<compile_context>
chip_gen: v7x
topology: tpu7x:2x2x1
jax: 0.10.0
libtpu: 0.0.40
codegen_flags: <defaults>
</compile_context>

<pallas_src>
import functools

import jax
import jax.numpy as jnp
from jax.experimental import pallas as pl
from jax.experimental.pallas import tpu as pltpu


_VMEM_LIMIT = 32 * 1024 * 1024  # safe scoped-VMEM budget on v5e / v6e / v7x


# ---------------------------------------------------------------------------
# Fused kernel: per batch tile  ->  QKV proj, IoU attention (all heads), out proj
# ---------------------------------------------------------------------------
def _fused_mhsa_kernel(x_ref, iou_ref, wqkv_ref, bqkv_ref, wout_ref, bout_ref,
                       o_ref, attn_scr, *, nhead, bblk):
    E = wout_ref.shape[0]
    hd = E // nhead

    wqkv = wqkv_ref[...]   # (E, 3E) bf16, VMEM-resident
    bqkv = bqkv_ref[...]   # (1, 3E) f32
    wout = wout_ref[...]   # (E, E)  bf16, VMEM-resident
    bout = bout_ref[...]   # (1, E)  f32

    for bb in range(bblk):                       # static unroll over the batch tile
        x = x_ref[bb]                            # (T, E) bf16
        iou = iou_ref[bb]                        # (T, S) f32

        # Fused QKV projection (1/sqrt(hd) already folded into the Q columns).
        qkv = jnp.dot(x, wqkv, preferred_element_type=jnp.float32) + bqkv   # (T, 3E) f32

        for h in range(nhead):                   # static per-head slices
            lo = h * hd
            qh = qkv[:, lo:lo + hd].astype(jnp.bfloat16)             # (T, hd)
            kh = qkv[:, E + lo:E + lo + hd].astype(jnp.bfloat16)     # (S, hd)
            vh = qkv[:, 2 * E + lo:2 * E + lo + hd].astype(jnp.bfloat16)

            # Contract last dims (MXU trans_b path) -- no explicit k transpose.
            s = jax.lax.dot_general(
                qh, kh, (((1,), (1,)), ((), ())),
                preferred_element_type=jnp.float32)                  # (T, S)
            # Overflow-safe exp; the row-max shift cancels in the normalization.
            s = s - jnp.max(s, axis=-1, keepdims=True)
            w = jnp.exp(s) * iou
            denom = jnp.sum(w, axis=-1, keepdims=True)
            denom = jnp.maximum(denom, 1e-30)    # guard all-zero iou rows
            w = w * pl.reciprocal(denom, approx=True)
            # dropout (p=0.1) is identity in eval mode.

            # Write this head's output straight into the (T, E) VMEM slab.
            attn_scr[:, lo:lo + hd] = jnp.dot(
                w.astype(jnp.bfloat16), vh,
                preferred_element_type=jnp.float32).astype(jnp.bfloat16)

        # Output projection from the lane-assembled slab; single MXU matmul.
        out = jnp.dot(attn_scr[...], wout, preferred_element_type=jnp.float32) + bout
        o_ref[bb] = out.astype(o_ref.dtype)


def pallas_fused_mhsa(x, ious, w_qkv, b_qkv, w_out, b_out, nhead, *, bblk=None):
    """x: (B, T, E) bf16; ious: (B, T, S) f32 -> (B, T, E) f32."""
    B, T, E = x.shape
    S = ious.shape[2]
    if bblk is None:
        bblk = 2 if (B % 2 == 0 and B >= 4) else 1   # keep >=2 parallel steps (v7x)
    assert B % bblk == 0
    kernel = functools.partial(_fused_mhsa_kernel, nhead=nhead, bblk=bblk)
    return pl.pallas_call(
        kernel,
        out_shape=jax.ShapeDtypeStruct((B, T, E), jnp.float32),
        grid=(B // bblk,),
        in_specs=[
            pl.BlockSpec((bblk, T, E), lambda b: (b, 0, 0)),
            pl.BlockSpec((bblk, T, S), lambda b: (b, 0, 0)),
            pl.BlockSpec((E, 3 * E), lambda b: (0, 0)),   # weights stay VMEM-resident
            pl.BlockSpec((1, 3 * E), lambda b: (0, 0)),
            pl.BlockSpec((E, E), lambda b: (0, 0)),
            pl.BlockSpec((1, E), lambda b: (0, 0)),
        ],
        out_specs=pl.BlockSpec((bblk, T, E), lambda b: (b, 0, 0)),
        scratch_shapes=[pltpu.VMEM((T, E), jnp.bfloat16)],
        compiler_params=pltpu.CompilerParams(
            dimension_semantics=("parallel",),
            vmem_limit_bytes=_VMEM_LIMIT,
        ),
    )(x, ious, w_qkv, b_qkv, w_out, b_out)


# ---------------------------------------------------------------------------
# Module wrapper
# ---------------------------------------------------------------------------
class MultiHeadSelfAttentionPallas:
    def __init__(self, d_model, nhead=8, dropout=0.1, key=None):
        assert d_model % nhead == 0
        self.embed_dim = d_model
        self.nhead = nhead
        self.head_dim = d_model // nhead
        self.dropout_p = dropout   # eval-mode: identity
        if key is None:
            key = jax.random.PRNGKey(0)
        k1, k2, k3, k4 = jax.random.split(key, 4)
        s = 1.0 / float(d_model) ** 0.5
        # PyTorch Linear stores weight as (out, in); we keep (in, out) for x @ W.
        # f32 masters (used by the pure-JAX reference)...
        self.w_qkv = jax.random.uniform(k1, (d_model, 3 * d_model), jnp.float32, -s, s)
        self.b_qkv = jax.random.uniform(k2, (1, 3 * d_model), jnp.float32, -s, s)
        self.w_out = jax.random.uniform(k3, (d_model, d_model), jnp.float32, -s, s)
        self.b_out = jax.random.uniform(k4, (1, d_model), jnp.float32, -s, s)
        # ...and bf16 kernel copies with 1/sqrt(head_dim) folded into the Q third
        # (free at init; removes a per-element VALU multiply per grid step).
        scaling = float(self.head_dim) ** (-0.5)
        self._w_qkv_bf16 = (
            self.w_qkv.at[:, :d_model].multiply(scaling).astype(jnp.bfloat16))
        self._b_qkv_s = self.b_qkv.at[:, :d_model].multiply(scaling)   # f32 bias
        self._w_out_bf16 = self.w_out.astype(jnp.bfloat16)

    def __call__(self, query, key, value, ious):
        # query/key/value: (T, B, E) with query == key == value (per module spec)
        T, B, E = query.shape
        # Batch-major, bf16 activations (halves the HBM read of x).
        x = query.transpose(1, 0, 2).astype(jnp.bfloat16)              # (B, T, E)
        out = pallas_fused_mhsa(x, ious, self._w_qkv_bf16, self._b_qkv_s,
                                self._w_out_bf16, self.b_out, self.nhead)
        return out.transpose(1, 0, 2)                                  # (T, B, E)


# ---------------------------------------------------------------------------
# Pure-JAX f32 reference (mirrors the PyTorch forward) for a sanity check.
# ---------------------------------------------------------------------------
def reference_forward(mod, query, key, value, ious):
    T, B, E = query.shape
    H, hd = mod.nhead, mod.head_dim
    scaling = float(hd) ** (-0.5)
    qkv = query.reshape(T * B, E) @ mod.w_qkv + mod.b_qkv
    q, k, v = jnp.split(qkv, 3, axis=-1)
    q = q * scaling

    def to_heads(t):
        return t.reshape(T, B, H, hd).transpose(1, 2, 0, 3).reshape(B * H, T, hd)

    q, k, v = to_heads(q), to_heads(k), to_heads(v)
    w = jnp.exp(jnp.einsum("btd,bsd->bts", q, k))
    w = w.reshape(B, H, T, T) * ious[:, None, :, :]
    w = w.reshape(B * H, T, T)
    w = w / jnp.sum(w, axis=-1, keepdims=True)
    o = jnp.einsum("bts,bsd->btd", w, v)
    o = o.reshape(B, H, T, hd).transpose(2, 0, 1, 3).reshape(T, B, E)
    return (o.reshape(T * B, E) @ mod.w_out + mod.b_out).reshape(T, B, E)


if __name__ == "__main__":
    d_model, nhead = 32, 8
    T, B = 64, 8     # grid = B // 2 = 4 parallel steps

    root = jax.random.PRNGKey(0)
    k_params, k_x, k_iou = jax.random.split(root, 3)

    mod = MultiHeadSelfAttentionPallas(d_model, nhead=nhead, key=k_params)

    x = jax.random.normal(k_x, (T, B, d_model), jnp.float32)
    # IoU-like matrix in (0.05, 1.0], strictly positive so normalization is safe.
    ious = jax.random.uniform(k_iou, (B, T, T), jnp.float32, 0.05, 1.0)

    out = mod(x, x, x, ious)
    out = jax.block_until_ready(out)

    ref = reference_forward(mod, x, x, x, ious)
    assert out.shape == (T, B, d_model)
    # bf16 MXU operands / activations + approx reciprocal vs. pure-f32 reference.
    assert jnp.allclose(out, ref, atol=2e-2, rtol=2e-2), "mismatch vs reference"

    print("KERNEL_OK")
</pallas_src>

<mosaic_0001>
module attributes {stable_mosaic.version = 11 : i64} {
  func.func @_fused_mhsa_kernel(%arg0: i32, %arg1: memref<2x64x32xbf16, #tpu.memory_space<vmem>>, %arg2: memref<2x64x64xf32, #tpu.memory_space<vmem>>, %arg3: memref<32x96xbf16, #tpu.memory_space<vmem>>, %arg4: memref<1x96xf32, #tpu.memory_space<vmem>>, %arg5: memref<32x32xbf16, #tpu.memory_space<vmem>>, %arg6: memref<1x32xf32, #tpu.memory_space<vmem>>, %arg7: memref<2x64x32xf32, #tpu.memory_space<vmem>>, %arg8: memref<64x32xbf16, #tpu.memory_space<vmem>>) attributes {dimension_semantics = [#tpu.dimension_semantics<parallel>], iteration_bounds = array<i64: 4>, scalar_prefetch = 0 : i64, scratch_operands = 1 : i64, tpu.core_type = #tpu.core_type<tc>, window_params = [{transform_indices = @transform_0, window_bounds = array<i64: 2, 64, 32>}, {transform_indices = @transform_1, window_bounds = array<i64: 2, 64, 64>}, {pipeline_mode = #tpu.pipeline_mode<synchronous>, transform_indices = @transform_2, window_bounds = array<i64: 32, 96>}, {pipeline_mode = #tpu.pipeline_mode<synchronous>, transform_indices = @transform_3, window_bounds = array<i64: 1, 96>}, {pipeline_mode = #tpu.pipeline_mode<synchronous>, transform_indices = @transform_4, window_bounds = array<i64: 32, 32>}, {pipeline_mode = #tpu.pipeline_mode<synchronous>, transform_indices = @transform_5, window_bounds = array<i64: 1, 32>}, {transform_indices = @transform_6, window_bounds = array<i64: 2, 64, 32>}]} {
    %c0 = arith.constant 0 : index
    %c0_0 = arith.constant 0 : index
    %0 = vector.load %arg3[%c0, %c0_0] : memref<32x96xbf16, #tpu.memory_space<vmem>>, vector<32x96xbf16>
    %c0_1 = arith.constant 0 : index
    %c0_2 = arith.constant 0 : index
    %1 = vector.load %arg4[%c0_1, %c0_2] : memref<1x96xf32, #tpu.memory_space<vmem>>, vector<1x96xf32>
    %c0_3 = arith.constant 0 : index
    %c0_4 = arith.constant 0 : index
    %2 = vector.load %arg5[%c0_3, %c0_4] : memref<32x32xbf16, #tpu.memory_space<vmem>>, vector<32x32xbf16>
    %c0_5 = arith.constant 0 : index
    %c0_6 = arith.constant 0 : index
    %3 = vector.load %arg6[%c0_5, %c0_6] : memref<1x32xf32, #tpu.memory_space<vmem>>, vector<1x32xf32>
    %c0_7 = arith.constant 0 : index
    %c0_8 = arith.constant 0 : index
    %c0_9 = arith.constant 0 : index
    %4 = vector.load %arg1[%c0_7, %c0_8, %c0_9] : memref<2x64x32xbf16, #tpu.memory_space<vmem>>, vector<1x64x32xbf16>
    %5 = vector.shape_cast %4 : vector<1x64x32xbf16> to vector<64x32xbf16>
    %c0_10 = arith.constant 0 : index
    %c0_11 = arith.constant 0 : index
    %c0_12 = arith.constant 0 : index
    %6 = vector.load %arg2[%c0_10, %c0_11, %c0_12] : memref<2x64x64xf32, #tpu.memory_space<vmem>>, vector<1x64x64xf32>
    %7 = vector.shape_cast %6 : vector<1x64x64xf32> to vector<64x64xf32>
    %cst = arith.constant dense<0.000000e+00> : vector<64x96xf32>
    %8 = tpu.matmul %5, %0, %cst {dimension_numbers = #tpu.dot_dimension_numbers<[1], [0], [0], [1], [0, 0, 1, 1], [], []>} : vector<64x32xbf16>, vector<32x96xbf16>, vector<64x96xf32> -> vector<64x96xf32>
    %9 = vector.broadcast %1 : vector<1x96xf32> to vector<64x96xf32>
    %10 = arith.addf %8, %9 : vector<64x96xf32>
    %11 = vector.extract_strided_slice %10 {offsets = [0, 0], sizes = [64, 4], strides = [1, 1]} : vector<64x96xf32> to vector<64x4xf32>
    %12 = arith.truncf %11 : vector<64x4xf32> to vector<64x4xbf16>
    %13 = vector.extract_strided_slice %10 {offsets = [0, 32], sizes = [64, 4], strides = [1, 1]} : vector<64x96xf32> to vector<64x4xf32>
    %14 = arith.truncf %13 : vector<64x4xf32> to vector<64x4xbf16>
    %15 = vector.extract_strided_slice %10 {offsets = [0, 64], sizes = [64, 4], strides = [1, 1]} : vector<64x96xf32> to vector<64x4xf32>
    %16 = arith.truncf %15 : vector<64x4xf32> to vector<64x4xbf16>
    %cst_13 = arith.constant dense<0.000000e+00> : vector<64x64xf32>
    %17 = tpu.matmul %12, %14, %cst_13 {dimension_numbers = #tpu.dot_dimension_numbers<[1], [1], [0], [0], [0, 0, 1, 0], [], []>} : vector<64x4xbf16>, vector<64x4xbf16>, vector<64x64xf32> -> vector<64x64xf32>
    %cst_14 = arith.constant dense<0xFF800000> : vector<64xf32>
    %18 = vector.multi_reduction <maximumf>, %17, %cst_14 [1] : vector<64x64xf32> to vector<64xf32>
    %19 = vector.shape_cast %18 : vector<64xf32> to vector<64x1xf32>
    %20 = vector.broadcast %19 : vector<64x1xf32> to vector<64x64xf32>
    %21 = arith.subf %17, %20 : vector<64x64xf32>
    %22 = math.exp %21 : vector<64x64xf32>
    %23 = arith.mulf %22, %7 : vector<64x64xf32>
    %cst_15 = arith.constant dense<0.000000e+00> : vector<64xf32>
    %24 = vector.multi_reduction <add>, %23, %cst_15 [1] : vector<64x64xf32> to vector<64xf32>
    %25 = vector.shape_cast %24 : vector<64xf32> to vector<64x1xf32>
    %cst_16 = arith.constant 1.000000e-30 : f32
    %26 = vector.broadcast %cst_16 : f32 to vector<64x1xf32>
    %27 = arith.maximumf %25, %26 : vector<64x1xf32>
    %28 = tpu.reciprocal %27 {approx = true} : vector<64x1xf32> -> vector<64x1xf32>
    %29 = vector.broadcast %28 : vector<64x1xf32> to vector<64x64xf32>
    %30 = arith.mulf %23, %29 : vector<64x64xf32>
    %31 = arith.truncf %30 : vector<64x64xf32> to vector<64x64xbf16>
    %cst_17 = arith.constant dense<0.000000e+00> : vector<64x4xf32>
    %32 = tpu.matmul %31, %16, %cst_17 {dimension_numbers = #tpu.dot_dimension_numbers<[1], [0], [0], [1], [0, 0, 1, 1], [], []>} : vector<64x64xbf16>, vector<64x4xbf16>, vector<64x4xf32> -> vector<64x4xf32>
    %33 = arith.truncf %32 : vector<64x4xf32> to vector<64x4xbf16>
    %c0_18 = arith.constant 0 : index
    %c0_19 = arith.constant 0 : index
    %34 = vector.load %arg8[%c0_18, %c0_19] : memref<64x32xbf16, #tpu.memory_space<vmem>>, vector<64x4xbf16>
    tpu.vector_store %arg8[%c0_18, %c0_19], %33 {strides = array<i32>} : memref<64x32xbf16, #tpu.memory_space<vmem>>, vector<64x4xbf16>,
    %35 = vector.extract_strided_slice %10 {offsets = [0, 4], sizes = [64, 4], strides = [1, 1]} : vector<64x96xf32> to vector<64x4xf32>
    %36 = arith.truncf %35 : vector<64x4xf32> to vector<64x4xbf16>
    %37 = vector.extract_strided_slice %10 {offsets = [0, 36], sizes = [64, 4], strides = [1, 1]} : vector<64x96xf32> to vector<64x4xf32>
    %38 = arith.truncf %37 : vector<64x4xf32> to vector<64x4xbf16>
    %39 = vector.extract_strided_slice %10 {offsets = [0, 68], sizes = [64, 4], strides = [1, 1]} : vector<64x96xf32> to vector<64x4xf32>
    %40 = arith.truncf %39 : vector<64x4xf32> to vector<64x4xbf16>
    %cst_20 = arith.constant dense<0.000000e+00> : vector<64x64xf32>
    %41 = tpu.matmul %36, %38, %cst_20 {dimension_numbers = #tpu.dot_dimension_numbers<[1], [1], [0], [0], [0, 0, 1, 0], [], []>} : vector<64x4xbf16>, vector<64x4xbf16>, vector<64x64xf32> -> vector<64x64xf32>
    %cst_21 = arith.constant dense<0xFF800000> : vector<64xf32>
    %42 = vector.multi_reduction <maximumf>, %41, %cst_21 [1] : vector<64x64xf32> to vector<64xf32>
    %43 = vector.shape_cast %42 : vector<64xf32> to vector<64x1xf32>
    %44 = vector.broadcast %43 : vector<64x1xf32> to vector<64x64xf32>
    %45 = arith.subf %41, %44 : vector<64x64xf32>
    %46 = math.exp %45 : vector<64x64xf32>
    %47 = arith.mulf %46, %7 : vector<64x64xf32>
    %cst_22 = arith.constant dense<0.000000e+00> : vector<64xf32>
    %48 = vector.multi_reduction <add>, %47, %cst_22 [1] : vector<64x64xf32> to vector<64xf32>
    %49 = vector.shape_cast %48 : vector<64xf32> to vector<64x1xf32>
    %cst_23 = arith.constant 1.000000e-30 : f32
    %50 = vector.broadcast %cst_23 : f32 to vector<64x1xf32>
    %51 = arith.maximumf %49, %50 : vector<64x1xf32>
    %52 = tpu.reciprocal %51 {approx = true} : vector<64x1xf32> -> vector<64x1xf32>
    %53 = vector.broadcast %52 : vector<64x1xf32> to vector<64x64xf32>
    %54 = arith.mulf %47, %53 : vector<64x64xf32>
    %55 = arith.truncf %54 : vector<64x64xf32> to vector<64x64xbf16>
    %cst_24 = arith.constant dense<0.000000e+00> : vector<64x4xf32>
    %56 = tpu.matmul %55, %40, %cst_24 {dimension_numbers = #tpu.dot_dimension_numbers<[1], [0], [0], [1], [0, 0, 1, 1], [], []>} : vector<64x64xbf16>, vector<64x4xbf16>, vector<64x4xf32> -> vector<64x4xf32>
    %57 = arith.truncf %56 : vector<64x4xf32> to vector<64x4xbf16>
    %c0_25 = arith.constant 0 : index
    %c4 = arith.constant 4 : index
    %58 = vector.load %arg8[%c0_25, %c4] : memref<64x32xbf16, #tpu.memory_space<vmem>>, vector<64x4xbf16>
    tpu.vector_store %arg8[%c0_25, %c4], %57 {strides = array<i32>} : memref<64x32xbf16, #tpu.memory_space<vmem>>, vector<64x4xbf16>,
    %59 = vector.extract_strided_slice %10 {offsets = [0, 8], sizes = [64, 4], strides = [1, 1]} : vector<64x96xf32> to vector<64x4xf32>
    %60 = arith.truncf %59 : vector<64x4xf32> to vector<64x4xbf16>
    %61 = vector.extract_strided_slice %10 {offsets = [0, 40], sizes = [64, 4], strides = [1, 1]} : vector<64x96xf32> to vector<64x4xf32>
    %62 = arith.truncf %61 : vector<64x4xf32> to vector<64x4xbf16>
    %63 = vector.extract_strided_slice %10 {offsets = [0, 72], sizes = [64, 4], strides = [1, 1]} : vector<64x96xf32> to vector<64x4xf32>
    %64 = arith.truncf %63 : vector<64x4xf32> to vector<64x4xbf16>
    %cst_26 = arith.constant dense<0.000000e+00> : vector<64x64xf32>
    %65 = tpu.matmul %60, %62, %cst_26 {dimension_numbers = #tpu.dot_dimension_numbers<[1], [1], [0], [0], [0, 0, 1, 0], [], []>} : vector<64x4xbf16>, vector<64x4xbf16>, vector<64x64xf32> -> vector<64x64xf32>
    %cst_27 = arith.constant dense<0xFF800000> : vector<64xf32>
    %66 = vector.multi_reduction <maximumf>, %65, %cst_27 [1] : vector<64x64xf32> to vector<64xf32>
    %67 = vector.shape_cast %66 : vector<64xf32> to vector<64x1xf32>
    %68 = vector.broadcast %67 : vector<64x1xf32> to vector<64x64xf32>
    %69 = arith.subf %65, %68 : vector<64x64xf32>
    %70 = math.exp %69 : vector<64x64xf32>
    %71 = arith.mulf %70, %7 : vector<64x64xf32>
    %cst_28 = arith.constant dense<0.000000e+00> : vector<64xf32>
    %72 = vector.multi_reduction <add>, %71, %cst_28 [1] : vector<64x64xf32> to vector<64xf32>
    %73 = vector.shape_cast %72 : vector<64xf32> to vector<64x1xf32>
    %cst_29 = arith.constant 1.000000e-30 : f32
    %74 = vector.broadcast %cst_29 : f32 to vector<64x1xf32>
    %75 = arith.maximumf %73, %74 : vector<64x1xf32>
    %76 = tpu.reciprocal %75 {approx = true} : vector<64x1xf32> -> vector<64x1xf32>
    %77 = vector.broadcast %76 : vector<64x1xf32> to vector<64x64xf32>
    %78 = arith.mulf %71, %77 : vector<64x64xf32>
    %79 = arith.truncf %78 : vector<64x64xf32> to vector<64x64xbf16>
    %cst_30 = arith.constant dense<0.000000e+00> : vector<64x4xf32>
    %80 = tpu.matmul %79, %64, %cst_30 {dimension_numbers = #tpu.dot_dimension_numbers<[1], [0], [0], [1], [0, 0, 1, 1], [], []>} : vector<64x64xbf16>, vector<64x4xbf16>, vector<64x4xf32> -> vector<64x4xf32>
    %81 = arith.truncf %80 : vector<64x4xf32> to vector<64x4xbf16>
    %c0_31 = arith.constant 0 : index
    %c8 = arith.constant 8 : index
    %82 = vector.load %arg8[%c0_31, %c8] : memref<64x32xbf16, #tpu.memory_space<vmem>>, vector<64x4xbf16>
    tpu.vector_store %arg8[%c0_31, %c8], %81 {strides = array<i32>} : memref<64x32xbf16, #tpu.memory_space<vmem>>, vector<64x4xbf16>,
    %83 = vector.extract_strided_slice %10 {offsets = [0, 12], sizes = [64, 4], strides = [1, 1]} : vector<64x96xf32> to vector<64x4xf32>
    %84 = arith.truncf %83 : vector<64x4xf32> to vector<64x4xbf16>
    %85 = vector.extract_strided_slice %10 {offsets = [0, 44], sizes = [64, 4], strides = [1, 1]} : vector<64x96xf32> to vector<64x4xf32>
    %86 = arith.truncf %85 : vector<64x4xf32> to vector<64x4xbf16>
    %87 = vector.extract_strided_slice %10 {offsets = [0, 76], sizes = [64, 4], strides = [1, 1]} : vector<64x96xf32> to vector<64x4xf32>
    %88 = arith.truncf %87 : vector<64x4xf32> to vector<64x4xbf16>
    %cst_32 = arith.constant dense<0.000000e+00> : vector<64x64xf32>
    %89 = tpu.matmul %84, %86, %cst_32 {dimension_numbers = #tpu.dot_dimension_numbers<[1], [1], [0], [0], [0, 0, 1, 0], [], []>} : vector<64x4xbf16>, vector<64x4xbf16>, vector<64x64xf32> -> vector<64x64xf32>
    %cst_33 = arith.constant dense<0xFF800000> : vector<64xf32>
    %90 = vector.multi_reduction <maximumf>, %89, %cst_33 [1] : vector<64x64xf32> to vector<64xf32>
    %91 = vector.shape_cast %90 : vector<64xf32> to vector<64x1xf32>
    %92 = vector.broadcast %91 : vector<64x1xf32> to vector<64x64xf32>
    %93 = arith.subf %89, %92 : vector<64x64xf32>
    %94 = math.exp %93 : vector<64x64xf32>
    %95 = arith.mulf %94, %7 : vector<64x64xf32>
    %cst_34 = arith.constant dense<0.000000e+00> : vector<64xf32>
    %96 = vector.multi_reduction <add>, %95, %cst_34 [1] : vector<64x64xf32> to vector<64xf32>
    %97 = vector.shape_cast %96 : vector<64xf32> to vector<64x1xf32>
    %cst_35 = arith.constant 1.000000e-30 : f32
    %98 = vector.broadcast %cst_35 : f32 to vector<64x1xf32>
    %99 = arith.maximumf %97, %98 : vector<64x1xf32>
    %100 = tpu.reciprocal %99 {approx = true} : vector<64x1xf32> -> vector<64x1xf32>
    %101 = vector.broadcast %100 : vector<64x1xf32> to vector<64x64xf32>
    %102 = arith.mulf %95, %101 : vector<64x64xf32>
    %103 = arith.truncf %102 : vector<64x64xf32> to vector<64x64xbf16>
    %cst_36 = arith.constant dense<0.000000e+00> : vector<64x4xf32>
    %104 = tpu.matmul %103, %88, %cst_36 {dimension_numbers = #tpu.dot_dimension_numbers<[1], [0], [0], [1], [0, 0, 1, 1], [], []>} : vector<64x64xbf16>, vector<64x4xbf16>, vector<64x4xf32> -> vector<64x4xf32>
    %105 = arith.truncf %104 : vector<64x4xf32> to vector<64x4xbf16>
    %c0_37 = arith.constant 0 : index
    %c12 = arith.constant 12 : index
    %106 = vector.load %arg8[%c0_37, %c12] : memref<64x32xbf16, #tpu.memory_space<vmem>>, vector<64x4xbf16>
    tpu.vector_store %arg8[%c0_37, %c12], %105 {strides = array<i32>} : memref<64x32xbf16, #tpu.memory_space<vmem>>, vector<64x4xbf16>,
    %107 = vector.extract_strided_slice %10 {offsets = [0, 16], sizes = [64, 4], strides = [1, 1]} : vector<64x96xf32> to vector<64x4xf32>
    %108 = arith.truncf %107 : vector<64x4xf32> to vector<64x4xbf16>
    %109 = vector.extract_strided_slice %10 {offsets = [0, 48], sizes = [64, 4], strides = [1, 1]} : vector<64x96xf32> to vector<64x4xf32>
    %110 = arith.truncf %109 : vector<64x4xf32> to vector<64x4xbf16>
    %111 = vector.extract_strided_slice %10 {offsets = [0, 80], sizes = [64, 4], strides = [1, 1]} : vector<64x96xf32> to vector<64x4xf32>
    %112 = arith.truncf %111 : vector<64x4xf32> to vector<64x4xbf16>
    %cst_38 = arith.constant dense<0.000000e+00> : vector<64x64xf32>
    %113 = tpu.matmul %108, %110, %cst_38 {dimension_numbers = #tpu.dot_dimension_numbers<[1], [1], [0], [0], [0, 0, 1, 0], [], []>} : vector<64x4xbf16>, vector<64x4xbf16>, vector<64x64xf32> -> vector<64x64xf32>
    %cst_39 = arith.constant dense<0xFF800000> : vector<64xf32>
    %114 = vector.multi_reduction <maximumf>, %113, %cst_39 [1] : vector<64x64xf32> to vector<64xf32>
    %115 = vector.shape_cast %114 : vector<64xf32> to vector<64x1xf32>
    %116 = vector.broadcast %115 : vector<64x1xf32> to vector<64x64xf32>
    %117 = arith.subf %113, %116 : vector<64x64xf32>
    %118 = math.exp %117 : vector<64x64xf32>
    %119 = arith.mulf %118, %7 : vector<64x64xf32>
    %cst_40 = arith.constant dense<0.000000e+00> : vector<64xf32>
    %120 = vector.multi_reduction <add>, %119, %cst_40 [1] : vector<64x64xf32> to vector<64xf32>
    %121 = vector.shape_cast %120 : vector<64xf32> to vector<64x1xf32>
    %cst_41 = arith.constant 1.000000e-30 : f32
    %122 = vector.broadcast %cst_41 : f32 to vector<64x1xf32>
    %123 = arith.maximumf %121, %122 : vector<64x1xf32>
    %124 = tpu.reciprocal %123 {approx = true} : vector<64x1xf32> -> vector<64x1xf32>
    %125 = vector.broadcast %124 : vector<64x1xf32> to vector<64x64xf32>
    %126 = arith.mulf %119, %125 : vector<64x64xf32>
    %127 = arith.truncf %126 : vector<64x64xf32> to vector<64x64xbf16>
    %cst_42 = arith.constant dense<0.000000e+00> : vector<64x4xf32>
    %128 = tpu.matmul %127, %112, %cst_42 {dimension_numbers = #tpu.dot_dimension_numbers<[1], [0], [0], [1], [0, 0, 1, 1], [], []>} : vector<64x64xbf16>, vector<64x4xbf16>, vector<64x4xf32> -> vector<64x4xf32>
    %129 = arith.truncf %128 : vector<64x4xf32> to vector<64x4xbf16>
    %c0_43 = arith.constant 0 : index
    %c16 = arith.constant 16 : index
    %130 = vector.load %arg8[%c0_43, %c16] : memref<64x32xbf16, #tpu.memory_space<vmem>>, vector<64x4xbf16>
    tpu.vector_store %arg8[%c0_43, %c16], %129 {strides = array<i32>} : memref<64x32xbf16, #tpu.memory_space<vmem>>, vector<64x4xbf16>,
    %131 = vector.extract_strided_slice %10 {offsets = [0, 20], sizes = [64, 4], strides = [1, 1]} : vector<64x96xf32> to vector<64x4xf32>
    %132 = arith.truncf %131 : vector<64x4xf32> to vector<64x4xbf16>
    %133 = vector.extract_strided_slice %10 {offsets = [0, 52], sizes = [64, 4], strides = [1, 1]} : vector<64x96xf32> to vector<64x4xf32>
    %134 = arith.truncf %133 : vector<64x4xf32> to vector<64x4xbf16>
    %135 = vector.extract_strided_slice %10 {offsets = [0, 84], sizes = [64, 4], strides = [1, 1]} : vector<64x96xf32> to vector<64x4xf32>
    %136 = arith.truncf %135 : vector<64x4xf32> to vector<64x4xbf16>
    %cst_44 = arith.constant dense<0.000000e+00> : vector<64x64xf32>
    %137 = tpu.matmul %132, %134, %cst_44 {dimension_numbers = #tpu.dot_dimension_numbers<[1], [1], [0], [0], [0, 0, 1, 0], [], []>} : vector<64x4xbf16>, vector<64x4xbf16>, vector<64x64xf32> -> vector<64x64xf32>
    %cst_45 = arith.constant dense<0xFF800000> : vector<64xf32>
    %138 = vector.multi_reduction <maximumf>, %137, %cst_45 [1] : vector<64x64xf32> to vector<64xf32>
    %139 = vector.shape_cast %138 : vector<64xf32> to vector<64x1xf32>
    %140 = vector.broadcast %139 : vector<64x1xf32> to vector<64x64xf32>
    %141 = arith.subf %137, %140 : vector<64x64xf32>
    %142 = math.exp %141 : vector<64x64xf32>
    %143 = arith.mulf %142, %7 : vector<64x64xf32>
    %cst_46 = arith.constant dense<0.000000e+00> : vector<64xf32>
    %144 = vector.multi_reduction <add>, %143, %cst_46 [1] : vector<64x64xf32> to vector<64xf32>
    %145 = vector.shape_cast %144 : vector<64xf32> to vector<64x1xf32>
    %cst_47 = arith.constant 1.000000e-30 : f32
    %146 = vector.broadcast %cst_47 : f32 to vector<64x1xf32>
    %147 = arith.maximumf %145, %146 : vector<64x1xf32>
    %148 = tpu.reciprocal %147 {approx = true} : vector<64x1xf32> -> vector<64x1xf32>
    %149 = vector.broadcast %148 : vector<64x1xf32> to vector<64x64xf32>
    %150 = arith.mulf %143, %149 : vector<64x64xf32>
    %151 = arith.truncf %150 : vector<64x64xf32> to vector<64x64xbf16>
    %cst_48 = arith.constant dense<0.000000e+00> : vector<64x4xf32>
    %152 = tpu.matmul %151, %136, %cst_48 {dimension_numbers = #tpu.dot_dimension_numbers<[1], [0], [0], [1], [0, 0, 1, 1], [], []>} : vector<64x64xbf16>, vector<64x4xbf16>, vector<64x4xf32> -> vector<64x4xf32>
    %153 = arith.truncf %152 : vector<64x4xf32> to vector<64x4xbf16>
    %c0_49 = arith.constant 0 : index
    %c20 = arith.constant 20 : index
    %154 = vector.load %arg8[%c0_49, %c20] : memref<64x32xbf16, #tpu.memory_space<vmem>>, vector<64x4xbf16>
    tpu.vector_store %arg8[%c0_49, %c20], %153 {strides = array<i32>} : memref<64x32xbf16, #tpu.memory_space<vmem>>, vector<64x4xbf16>,
    %155 = vector.extract_strided_slice %10 {offsets = [0, 24], sizes = [64, 4], strides = [1, 1]} : vector<64x96xf32> to vector<64x4xf32>
    %156 = arith.truncf %155 : vector<64x4xf32> to vector<64x4xbf16>
    %157 = vector.extract_strided_slice %10 {offsets = [0, 56], sizes = [64, 4], strides = [1, 1]} : vector<64x96xf32> to vector<64x4xf32>
    %158 = arith.truncf %157 : vector<64x4xf32> to vector<64x4xbf16>
    %159 = vector.extract_strided_slice %10 {offsets = [0, 88], sizes = [64, 4], strides = [1, 1]} : vector<64x96xf32> to vector<64x4xf32>
    %160 = arith.truncf %159 : vector<64x4xf32> to vector<64x4xbf16>
    %cst_50 = arith.constant dense<0.000000e+00> : vector<64x64xf32>
    %161 = tpu.matmul %156, %158, %cst_50 {dimension_numbers = #tpu.dot_dimension_numbers<[1], [1], [0], [0], [0, 0, 1, 0], [], []>} : vector<64x4xbf16>, vector<64x4xbf16>, vector<64x64xf32> -> vector<64x64xf32>
    %cst_51 = arith.constant dense<0xFF800000> : vector<64xf32>
    %162 = vector.multi_reduction <maximumf>, %161, %cst_51 [1] : vector<64x64xf32> to vector<64xf32>
    %163 = vector.shape_cast %162 : vector<64xf32> to vector<64x1xf32>
    %164 = vector.broadcast %163 : vector<64x1xf32> to vector<64x64xf32>
    %165 = arith.subf %161, %164 : vector<64x64xf32>
    %166 = math.exp %165 : vector<64x64xf32>
    %167 = arith.mulf %166, %7 : vector<64x64xf32>
    %cst_52 = arith.constant dense<0.000000e+00> : vector<64xf32>
    %168 = vector.multi_reduction <add>, %167, %cst_52 [1] : vector<64x64xf32> to vector<64xf32>
    %169 = vector.shape_cast %168 : vector<64xf32> to vector<64x1xf32>
    %cst_53 = arith.constant 1.000000e-30 : f32
    %170 = vector.broadcast %cst_53 : f32 to vector<64x1xf32>
    %171 = arith.maximumf %169, %170 : vector<64x1xf32>
    %172 = tpu.reciprocal %171 {approx = true} : vector<64x1xf32> -> vector<64x1xf32>
    %173 = vector.broadcast %172 : vector<64x1xf32> to vector<64x64xf32>
    %174 = arith.mulf %167, %173 : vector<64x64xf32>
    %175 = arith.truncf %174 : vector<64x64xf32> to vector<64x64xbf16>
    %cst_54 = arith.constant dense<0.000000e+00> : vector<64x4xf32>
    %176 = tpu.matmul %175, %160, %cst_54 {dimension_numbers = #tpu.dot_dimension_numbers<[1], [0], [0], [1], [0, 0, 1, 1], [], []>} : vector<64x64xbf16>, vector<64x4xbf16>, vector<64x4xf32> -> vector<64x4xf32>
    %177 = arith.truncf %176 : vector<64x4xf32> to vector<64x4xbf16>
    %c0_55 = arith.constant 0 : index
    %c24 = arith.constant 24 : index
    %178 = vector.load %arg8[%c0_55, %c24] : memref<64x32xbf16, #tpu.memory_space<vmem>>, vector<64x4xbf16>
    tpu.vector_store %arg8[%c0_55, %c24], %177 {strides = array<i32>} : memref<64x32xbf16, #tpu.memory_space<vmem>>, vector<64x4xbf16>,
    %179 = vector.extract_strided_slice %10 {offsets = [0, 28], sizes = [64, 4], strides = [1, 1]} : vector<64x96xf32> to vector<64x4xf32>
    %180 = arith.truncf %179 : vector<64x4xf32> to vector<64x4xbf16>
    %181 = vector.extract_strided_slice %10 {offsets = [0, 60], sizes = [64, 4], strides = [1, 1]} : vector<64x96xf32> to vector<64x4xf32>
    %182 = arith.truncf %181 : vector<64x4xf32> to vector<64x4xbf16>
    %183 = vector.extract_strided_slice %10 {offsets = [0, 92], sizes = [64, 4], strides = [1, 1]} : vector<64x96xf32> to vector<64x4xf32>
    %184 = arith.truncf %183 : vector<64x4xf32> to vector<64x4xbf16>
    %cst_56 = arith.constant dense<0.000000e+00> : vector<64x64xf32>
    %185 = tpu.matmul %180, %182, %cst_56 {dimension_numbers = #tpu.dot_dimension_numbers<[1], [1], [0], [0], [0, 0, 1, 0], [], []>} : vector<64x4xbf16>, vector<64x4xbf16>, vector<64x64xf32> -> vector<64x64xf32>
    %cst_57 = arith.constant dense<0xFF800000> : vector<64xf32>
    %186 = vector.multi_reduction <maximumf>, %185, %cst_57 [1] : vector<64x64xf32> to vector<64xf32>
    %187 = vector.shape_cast %186 : vector<64xf32> to vector<64x1xf32>
    %188 = vector.broadcast %187 : vector<64x1xf32> to vector<64x64xf32>
    %189 = arith.subf %185, %188 : vector<64x64xf32>
    %190 = math.exp %189 : vector<64x64xf32>
    %191 = arith.mulf %190, %7 : vector<64x64xf32>
    %cst_58 = arith.constant dense<0.000000e+00> : vector<64xf32>
    %192 = vector.multi_reduction <add>, %191, %cst_58 [1] : vector<64x64xf32> to vector<64xf32>
    %193 = vector.shape_cast %192 : vector<64xf32> to vector<64x1xf32>
    %cst_59 = arith.constant 1.000000e-30 : f32
    %194 = vector.broadcast %cst_59 : f32 to vector<64x1xf32>
    %195 = arith.maximumf %193, %194 : vector<64x1xf32>
    %196 = tpu.reciprocal %195 {approx = true} : vector<64x1xf32> -> vector<64x1xf32>
    %197 = vector.broadcast %196 : vector<64x1xf32> to vector<64x64xf32>
    %198 = arith.mulf %191, %197 : vector<64x64xf32>
    %199 = arith.truncf %198 : vector<64x64xf32> to vector<64x64xbf16>
    %cst_60 = arith.constant dense<0.000000e+00> : vector<64x4xf32>
    %200 = tpu.matmul %199, %184, %cst_60 {dimension_numbers = #tpu.dot_dimension_numbers<[1], [0], [0], [1], [0, 0, 1, 1], [], []>} : vector<64x64xbf16>, vector<64x4xbf16>, vector<64x4xf32> -> vector<64x4xf32>
    %201 = arith.truncf %200 : vector<64x4xf32> to vector<64x4xbf16>
    %c0_61 = arith.constant 0 : index
    %c28 = arith.constant 28 : index
    %202 = vector.load %arg8[%c0_61, %c28] : memref<64x32xbf16, #tpu.memory_space<vmem>>, vector<64x4xbf16>
    tpu.vector_store %arg8[%c0_61, %c28], %201 {strides = array<i32>} : memref<64x32xbf16, #tpu.memory_space<vmem>>, vector<64x4xbf16>,
    %c0_62 = arith.constant 0 : index
    %c0_63 = arith.constant 0 : index
    %203 = vector.load %arg8[%c0_62, %c0_63] : memref<64x32xbf16, #tpu.memory_space<vmem>>, vector<64x32xbf16>
    %cst_64 = arith.constant dense<0.000000e+00> : vector<64x32xf32>
    %204 = tpu.matmul %203, %2, %cst_64 {dimension_numbers = #tpu.dot_dimension_numbers<[1], [0], [0], [1], [0, 0, 1, 1], [], []>} : vector<64x32xbf16>, vector<32x32xbf16>, vector<64x32xf32> -> vector<64x32xf32>
    %205 = vector.broadcast %3 : vector<1x32xf32> to vector<64x32xf32>
    %206 = arith.addf %204, %205 : vector<64x32xf32>
    %c0_65 = arith.constant 0 : index
    %c0_66 = arith.constant 0 : index
    %c0_67 = arith.constant 0 : index
    %207 = vector.load %arg7[%c0_65, %c0_66, %c0_67] : memref<2x64x32xf32, #tpu.memory_space<vmem>>, vector<1x64x32xf32>
    %208 = vector.shape_cast %207 : vector<1x64x32xf32> to vector<64x32xf32>
    %209 = vector.shape_cast %206 : vector<64x32xf32> to vector<1x64x32xf32>
    tpu.vector_store %arg7[%c0_65, %c0_66, %c0_67], %209 {strides = array<i32>} : memref<2x64x32xf32, #tpu.memory_space<vmem>>, vector<1x64x32xf32>,
    %c1 = arith.constant 1 : index
    %c0_68 = arith.constant 0 : index
    %c0_69 = arith.constant 0 : index
    %210 = vector.load %arg1[%c1, %c0_68, %c0_69] : memref<2x64x32xbf16, #tpu.memory_space<vmem>>, vector<1x64x32xbf16>
    %211 = vector.shape_cast %210 : vector<1x64x32xbf16> to vector<64x32xbf16>
    %c1_70 = arith.constant 1 : index
    %c0_71 = arith.constant 0 : index
    %c0_72 = arith.constant 0 : index
    %212 = vector.load %arg2[%c1_70, %c0_71, %c0_72] : memref<2x64x64xf32, #tpu.memory_space<vmem>>, vector<1x64x64xf32>
    %213 = vector.shape_cast %212 : vector<1x64x64xf32> to vector<64x64xf32>
    %cst_73 = arith.constant dense<0.000000e+00> : vector<64x96xf32>
    %214 = tpu.matmul %211, %0, %cst_73 {dimension_numbers = #tpu.dot_dimension_numbers<[1], [0], [0], [1], [0, 0, 1, 1], [], []>} : vector<64x32xbf16>, vector<32x96xbf16>, vector<64x96xf32> -> vector<64x96xf32>
    %215 = vector.broadcast %1 : vector<1x96xf32> to vector<64x96xf32>
    %216 = arith.addf %214, %215 : vector<64x96xf32>
    %217 = vector.extract_strided_slice %216 {offsets = [0, 0], sizes = [64, 4], strides = [1, 1]} : vector<64x96xf32> to vector<64x4xf32>
    %218 = arith.truncf %217 : vector<64x4xf32> to vector<64x4xbf16>
    %219 = vector.extract_strided_slice %216 {offsets = [0, 32], sizes = [64, 4], strides = [1, 1]} : vector<64x96xf32> to vector<64x4xf32>
    %220 = arith.truncf %219 : vector<64x4xf32> to vector<64x4xbf16>
    %221 = vector.extract_strided_slice %216 {offsets = [0, 64], sizes = [64, 4], strides = [1, 1]} : vector<64x96xf32> to vector<64x4xf32>
    %222 = arith.truncf %221 : vector<64x4xf32> to vector<64x4xbf16>
    %cst_74 = arith.constant dense<0.000000e+00> : vector<64x64xf32>
    %223 = tpu.matmul %218, %220, %cst_74 {dimension_numbers = #tpu.dot_dimension_numbers<[1], [1], [0], [0], [0, 0, 1, 0], [], []>} : vector<64x4xbf16>, vector<64x4xbf16>, vector<64x64xf32> -> vector<64x64xf32>
    %cst_75 = arith.constant dense<0xFF800000> : vector<64xf32>
    %224 = vector.multi_reduction <maximumf>, %223, %cst_75 [1] : vector<64x64xf32> to vector<64xf32>
    %225 = vector.shape_cast %224 : vector<64xf32> to vector<64x1xf32>
    %226 = vector.broadcast %225 : vector<64x1xf32> to vector<64x64xf32>
    %227 = arith.subf %223, %226 : vector<64x64xf32>
    %228 = math.exp %227 : vector<64x64xf32>
    %229 = arith.mulf %228, %213 : vector<64x64xf32>
    %cst_76 = arith.constant dense<0.000000e+00> : vector<64xf32>
    %230 = vector.multi_reduction <add>, %229, %cst_76 [1] : vector<64x64xf32> to vector<64xf32>
    %231 = vector.shape_cast %230 : vector<64xf32> to vector<64x1xf32>
    %cst_77 = arith.constant 1.000000e-30 : f32
    %232 = vector.broadcast %cst_77 : f32 to vector<64x1xf32>
    %233 = arith.maximumf %231, %232 : vector<64x1xf32>
    %234 = tpu.reciprocal %233 {approx = true} : vector<64x1xf32> -> vector<64x1xf32>
    %235 = vector.broadcast %234 : vector<64x1xf32> to vector<64x64xf32>
    %236 = arith.mulf %229, %235 : vector<64x64xf32>
    %237 = arith.truncf %236 : vector<64x64xf32> to vector<64x64xbf16>
    %cst_78 = arith.constant dense<0.000000e+00> : vector<64x4xf32>
    %238 = tpu.matmul %237, %222, %cst_78 {dimension_numbers = #tpu.dot_dimension_numbers<[1], [0], [0], [1], [0, 0, 1, 1], [], []>} : vector<64x64xbf16>, vector<64x4xbf16>, vector<64x4xf32> -> vector<64x4xf32>
    %239 = arith.truncf %238 : vector<64x4xf32> to vector<64x4xbf16>
    %c0_79 = arith.constant 0 : index
    %c0_80 = arith.constant 0 : index
    %240 = vector.load %arg8[%c0_79, %c0_80] : memref<64x32xbf16, #tpu.memory_space<vmem>>, vector<64x4xbf16>
    tpu.vector_store %arg8[%c0_79, %c0_80], %239 {strides = array<i32>} : memref<64x32xbf16, #tpu.memory_space<vmem>>, vector<64x4xbf16>,
    %241 = vector.extract_strided_slice %216 {offsets = [0, 4], sizes = [64, 4], strides = [1, 1]} : vector<64x96xf32> to vector<64x4xf32>
    %242 = arith.truncf %241 : vector<64x4xf32> to vector<64x4xbf16>
    %243 = vector.extract_strided_slice %216 {offsets = [0, 36], sizes = [64, 4], strides = [1, 1]} : vector<64x96xf32> to vector<64x4xf32>
    %244 = arith.truncf %243 : vector<64x4xf32> to vector<64x4xbf16>
    %245 = vector.extract_strided_slice %216 {offsets = [0, 68], sizes = [64, 4], strides = [1, 1]} : vector<64x96xf32> to vector<64x4xf32>
    %246 = arith.truncf %245 : vector<64x4xf32> to vector<64x4xbf16>
    %cst_81 = arith.constant dense<0.000000e+00> : vector<64x64xf32>
    %247 = tpu.matmul %242, %244, %cst_81 {dimension_numbers = #tpu.dot_dimension_numbers<[1], [1], [0], [0], [0, 0, 1, 0], [], []>} : vector<64x4xbf16>, vector<64x4xbf16>, vector<64x64xf32> -> vector<64x64xf32>
    %cst_82 = arith.constant dense<0xFF800000> : vector<64xf32>
    %248 = vector.multi_reduction <maximumf>, %247, %cst_82 [1] : vector<64x64xf32> to vector<64xf32>
    %249 = vector.shape_cast %248 : vector<64xf32> to vector<64x1xf32>
    %250 = vector.broadcast %249 : vector<64x1xf32> to vector<64x64xf32>
    %251 = arith.subf %247, %250 : vector<64x64xf32>
    %252 = math.exp %251 : vector<64x64xf32>
    %253 = arith.mulf %252, %213 : vector<64x64xf32>
    %cst_83 = arith.constant dense<0.000000e+00> : vector<64xf32>
    %254 = vector.multi_reduction <add>, %253, %cst_83 [1] : vector<64x64xf32> to vector<64xf32>
    %255 = vector.shape_cast %254 : vector<64xf32> to vector<64x1xf32>
    %cst_84 = arith.constant 1.000000e-30 : f32
    %256 = vector.broadcast %cst_84 : f32 to vector<64x1xf32>
    %257 = arith.maximumf %255, %256 : vector<64x1xf32>
    %258 = tpu.reciprocal %257 {approx = true} : vector<64x1xf32> -> vector<64x1xf32>
    %259 = vector.broadcast %258 : vector<64x1xf32> to vector<64x64xf32>
    %260 = arith.mulf %253, %259 : vector<64x64xf32>
    %261 = arith.truncf %260 : vector<64x64xf32> to vector<64x64xbf16>
    %cst_85 = arith.constant dense<0.000000e+00> : vector<64x4xf32>
    %262 = tpu.matmul %261, %246, %cst_85 {dimension_numbers = #tpu.dot_dimension_numbers<[1], [0], [0], [1], [0, 0, 1, 1], [], []>} : vector<64x64xbf16>, vector<64x4xbf16>, vector<64x4xf32> -> vector<64x4xf32>
    %263 = arith.truncf %262 : vector<64x4xf32> to vector<64x4xbf16>
    %c0_86 = arith.constant 0 : index
    %c4_87 = arith.constant 4 : index
    %264 = vector.load %arg8[%c0_86, %c4_87] : memref<64x32xbf16, #tpu.memory_space<vmem>>, vector<64x4xbf16>
    tpu.vector_store %arg8[%c0_86, %c4_87], %263 {strides = array<i32>} : memref<64x32xbf16, #tpu.memory_space<vmem>>, vector<64x4xbf16>,
    %265 = vector.extract_strided_slice %216 {offsets = [0, 8], sizes = [64, 4], strides = [1, 1]} : vector<64x96xf32> to vector<64x4xf32>
    %266 = arith.truncf %265 : vector<64x4xf32> to vector<64x4xbf16>
    %267 = vector.extract_strided_slice %216 {offsets = [0, 40], sizes = [64, 4], strides = [1, 1]} : vector<64x96xf32> to vector<64x4xf32>
    %268 = arith.truncf %267 : vector<64x4xf32> to vector<64x4xbf16>
    %269 = vector.extract_strided_slice %216 {offsets = [0, 72], sizes = [64, 4], strides = [1, 1]} : vector<64x96xf32> to vector<64x4xf32>
    %270 = arith.truncf %269 : vector<64x4xf32> to vector<64x4xbf16>
    %cst_88 = arith.constant dense<0.000000e+00> : vector<64x64xf32>
    %271 = tpu.matmul %266, %268, %cst_88 {dimension_numbers = #tpu.dot_dimension_numbers<[1], [1], [0], [0], [0, 0, 1, 0], [], []>} : vector<64x4xbf16>, vector<64x4xbf16>, vector<64x64xf32> -> vector<64x64xf32>
    %cst_89 = arith.constant dense<0xFF800000> : vector<64xf32>
    %272 = vector.multi_reduction <maximumf>, %271, %cst_89 [1] : vector<64x64xf32> to vector<64xf32>
    %273 = vector.shape_cast %272 : vector<64xf32> to vector<64x1xf32>
    %274 = vector.broadcast %273 : vector<64x1xf32> to vector<64x64xf32>
    %275 = arith.subf %271, %274 : vector<64x64xf32>
    %276 = math.exp %275 : vector<64x64xf32>
    %277 = arith.mulf %276, %213 : vector<64x64xf32>
    %cst_90 = arith.constant dense<0.000000e+00> : vector<64xf32>
    %278 = vector.multi_reduction <add>, %277, %cst_90 [1] : vector<64x64xf32> to vector<64xf32>
    %279 = vector.shape_cast %278 : vector<64xf32> to vector<64x1xf32>
    %cst_91 = arith.constant 1.000000e-30 : f32
    %280 = vector.broadcast %cst_91 : f32 to vector<64x1xf32>
    %281 = arith.maximumf %279, %280 : vector<64x1xf32>
    %282 = tpu.reciprocal %281 {approx = true} : vector<64x1xf32> -> vector<64x1xf32>
    %283 = vector.broadcast %282 : vector<64x1xf32> to vector<64x64xf32>
    %284 = arith.mulf %277, %283 : vector<64x64xf32>
    %285 = arith.truncf %284 : vector<64x64xf32> to vector<64x64xbf16>
    %cst_92 = arith.constant dense<0.000000e+00> : vector<64x4xf32>
    %286 = tpu.matmul %285, %270, %cst_92 {dimension_numbers = #tpu.dot_dimension_numbers<[1], [0], [0], [1], [0, 0, 1, 1], [], []>} : vector<64x64xbf16>, vector<64x4xbf16>, vector<64x4xf32> -> vector<64x4xf32>
    %287 = arith.truncf %286 : vector<64x4xf32> to vector<64x4xbf16>
    %c0_93 = arith.constant 0 : index
    %c8_94 = arith.constant 8 : index
    %288 = vector.load %arg8[%c0_93, %c8_94] : memref<64x32xbf16, #tpu.memory_space<vmem>>, vector<64x4xbf16>
    tpu.vector_store %arg8[%c0_93, %c8_94], %287 {strides = array<i32>} : memref<64x32xbf16, #tpu.memory_space<vmem>>, vector<64x4xbf16>,
    %289 = vector.extract_strided_slice %216 {offsets = [0, 12], sizes = [64, 4], strides = [1, 1]} : vector<64x96xf32> to vector<64x4xf32>
    %290 = arith.truncf %289 : vector<64x4xf32> to vector<64x4xbf16>
    %291 = vector.extract_strided_slice %216 {offsets = [0, 44], sizes = [64, 4], strides = [1, 1]} : vector<64x96xf32> to vector<64x4xf32>
    %292 = arith.truncf %291 : vector<64x4xf32> to vector<64x4xbf16>
    %293 = vector.extract_strided_slice %216 {offsets = [0, 76], sizes = [64, 4], strides = [1, 1]} : vector<64x96xf32> to vector<64x4xf32>
    %294 = arith.truncf %293 : vector<64x4xf32> to vector<64x4xbf16>
    %cst_95 = arith.constant dense<0.000000e+00> : vector<64x64xf32>
    %295 = tpu.matmul %290, %292, %cst_95 {dimension_numbers = #tpu.dot_dimension_numbers<[1], [1], [0], [0], [0, 0, 1, 0], [], []>} : vector<64x4xbf16>, vector<64x4xbf16>, vector<64x64xf32> -> vector<64x64xf32>
    %cst_96 = arith.constant dense<0xFF800000> : vector<64xf32>
    %296 = vector.multi_reduction <maximumf>, %295, %cst_96 [1] : vector<64x64xf32> to vector<64xf32>
    %297 = vector.shape_cast %296 : vector<64xf32> to vector<64x1xf32>
    %298 = vector.broadcast %297 : vector<64x1xf32> to vector<64x64xf32>
    %299 = arith.subf %295, %298 : vector<64x64xf32>
    %300 = math.exp %299 : vector<64x64xf32>
    %301 = arith.mulf %300, %213 : vector<64x64xf32>
    %cst_97 = arith.constant dense<0.000000e+00> : vector<64xf32>
    %302 = vector.multi_reduction <add>, %301, %cst_97 [1] : vector<64x64xf32> to vector<64xf32>
    %303 = vector.shape_cast %302 : vector<64xf32> to vector<64x1xf32>
    %cst_98 = arith.constant 1.000000e-30 : f32
    %304 = vector.broadcast %cst_98 : f32 to vector<64x1xf32>
    %305 = arith.maximumf %303, %304 : vector<64x1xf32>
    %306 = tpu.reciprocal %305 {approx = true} : vector<64x1xf32> -> vector<64x1xf32>
    %307 = vector.broadcast %306 : vector<64x1xf32> to vector<64x64xf32>
    %308 = arith.mulf %301, %307 : vector<64x64xf32>
    %309 = arith.truncf %308 : vector<64x64xf32> to vector<64x64xbf16>
    %cst_99 = arith.constant dense<0.000000e+00> : vector<64x4xf32>
    %310 = tpu.matmul %309, %294, %cst_99 {dimension_numbers = #tpu.dot_dimension_numbers<[1], [0], [0], [1], [0, 0, 1, 1], [], []>} : vector<64x64xbf16>, vector<64x4xbf16>, vector<64x4xf32> -> vector<64x4xf32>
    %311 = arith.truncf %310 : vector<64x4xf32> to vector<64x4xbf16>
    %c0_100 = arith.constant 0 : index
    %c12_101 = arith.constant 12 : index
    %312 = vector.load %arg8[%c0_100, %c12_101] : memref<64x32xbf16, #tpu.memory_space<vmem>>, vector<64x4xbf16>
    tpu.vector_store %arg8[%c0_100, %c12_101], %311 {strides = array<i32>} : memref<64x32xbf16, #tpu.memory_space<vmem>>, vector<64x4xbf16>,
    %313 = vector.extract_strided_slice %216 {offsets = [0, 16], sizes = [64, 4], strides = [1, 1]} : vector<64x96xf32> to vector<64x4xf32>
    %314 = arith.truncf %313 : vector<64x4xf32> to vector<64x4xbf16>
    %315 = vector.extract_strided_slice %216 {offsets = [0, 48], sizes = [64, 4], strides = [1, 1]} : vector<64x96xf32> to vector<64x4xf32>
    %316 = arith.truncf %315 : vector<64x4xf32> to vector<64x4xbf16>
    %317 = vector.extract_strided_slice %216 {offsets = [0, 80], sizes = [64, 4], strides = [1, 1]} : vector<64x96xf32> to vector<64x4xf32>
    %318 = arith.truncf %317 : vector<64x4xf32> to vector<64x4xbf16>
    %cst_102 = arith.constant dense<0.000000e+00> : vector<64x64xf32>
    %319 = tpu.matmul %314, %316, %cst_102 {dimension_numbers = #tpu.dot_dimension_numbers<[1], [1], [0], [0], [0, 0, 1, 0], [], []>} : vector<64x4xbf16>, vector<64x4xbf16>, vector<64x64xf32> -> vector<64x64xf32>
    %cst_103 = arith.constant dense<0xFF800000> : vector<64xf32>
    %320 = vector.multi_reduction <maximumf>, %319, %cst_103 [1] : vector<64x64xf32> to vector<64xf32>
    %321 = vector.shape_cast %320 : vector<64xf32> to vector<64x1xf32>
    %322 = vector.broadcast %321 : vector<64x1xf32> to vector<64x64xf32>
    %323 = arith.subf %319, %322 : vector<64x64xf32>
    %324 = math.exp %323 : vector<64x64xf32>
    %325 = arith.mulf %324, %213 : vector<64x64xf32>
    %cst_104 = arith.constant dense<0.000000e+00> : vector<64xf32>
    %326 = vector.multi_reduction <add>, %325, %cst_104 [1] : vector<64x64xf32> to vector<64xf32>
    %327 = vector.shape_cast %326 : vector<64xf32> to vector<64x1xf32>
    %cst_105 = arith.constant 1.000000e-30 : f32
    %328 = vector.broadcast %cst_105 : f32 to vector<64x1xf32>
    %329 = arith.maximumf %327, %328 : vector<64x1xf32>
    %330 = tpu.reciprocal %329 {approx = true} : vector<64x1xf32> -> vector<64x1xf32>
    %331 = vector.broadcast %330 : vector<64x1xf32> to vector<64x64xf32>
    %332 = arith.mulf %325, %331 : vector<64x64xf32>
    %333 = arith.truncf %332 : vector<64x64xf32> to vector<64x64xbf16>
    %cst_106 = arith.constant dense<0.000000e+00> : vector<64x4xf32>
    %334 = tpu.matmul %333, %318, %cst_106 {dimension_numbers = #tpu.dot_dimension_numbers<[1], [0], [0], [1], [0, 0, 1, 1], [], []>} : vector<64x64xbf16>, vector<64x4xbf16>, vector<64x4xf32> -> vector<64x4xf32>
    %335 = arith.truncf %334 : vector<64x4xf32> to vector<64x4xbf16>
    %c0_107 = arith.constant 0 : index
    %c16_108 = arith.constant 16 : index
    %336 = vector.load %arg8[%c0_107, %c16_108] : memref<64x32xbf16, #tpu.memory_space<vmem>>, vector<64x4xbf16>
    tpu.vector_store %arg8[%c0_107, %c16_108], %335 {strides = array<i32>} : memref<64x32xbf16, #tpu.memory_space<vmem>>, vector<64x4xbf16>,
    %337 = vector.extract_strided_slice %216 {offsets = [0, 20], sizes = [64, 4], strides = [1, 1]} : vector<64x96xf32> to vector<64x4xf32>
    %338 = arith.truncf %337 : vector<64x4xf32> to vector<64x4xbf16>
    %339 = vector.extract_strided_slice %216 {offsets = [0, 52], sizes = [64, 4], strides = [1, 1]} : vector<64x96xf32> to vector<64x4xf32>
    %340 = arith.truncf %339 : vector<64x4xf32> to vector<64x4xbf16>
    %341 = vector.extract_strided_slice %216 {offsets = [0, 84], sizes = [64, 4], strides = [1, 1]} : vector<64x96xf32> to vector<64x4xf32>
    %342 = arith.truncf %341 : vector<64x4xf32> to vector<64x4xbf16>
    %cst_109 = arith.constant dense<0.000000e+00> : vector<64x64xf32>
    %343 = tpu.matmul %338, %340, %cst_109 {dimension_numbers = #tpu.dot_dimension_numbers<[1], [1], [0], [0], [0, 0, 1, 0], [], []>} : vector<64x4xbf16>, vector<64x4xbf16>, vector<64x64xf32> -> vector<64x64xf32>
    %cst_110 = arith.constant dense<0xFF800000> : vector<64xf32>
    %344 = vector.multi_reduction <maximumf>, %343, %cst_110 [1] : vector<64x64xf32> to vector<64xf32>
    %345 = vector.shape_cast %344 : vector<64xf32> to vector<64x1xf32>
    %346 = vector.broadcast %345 : vector<64x1xf32> to vector<64x64xf32>
    %347 = arith.subf %343, %346 : vector<64x64xf32>
    %348 = math.exp %347 : vector<64x64xf32>
    %349 = arith.mulf %348, %213 : vector<64x64xf32>
    %cst_111 = arith.constant dense<0.000000e+00> : vector<64xf32>
    %350 = vector.multi_reduction <add>, %349, %cst_111 [1] : vector<64x64xf32> to vector<64xf32>
    %351 = vector.shape_cast %350 : vector<64xf32> to vector<64x1xf32>
    %cst_112 = arith.constant 1.000000e-30 : f32
    %352 = vector.broadcast %cst_112 : f32 to vector<64x1xf32>
    %353 = arith.maximumf %351, %352 : vector<64x1xf32>
    %354 = tpu.reciprocal %353 {approx = true} : vector<64x1xf32> -> vector<64x1xf32>
    %355 = vector.broadcast %354 : vector<64x1xf32> to vector<64x64xf32>
    %356 = arith.mulf %349, %355 : vector<64x64xf32>
    %357 = arith.truncf %356 : vector<64x64xf32> to vector<64x64xbf16>
    %cst_113 = arith.constant dense<0.000000e+00> : vector<64x4xf32>
    %358 = tpu.matmul %357, %342, %cst_113 {dimension_numbers = #tpu.dot_dimension_numbers<[1], [0], [0], [1], [0, 0, 1, 1], [], []>} : vector<64x64xbf16>, vector<64x4xbf16>, vector<64x4xf32> -> vector<64x4xf32>
    %359 = arith.truncf %358 : vector<64x4xf32> to vector<64x4xbf16>
    %c0_114 = arith.constant 0 : index
    %c20_115 = arith.constant 20 : index
    %360 = vector.load %arg8[%c0_114, %c20_115] : memref<64x32xbf16, #tpu.memory_space<vmem>>, vector<64x4xbf16>
    tpu.vector_store %arg8[%c0_114, %c20_115], %359 {strides = array<i32>} : memref<64x32xbf16, #tpu.memory_space<vmem>>, vector<64x4xbf16>,
    %361 = vector.extract_strided_slice %216 {offsets = [0, 24], sizes = [64, 4], strides = [1, 1]} : vector<64x96xf32> to vector<64x4xf32>
    %362 = arith.truncf %361 : vector<64x4xf32> to vector<64x4xbf16>
    %363 = vector.extract_strided_slice %216 {offsets = [0, 56], sizes = [64, 4], strides = [1, 1]} : vector<64x96xf32> to vector<64x4xf32>
    %364 = arith.truncf %363 : vector<64x4xf32> to vector<64x4xbf16>
    %365 = vector.extract_strided_slice %216 {offsets = [0, 88], sizes = [64, 4], strides = [1, 1]} : vector<64x96xf32> to vector<64x4xf32>
    %366 = arith.truncf %365 : vector<64x4xf32> to vector<64x4xbf16>
    %cst_116 = arith.constant dense<0.000000e+00> : vector<64x64xf32>
    %367 = tpu.matmul %362, %364, %cst_116 {dimension_numbers = #tpu.dot_dimension_numbers<[1], [1], [0], [0], [0, 0, 1, 0], [], []>} : vector<64x4xbf16>, vector<64x4xbf16>, vector<64x64xf32> -> vector<64x64xf32>
    %cst_117 = arith.constant dense<0xFF800000> : vector<64xf32>
    %368 = vector.multi_reduction <maximumf>, %367, %cst_117 [1] : vector<64x64xf32> to vector<64xf32>
    %369 = vector.shape_cast %368 : vector<64xf32> to vector<64x1xf32>
    %370 = vector.broadcast %369 : vector<64x1xf32> to vector<64x64xf32>
    %371 = arith.subf %367, %370 : vector<64x64xf32>
    %372 = math.exp %371 : vector<64x64xf32>
    %373 = arith.mulf %372, %213 : vector<64x64xf32>
    %cst_118 = arith.constant dense<0.000000e+00> : vector<64xf32>
    %374 = vector.multi_reduction <add>, %373, %cst_118 [1] : vector<64x64xf32> to vector<64xf32>
    %375 = vector.shape_cast %374 : vector<64xf32> to vector<64x1xf32>
    %cst_119 = arith.constant 1.000000e-30 : f32
    %376 = vector.broadcast %cst_119 : f32 to vector<64x1xf32>
    %377 = arith.maximumf %375, %376 : vector<64x1xf32>
    %378 = tpu.reciprocal %377 {approx = true} : vector<64x1xf32> -> vector<64x1xf32>
    %379 = vector.broadcast %378 : vector<64x1xf32> to vector<64x64xf32>
    %380 = arith.mulf %373, %379 : vector<64x64xf32>
    %381 = arith.truncf %380 : vector<64x64xf32> to vector<64x64xbf16>
    %cst_120 = arith.constant dense<0.000000e+00> : vector<64x4xf32>
    %382 = tpu.matmul %381, %366, %cst_120 {dimension_numbers = #tpu.dot_dimension_numbers<[1], [0], [0], [1], [0, 0, 1, 1], [], []>} : vector<64x64xbf16>, vector<64x4xbf16>, vector<64x4xf32> -> vector<64x4xf32>
    %383 = arith.truncf %382 : vector<64x4xf32> to vector<64x4xbf16>
    %c0_121 = arith.constant 0 : index
    %c24_122 = arith.constant 24 : index
    %384 = vector.load %arg8[%c0_121, %c24_122] : memref<64x32xbf16, #tpu.memory_space<vmem>>, vector<64x4xbf16>
    tpu.vector_store %arg8[%c0_121, %c24_122], %383 {strides = array<i32>} : memref<64x32xbf16, #tpu.memory_space<vmem>>, vector<64x4xbf16>,
    %385 = vector.extract_strided_slice %216 {offsets = [0, 28], sizes = [64, 4], strides = [1, 1]} : vector<64x96xf32> to vector<64x4xf32>
    %386 = arith.truncf %385 : vector<64x4xf32> to vector<64x4xbf16>
    %387 = vector.extract_strided_slice %216 {offsets = [0, 60], sizes = [64, 4], strides = [1, 1]} : vector<64x96xf32> to vector<64x4xf32>
    %388 = arith.truncf %387 : vector<64x4xf32> to vector<64x4xbf16>
    %389 = vector.extract_strided_slice %216 {offsets = [0, 92], sizes = [64, 4], strides = [1, 1]} : vector<64x96xf32> to vector<64x4xf32>
    %390 = arith.truncf %389 : vector<64x4xf32> to vector<64x4xbf16>
    %cst_123 = arith.constant dense<0.000000e+00> : vector<64x64xf32>
    %391 = tpu.matmul %386, %388, %cst_123 {dimension_numbers = #tpu.dot_dimension_numbers<[1], [1], [0], [0], [0, 0, 1, 0], [], []>} : vector<64x4xbf16>, vector<64x4xbf16>, vector<64x64xf32> -> vector<64x64xf32>
    %cst_124 = arith.constant dense<0xFF800000> : vector<64xf32>
    %392 = vector.multi_reduction <maximumf>, %391, %cst_124 [1] : vector<64x64xf32> to vector<64xf32>
    %393 = vector.shape_cast %392 : vector<64xf32> to vector<64x1xf32>
    %394 = vector.broadcast %393 : vector<64x1xf32> to vector<64x64xf32>
    %395 = arith.subf %391, %394 : vector<64x64xf32>
    %396 = math.exp %395 : vector<64x64xf32>
    %397 = arith.mulf %396, %213 : vector<64x64xf32>
    %cst_125 = arith.constant dense<0.000000e+00> : vector<64xf32>
    %398 = vector.multi_reduction <add>, %397, %cst_125 [1] : vector<64x64xf32> to vector<64xf32>
    %399 = vector.shape_cast %398 : vector<64xf32> to vector<64x1xf32>
    %cst_126 = arith.constant 1.000000e-30 : f32
    %400 = vector.broadcast %cst_126 : f32 to vector<64x1xf32>
    %401 = arith.maximumf %399, %400 : vector<64x1xf32>
    %402 = tpu.reciprocal %401 {approx = true} : vector<64x1xf32> -> vector<64x1xf32>
    %403 = vector.broadcast %402 : vector<64x1xf32> to vector<64x64xf32>
    %404 = arith.mulf %397, %403 : vector<64x64xf32>
    %405 = arith.truncf %404 : vector<64x64xf32> to vector<64x64xbf16>
    %cst_127 = arith.constant dense<0.000000e+00> : vector<64x4xf32>
    %406 = tpu.matmul %405, %390, %cst_127 {dimension_numbers = #tpu.dot_dimension_numbers<[1], [0], [0], [1], [0, 0, 1, 1], [], []>} : vector<64x64xbf16>, vector<64x4xbf16>, vector<64x4xf32> -> vector<64x4xf32>
    %407 = arith.truncf %406 : vector<64x4xf32> to vector<64x4xbf16>
    %c0_128 = arith.constant 0 : index
    %c28_129 = arith.constant 28 : index
    %408 = vector.load %arg8[%c0_128, %c28_129] : memref<64x32xbf16, #tpu.memory_space<vmem>>, vector<64x4xbf16>
    tpu.vector_store %arg8[%c0_128, %c28_129], %407 {strides = array<i32>} : memref<64x32xbf16, #tpu.memory_space<vmem>>, vector<64x4xbf16>,
    %c0_130 = arith.constant 0 : index
    %c0_131 = arith.constant 0 : index
    %409 = vector.load %arg8[%c0_130, %c0_131] : memref<64x32xbf16, #tpu.memory_space<vmem>>, vector<64x32xbf16>
    %cst_132 = arith.constant dense<0.000000e+00> : vector<64x32xf32>
    %410 = tpu.matmul %409, %2, %cst_132 {dimension_numbers = #tpu.dot_dimension_numbers<[1], [0], [0], [1], [0, 0, 1, 1], [], []>} : vector<64x32xbf16>, vector<32x32xbf16>, vector<64x32xf32> -> vector<64x32xf32>
    %411 = vector.broadcast %3 : vector<1x32xf32> to vector<64x32xf32>
    %412 = arith.addf %410, %411 : vector<64x32xf32>
    %c1_133 = arith.constant 1 : index
    %c0_134 = arith.constant 0 : index
    %c0_135 = arith.constant 0 : index
    %413 = vector.load %arg7[%c1_133, %c0_134, %c0_135] : memref<2x64x32xf32, #tpu.memory_space<vmem>>, vector<1x64x32xf32>
    %414 = vector.shape_cast %413 : vector<1x64x32xf32> to vector<64x32xf32>
    %415 = vector.shape_cast %412 : vector<64x32xf32> to vector<1x64x32xf32>
    tpu.vector_store %arg7[%c1_133, %c0_134, %c0_135], %415 {strides = array<i32>} : memref<2x64x32xf32, #tpu.memory_space<vmem>>, vector<1x64x32xf32>,
    return
  }
  func.func @transform_0(%arg0: i32) -> (i32, i32, i32) {
    %c0_i32 = arith.constant 0 : i32
    %c0_i32_0 = arith.constant 0 : i32
    %c0_i32_1 = arith.constant 0 : i32
    return %arg0, %c0_i32, %c0_i32_0 : i32, i32, i32
  }
  func.func @transform_1(%arg0: i32) -> (i32, i32, i32) {
    %c0_i32 = arith.constant 0 : i32
    %c0_i32_0 = arith.constant 0 : i32
    %c0_i32_1 = arith.constant 0 : i32
    return %arg0, %c0_i32, %c0_i32_0 : i32, i32, i32
  }
  func.func @transform_2(%arg0: i32) -> (i32, i32) {
    %c0_i32 = arith.constant 0 : i32
    %c0_i32_0 = arith.constant 0 : i32
    %c0_i32_1 = arith.constant 0 : i32
    return %c0_i32, %c0_i32_0 : i32, i32
  }
  func.func @transform_3(%arg0: i32) -> (i32, i32) {
    %c0_i32 = arith.constant 0 : i32
    %c0_i32_0 = arith.constant 0 : i32
    %c0_i32_1 = arith.constant 0 : i32
    return %c0_i32, %c0_i32_0 : i32, i32
  }
  func.func @transform_4(%arg0: i32) -> (i32, i32) {
    %c0_i32 = arith.constant 0 : i32
    %c0_i32_0 = arith.constant 0 : i32
    %c0_i32_1 = arith.constant 0 : i32
    return %c0_i32, %c0_i32_0 : i32, i32
  }
  func.func @transform_5(%arg0: i32) -> (i32, i32) {
    %c0_i32 = arith.constant 0 : i32
    %c0_i32_0 = arith.constant 0 : i32
    %c0_i32_1 = arith.constant 0 : i32
    return %c0_i32, %c0_i32_0 : i32, i32
  }
  func.func @transform_6(%arg0: i32) -> (i32, i32, i32) {
    %c0_i32 = arith.constant 0 : i32
    %c0_i32_0 = arith.constant 0 : i32
    %c0_i32_1 = arith.constant 0 : i32
    return %arg0, %c0_i32, %c0_i32_0 : i32, i32, i32
  }
}

</mosaic_0001>

<bundles_post_ra>
// kernel: tpu_custom_call.1
= control target key start
LH: loop header
LB: loop body
LE: loop exit
PB: predicated region body
PF: predicated region fallthrough
CT: control target
= control target key end

     0   :  { %11 = vsyncpa [#allocation4], 0  ;;  %s10332_s0 = inlined_call_operand.vmem [shape: bf16[8,64,32], index: 0, kind: input, shape index: {}]   ;;  %s10333_s1 = inlined_call_operand.hbm [shape: f32[8,64,64], index: 1, kind: input, shape index: {}]   ;;  %s10334_s2 = inlined_call_operand.vmem [shape: bf16[32,96], index: 2, kind: input, shape index: {}]   ;;  %s10335_s3 = inlined_call_operand.vmem [shape: f32[1,96], index: 3, kind: input, shape index: {}]   ;;  %s10336_s4 = inlined_call_operand.vmem [shape: bf16[32,32], index: 4, kind: input, shape index: {}]   ;;  %s10337_s5 = inlined_call_operand.vmem [shape: f32[1,32], index: 5, kind: input, shape index: {}]   ;;  %s10338_s6 = inlined_call_operand.vmem [shape: f32[8,64,32], index: 6, kind: output, shape index: {}]  }
   0x1   :  { %13 = vsyncpa [#allocation4 + $0x1], 0  ;;  %s7906_s21 = smov 0   ;;  %s7908_s22 = smov 0  }
   0x2   :  { %s7910_s23 = smov 0   ;;  %s7912_s24 = smov 0  }
   0x3 LB: > { %s6031_s25 = sadd.s32 4294967295, %s7836_s24   ;;  %s7926_s26 = sadd.s32 1, %s7836_s24   ;;  %s7836_s24 = sphi %s7912_s24, %s10576_s24   ;;  %s7832_s23 = sphi %s7910_s23, %s10575_s23   ;;  %s7828_s22 = sphi %s7908_s22, %s10574_s22   ;;  %s7824_s21 = sphi %s7906_s21, %s10573_s21  }
   0x4   : > { %s49_s27 = ssub.s32 %s7836_s24, %s7926_s26  ;;  %s52_s28 = sadd.s32 1, %s7832_s23 }
   0x5   : > { %p50_p0 = scmp.eq.s32.totalorder %s49_s27, 0  ;;  %p59_p1 = scmp.ne.s32.totalorder %s7832_s23, %s7828_s22 }
   0x6   : > { %p60_p2 = scmp.eq.s32.totalorder %s7836_s24, 0  ;;  %p65_p3 = scmp.ne.s32.totalorder %s7828_s22, %s7824_s21 }
   0x7   : > { %s7936_s29 = scalar_select %p50_p0, %s7832_s23, %s52_s28  }
   0x8   : > { %p61_p4 = por %p60_p2, %p59_p1  ;;  %p66_p5 = scmp.eq.s32.totalorder %s6031_s25, 0 }
   0x9   : > { %p7145_p6 = scmp.lt.s32.totalorder %s7836_s24, 4  ;;  %s221_s7 = sand.u32 1, %s7832_s23  }
   0xa   : > { %p7941_p7 = por %p66_p5, %p65_p3  ;;  %s6035_s8 = sshll.u32 %s221_s7, 7 }
   0xb   : > { %s6232_s9 = sshll.u32 %s7836_s24, 11  ;;  %s225_s13 = scalar_lea.vmem [#allocation3], %s6035_s8 }
   0xc   : > { %s7950_s12 = scalar_lea.hbm %s10333_s1, %s6232_s9  ;;  %s233_s14 = sshll.u32 %s225_s13, 4  ;;  %s7952_s14 = int_to_ptr.vmem [resolvable:$true] %s233_s14 }
   0xd   : > { %p7954_p8 = pnand %p7145_p6, %p61_p4  ;;  %s7959_s16 = scalar_lea.sflag [#allocation4], %s221_s7 }
   0xe   : > { %s7772_s17 = scalar_lea.hbm %s7950_s12, 2048  ;;  %s7777_s20 = scalar_lea.hbm %s10333_s1, 8192 }
   0xf   : > { %p7773_p10 = scmp.ne.s32.totalorder %s7950_s12, %s7772_s17  ;;  %p7774_p11 = pneg %p7954_p8 }
  0x10   : > { %p7778_p0 = scmp.lt.u32.totalorder %s7950_s12, %s10333_s1  ;;  %p7779_p1 = scmp.lt.u32.totalorder %s7777_s20, %s7772_s17 }
  0x11   : > { %p7775_p12 = pnand %p7774_p11, %p7773_p10  ;;  %p7781_p3 = scmp.lt.u32.totalorder %s7772_s17, %s7950_s12 }
  0x12   : > { %p7780_p2 = por %p7779_p1, %p7778_p0 }
  0x13   : > { %p7776_p13 = pneg %p7775_p12 }
  0x14   : > { %p7782_p4 = por %p7781_p3, %p7780_p2 }
  0x16   : > { %p7783_p5 = pnand %p7782_p4, %p7776_p13 }
  0x18   : > { %7786 = shalt.err (!%p7783_p5)
}
  0x19   : > { %s7787_s28 = scalar_lea.vmem %s7952_s14, 2048  ;;  %s7838_s7 = smov [#allocation3]  }
  0x1a   : > { %p7788_p6 = scmp.ne.s32.totalorder %s7952_s14, %s7787_s28  ;;  %s7792_s8 = sshll.u32 %s7838_s7, 4  ;;  %s7793_s8 = int_to_ptr.vmem [resolvable:$false] %s7792_s8 }
  0x1b   : > { %s7794_s9 = scalar_lea.vmem %s7793_s8, 4096  ;;  %p7795_p9 = scmp.lt.s32.totalorder %s7952_s14, %s7793_s8 }
  0x1c   : > { %p7790_p10 = pnand %p7788_p6, %p7774_p11  ;;  %p7796_p0 = scmp.lt.s32.totalorder %s7794_s9, %s7787_s28 }
  0x1e   : > { %p7791_p12 = pneg %p7790_p10  ;;  %p7797_p1 = por %p7796_p0, %p7795_p9 }
  0x20   : > { %p7798_p2 = pnand %p7797_p1, %p7791_p12 }
  0x22   : > { %7801 = shalt.err (!%p7798_p2)
}
  0x23   : > { %s7839_s10 = smov 128   ;;  %s7840_s11 = smov 8  }
  0x24   : > { %7144 = dma.hbm_to_vmem [thread:$0]  (!%p7954_p8), %s7950_s12, 2048, %s7952_s14, %s7959_s16, %s7839_s10, %s7839_s10, %s7840_s11  }
  0x25   : > { %p241_p11 = scmp.lt.s32.totalorder %s7836_s24, 5  ;;  %p10419_p13 = scmp.ge.s32.totalorder %s7836_s24, 1 }
  0x27   : > { %p242_p3 = pnand %p10419_p13, %p241_p11 }
  0x29   : > { %245 = sbr.rel (%p242_p3) target bundleno = 10837 (0x2a55), region = 44 }
  0x30   : > { %s247_s13 = sand.u32 1, %s7828_s22  }
  0x31   : > { %s6040_s17 = sshll.u32 %s247_s13, 7  ;;  %s248_s18 = scalar_lea.sflag [#allocation4], %s247_s13 }
  0x32   : > { %s7991_s19 = scalar_lea.vmem [#allocation3], %s6040_s17 }
  0x33   : > { %7819 = dma.done.wait (%p7941_p7), %s248_s18, 2048  }
  0x34   : > { %7821 = vsyncadd (%p7941_p7), %s248_s18, 4294965248  ;;  %s6041_s15 = sshll.u32 %s6031_s25, 1  ;;  %v7210_v0 = vld [vmem:[%s10334_s2] sm:$0xff]   ;;  %v7211_v1 = vld [vmem:[%s10334_s2 + $0x8] sm:$0xff]   ;;  %vm367_vm0 = vcmask 261120   ;;  %vm461_vm1 = vcmask 31744  }
  0x35   : > { %p288_p8 = scmp.lt.s32.totalorder %s6041_s15, 7  ;;  %6515 = vmatprep.subr.bf16.mxu0 %v7210_v0  ;;  %v6047_v7 = vld [vmem:[%s10335_s3] ss:$0 sm:$0xff]  ;;  %s7841_s7 = smov 96   ;;  %vm551_vm2 = vcmask 523264   ;;  %vm1079_vm3 = vcmask 64544  }
  0x36   : > { %6516 = vmatpush3.bf16.msra.mxu0 %v7210_v0  ;;  %s7842_s8 = smov 64   ;;  %s7843_s9 = smov 92   ;;  %vm1406_vm4 = vcmask 97344   ;;  %vm1733_vm5 = vcmask 130144   ;;  %vm2060_vm6 = vcmask 162944   ;;  %vm2387_vm7 = vcmask 195744  }
  0x37   : > { %s10578_s15 = smov (!%p288_p8, %s6041_s15), 7  ;;  %6517 = vmatprep.subr.bf16.mxu0 %v7211_v1  ;;  %s7844_s10 = smov 124   ;;  %vm2714_vm8 = vcmask 228544   ;;  %vm3041_vm9 = vcmask 261344  }
  0x38   : > { %s6233_s12 = sshll.u32 %s10578_s15, 5  ;;  %s7845_s11 = smov 60  }
  0x39   : > { %s8005_s20 = scalar_lea.vmem %s10332_s0, %s6233_s12  ;;  %s7846_s13 = smov 88  }
  0x3a   : > { %v7212_v2 = vld [vmem:[%s8005_s20] sm:$0xff]   ;;  %v7213_v3 = vld [vmem:[%s8005_s20 + $0x8] sm:$0xff]   ;;  %v7214_v4 = vld [vmem:[%s8005_s20 + $0x10] sm:$0xff]   ;;  %6518 = vmatpush3.bf16.msra.mxu0 %v7211_v1  ;;  %s7847_s17 = smov 120   ;;  %s7848_s18 = smov 56  }
  0x3b   : > { %6519 = vmatprep.mubr.msk.bf16.mxu0 %vm367_vm0, %v7212_v2  ;;  %v7215_v5 = vld [vmem:[%s8005_s20 + $0x18] sm:$0xff]   ;;  %s10392_s12 = smov 84   ;;  %s10390_s14 = smov 116  }
  0x3c   : > { %s10388_s16 = smov 52   ;;  %s10384_s21 = smov 80  }
  0x3d   : > { %6520 = vmatmul.mubr.msk.bf16.vlgmr.msra.gmra.mrb[0].mxu0 %vm367_vm0, %v7213_v3  ;;  %s10382_s27 = smov 112   ;;  %s10378_s24 = smov 48  }
  0x3e   : > { %6523 = vmatprep.mubr.msk.bf16.mxu0 %vm367_vm0, %v7214_v4  ;;  %s10368_s25 = smov 76   ;;  %s10339_s30 = smov 108  }
  0x3f   : > { %s10347_s28 = smov 44  }
  0x45   : > { %6524 = vmatmul.mubr.msk.bf16.gmra.mrb[4].mxu0 %vm367_vm0, %v7215_v5  ;;  %v8078_v5 = vld [vmem:[%s7991_s19 + $0x10] sm:$0xff] }
 0x110   : > { %v6521_v6 = vpop.f32.mrb[0].mxu0 }
 0x111   : > { %v414_v8 = vpop.f32.mrb[1].mxu0  ;;  %v423_v10 = vadd.f32 %v6521_v6, %v6047_v7 }
 0x112   : > { %v6522_v9 = vpop.f32.mrb[2].mxu0  ;;  %v415_v13 = vadd.f32 %v6047_v7, %v414_v8 }
 0x113   : > { %v426_v11 = vadd.f32 %v6522_v9, %v6047_v7  ;;  %v417_v12 = vpop.f32.mrb[3].mxu0 }
 0x114   : > { %v418_v14 = vadd.f32 %v6047_v7, %v417_v12  ;;  %v8084_v12 = vld [vmem:[%s7991_s19] sm:$0xff] }
 0x115   : > { %v8024_v15 = vpack.c.bf16 %v426_v11, %v423_v10 }
 0x116   : > { %v8026_v16 = vpack.c.bf16 %v418_v14, %v415_v13 }
 0x118   : > { %453 = vrot.lane.b32.xlu0 %v8026_v16, %s7841_s7  ;;  %6535 = vmatprep.mubr.msk.bf16.mxu1 %vm461_vm1, %v8026_v16  ;;  %v6525_v17 = vpop.f32.mrb[4].mxu0 }
 0x119   : > { %v439_v18 = vadd.f32 %v6525_v17, %v6047_v7  ;;  %v430_v19 = vpop.f32.mrb[5].mxu0 }
 0x11a   : > { %v431_v20 = vadd.f32 %v6047_v7, %v430_v19  ;;  %v6526_v21 = vpop.f32.mrb[6].mxu0 }
 0x11b   : > { %v442_v22 = vadd.f32 %v6526_v21, %v6047_v7  ;;  %v433_v23 = vpop.f32.mrb[7].mxu0  ;;  %v8092_v21 = vld [vmem:[%s7991_s19 + $0x18] sm:$0xff] }
 0x11c   : > { %v434_v24 = vadd.f32 %v6047_v7, %v433_v23  ;;  %455 = vrot.lane.b32.xlu0 %v8024_v15, %s7841_s7 }
 0x11d   : > { %v8034_v25 = vpack.c.bf16 %v442_v22, %v439_v18 }
 0x11e   : > { %v8036_v26 = vpack.c.bf16 %v434_v24, %v431_v20 }
 0x120   : > { %457 = vrot.lane.b32.xlu1 %v8036_v26, %s7841_s7 }
 0x124   : > { %459 = vrot.lane.b32.xlu1 %v8034_v25, %s7841_s7 }
 0x18a   : > { %v454_v27 = vpop.permute.xlu0 %453 }
 0x18b   : > { %7075 = vmatprep.subr.msk.bf16.mxu1 %vm461_vm1, %v454_v27  ;;  %v475_v28 = vsel %vm461_vm1, %v454_v27, 0  ;;  %v8097_v27 = vld [vmem:[%s7991_s19 + $0x8] sm:$0xff] }
 0x18c   : > { %6528 = vmatpush3.bf16.xpose.msra.mxu1 %v475_v28 }
 0x18e   : > { %v456_v29 = vpop.permute.xlu0 %455 }
 0x18f   : > { %7076 = vmatprep.subr.msk.bf16.mxu1 %vm461_vm1, %v456_v29  ;;  %v478_v30 = vsel %vm461_vm1, %v456_v29, 0 }
 0x192   : > { %v458_v31 = vpop.permute.xlu1 %457 }
 0x193   : > { %v481_v32 = vsel %vm461_vm1, %v458_v31, 0 }
 0x194   : > { %6530 = vmatpush3.bf16.xpose.msra.mxu1 %v478_v30 }
 0x195   : > { %7077 = vmatprep.subr.msk.bf16.mxu1 %vm461_vm1, %v458_v31 }
 0x196   : > { %v460_v33 = vpop.permute.xlu1 %459 }
 0x197   : > { %v484_v34 = vsel %vm461_vm1, %v460_v33, 0 }
 0x19c   : > { %6532 = vmatpush3.bf16.xpose.msra.mxu1 %v481_v32 }
 0x19d   : > { %7078 = vmatprep.subr.msk.bf16.mxu1 %vm461_vm1, %v460_v33  ;;  %v8103_v33 = vld [vmem:[%s7991_s19 + $0x30] sm:$0xff] }
 0x1a4   : > { %6534 = vmatpush3.bf16.xpose.msra.mxu1 %v484_v34 }
 0x1ab   : > { %6536 = vmatmul.mubr.msk.bf16.vlgmr.msra.gmra.mrb[0].mxu1 %vm461_vm1, %v8024_v15 }
 0x1ac   : > { %6539 = vmatprep.mubr.msk.bf16.mxu1 %vm461_vm1, %v8036_v26 }
 0x1b3   : > { %6540 = vmatmul.mubr.msk.bf16.gmra.mrb[4].mxu1 %vm461_vm1, %v8034_v25 }
 0x27e   : > { %v6537_v35 = vpop.f32.mrb[0].mxu1 }
 0x27f   : > { %v520_v36 = vpop.f32.mrb[1].mxu1  ;;  %v558_v37 = vsel %vm551_vm2, %v6537_v35, -inf }
 0x280   : > { %559 = vmax.xlane.f32.xlu0 %v558_v37  ;;  %v6538_v38 = vpop.f32.mrb[2].mxu1  ;;  %v552_v41 = vsel %vm551_vm2, %v520_v36, -inf }
 0x281   : > { %v523_v39 = vpop.f32.mrb[3].mxu1  ;;  %v561_v44 = vsel %vm551_vm2, %v6538_v38, -inf }
 0x282   : > { %v555_v40 = vsel %vm551_vm2, %v523_v39, -inf }
 0x283   : > { %556 = vmax.xlane.f32.xlu1 %v555_v40 }
 0x284   : > { %553 = vmax.xlane.f32.xlu0 %v552_v41 }
 0x286   : > { %v6541_v42 = vpop.f32.mrb[4].mxu1 }
 0x287   : > { %v536_v43 = vpop.f32.mrb[5].mxu1  ;;  %v570_v45 = vsel %vm551_vm2, %v6541_v42, -inf }
 0x288   : > { %562 = vmax.xlane.f32.xlu0 %v561_v44  ;;  %571 = vmax.xlane.f32.xlu1 %v570_v45  ;;  %v6542_v46 = vpop.f32.mrb[6].mxu1  ;;  %v564_v49 = vsel %vm551_vm2, %v536_v43, -inf }
 0x289   : > { %v8061_v47 = vpop.f32.mrb[7].mxu1  ;;  %v573_v50 = vsel %vm551_vm2, %v6542_v46, -inf }
 0x28a   : > { %v567_v48 = vsel %vm551_vm2, %v8061_v47, -inf }
 0x28c   : > { %565 = vmax.xlane.f32.xlu1 %v564_v49  ;;  %568 = vmax.xlane.f32.xlu0 %v567_v48 }
 0x290   : > { %574 = vmax.xlane.f32.xlu0 %v573_v50  ;;  %v8134_v50 = vld [vmem:[%s7991_s19 + $0x28] sm:$0xff] }
 0x29d   : > { %660 = vrot.lane.b32.xlu1 %v8026_v16, %s7842_s8 }
 0x2a1   : > { %664 = vrot.lane.b32.xlu1 %v8036_v26, %s7842_s8 }
 0x2a5   : > { %666 = vrot.lane.b32.xlu1 %v8034_v25, %s7842_s8 }
 0x2a6   : > { %662 = vrot.lane.b32.xlu0 %v8024_v15, %s7842_s8 }
 0x2a9   : > { %765 = vrot.lane.b32.xlu1 %v8026_v16, %s7843_s9 }
 0x30d   : > { %v560_v51 = vpop.xlane.xlu0 %559 }
 0x30e   : > { %v578_v52 = vsub.f32 %v6537_v35, %v560_v51 }
 0x310   : > { %v588_v53 = vmul.f32 1.442695, %v578_v52  ;;  %v557_v54 = vpop.xlane.xlu1 %556 }
 0x311   : > { %v577_v55 = vsub.f32 %v523_v39, %v557_v54  ;;  %v554_v56 = vpop.xlane.xlu0 %553 }
 0x312   : > { %7222 = vpow2.f32 %v588_v53  ;;  %v576_v57 = vsub.f32 %v520_v36, %v554_v56 }
 0x313   : > { %v586_v59 = vmul.f32 1.442695, %v577_v55 }
 0x314   : > { %v584_v58 = vmul.f32 1.442695, %v576_v57 }
 0x315   : > { %v563_v60 = vpop.xlane.xlu0 %562  ;;  %v572_v61 = vpop.xlane.xlu1 %571 }
 0x316   : > { %7224 = vpow2.f32 %v584_v58  ;;  %v579_v62 = vsub.f32 %v6538_v38, %v563_v60  ;;  %v582_v63 = vsub.f32 %v6541_v42, %v572_v61  ;;  %v8111_v38 = vld [vmem:[%s7991_s19 + $0x20] sm:$0xff]  ;;  %v8119_v42 = vld [vmem:[%s7991_s19 + $0x38] sm:$0xff] }
 0x317   : > { %7226 = vpow2.f32 %v586_v59 }
 0x318   : > { %v590_v0 = vmul.f32 1.442695, %v579_v62  ;;  %v596_v3 = vmul.f32 1.442695, %v582_v63 }
 0x319   : > { %v566_v1 = vpop.xlane.xlu1 %565  ;;  %v569_v2 = vpop.xlane.xlu0 %568 }
 0x31a   : > { %7228 = vpow2.f32 %v590_v0  ;;  %v580_v4 = vsub.f32 %v536_v43, %v566_v1 }
 0x31b   : > { %7230 = vpow2.f32 %v596_v3 }
 0x31c   : > { %v7223_v6 = vpop.eup %7222  ;;  %v592_v10 = vmul.f32 1.442695, %v580_v4 }
 0x31d   : > { %v661_v7 = vpop.permute.xlu1 %660  ;;  %v575_v8 = vpop.xlane.xlu0 %574  ;;  %v8081_v9 = vmul.f32 %v7223_v6, %v8078_v5 }
 0x31e   : > { %v583_v11 = vsub.f32 %v6542_v46, %v575_v8  ;;  %6543 = vmatprep.subr.bf16.mxu0 %v661_v7  ;;  %7232 = vpow2.f32 %v592_v10  ;;  %v581_v46 = vsub.f32 %v8061_v47, %v569_v2 }
 0x31f   : > { %6544 = vmatpush3.bf16.msra.mxu0 %v661_v7  ;;  %v614_v13 = vsel %vm551_vm2, %v8081_v9, 0.0 }
 0x320   : > { %v7225_v14 = vpop.eup %7224  ;;  %615 = vadd.xlane.f32.xlu1 %v614_v13  ;;  %v598_v20 = vmul.f32 1.442695, %v583_v11  ;;  %v594_v48 = vmul.f32 1.442695, %v581_v46 }
 0x321   : > { %v665_v17 = vpop.permute.xlu1 %664  ;;  %v663_v18 = vpop.permute.xlu0 %662  ;;  %v8089_v19 = vmul.f32 %v7225_v14, %v8084_v12 }
 0x322   : > { %6545 = vmatprep.subr.bf16.mxu0 %v663_v18  ;;  %v7227_v22 = vpop.eup %7226  ;;  %7234 = vpow2.f32 %v598_v20 }
 0x323   : > { %6546 = vmatpush3.bf16.msra.mxu0 %v663_v18  ;;  %v608_v23 = vsel %vm551_vm2, %v8089_v19, 0.0  ;;  %v601_v31 = vmul.f32 %v7227_v22, %v8097_v27  ;;  %7236 = vpow2.f32 %v594_v48 }
 0x324   : > { %v7229_v24 = vpop.eup %7228  ;;  %609 = vadd.xlane.f32.xlu1 %v608_v23  ;;  %6547 = vmatprep.subr.bf16.mxu0 %v665_v17 }
 0x325   : > { %v667_v28 = vpop.permute.xlu1 %666  ;;  %v603_v29 = vmul.f32 %v7229_v24, %v8092_v21  ;;  %v7231_v32 = vpop.eup %7230  ;;  %v611_v35 = vsel %vm551_vm2, %v601_v31, 0.0 }
 0x326   : > { %v8107_v36 = vmul.f32 %v7231_v32, %v8103_v33 }
 0x327   : > { %6548 = vmatpush3.bf16.msra.mxu0 %v665_v17  ;;  %v617_v30 = vsel %vm551_vm2, %v603_v29, 0.0 }
 0x328   : > { %618 = vadd.xlane.f32.xlu0 %v617_v30  ;;  %6549 = vmatprep.subr.bf16.mxu0 %v667_v28  ;;  %v7233_v37 = vpop.eup %7232  ;;  %v626_v39 = vsel %vm551_vm2, %v8107_v36, 0.0 }
 0x329   : > { %v766_v34 = vpop.permute.xlu1 %765  ;;  %v8116_v40 = vmul.f32 %v7233_v37, %v8111_v38 }
 0x32a   : > { %v786_v11 = vsel %vm461_vm1, %v766_v34, 0 }
 0x32b   : > { %6550 = vmatpush3.bf16.msra.mxu0 %v667_v28  ;;  %v620_v43 = vsel %vm551_vm2, %v8116_v40, 0.0 }
 0x32c   : > { %612 = vadd.xlane.f32.xlu0 %v611_v35  ;;  %7079 = vmatprep.subr.msk.bf16.mxu0 %vm461_vm1, %v766_v34  ;;  %v7235_v41 = vpop.eup %7234 }
 0x32d   : > { %v8124_v44 = vmul.f32 %v7235_v41, %v8119_v42  ;;  %v7237_v49 = vpop.eup %7236 }
 0x32e   : > { %v8139_v51 = vmul.f32 %v7237_v49, %v8134_v50 }
 0x32f   : > { %v629_v45 = vsel %vm551_vm2, %v8124_v44, 0.0 }
 0x330   : > { %627 = vadd.xlane.f32.xlu0 %v626_v39  ;;  %v623_v47 = vsel %vm551_vm2, %v8139_v51, 0.0 }
 0x334   : > { %621 = vadd.xlane.f32.xlu0 %v620_v43 }
 0x335   : > { %769 = vrot.lane.b32.xlu1 %v8036_v26, %s7843_s9 }
 0x338   : > { %630 = vadd.xlane.f32.xlu0 %v629_v45 }
 0x34e   : > { %767 = vrot.lane.b32.xlu0 %v8024_v15, %s7843_s9 }
 0x352   : > { %757 = vrot.lane.b32.xlu0 %v8026_v16, %s7844_s10 }
 0x356   : > { %761 = vrot.lane.b32.xlu0 %v8036_v26, %s7844_s10 }
 0x359   : > { %624 = vadd.xlane.f32.xlu1 %v623_v47 }
 0x36a   : > { %771 = vrot.lane.b32.xlu1 %v8034_v25, %s7843_s9 }
 0x36e   : > { %759 = vrot.lane.b32.xlu1 %v8024_v15, %s7844_s10 }
 0x372   : > { %763 = vrot.lane.b32.xlu1 %v8034_v25, %s7844_s10 }
 0x3ad   : > { %v616_v52 = vpop.xlane.xlu1 %615 }
 0x3ae   : > { %v634_v57 = vmax.f32 %v616_v52, 1e-30 }
 0x3b1   : > { %v610_v53 = vpop.xlane.xlu1 %609 }
 0x3b2   : > { %v632_v55 = vmax.f32 %v610_v53, 1e-30 }
 0x3b5   : > { %v619_v54 = vpop.xlane.xlu0 %618  ;;  %v770_v17 = vpop.permute.xlu1 %769 }
 0x3b6   : > { %v635_v56 = vmax.f32 %v619_v54, 1e-30 }
 0x3b8   : > { %7238 = vrcp.f32 %v635_v56 }
 0x3b9   : > { %v613_v58 = vpop.xlane.xlu0 %612  ;;  %7240 = vrcp.f32 %v632_v55 }
 0x3ba   : > { %v633_v59 = vmax.f32 %v613_v58, 1e-30  ;;  %7242 = vrcp.f32 %v634_v57 }
 0x3bc   : > { %7244 = vrcp.f32 %v633_v59 }
 0x3bd   : > { %v628_v60 = vpop.xlane.xlu0 %627 }
 0x3be   : > { %v638_v20 = vmax.f32 %v628_v60, 1e-30 }
 0x3c1   : > { %v622_v61 = vpop.xlane.xlu0 %621 }
 0x3c2   : > { %v7239_v62 = vpop.eup %7238 }
 0x3c3   : > { %v7241_v63 = vpop.eup %7240  ;;  %v651_v2 = vmul.f32 %v7239_v62, %v603_v29 }
 0x3c4   : > { %v7243_v0 = vpop.eup %7242  ;;  %v648_v4 = vmul.f32 %v7241_v63, %v8089_v19  ;;  %v636_v19 = vmax.f32 %v622_v61, 1e-30 }
 0x3c5   : > { %v631_v3 = vpop.xlane.xlu0 %630  ;;  %v650_v7 = vmul.f32 %v7243_v0, %v8081_v9  ;;  %v792_v9 = vsel %vm461_vm1, %v770_v17, 0 }
 0x3c6   : > { %v7245_v1 = vpop.eup %7244  ;;  %v639_v18 = vmax.f32 %v631_v3, 1e-30 }
 0x3c7   : > { %v649_v6 = vmul.f32 %v7245_v1, %v601_v31  ;;  %v657_v10 = vpack.c.bf16 %v651_v2, %v650_v7 }
 0x3c8   : > { %7246 = vrcp.f32 %v639_v18 }
 0x3c9   : > { %v656_v8 = vpack.c.bf16 %v649_v6, %v648_v4  ;;  %v768_v13 = vpop.permute.xlu0 %767  ;;  %7248 = vrcp.f32 %v636_v19 }
 0x3ca   : > { %v789_v14 = vsel %vm461_vm1, %v768_v13, 0  ;;  %7250 = vrcp.f32 %v638_v20 }
 0x3cb   : > { %6551 = vmatprep.mubr.msk.bf16.mxu0 %vm551_vm2, %v656_v8 }
 0x3cc   : > { %6552 = vmatmul.mubr.msk.bf16.vlgmr.msra.gmra.mrb[8].mxu0 %vm551_vm2, %v657_v10 }
 0x3cd   : > { %6560 = vmatpush3.bf16.xpose.msra.mxu0 %v786_v11  ;;  %v758_v45 = vpop.permute.xlu0 %757 }
 0x3ce   : > { %7080 = vmatprep.subr.msk.bf16.mxu0 %vm461_vm1, %v768_v13 }
 0x3d1   : > { %v762_v48 = vpop.permute.xlu0 %761 }
 0x3d2   : > { %v7247_v29 = vpop.eup %7246 }
 0x3d3   : > { %v7249_v30 = vpop.eup %7248  ;;  %v655_v34 = vmul.f32 %v7247_v29, %v8124_v44 }
 0x3d4   : > { %v7251_v31 = vpop.eup %7250  ;;  %v652_v35 = vmul.f32 %v7249_v30, %v8116_v40 }
 0x3d5   : > { %6562 = vmatpush3.bf16.xpose.msra.mxu0 %v789_v14  ;;  %v654_v39 = vmul.f32 %v7251_v31, %v8107_v36 }
 0x3d6   : > { %7081 = vmatprep.subr.msk.bf16.mxu0 %vm461_vm1, %v770_v17 }
 0x3d7   : > { %v659_v43 = vpack.c.bf16 %v655_v34, %v654_v39 }
 0x3dd   : > { %6564 = vmatpush3.bf16.xpose.msra.mxu0 %v792_v9 }
 0x3e6   : > { %v625_v22 = vpop.xlane.xlu1 %624 }
 0x3e7   : > { %v637_v23 = vmax.f32 %v625_v22, 1e-30 }
 0x3e9   : > { %7252 = vrcp.f32 %v637_v23 }
 0x3ea   : > { %v772_v24 = vpop.permute.xlu1 %771 }
 0x3eb   : > { %7082 = vmatprep.subr.msk.bf16.mxu0 %vm461_vm1, %v772_v24  ;;  %v795_v28 = vsel %vm461_vm1, %v772_v24, 0 }
 0x3ec   : > { %6566 = vmatpush3.bf16.xpose.msra.mxu0 %v795_v28 }
 0x3ee   : > { %v760_v46 = vpop.permute.xlu1 %759 }
 0x3f2   : > { %v764_v40 = vpop.permute.xlu1 %763 }
 0x3f3   : > { %v7253_v32 = vpop.eup %7252 }
 0x3f4   : > { %v653_v37 = vmul.f32 %v7253_v32, %v8139_v51 }
 0x3f6   : > { %v658_v41 = vpack.c.bf16 %v653_v37, %v652_v35 }
 0x3f8   : > { %6555 = vmatprep.mubr.msk.bf16.mxu0 %vm551_vm2, %v658_v41 }
 0x3f9   : > { %6556 = vmatmul.mubr.msk.bf16.gmra.mrb[12].mxu0 %vm551_vm2, %v659_v43 }
 0x3fa   : > { %6567 = vmatprep.mubr.msk.bf16.mxu0 %vm461_vm1, %v758_v45 }
 0x401   : > { %6568 = vmatmul.mubr.msk.bf16.vlgmr.msra.gmra.mrb[16].mxu0 %vm461_vm1, %v760_v46 }
 0x402   : > { %6571 = vmatprep.mubr.msk.bf16.mxu0 %vm461_vm1, %v762_v48 }
 0x409   : > { %6572 = vmatmul.mubr.msk.bf16.gmra.mrb[20].mxu0 %vm461_vm1, %v764_v40 }
 0x49f   : > { %v6553_v44 = vpop.f32.mrb[8].mxu0 }
 0x4a0   : > { %v718_v36 = vpop.f32.mrb[9].mxu0 }
 0x4a1   : > { %v6554_v49 = vpop.f32.mrb[10].mxu0 }
 0x4a2   : > { %v750_v51 = vpack.c.bf16 %v6554_v49, %v6553_v44  ;;  %v721_v47 = vpop.f32.mrb[11].mxu0 }
 0x4a3   : > { %v749_v52 = vpack.c.bf16 %v721_v47, %v718_v36 }
 0x4a4   : > { %754 = vst.msk [vmem:[#allocation2 + $0x8] sm:$0xff] %vm461_vm1, %v750_v51 }
 0x4a5   : > { %753 = vst.msk [vmem:[#allocation2] sm:$0xff] %vm461_vm1, %v749_v52 }
 0x4cc   : > { %v6557_v53 = vpop.f32.mrb[12].mxu0 }
 0x4cd   : > { %v734_v54 = vpop.f32.mrb[13].mxu0 }
 0x4ce   : > { %v6558_v55 = vpop.f32.mrb[14].mxu0 }
 0x4cf   : > { %v752_v56 = vpack.c.bf16 %v6558_v55, %v6557_v53  ;;  %v737_v57 = vpop.f32.mrb[15].mxu0 }
 0x4d0   : > { %v751_v58 = vpack.c.bf16 %v737_v57, %v734_v54 }
 0x4d1   : > { %756 = vst.msk [vmem:[#allocation2 + $0x18] sm:$0xff] %vm461_vm1, %v752_v56 }
 0x4d2   : > { %755 = vst.msk [vmem:[#allocation2 + $0x10] sm:$0xff] %vm461_vm1, %v751_v58 }
 0x4d4   : > { %v6569_v59 = vpop.f32.mrb[16].mxu0 }
 0x4d5   : > { %v831_v60 = vpop.f32.mrb[17].mxu0  ;;  %v868_v61 = vsel %vm551_vm2, %v6569_v59, -inf }
 0x4d6   : > { %869 = vmax.xlane.f32.xlu0 %v868_v61  ;;  %v6570_v62 = vpop.f32.mrb[18].mxu0  ;;  %v862_v1 = vsel %vm551_vm2, %v831_v60, -inf }
 0x4d7   : > { %v834_v63 = vpop.f32.mrb[19].mxu0  ;;  %v871_v4 = vsel %vm551_vm2, %v6570_v62, -inf }
 0x4d8   : > { %v865_v0 = vsel %vm551_vm2, %v834_v63, -inf }
 0x4d9   : > { %866 = vmax.xlane.f32.xlu1 %v865_v0 }
 0x4da   : > { %863 = vmax.xlane.f32.xlu0 %v862_v1 }
 0x4dc   : > { %v6573_v2 = vpop.f32.mrb[20].mxu0 }
 0x4dd   : > { %v847_v3 = vpop.f32.mrb[21].mxu0  ;;  %v880_v6 = vsel %vm551_vm2, %v6573_v2, -inf }
 0x4de   : > { %872 = vmax.xlane.f32.xlu0 %v871_v4  ;;  %881 = vmax.xlane.f32.xlu1 %v880_v6  ;;  %v6574_v7 = vpop.f32.mrb[22].mxu0  ;;  %v874_v11 = vsel %vm551_vm2, %v847_v3, -inf }
 0x4df   : > { %v8181_v8 = vpop.f32.mrb[23].mxu0  ;;  %v883_v13 = vsel %vm551_vm2, %v6574_v7, -inf }
 0x4e0   : > { %v877_v10 = vsel %vm551_vm2, %v8181_v8, -inf }
 0x4e2   : > { %875 = vmax.xlane.f32.xlu1 %v874_v11  ;;  %878 = vmax.xlane.f32.xlu0 %v877_v10 }
 0x4e6   : > { %884 = vmax.xlane.f32.xlu0 %v883_v13 }
 0x4f3   : > { %970 = vrot.lane.b32.xlu1 %v8026_v16, %s7845_s11 }
 0x4f7   : > { %974 = vrot.lane.b32.xlu1 %v8036_v26, %s7845_s11 }
 0x4fb   : > { %976 = vrot.lane.b32.xlu1 %v8034_v25, %s7845_s11 }
 0x4fc   : > { %972 = vrot.lane.b32.xlu0 %v8024_v15, %s7845_s11 }
 0x4ff   : > { %1092 = vrot.lane.b32.xlu1 %v8026_v16, %s7846_s13 }
 0x563   : > { %v870_v14 = vpop.xlane.xlu0 %869 }
 0x564   : > { %v888_v17 = vsub.f32 %v6569_v59, %v870_v14 }
 0x566   : > { %v898_v9 = vmul.f32 1.442695, %v888_v17  ;;  %v867_v18 = vpop.xlane.xlu1 %866 }
 0x567   : > { %v864_v19 = vpop.xlane.xlu0 %863  ;;  %v887_v20 = vsub.f32 %v834_v63, %v867_v18 }
 0x568   : > { %7254 = vpow2.f32 %v898_v9  ;;  %v886_v22 = vsub.f32 %v831_v60, %v864_v19 }
 0x569   : > { %v896_v29 = vmul.f32 1.442695, %v887_v20 }
 0x56a   : > { %v894_v23 = vmul.f32 1.442695, %v886_v22 }
 0x56b   : > { %v882_v24 = vpop.xlane.xlu1 %881  ;;  %v873_v28 = vpop.xlane.xlu0 %872 }
 0x56c   : > { %7256 = vpow2.f32 %v894_v23  ;;  %v889_v30 = vsub.f32 %v6570_v62, %v873_v28  ;;  %v892_v31 = vsub.f32 %v6573_v2, %v882_v24 }
 0x56d   : > { %7258 = vpow2.f32 %v896_v29 }
 0x56e   : > { %v900_v32 = vmul.f32 1.442695, %v889_v30  ;;  %v906_v37 = vmul.f32 1.442695, %v892_v31 }
 0x56f   : > { %v876_v34 = vpop.xlane.xlu1 %875  ;;  %v879_v35 = vpop.xlane.xlu0 %878 }
 0x570   : > { %7260 = vpow2.f32 %v900_v32  ;;  %v890_v39 = vsub.f32 %v847_v3, %v876_v34  ;;  %v891_v10 = vsub.f32 %v8181_v8, %v879_v35 }
 0x571   : > { %7262 = vpow2.f32 %v906_v37 }
 0x572   : > { %v7255_v41 = vpop.eup %7254  ;;  %v902_v48 = vmul.f32 1.442695, %v890_v39  ;;  %v904_v11 = vmul.f32 1.442695, %v891_v10 }
 0x573   : > { %v971_v43 = vpop.permute.xlu1 %970  ;;  %v885_v45 = vpop.xlane.xlu0 %884  ;;  %v8198_v46 = vmul.f32 %v7255_v41, %v8078_v5 }
 0x574   : > { %6575 = vmatprep.subr.bf16.mxu1 %v971_v43  ;;  %v893_v40 = vsub.f32 %v6574_v7, %v885_v45  ;;  %7264 = vpow2.f32 %v902_v48 }
 0x575   : > { %6576 = vmatpush3.bf16.msra.mxu1 %v971_v43  ;;  %v924_v44 = vsel %vm551_vm2, %v8198_v46, 0.0 }
 0x576   : > { %v7257_v36 = vpop.eup %7256  ;;  %925 = vadd.xlane.f32.xlu1 %v924_v44  ;;  %v908_v52 = vmul.f32 1.442695, %v893_v40 }
 0x577   : > { %v975_v49 = vpop.permute.xlu1 %974  ;;  %v973_v51 = vpop.permute.xlu0 %972  ;;  %v8203_v47 = vmul.f32 %v7257_v36, %v8084_v12 }
 0x578   : > { %6577 = vmatprep.subr.bf16.mxu1 %v973_v51  ;;  %v7259_v54 = vpop.eup %7258  ;;  %7266 = vpow2.f32 %v908_v52 }
 0x579   : > { %6578 = vmatpush3.bf16.msra.mxu1 %v973_v51  ;;  %v918_v53 = vsel %vm551_vm2, %v8203_v47, 0.0  ;;  %v911_v59 = vmul.f32 %v7259_v54, %v8097_v27  ;;  %7268 = vpow2.f32 %v904_v11 }
 0x57a   : > { %919 = vadd.xlane.f32.xlu1 %v918_v53  ;;  %6579 = vmatprep.subr.bf16.mxu1 %v975_v49  ;;  %v7261_v55 = vpop.eup %7260 }
 0x57b   : > { %v977_v56 = vpop.permute.xlu1 %976  ;;  %v913_v57 = vmul.f32 %v7261_v55, %v8092_v21  ;;  %v7263_v60 = vpop.eup %7262  ;;  %v921_v62 = vsel %vm551_vm2, %v911_v59, 0.0 }
 0x57c   : > { %v8213_v63 = vmul.f32 %v7263_v60, %v8103_v33 }
 0x57d   : > { %6580 = vmatpush3.bf16.msra.mxu1 %v975_v49  ;;  %v927_v58 = vsel %vm551_vm2, %v913_v57, 0.0 }
 0x57e   : > { %6581 = vmatprep.subr.bf16.mxu1 %v977_v56  ;;  %928 = vadd.xlane.f32.xlu0 %v927_v58  ;;  %v7265_v0 = vpop.eup %7264  ;;  %v936_v1 = vsel %vm551_vm2, %v8213_v63, 0.0 }
 0x57f   : > { %v1093_v61 = vpop.permute.xlu1 %1092  ;;  %v8218_v2 = vmul.f32 %v7265_v0, %v8111_v38 }
 0x580   : > { %v1113_v40 = vsel %vm461_vm1, %v1093_v61, 0 }
 0x581   : > { %6582 = vmatpush3.bf16.msra.mxu1 %v977_v56  ;;  %v930_v4 = vsel %vm551_vm2, %v8218_v2, 0.0 }
 0x582   : > { %7083 = vmatprep.subr.msk.bf16.mxu1 %vm461_vm1, %v1093_v61  ;;  %922 = vadd.xlane.f32.xlu0 %v921_v62  ;;  %v7267_v3 = vpop.eup %7266 }
 0x583   : > { %v8223_v6 = vmul.f32 %v7267_v3, %v8119_v42  ;;  %v7269_v13 = vpop.eup %7268 }
 0x584   : > { %v8235_v14 = vmul.f32 %v7269_v13, %v8134_v50 }
 0x585   : > { %v939_v7 = vsel %vm551_vm2, %v8223_v6, 0.0 }
 0x586   : > { %937 = vadd.xlane.f32.xlu0 %v936_v1  ;;  %v933_v17 = vsel %vm551_vm2, %v8235_v14, 0.0 }
 0x58a   : > { %931 = vadd.xlane.f32.xlu0 %v930_v4 }
 0x58b   : > { %1096 = vrot.lane.b32.xlu1 %v8036_v26, %s7846_s13 }
 0x58e   : > { %940 = vadd.xlane.f32.xlu0 %v939_v7 }
 0x5a4   : > { %1094 = vrot.lane.b32.xlu0 %v8024_v15, %s7846_s13 }
 0x5a8   : > { %1084 = vrot.lane.b32.xlu0 %v8026_v16, %s7847_s17 }
 0x5ac   : > { %1088 = vrot.lane.b32.xlu0 %v8036_v26, %s7847_s17 }
 0x5af   : > { %934 = vadd.xlane.f32.xlu1 %v933_v17 }
 0x5c0   : > { %1098 = vrot.lane.b32.xlu1 %v8034_v25, %s7846_s13 }
 0x5c4   : > { %1086 = vrot.lane.b32.xlu1 %v8024_v15, %s7847_s17 }
 0x5c8   : > { %1090 = vrot.lane.b32.xlu1 %v8034_v25, %s7847_s17 }
 0x603   : > { %v926_v8 = vpop.xlane.xlu1 %925 }
 0x604   : > { %v944_v22 = vmax.f32 %v926_v8, 1e-30 }
 0x607   : > { %v920_v9 = vpop.xlane.xlu1 %919 }
 0x608   : > { %v942_v19 = vmax.f32 %v920_v9, 1e-30 }
 0x60b   : > { %v929_v18 = vpop.xlane.xlu0 %928  ;;  %v1097_v49 = vpop.permute.xlu1 %1096 }
 0x60c   : > { %v945_v20 = vmax.f32 %v929_v18, 1e-30 }
 0x60e   : > { %7270 = vrcp.f32 %v945_v20 }
 0x60f   : > { %v923_v23 = vpop.xlane.xlu0 %922  ;;  %7272 = vrcp.f32 %v942_v19 }
 0x610   : > { %v943_v24 = vmax.f32 %v923_v23, 1e-30  ;;  %7274 = vrcp.f32 %v944_v22 }
 0x612   : > { %7276 = vrcp.f32 %v943_v24 }
 0x613   : > { %v938_v28 = vpop.xlane.xlu0 %937 }
 0x614   : > { %v948_v52 = vmax.f32 %v938_v28, 1e-30 }
 0x617   : > { %v932_v29 = vpop.xlane.xlu0 %931 }
 0x618   : > { %v7271_v30 = vpop.eup %7270 }
 0x619   : > { %v7273_v31 = vpop.eup %7272  ;;  %v961_v35 = vmul.f32 %v7271_v30, %v913_v57 }
 0x61a   : > { %v7275_v32 = vpop.eup %7274  ;;  %v958_v39 = vmul.f32 %v7273_v31, %v8203_v47  ;;  %v946_v47 = vmax.f32 %v932_v29, 1e-30 }
 0x61b   : > { %v941_v37 = vpop.xlane.xlu0 %940  ;;  %v960_v43 = vmul.f32 %v7275_v32, %v8198_v46  ;;  %v1119_v46 = vsel %vm461_vm1, %v1097_v49, 0 }
 0x61c   : > { %v7277_v34 = vpop.eup %7276  ;;  %v949_v51 = vmax.f32 %v941_v37, 1e-30 }
 0x61d   : > { %v959_v41 = vmul.f32 %v7277_v34, %v911_v59  ;;  %v967_v48 = vpack.c.bf16 %v961_v35, %v960_v43 }
 0x61e   : > { %7278 = vrcp.f32 %v949_v51 }
 0x61f   : > { %v966_v45 = vpack.c.bf16 %v959_v41, %v958_v39  ;;  %v1095_v44 = vpop.permute.xlu0 %1094  ;;  %7280 = vrcp.f32 %v946_v47 }
 0x620   : > { %v1116_v36 = vsel %vm461_vm1, %v1095_v44, 0  ;;  %7282 = vrcp.f32 %v948_v52 }
 0x621   : > { %6583 = vmatprep.mubr.msk.bf16.mxu1 %vm551_vm2, %v966_v45 }
 0x622   : > { %6584 = vmatmul.mubr.msk.bf16.vlgmr.msra.gmra.mrb[8].mxu1 %vm551_vm2, %v967_v48 }
 0x623   : > { %6592 = vmatpush3.bf16.xpose.msra.mxu1 %v1113_v40  ;;  %v1085_v7 = vpop.permute.xlu0 %1084 }
 0x624   : > { %7084 = vmatprep.subr.msk.bf16.mxu1 %vm461_vm1, %v1095_v44 }
 0x627   : > { %v1089_v11 = vpop.permute.xlu0 %1088 }
 0x628   : > { %v7279_v57 = vpop.eup %7278 }
 0x629   : > { %v7281_v58 = vpop.eup %7280  ;;  %v965_v61 = vmul.f32 %v7279_v57, %v8223_v6 }
 0x62a   : > { %v7283_v59 = vpop.eup %7282  ;;  %v962_v62 = vmul.f32 %v7281_v58, %v8218_v2 }
 0x62b   : > { %6594 = vmatpush3.bf16.xpose.msra.mxu1 %v1116_v36  ;;  %v964_v1 = vmul.f32 %v7283_v59, %v8213_v63 }
 0x62c   : > { %7085 = vmatprep.subr.msk.bf16.mxu1 %vm461_vm1, %v1097_v49 }
 0x62d   : > { %v969_v4 = vpack.c.bf16 %v965_v61, %v964_v1 }
 0x633   : > { %6596 = vmatpush3.bf16.xpose.msra.mxu1 %v1119_v46 }
 0x63c   : > { %v935_v53 = vpop.xlane.xlu1 %934 }
 0x63d   : > { %v947_v54 = vmax.f32 %v935_v53, 1e-30 }
 0x63f   : > { %7284 = vrcp.f32 %v947_v54 }
 0x640   : > { %v1099_v55 = vpop.permute.xlu1 %1098 }
 0x641   : > { %7086 = vmatprep.subr.msk.bf16.mxu1 %vm461_vm1, %v1099_v55  ;;  %v1122_v56 = vsel %vm461_vm1, %v1099_v55, 0 }
 0x642   : > { %6598 = vmatpush3.bf16.xpose.msra.mxu1 %v1122_v56 }
 0x644   : > { %v1087_v10 = vpop.permute.xlu1 %1086 }
 0x648   : > { %v1091_v2 = vpop.permute.xlu1 %1090 }
 0x649   : > { %v7285_v60 = vpop.eup %7284 }
 0x64a   : > { %v963_v0 = vmul.f32 %v7285_v60, %v8235_v14 }
 0x64c   : > { %v968_v3 = vpack.c.bf16 %v963_v0, %v962_v62 }
 0x64e   : > { %6587 = vmatprep.mubr.msk.bf16.mxu1 %vm551_vm2, %v968_v3 }
 0x64f   : > { %6588 = vmatmul.mubr.msk.bf16.gmra.mrb[12].mxu1 %vm551_vm2, %v969_v4 }
 0x650   : > { %6599 = vmatprep.mubr.msk.bf16.mxu1 %vm461_vm1, %v1085_v7 }
 0x657   : > { %6600 = vmatmul.mubr.msk.bf16.vlgmr.msra.gmra.mrb[16].mxu1 %vm461_vm1, %v1087_v10 }
 0x658   : > { %6603 = vmatprep.mubr.msk.bf16.mxu1 %vm461_vm1, %v1089_v11 }
 0x65f   : > { %6604 = vmatmul.mubr.msk.bf16.gmra.mrb[20].mxu1 %vm461_vm1, %v1091_v2 }
 0x6f5   : > { %v8268_v6 = vpop.f32.mrb[8].mxu1 }
 0x6f6   : > { %v8270_v63 = vpop.f32.mrb[9].mxu1 }
 0x6f7   : > { %v8272_v13 = vpop.f32.mrb[10].mxu1 }
 0x6f8   : > { %v8276_v17 = vpop.f32.mrb[11].mxu1 }
 0x722   : > { %v8280_v9 = vpop.f32.mrb[12].mxu1 }
 0x723   : > { %10420 = vst [vmem:[#allocation6_spill] sm:$0xff] %v8280_v9  ;;  %v8282_v18 = vpop.f32.mrb[13].mxu1 }
 0x724   : > { %10421 = vst [vmem:[#allocation7_spill] sm:$0xff] %v8282_v18  ;;  %v8284_v19 = vpop.f32.mrb[14].mxu1 }
 0x725   : > { %v8288_v22 = vpop.f32.mrb[15].mxu1 }
 0x726   : > { %10422 = vst [vmem:[#allocation8_spill] sm:$0xff] %v8288_v22 }
 0x72a   : > { %v6601_v24 = vpop.f32.mrb[16].mxu1 }
 0x72b   : > { %v1158_v28 = vpop.f32.mrb[17].mxu1  ;;  %v1195_v29 = vsel %vm551_vm2, %v6601_v24, -inf }
 0x72c   : > { %1196 = vmax.xlane.f32.xlu0 %v1195_v29  ;;  %v6602_v30 = vpop.f32.mrb[18].mxu1  ;;  %v1189_v34 = vsel %vm551_vm2, %v1158_v28, -inf }
 0x72d   : > { %v1161_v31 = vpop.f32.mrb[19].mxu1  ;;  %v1198_v39 = vsel %vm551_vm2, %v6602_v30, -inf }
 0x72e   : > { %v1192_v32 = vsel %vm551_vm2, %v1161_v31, -inf }
 0x72f   : > { %1193 = vmax.xlane.f32.xlu1 %v1192_v32 }
 0x730   : > { %1190 = vmax.xlane.f32.xlu0 %v1189_v34 }
 0x732   : > { %v6605_v35 = vpop.f32.mrb[20].mxu1 }
 0x733   : > { %v1174_v37 = vpop.f32.mrb[21].mxu1  ;;  %v1207_v41 = vsel %vm551_vm2, %v6605_v35, -inf }
 0x734   : > { %1199 = vmax.xlane.f32.xlu0 %v1198_v39  ;;  %1208 = vmax.xlane.f32.xlu1 %v1207_v41  ;;  %v6606_v43 = vpop.f32.mrb[22].mxu1  ;;  %v1201_v40 = vsel %vm551_vm2, %v1174_v37, -inf }
 0x735   : > { %v8297_v45 = vpop.f32.mrb[23].mxu1  ;;  %v1210_v44 = vsel %vm551_vm2, %v6606_v43, -inf }
 0x736   : > { %v1204_v48 = vsel %vm551_vm2, %v8297_v45, -inf }
 0x738   : > { %1202 = vmax.xlane.f32.xlu1 %v1201_v40  ;;  %1205 = vmax.xlane.f32.xlu0 %v1204_v48 }
 0x73c   : > { %1211 = vmax.xlane.f32.xlu0 %v1210_v44 }
 0x749   : > { %1297 = vrot.lane.b32.xlu1 %v8026_v16, %s7848_s18 }
 0x74d   : > { %1301 = vrot.lane.b32.xlu1 %v8036_v26, %s7848_s18 }
 0x751   : > { %1303 = vrot.lane.b32.xlu1 %v8034_v25, %s7848_s18 }
 0x752   : > { %1299 = vrot.lane.b32.xlu0 %v8024_v15, %s7848_s18 }
 0x755   : > { %1419 = vrot.lane.b32.xlu1 %v8026_v16, %s10392_s12 }
 0x7b9   : > { %v1197_v36 = vpop.xlane.xlu0 %1196 }
 0x7ba   : > { %v1215_v49 = vsub.f32 %v6601_v24, %v1197_v36 }
 0x7bc   : > { %v1225_v46 = vmul.f32 1.442695, %v1215_v49  ;;  %v1194_v51 = vpop.xlane.xlu1 %1193 }
 0x7bd   : > { %v1191_v47 = vpop.xlane.xlu0 %1190  ;;  %v1214_v52 = vsub.f32 %v1161_v31, %v1194_v51 }
 0x7be   : > { %7286 = vpow2.f32 %v1225_v46  ;;  %v1213_v53 = vsub.f32 %v1158_v28, %v1191_v47 }
 0x7bf   : > { %v1223_v57 = vmul.f32 1.442695, %v1214_v52 }
 0x7c0   : > { %v1221_v54 = vmul.f32 1.442695, %v1213_v53 }
 0x7c1   : > { %v1209_v55 = vpop.xlane.xlu1 %1208  ;;  %v1200_v56 = vpop.xlane.xlu0 %1199 }
 0x7c2   : > { %7288 = vpow2.f32 %v1221_v54  ;;  %v1216_v58 = vsub.f32 %v6602_v30, %v1200_v56  ;;  %v1219_v59 = vsub.f32 %v6605_v35, %v1209_v55 }
 0x7c3   : > { %7290 = vpow2.f32 %v1223_v57 }
 0x7c4   : > { %v1227_v60 = vmul.f32 1.442695, %v1216_v58  ;;  %v1233_v0 = vmul.f32 1.442695, %v1219_v59 }
 0x7c5   : > { %v1203_v61 = vpop.xlane.xlu1 %1202  ;;  %v1206_v62 = vpop.xlane.xlu0 %1205 }
 0x7c6   : > { %7292 = vpow2.f32 %v1227_v60  ;;  %v1217_v1 = vsub.f32 %v1174_v37, %v1203_v61  ;;  %v1218_v47 = vsub.f32 %v8297_v45, %v1206_v62 }
 0x7c7   : > { %7294 = vpow2.f32 %v1233_v0 }
 0x7c8   : > { %v7287_v3 = vpop.eup %7286  ;;  %v1229_v11 = vmul.f32 1.442695, %v1217_v1 }
 0x7c9   : > { %v1298_v4 = vpop.permute.xlu1 %1297  ;;  %v1212_v7 = vpop.xlane.xlu0 %1211  ;;  %v8314_v10 = vmul.f32 %v7287_v3, %v8078_v5 }
 0x7ca   : > { %6607 = vmatprep.subr.bf16.mxu0 %v1298_v4  ;;  %v1220_v2 = vsub.f32 %v6606_v43, %v1212_v7  ;;  %7296 = vpow2.f32 %v1229_v11 }
 0x7cb   : > { %6608 = vmatpush3.bf16.msra.mxu0 %v1298_v4  ;;  %v1251_v24 = vsel %vm551_vm2, %v8314_v10, 0.0 }
 0x7cc   : > { %v7289_v28 = vpop.eup %7288  ;;  %1252 = vadd.xlane.f32.xlu1 %v1251_v24  ;;  %v1235_v32 = vmul.f32 1.442695, %v1220_v2 }
 0x7cd   : > { %v1302_v29 = vpop.permute.xlu1 %1301  ;;  %v1300_v30 = vpop.permute.xlu0 %1299  ;;  %v8319_v31 = vmul.f32 %v7289_v28, %v8084_v12 }
 0x7ce   : > { %6609 = vmatprep.subr.bf16.mxu0 %v1300_v30  ;;  %v7291_v34 = vpop.eup %7290  ;;  %7298 = vpow2.f32 %v1235_v32 }
 0x7cf   : > { %6610 = vmatpush3.bf16.msra.mxu0 %v1300_v30  ;;  %v1245_v5 = vsel %vm551_vm2, %v8319_v31, 0.0  ;;  %v1238_v12 = vmul.f32 %v7291_v34, %v8097_v27 }
 0x7d0   : > { %1246 = vadd.xlane.f32.xlu1 %v1245_v5  ;;  %6611 = vmatprep.subr.bf16.mxu0 %v1302_v29  ;;  %v7293_v35 = vpop.eup %7292 }
 0x7d1   : > { %v1304_v37 = vpop.permute.xlu1 %1303  ;;  %v1240_v39 = vmul.f32 %v7293_v35, %v8092_v21  ;;  %v7295_v43 = vpop.eup %7294  ;;  %v1248_v40 = vsel %vm551_vm2, %v1238_v12, 0.0 }
 0x7d2   : > { %v8329_v44 = vmul.f32 %v7295_v43, %v8103_v33 }
 0x7d3   : > { %6612 = vmatpush3.bf16.msra.mxu0 %v1302_v29  ;;  %v1254_v41 = vsel %vm551_vm2, %v1240_v39, 0.0 }
 0x7d4   : > { %6613 = vmatprep.subr.bf16.mxu0 %v1304_v37  ;;  %1255 = vadd.xlane.f32.xlu0 %v1254_v41  ;;  %v7297_v36 = vpop.eup %7296  ;;  %v1263_v21 = vsel %vm551_vm2, %v8329_v44, 0.0 }
 0x7d5   : > { %v1420_v48 = vpop.permute.xlu1 %1419  ;;  %v8334_v49 = vmul.f32 %v7297_v36, %v8111_v38  ;;  %v1231_v38 = vmul.f32 1.442695, %v1218_v47 }
 0x7d6   : > { %v1440_v30 = vsel %vm461_vm1, %v1420_v48, 0 }
 0x7d7   : > { %6614 = vmatpush3.bf16.msra.mxu0 %v1304_v37  ;;  %v1257_v46 = vsel %vm551_vm2, %v8334_v49, 0.0  ;;  %7300 = vpow2.f32 %v1231_v38 }
 0x7d8   : > { %7087 = vmatprep.subr.msk.bf16.mxu0 %vm461_vm1, %v1420_v48  ;;  %1249 = vadd.xlane.f32.xlu0 %v1248_v40  ;;  %v7299_v27 = vpop.eup %7298 }
 0x7d9   : > { %v8339_v51 = vmul.f32 %v7299_v27, %v8119_v42 }
 0x7db   : > { %v1266_v33 = vsel %vm551_vm2, %v8339_v51, 0.0 }
 0x7dc   : > { %1264 = vadd.xlane.f32.xlu0 %v1263_v21 }
 0x7e0   : > { %1258 = vadd.xlane.f32.xlu0 %v1257_v46 }
 0x7e1   : > { %1423 = vrot.lane.b32.xlu1 %v8036_v26, %s10392_s12  ;;  %v7301_v52 = vpop.eup %7300 }
 0x7e2   : > { %v8351_v42 = vmul.f32 %v7301_v52, %v8134_v50 }
 0x7e4   : > { %1267 = vadd.xlane.f32.xlu0 %v1266_v33  ;;  %v1260_v53 = vsel %vm551_vm2, %v8351_v42, 0.0 }
 0x7fa   : > { %1421 = vrot.lane.b32.xlu0 %v8024_v15, %s10392_s12 }
 0x7fe   : > { %1411 = vrot.lane.b32.xlu0 %v8026_v16, %s10390_s14 }
 0x802   : > { %1415 = vrot.lane.b32.xlu0 %v8036_v26, %s10390_s14 }
 0x805   : > { %1261 = vadd.xlane.f32.xlu1 %v1260_v53 }
 0x816   : > { %1425 = vrot.lane.b32.xlu1 %v8034_v25, %s10392_s12  ;;  %s10394_s12 = smov 28  }
 0x81a   : > { %1413 = vrot.lane.b32.xlu1 %v8024_v15, %s10390_s14 }
 0x81e   : > { %1417 = vrot.lane.b32.xlu1 %v8034_v25, %s10390_s14  ;;  %s10512_s14 = smov 72  }
 0x859   : > { %v1253_v45 = vpop.xlane.xlu1 %1252 }
 0x85a   : > { %v1271_v57 = vmax.f32 %v1253_v45, 1e-30 }
 0x85d   : > { %v1247_v54 = vpop.xlane.xlu1 %1246 }
 0x85e   : > { %v1269_v55 = vmax.f32 %v1247_v54, 1e-30 }
 0x861   : > { %v1256_v50 = vpop.xlane.xlu0 %1255  ;;  %v1424_v34 = vpop.permute.xlu1 %1423 }
 0x862   : > { %v1272_v56 = vmax.f32 %v1256_v50, 1e-30 }
 0x864   : > { %7302 = vrcp.f32 %v1272_v56 }
 0x865   : > { %v1250_v58 = vpop.xlane.xlu0 %1249  ;;  %7304 = vrcp.f32 %v1269_v55 }
 0x866   : > { %v1270_v59 = vmax.f32 %v1250_v58, 1e-30  ;;  %7306 = vrcp.f32 %v1271_v57 }
 0x868   : > { %7308 = vrcp.f32 %v1270_v59 }
 0x869   : > { %v1265_v60 = vpop.xlane.xlu0 %1264 }
 0x86a   : > { %v1275_v37 = vmax.f32 %v1265_v60, 1e-30 }
 0x86d   : > { %v1259_v61 = vpop.xlane.xlu0 %1258 }
 0x86e   : > { %v7303_v62 = vpop.eup %7302  ;;  %v1273_v35 = vmax.f32 %v1259_v61, 1e-30 }
 0x86f   : > { %v7305_v0 = vpop.eup %7304  ;;  %v1288_v4 = vmul.f32 %v7303_v62, %v1240_v39 }
 0x870   : > { %v7307_v1 = vpop.eup %7306  ;;  %v1285_v11 = vmul.f32 %v7305_v0, %v8319_v31 }
 0x871   : > { %v1268_v7 = vpop.xlane.xlu0 %1267  ;;  %v1287_v24 = vmul.f32 %v7307_v1, %v8314_v10  ;;  %v1446_v10 = vsel %vm461_vm1, %v1424_v34, 0 }
 0x872   : > { %v7309_v3 = vpop.eup %7308  ;;  %v1276_v31 = vmax.f32 %v1268_v7, 1e-30 }
 0x873   : > { %v1286_v2 = vmul.f32 %v7309_v3, %v1238_v12  ;;  %v1294_v29 = vpack.c.bf16 %v1288_v4, %v1287_v24 }
 0x874   : > { %7310 = vrcp.f32 %v1276_v31 }
 0x875   : > { %v1293_v28 = vpack.c.bf16 %v1286_v2, %v1285_v11  ;;  %v1422_v32 = vpop.permute.xlu0 %1421  ;;  %7312 = vrcp.f32 %v1273_v35 }
 0x876   : > { %v1443_v5 = vsel %vm461_vm1, %v1422_v32, 0  ;;  %7314 = vrcp.f32 %v1275_v37 }
 0x877   : > { %6615 = vmatprep.mubr.msk.bf16.mxu0 %vm551_vm2, %v1293_v28 }
 0x878   : > { %6616 = vmatmul.mubr.msk.bf16.vlgmr.msra.gmra.mrb[24].mxu0 %vm551_vm2, %v1294_v29 }
 0x879   : > { %6624 = vmatpush3.bf16.xpose.msra.mxu0 %v1440_v30  ;;  %v1412_v53 = vpop.permute.xlu0 %1411 }
 0x87a   : > { %7088 = vmatprep.subr.msk.bf16.mxu0 %vm461_vm1, %v1422_v32 }
 0x87d   : > { %v1416_v54 = vpop.permute.xlu0 %1415 }
 0x87e   : > { %v7311_v48 = vpop.eup %7310 }
 0x87f   : > { %v7313_v40 = vpop.eup %7312  ;;  %v1292_v27 = vmul.f32 %v7311_v48, %v8339_v51 }
 0x880   : > { %v7315_v36 = vpop.eup %7314  ;;  %v1289_v46 = vmul.f32 %v7313_v40, %v8334_v49 }
 0x881   : > { %6626 = vmatpush3.bf16.xpose.msra.mxu0 %v1443_v5  ;;  %v1291_v47 = vmul.f32 %v7315_v36, %v8329_v44 }
 0x882   : > { %7089 = vmatprep.subr.msk.bf16.mxu0 %vm461_vm1, %v1424_v34 }
 0x883   : > { %v1296_v52 = vpack.c.bf16 %v1292_v27, %v1291_v47 }
 0x889   : > { %6628 = vmatpush3.bf16.xpose.msra.mxu0 %v1446_v10 }
 0x892   : > { %v1262_v39 = vpop.xlane.xlu1 %1261 }
 0x893   : > { %v1274_v41 = vmax.f32 %v1262_v39, 1e-30 }
 0x895   : > { %7316 = vrcp.f32 %v1274_v41 }
 0x896   : > { %v1426_v12 = vpop.permute.xlu1 %1425 }
 0x897   : > { %7090 = vmatprep.subr.msk.bf16.mxu0 %vm461_vm1, %v1426_v12  ;;  %v1449_v43 = vsel %vm461_vm1, %v1426_v12, 0 }
 0x898   : > { %6630 = vmatpush3.bf16.xpose.msra.mxu0 %v1449_v43 }
 0x89a   : > { %v1414_v45 = vpop.permute.xlu1 %1413 }
 0x89e   : > { %v1418_v49 = vpop.permute.xlu1 %1417 }
 0x89f   : > { %v7317_v21 = vpop.eup %7316 }
 0x8a0   : > { %v1290_v33 = vmul.f32 %v7317_v21, %v8351_v42 }
 0x8a2   : > { %v1295_v38 = vpack.c.bf16 %v1290_v33, %v1289_v46 }
 0x8a4   : > { %6619 = vmatprep.mubr.msk.bf16.mxu0 %vm551_vm2, %v1295_v38 }
 0x8a5   : > { %6620 = vmatmul.mubr.msk.bf16.gmra.mrb[28].mxu0 %vm551_vm2, %v1296_v52 }
 0x8a6   : > { %6631 = vmatprep.mubr.msk.bf16.mxu0 %vm461_vm1, %v1412_v53 }
 0x8ad   : > { %6632 = vmatmul.mubr.msk.bf16.vlgmr.msra.gmra.mrb[32].mxu0 %vm461_vm1, %v1414_v45 }
 0x8ae   : > { %6635 = vmatprep.mubr.msk.bf16.mxu0 %vm461_vm1, %v1416_v54 }
 0x8b5   : > { %6636 = vmatmul.mubr.msk.bf16.gmra.mrb[36].mxu0 %vm461_vm1, %v1418_v49 }
 0x94b   : > { %v8384_v51 = vpop.f32.mrb[24].mxu0 }
 0x94c   : > { %v8386_v44 = vpop.f32.mrb[25].mxu0 }
 0x94d   : > { %v8388_v42 = vpop.f32.mrb[26].mxu0 }
 0x94e   : > { %v8392_v55 = vpop.f32.mrb[27].mxu0 }
 0x978   : > { %v8396_v57 = vpop.f32.mrb[28].mxu0 }
 0x979   : > { %10423 = vst [vmem:[#allocation9_spill] sm:$0xff] %v8396_v57  ;;  %v8398_v58 = vpop.f32.mrb[29].mxu0 }
 0x97a   : > { %10424 = vst [vmem:[#allocation10_spill] sm:$0xff] %v8398_v58  ;;  %v8400_v59 = vpop.f32.mrb[30].mxu0 }
 0x97b   : > { %10425 = vst [vmem:[#allocation11_spill] sm:$0xff] %v8400_v59  ;;  %v8404_v61 = vpop.f32.mrb[31].mxu0 }
 0x97c   : > { %10426 = vst [vmem:[#allocation12_spill] sm:$0xff] %v8404_v61 }
 0x980   : > { %v6633_v0 = vpop.f32.mrb[32].mxu0 }
 0x981   : > { %v1485_v1 = vpop.f32.mrb[33].mxu0  ;;  %v1522_v3 = vsel %vm551_vm2, %v6633_v0, -inf }
 0x982   : > { %1523 = vmax.xlane.f32.xlu0 %v1522_v3  ;;  %v6634_v4 = vpop.f32.mrb[34].mxu0  ;;  %v1516_v2 = vsel %vm551_vm2, %v1485_v1, -inf }
 0x983   : > { %v1488_v7 = vpop.f32.mrb[35].mxu0  ;;  %v1525_v29 = vsel %vm551_vm2, %v6634_v4, -inf }
 0x984   : > { %v1519_v11 = vsel %vm551_vm2, %v1488_v7, -inf }
 0x985   : > { %1520 = vmax.xlane.f32.xlu1 %v1519_v11 }
 0x986   : > { %1517 = vmax.xlane.f32.xlu0 %v1516_v2 }
 0x988   : > { %v6637_v24 = vpop.f32.mrb[36].mxu0 }
 0x989   : > { %v1501_v28 = vpop.f32.mrb[37].mxu0  ;;  %v1534_v30 = vsel %vm551_vm2, %v6637_v24, -inf }
 0x98a   : > { %1526 = vmax.xlane.f32.xlu0 %v1525_v29  ;;  %1535 = vmax.xlane.f32.xlu1 %v1534_v30  ;;  %v6638_v32 = vpop.f32.mrb[38].mxu0  ;;  %v1528_v10 = vsel %vm551_vm2, %v1501_v28, -inf  ;;  %v8440_v29 = vld [vmem:[%s7991_s19] sm:$0xff] }
 0x98b   : > { %v8413_v5 = vpop.f32.mrb[39].mxu0  ;;  %v1537_v31 = vsel %vm551_vm2, %v6638_v32, -inf }
 0x98c   : > { %v1531_v34 = vsel %vm551_vm2, %v8413_v5, -inf }
 0x98e   : > { %1529 = vmax.xlane.f32.xlu1 %v1528_v10  ;;  %1532 = vmax.xlane.f32.xlu0 %v1531_v34 }
 0x992   : > { %1538 = vmax.xlane.f32.xlu0 %v1537_v31 }
 0x99f   : > { %1624 = vrot.lane.b32.xlu1 %v8026_v16, %s10388_s16 }
 0x9a3   : > { %1628 = vrot.lane.b32.xlu1 %v8036_v26, %s10388_s16 }
 0x9a7   : > { %1630 = vrot.lane.b32.xlu1 %v8034_v25, %s10388_s16 }
 0x9a8   : > { %1626 = vrot.lane.b32.xlu0 %v8024_v15, %s10388_s16  ;;  %s10513_s16 = smov 104  }
 0x9ab   : > { %1746 = vrot.lane.b32.xlu1 %v8026_v16, %s10384_s21 }
 0xa0f   : > { %v1524_v35 = vpop.xlane.xlu0 %1523 }
 0xa10   : > { %v1542_v37 = vsub.f32 %v6633_v0, %v1524_v35 }
 0xa12   : > { %v1552_v39 = vmul.f32 1.442695, %v1542_v37  ;;  %v1521_v41 = vpop.xlane.xlu1 %1520  ;;  %v8448_v37 = vld [vmem:[%s7991_s19 + $0x18] sm:$0xff] }
 0xa13   : > { %v1518_v12 = vpop.xlane.xlu0 %1517  ;;  %v1541_v43 = vsub.f32 %v1488_v7, %v1521_v41 }
 0xa14   : > { %7318 = vpow2.f32 %v1552_v39  ;;  %v1540_v48 = vsub.f32 %v1485_v1, %v1518_v12  ;;  %v8432_v1 = vld [vmem:[%s7991_s19 + $0x10] sm:$0xff]  ;;  %v8453_v12 = vld [vmem:[%s7991_s19 + $0x8] sm:$0xff] }
 0xa15   : > { %v1550_v27 = vmul.f32 1.442695, %v1541_v43 }
 0xa16   : > { %v1548_v40 = vmul.f32 1.442695, %v1540_v48 }
 0xa17   : > { %v1536_v36 = vpop.xlane.xlu1 %1535  ;;  %v1527_v21 = vpop.xlane.xlu0 %1526 }
 0xa18   : > { %7320 = vpow2.f32 %v1548_v40  ;;  %v1543_v46 = vsub.f32 %v6634_v4, %v1527_v21  ;;  %v1546_v33 = vsub.f32 %v6637_v24, %v1536_v36  ;;  %v8459_v21 = vld [vmem:[%s7991_s19 + $0x30] sm:$0xff] }
 0xa19   : > { %7322 = vpow2.f32 %v1550_v27 }
 0xa1a   : > { %v1554_v47 = vmul.f32 1.442695, %v1543_v46  ;;  %v1560_v53 = vmul.f32 1.442695, %v1546_v33 }
 0xa1b   : > { %v1530_v38 = vpop.xlane.xlu1 %1529  ;;  %v8429_v52 = vpop.xlane.xlu0 %1532 }
 0xa1c   : > { %7324 = vpow2.f32 %v1554_v47  ;;  %v1544_v45 = vsub.f32 %v1501_v28, %v1530_v38  ;;  %v8467_v47 = vld [vmem:[%s7991_s19 + $0x20] sm:$0xff] }
 0xa1d   : > { %7326 = vpow2.f32 %v1560_v53 }
 0xa1e   : > { %v7319_v54 = vpop.eup %7318  ;;  %v1556_v4 = vmul.f32 1.442695, %v1544_v45 }
 0xa1f   : > { %v1625_v49 = vpop.permute.xlu1 %1624  ;;  %v1539_v0 = vpop.xlane.xlu0 %1538  ;;  %v8435_v3 = vmul.f32 %v8432_v1, %v7319_v54  ;;  %v8475_v54 = vld [vmem:[%s7991_s19 + $0x38] sm:$0xff] }
 0xa20   : > { %6639 = vmatprep.subr.bf16.mxu1 %v1625_v49  ;;  %v1547_v7 = vsub.f32 %v6638_v32, %v1539_v0  ;;  %7328 = vpow2.f32 %v1556_v4  ;;  %v1545_v4 = vsub.f32 %v8413_v5, %v8429_v52 }
 0xa21   : > { %6640 = vmatpush3.bf16.msra.mxu1 %v1625_v49  ;;  %v1578_v11 = vsel %vm551_vm2, %v8435_v3, 0.0 }
 0xa22   : > { %v7321_v2 = vpop.eup %7320  ;;  %1579 = vadd.xlane.f32.xlu1 %v1578_v11  ;;  %v1562_v34 = vmul.f32 1.442695, %v1547_v7  ;;  %v1558_v7 = vmul.f32 1.442695, %v1545_v4 }
 0xa23   : > { %v1629_v24 = vpop.permute.xlu1 %1628  ;;  %v1627_v28 = vpop.permute.xlu0 %1626  ;;  %v8443_v30 = vmul.f32 %v8440_v29, %v7321_v2  ;;  %v8491_v2 = vld [vmem:[%s7991_s19 + $0x28] sm:$0xff] }
 0xa24   : > { %6641 = vmatprep.subr.bf16.mxu1 %v1627_v28  ;;  %v7323_v10 = vpop.eup %7322  ;;  %7330 = vpow2.f32 %v1562_v34 }
 0xa25   : > { %6642 = vmatpush3.bf16.msra.mxu1 %v1627_v28  ;;  %v1572_v32 = vsel %vm551_vm2, %v8443_v30, 0.0  ;;  %v1565_v43 = vmul.f32 %v8453_v12, %v7323_v10  ;;  %7332 = vpow2.f32 %v1558_v7 }
 0xa26   : > { %1573 = vadd.xlane.f32.xlu1 %v1572_v32  ;;  %6643 = vmatprep.subr.bf16.mxu1 %v1629_v24  ;;  %v7325_v31 = vpop.eup %7324 }
 0xa27   : > { %v1631_v35 = vpop.permute.xlu1 %1630  ;;  %v1567_v39 = vmul.f32 %v8448_v37, %v7325_v31  ;;  %v7327_v48 = vpop.eup %7326  ;;  %v1575_v36 = vsel %vm551_vm2, %v1565_v43, 0.0 }
 0xa28   : > { %v8462_v27 = vmul.f32 %v8459_v21, %v7327_v48 }
 0xa29   : > { %6644 = vmatpush3.bf16.msra.mxu1 %v1629_v24  ;;  %v1581_v41 = vsel %vm551_vm2, %v1567_v39, 0.0 }
 0xa2a   : > { %6645 = vmatprep.subr.bf16.mxu1 %v1631_v35  ;;  %1582 = vadd.xlane.f32.xlu0 %v1581_v41  ;;  %v7329_v46 = vpop.eup %7328  ;;  %v1590_v33 = vsel %vm551_vm2, %v8462_v27, 0.0 }
 0xa2b   : > { %v1747_v40 = vpop.permute.xlu1 %1746  ;;  %v8470_v38 = vmul.f32 %v8467_v47, %v7329_v46 }
 0xa2d   : > { %6646 = vmatpush3.bf16.msra.mxu1 %v1631_v35  ;;  %v1584_v45 = vsel %vm551_vm2, %v8470_v38, 0.0 }
 0xa2e   : > { %7091 = vmatprep.subr.msk.bf16.mxu1 %vm461_vm1, %v1747_v40  ;;  %1576 = vadd.xlane.f32.xlu0 %v1575_v36  ;;  %v7331_v53 = vpop.eup %7330 }
 0xa2f   : > { %v8478_v49 = vmul.f32 %v8475_v54, %v7331_v53  ;;  %v7333_v11 = vpop.eup %7332 }
 0xa30   : > { %v8494_v24 = vmul.f32 %v8491_v2, %v7333_v11 }
 0xa31   : > { %v1593_v0 = vsel %vm551_vm2, %v8478_v49, 0.0 }
 0xa32   : > { %1591 = vadd.xlane.f32.xlu0 %v1590_v33  ;;  %v1587_v5 = vsel %vm551_vm2, %v8494_v24, 0.0 }
 0xa36   : > { %1585 = vadd.xlane.f32.xlu0 %v1584_v45 }
 0xa37   : > { %1750 = vrot.lane.b32.xlu1 %v8036_v26, %s10384_s21 }
 0xa3a   : > { %1594 = vadd.xlane.f32.xlu0 %v1593_v0 }
 0xa50   : > { %1748 = vrot.lane.b32.xlu0 %v8024_v15, %s10384_s21 }
 0xa54   : > { %1738 = vrot.lane.b32.xlu0 %v8026_v16, %s10382_s27 }
 0xa58   : > { %1742 = vrot.lane.b32.xlu0 %v8036_v26, %s10382_s27 }
 0xa5b   : > { %1588 = vadd.xlane.f32.xlu1 %v1587_v5 }
 0xa6c   : > { %1752 = vrot.lane.b32.xlu1 %v8034_v25, %s10384_s21  ;;  %s7869_s21 = smov 24  }
 0xa70   : > { %1740 = vrot.lane.b32.xlu1 %v8024_v15, %s10382_s27 }
 0xa74   : > { %1744 = vrot.lane.b32.xlu1 %v8034_v25, %s10382_s27  ;;  %s7868_s27 = smov 20  }
 0xaaf   : > { %v1580_v52 = vpop.xlane.xlu1 %1579 }
 0xab0   : > { %v1598_v31 = vmax.f32 %v1580_v52, 1e-30 }
 0xab3   : > { %v1574_v28 = vpop.xlane.xlu1 %1573 }
 0xab4   : > { %v1596_v32 = vmax.f32 %v1574_v28, 1e-30 }
 0xab7   : > { %v1583_v34 = vpop.xlane.xlu0 %1582 }
 0xab8   : > { %v1599_v10 = vmax.f32 %v1583_v34, 1e-30  ;;  %v1767_v34 = vsel %vm461_vm1, %v1747_v40, 0 }
 0xaba   : > { %7334 = vrcp.f32 %v1599_v10  ;;  %v1751_v10 = vpop.permute.xlu1 %1750 }
 0xabb   : > { %v1577_v35 = vpop.xlane.xlu0 %1576  ;;  %7336 = vrcp.f32 %v1596_v32 }
 0xabc   : > { %v1597_v41 = vmax.f32 %v1577_v35, 1e-30  ;;  %7338 = vrcp.f32 %v1598_v31 }
 0xabe   : > { %7340 = vrcp.f32 %v1597_v41 }
 0xabf   : > { %v1592_v48 = vpop.xlane.xlu0 %1591 }
 0xac0   : > { %v1602_v31 = vmax.f32 %v1592_v48, 1e-30 }
 0xac3   : > { %v1586_v36 = vpop.xlane.xlu0 %1585 }
 0xac4   : > { %v7335_v46 = vpop.eup %7334 }
 0xac5   : > { %v7337_v33 = vpop.eup %7336  ;;  %v1615_v0 = vmul.f32 %v7335_v46, %v1567_v39 }
 0xac6   : > { %v7339_v53 = vpop.eup %7338  ;;  %v1612_v7 = vmul.f32 %v7337_v33, %v8443_v30 }
 0xac7   : > { %v1595_v4 = vpop.xlane.xlu0 %1594  ;;  %v1614_v5 = vmul.f32 %v7339_v53, %v8435_v3  ;;  %v1773_v3 = vsel %vm461_vm1, %v1751_v10, 0 }
 0xac8   : > { %v7341_v45 = vpop.eup %7340  ;;  %v1603_v30 = vmax.f32 %v1595_v4, 1e-30 }
 0xac9   : > { %v1613_v11 = vmul.f32 %v7341_v45, %v1565_v43  ;;  %v1621_v28 = vpack.c.bf16 %v1615_v0, %v1614_v5  ;;  %v1600_v43 = vmax.f32 %v1586_v36, 1e-30 }
 0xaca   : > { %7342 = vrcp.f32 %v1603_v30 }
 0xacb   : > { %v1620_v52 = vpack.c.bf16 %v1613_v11, %v1612_v7  ;;  %v1749_v32 = vpop.permute.xlu0 %1748  ;;  %7344 = vrcp.f32 %v1600_v43 }
 0xacc   : > { %v1770_v39 = vsel %vm461_vm1, %v1749_v32, 0  ;;  %7346 = vrcp.f32 %v1602_v31 }
 0xacd   : > { %6647 = vmatprep.mubr.msk.bf16.mxu1 %vm551_vm2, %v1620_v52 }
 0xace   : > { %6648 = vmatmul.mubr.msk.bf16.vlgmr.msra.gmra.mrb[24].mxu1 %vm551_vm2, %v1621_v28 }
 0xacf   : > { %6656 = vmatpush3.bf16.xpose.msra.mxu1 %v1767_v34  ;;  %v1739_v52 = vpop.permute.xlu0 %1738 }
 0xad0   : > { %7092 = vmatprep.subr.msk.bf16.mxu1 %vm461_vm1, %v1749_v32 }
 0xad3   : > { %v1743_v34 = vpop.permute.xlu0 %1742 }
 0xad4   : > { %v7343_v33 = vpop.eup %7342 }
 0xad5   : > { %v7345_v53 = vpop.eup %7344  ;;  %v1619_v4 = vmul.f32 %v7343_v33, %v8478_v49 }
 0xad6   : > { %v7347_v45 = vpop.eup %7346  ;;  %v1616_v48 = vmul.f32 %v7345_v53, %v8470_v38 }
 0xad7   : > { %6658 = vmatpush3.bf16.xpose.msra.mxu1 %v1770_v39  ;;  %v1618_v7 = vmul.f32 %v7347_v45, %v8462_v27 }
 0xad8   : > { %7093 = vmatprep.subr.msk.bf16.mxu1 %vm461_vm1, %v1751_v10 }
 0xad9   : > { %v1623_v5 = vpack.c.bf16 %v1619_v4, %v1618_v7 }
 0xadf   : > { %6660 = vmatpush3.bf16.xpose.msra.mxu1 %v1773_v3 }
 0xae8   : > { %v1589_v35 = vpop.xlane.xlu1 %1588 }
 0xae9   : > { %v1601_v40 = vmax.f32 %v1589_v35, 1e-30 }
 0xaeb   : > { %7348 = vrcp.f32 %v1601_v40 }
 0xaec   : > { %v1753_v41 = vpop.permute.xlu1 %1752 }
 0xaed   : > { %7094 = vmatprep.subr.msk.bf16.mxu1 %vm461_vm1, %v1753_v41  ;;  %v1776_v46 = vsel %vm461_vm1, %v1753_v41, 0 }
 0xaee   : > { %6662 = vmatpush3.bf16.xpose.msra.mxu1 %v1776_v46 }
 0xaf0   : > { %v1741_v28 = vpop.permute.xlu1 %1740 }
 0xaf4   : > { %v1745_v38 = vpop.permute.xlu1 %1744 }
 0xaf5   : > { %v7349_v0 = vpop.eup %7348 }
 0xaf6   : > { %v1617_v36 = vmul.f32 %v7349_v0, %v8494_v24 }
 0xaf8   : > { %v1622_v11 = vpack.c.bf16 %v1617_v36, %v1616_v48 }
 0xafa   : > { %6651 = vmatprep.mubr.msk.bf16.mxu1 %vm551_vm2, %v1622_v11 }
 0xafb   : > { %6652 = vmatmul.mubr.msk.bf16.gmra.mrb[28].mxu1 %vm551_vm2, %v1623_v5 }
 0xafc   : > { %6663 = vmatprep.mubr.msk.bf16.mxu1 %vm461_vm1, %v1739_v52 }
 0xb03   : > { %6664 = vmatmul.mubr.msk.bf16.vlgmr.msra.gmra.mrb[32].mxu1 %vm461_vm1, %v1741_v28 }
 0xb04   : > { %6667 = vmatprep.mubr.msk.bf16.mxu1 %vm461_vm1, %v1743_v34 }
 0xb0b   : > { %6668 = vmatmul.mubr.msk.bf16.gmra.mrb[36].mxu1 %vm461_vm1, %v1745_v38 }
 0xba1   : > { %v8527_v49 = vpop.f32.mrb[24].mxu1 }
 0xba2   : > { %v8529_v27 = vpop.f32.mrb[25].mxu1 }
 0xba3   : > { %v8531_v24 = vpop.f32.mrb[26].mxu1 }
 0xba4   : > { %v8535_v39 = vpop.f32.mrb[27].mxu1 }
 0xbce   : > { %v8539_v3 = vpop.f32.mrb[28].mxu1 }
 0xbcf   : > { %10427 = vst [vmem:[#allocation13_spill] sm:$0xff] %v8539_v3  ;;  %v8541_v30 = vpop.f32.mrb[29].mxu1 }
 0xbd0   : > { %10428 = vst [vmem:[#allocation14_spill] sm:$0xff] %v8541_v30  ;;  %v8543_v43 = vpop.f32.mrb[30].mxu1 }
 0xbd1   : > { %10429 = vst [vmem:[#allocation15_spill] sm:$0xff] %v8543_v43  ;;  %v8547_v35 = vpop.f32.mrb[31].mxu1 }
 0xbd2   : > { %10430 = vst [vmem:[#allocation16_spill] sm:$0xff] %v8547_v35 }
 0xbd6   : > { %v6665_v41 = vpop.f32.mrb[32].mxu1 }
 0xbd7   : > { %v1812_v46 = vpop.f32.mrb[33].mxu1  ;;  %v1849_v33 = vsel %vm551_vm2, %v6665_v41, -inf }
 0xbd8   : > { %1850 = vmax.xlane.f32.xlu0 %v1849_v33  ;;  %v6666_v53 = vpop.f32.mrb[34].mxu1  ;;  %v1843_v4 = vsel %vm551_vm2, %v1812_v46, -inf }
 0xbd9   : > { %v1815_v45 = vpop.f32.mrb[35].mxu1  ;;  %v1852_v7 = vsel %vm551_vm2, %v6666_v53, -inf }
 0xbda   : > { %v1846_v0 = vsel %vm551_vm2, %v1815_v45, -inf }
 0xbdb   : > { %1847 = vmax.xlane.f32.xlu1 %v1846_v0 }
 0xbdc   : > { %1844 = vmax.xlane.f32.xlu0 %v1843_v4 }
 0xbde   : > { %v6669_v48 = vpop.f32.mrb[36].mxu1 }
 0xbdf   : > { %v1828_v36 = vpop.f32.mrb[37].mxu1  ;;  %v1861_v11 = vsel %vm551_vm2, %v6669_v48, -inf }
 0xbe0   : > { %1853 = vmax.xlane.f32.xlu0 %v1852_v7  ;;  %1862 = vmax.xlane.f32.xlu1 %v1861_v11  ;;  %v6670_v5 = vpop.f32.mrb[38].mxu1  ;;  %v1855_v34 = vsel %vm551_vm2, %v1828_v36, -inf }
 0xbe1   : > { %v8556_v52 = vpop.f32.mrb[39].mxu1  ;;  %v1864_v38 = vsel %vm551_vm2, %v6670_v5, -inf }
 0xbe2   : > { %v1858_v28 = vsel %vm551_vm2, %v8556_v52, -inf }
 0xbe4   : > { %1856 = vmax.xlane.f32.xlu1 %v1855_v34  ;;  %1859 = vmax.xlane.f32.xlu0 %v1858_v28 }
 0xbe8   : > { %1865 = vmax.xlane.f32.xlu0 %v1864_v38 }
 0xbf5   : > { %1951 = vrot.lane.b32.xlu1 %v8026_v16, %s10378_s24 }
 0xbf9   : > { %1955 = vrot.lane.b32.xlu1 %v8036_v26, %s10378_s24 }
 0xbfd   : > { %1957 = vrot.lane.b32.xlu1 %v8034_v25, %s10378_s24 }
 0xbfe   : > { %1953 = vrot.lane.b32.xlu0 %v8024_v15, %s10378_s24  ;;  %s7866_s24 = smov 12  }
 0xc01   : > { %2073 = vrot.lane.b32.xlu1 %v8026_v16, %s10368_s25 }
 0xc65   : > { %v1851_v33 = vpop.xlane.xlu0 %1850 }
 0xc66   : > { %v1869_v0 = vsub.f32 %v6665_v41, %v1851_v33 }
 0xc68   : > { %v1879_v4 = vmul.f32 1.442695, %v1869_v0  ;;  %v1848_v7 = vpop.xlane.xlu1 %1847 }
 0xc69   : > { %v1845_v11 = vpop.xlane.xlu0 %1844  ;;  %v1868_v28 = vsub.f32 %v1815_v45, %v1848_v7 }
 0xc6a   : > { %7350 = vpow2.f32 %v1879_v4  ;;  %v1867_v34 = vsub.f32 %v1812_v46, %v1845_v11 }
 0xc6b   : > { %v1877_v60 = vmul.f32 1.442695, %v1868_v28 }
 0xc6c   : > { %v1875_v38 = vmul.f32 1.442695, %v1867_v34 }
 0xc6d   : > { %v1863_v31 = vpop.xlane.xlu1 %1862  ;;  %v1854_v40 = vpop.xlane.xlu0 %1853 }
 0xc6e   : > { %7352 = vpow2.f32 %v1875_v38  ;;  %v1870_v62 = vsub.f32 %v6666_v53, %v1854_v40  ;;  %v1873_v23 = vsub.f32 %v6669_v48, %v1863_v31 }
 0xc6f   : > { %7354 = vpow2.f32 %v1877_v60 }
 0xc70   : > { %v1881_v20 = vmul.f32 1.442695, %v1870_v62  ;;  %v1887_v56 = vmul.f32 1.442695, %v1873_v23 }
 0xc71   : > { %v1857_v10 = vpop.xlane.xlu1 %1856  ;;  %v1860_v32 = vpop.xlane.xlu0 %1859 }
 0xc72   : > { %7356 = vpow2.f32 %v1881_v20  ;;  %v1871_v41 = vsub.f32 %v1828_v36, %v1857_v10 }
 0xc73   : > { %7358 = vpow2.f32 %v1887_v56 }
 0xc74   : > { %v7351_v33 = vpop.eup %7350  ;;  %v1883_v46 = vmul.f32 1.442695, %v1871_v41 }
 0xc75   : > { %v1952_v0 = vpop.permute.xlu1 %1951  ;;  %v1866_v50 = vpop.xlane.xlu0 %1865  ;;  %v8573_v45 = vmul.f32 %v8432_v1, %v7351_v33 }
 0xc76   : > { %6671 = vmatprep.subr.bf16.mxu0 %v1952_v0  ;;  %v1874_v4 = vsub.f32 %v6670_v5, %v1866_v50  ;;  %7360 = vpow2.f32 %v1883_v46 }
 0xc77   : > { %6672 = vmatpush3.bf16.msra.mxu0 %v1952_v0  ;;  %v1905_v62 = vsel %vm551_vm2, %v8573_v45, 0.0 }
 0xc78   : > { %v7353_v31 = vpop.eup %7352  ;;  %1906 = vadd.xlane.f32.xlu1 %v1905_v62  ;;  %v1889_v10 = vmul.f32 1.442695, %v1874_v4 }
 0xc79   : > { %v1956_v60 = vpop.permute.xlu1 %1955  ;;  %v1954_v23 = vpop.permute.xlu0 %1953  ;;  %v8578_v20 = vmul.f32 %v8440_v29, %v7353_v31  ;;  %v1872_v31 = vsub.f32 %v8556_v52, %v1860_v32 }
 0xc7a   : > { %6673 = vmatprep.subr.bf16.mxu0 %v1954_v23  ;;  %v7355_v40 = vpop.eup %7354  ;;  %7362 = vpow2.f32 %v1889_v10 }
 0xc7b   : > { %6674 = vmatpush3.bf16.msra.mxu0 %v1954_v23  ;;  %v1899_v56 = vsel %vm551_vm2, %v8578_v20, 0.0  ;;  %v1892_v5 = vmul.f32 %v8453_v12, %v7355_v40 }
 0xc7c   : > { %1900 = vadd.xlane.f32.xlu1 %v1899_v56  ;;  %6675 = vmatprep.subr.bf16.mxu0 %v1956_v60  ;;  %v7357_v50 = vpop.eup %7356 }
 0xc7d   : > { %v1958_v53 = vpop.permute.xlu1 %1957  ;;  %v1894_v48 = vmul.f32 %v8448_v37, %v7357_v50  ;;  %v7359_v7 = vpop.eup %7358  ;;  %v1902_v28 = vsel %vm551_vm2, %v1892_v5, 0.0 }
 0xc7e   : > { %v8588_v34 = vmul.f32 %v8459_v21, %v7359_v7 }
 0xc7f   : > { %6676 = vmatpush3.bf16.msra.mxu0 %v1956_v60  ;;  %v1908_v36 = vsel %vm551_vm2, %v1894_v48, 0.0  ;;  %v1885_v60 = vmul.f32 1.442695, %v1872_v31 }
 0xc80   : > { %6677 = vmatprep.subr.bf16.mxu0 %v1958_v53  ;;  %1909 = vadd.xlane.f32.xlu0 %v1908_v36  ;;  %v7361_v38 = vpop.eup %7360  ;;  %v1917_v41 = vsel %vm551_vm2, %v8588_v34, 0.0 }
 0xc81   : > { %v2074_v11 = vpop.permute.xlu1 %2073  ;;  %v8593_v33 = vmul.f32 %v8467_v47, %v7361_v38  ;;  %7364 = vpow2.f32 %v1885_v60 }
 0xc83   : > { %6678 = vmatpush3.bf16.msra.mxu0 %v1958_v53  ;;  %v1911_v46 = vsel %vm551_vm2, %v8593_v33, 0.0 }
 0xc84   : > { %7095 = vmatprep.subr.msk.bf16.mxu0 %vm461_vm1, %v2074_v11  ;;  %1903 = vadd.xlane.f32.xlu0 %v1902_v28  ;;  %v7363_v0 = vpop.eup %7362 }
 0xc85   : > { %v8598_v4 = vmul.f32 %v8475_v54, %v7363_v0 }
 0xc87   : > { %v1920_v62 = vsel %vm551_vm2, %v8598_v4, 0.0 }
 0xc88   : > { %1918 = vadd.xlane.f32.xlu0 %v1917_v41 }
 0xc8b   : > { %v7365_v23 = vpop.eup %7364 }
 0xc8c   : > { %1912 = vadd.xlane.f32.xlu0 %v1911_v46  ;;  %v8610_v10 = vmul.f32 %v8491_v2, %v7365_v23 }
 0xc8d   : > { %2077 = vrot.lane.b32.xlu1 %v8036_v26, %s10368_s25 }
 0xc8e   : > { %v1914_v56 = vsel %vm551_vm2, %v8610_v10, 0.0 }
 0xc90   : > { %1921 = vadd.xlane.f32.xlu0 %v1920_v62 }
 0xca6   : > { %2075 = vrot.lane.b32.xlu0 %v8024_v15, %s10368_s25 }
 0xcaa   : > { %2065 = vrot.lane.b32.xlu0 %v8026_v16, %s10339_s30 }
 0xcae   : > { %2069 = vrot.lane.b32.xlu0 %v8036_v26, %s10339_s30 }
 0xcb1   : > { %1915 = vadd.xlane.f32.xlu1 %v1914_v56 }
 0xcc2   : > { %2079 = vrot.lane.b32.xlu1 %v8034_v25, %s10368_s25  ;;  %s10386_s25 = smov 4  }
 0xcc6   : > { %2067 = vrot.lane.b32.xlu1 %v8024_v15, %s10339_s30 }
 0xcca   : > { %2071 = vrot.lane.b32.xlu1 %v8034_v25, %s10339_s30  ;;  %s10351_s30 = smov 72  }
 0xd05   : > { %v1907_v32 = vpop.xlane.xlu1 %1906 }
 0xd06   : > { %v1925_v36 = vmax.f32 %v1907_v32, 1e-30 }
 0xd09   : > { %v1901_v52 = vpop.xlane.xlu1 %1900 }
 0xd0a   : > { %v1923_v50 = vmax.f32 %v1901_v52, 1e-30 }
 0xd0d   : > { %v1910_v40 = vpop.xlane.xlu0 %1909 }
 0xd0e   : > { %v1926_v53 = vmax.f32 %v1910_v40, 1e-30 }
 0xd10   : > { %7366 = vrcp.f32 %v1926_v53 }
 0xd11   : > { %v1904_v7 = vpop.xlane.xlu0 %1903  ;;  %7368 = vrcp.f32 %v1923_v50  ;;  %v2094_v50 = vsel %vm461_vm1, %v2074_v11, 0 }
 0xd12   : > { %v1924_v28 = vmax.f32 %v1904_v7, 1e-30  ;;  %7370 = vrcp.f32 %v1925_v36  ;;  %v2078_v36 = vpop.permute.xlu1 %2077 }
 0xd14   : > { %7372 = vrcp.f32 %v1924_v28 }
 0xd15   : > { %v1919_v38 = vpop.xlane.xlu0 %1918 }
 0xd19   : > { %v1913_v41 = vpop.xlane.xlu0 %1912 }
 0xd1a   : > { %v7367_v0 = vpop.eup %7366 }
 0xd1b   : > { %v7369_v46 = vpop.eup %7368  ;;  %v1942_v60 = vmul.f32 %v7367_v0, %v1894_v48 }
 0xd1c   : > { %v7371_v62 = vpop.eup %7370  ;;  %v1939_v56 = vmul.f32 %v7369_v46, %v8578_v20  ;;  %v1927_v20 = vmax.f32 %v1913_v41, 1e-30 }
 0xd1d   : > { %v1922_v23 = vpop.xlane.xlu0 %1921  ;;  %v1941_v52 = vmul.f32 %v7371_v62, %v8573_v45  ;;  %v2100_v45 = vsel %vm461_vm1, %v2078_v36, 0 }
 0xd1e   : > { %v7373_v31 = vpop.eup %7372 }
 0xd1f   : > { %v1940_v14 = vmul.f32 %v7373_v31, %v1892_v5  ;;  %v1948_v40 = vpack.c.bf16 %v1942_v60, %v1941_v52  ;;  %v1929_v5 = vmax.f32 %v1919_v38, 1e-30 }
 0xd21   : > { %v1947_v32 = vpack.c.bf16 %v1940_v14, %v1939_v56  ;;  %v2076_v53 = vpop.permute.xlu0 %2075  ;;  %v1930_v14 = vmax.f32 %v1922_v23, 1e-30 }
 0xd22   : > { %v2097_v48 = vsel %vm461_vm1, %v2076_v53, 0 }
 0xd23   : > { %6679 = vmatprep.mubr.msk.bf16.mxu0 %vm551_vm2, %v1947_v32  ;;  %7374 = vrcp.f32 %v1930_v14 }
 0xd24   : > { %6680 = vmatmul.mubr.msk.bf16.vlgmr.msra.gmra.mrb[40].mxu0 %vm551_vm2, %v1948_v40  ;;  %7376 = vrcp.f32 %v1927_v20 }
 0xd25   : > { %6688 = vmatpush3.bf16.xpose.msra.mxu0 %v2094_v50  ;;  %7378 = vrcp.f32 %v1929_v5  ;;  %v2066_v40 = vpop.permute.xlu0 %2065 }
 0xd26   : > { %7096 = vmatprep.subr.msk.bf16.mxu0 %vm461_vm1, %v2076_v53 }
 0xd29   : > { %v2070_v53 = vpop.permute.xlu0 %2069 }
 0xd2d   : > { %6690 = vmatpush3.bf16.xpose.msra.mxu0 %v2097_v48  ;;  %v7375_v46 = vpop.eup %7374 }
 0xd2e   : > { %7097 = vmatprep.subr.msk.bf16.mxu0 %vm461_vm1, %v2078_v36  ;;  %v7377_v62 = vpop.eup %7376  ;;  %v1946_v23 = vmul.f32 %v7375_v46, %v8598_v4 }
 0xd2f   : > { %v7379_v31 = vpop.eup %7378  ;;  %v1943_v38 = vmul.f32 %v7377_v62, %v8593_v33 }
 0xd30   : > { %v1945_v56 = vmul.f32 %v7379_v31, %v8588_v34 }
 0xd32   : > { %v1950_v32 = vpack.c.bf16 %v1946_v23, %v1945_v56 }
 0xd35   : > { %6692 = vmatpush3.bf16.xpose.msra.mxu0 %v2100_v45 }
 0xd3e   : > { %v1916_v7 = vpop.xlane.xlu1 %1915 }
 0xd3f   : > { %v1928_v11 = vmax.f32 %v1916_v7, 1e-30 }
 0xd41   : > { %7380 = vrcp.f32 %v1928_v11 }
 0xd42   : > { %v2080_v28 = vpop.permute.xlu1 %2079 }
 0xd43   : > { %7098 = vmatprep.subr.msk.bf16.mxu0 %vm461_vm1, %v2080_v28  ;;  %v2103_v0 = vsel %vm461_vm1, %v2080_v28, 0 }
 0xd44   : > { %6694 = vmatpush3.bf16.xpose.msra.mxu0 %v2103_v0 }
 0xd46   : > { %v2068_v50 = vpop.permute.xlu1 %2067 }
 0xd4a   : > { %v2072_v33 = vpop.permute.xlu1 %2071 }
 0xd4b   : > { %v7381_v60 = vpop.eup %7380 }
 0xd4c   : > { %v1944_v41 = vmul.f32 %v7381_v60, %v8610_v10 }
 0xd4e   : > { %v1949_v52 = vpack.c.bf16 %v1944_v41, %v1943_v38 }
 0xd50   : > { %6683 = vmatprep.mubr.msk.bf16.mxu0 %vm551_vm2, %v1949_v52 }
 0xd51   : > { %6684 = vmatmul.mubr.msk.bf16.gmra.mrb[44].mxu0 %vm551_vm2, %v1950_v32 }
 0xd52   : > { %6695 = vmatprep.mubr.msk.bf16.mxu0 %vm461_vm1, %v2066_v40 }
 0xd59   : > { %6696 = vmatmul.mubr.msk.bf16.vlgmr.msra.gmra.mrb[48].mxu0 %vm461_vm1, %v2068_v50 }
 0xd5a   : > { %6699 = vmatprep.mubr.msk.bf16.mxu0 %vm461_vm1, %v2070_v53 }
 0xd61   : > { %6700 = vmatmul.mubr.msk.bf16.gmra.mrb[52].mxu0 %vm461_vm1, %v2072_v33 }
 0xdf7   : > { %v8643_v4 = vpop.f32.mrb[40].mxu0 }
 0xdf8   : > { %v8645_v34 = vpop.f32.mrb[41].mxu0 }
 0xdf9   : > { %v8647_v10 = vpop.f32.mrb[42].mxu0 }
 0xdfa   : > { %v8651_v36 = vpop.f32.mrb[43].mxu0 }
 0xe24   : > { %v8655_v14 = vpop.f32.mrb[44].mxu0 }
 0xe25   : > { %10431 = vst [vmem:[#allocation17_spill] sm:$0xff] %v8655_v14  ;;  %v8657_v20 = vpop.f32.mrb[45].mxu0 }
 0xe26   : > { %10432 = vst [vmem:[#allocation18_spill] sm:$0xff] %v8657_v20  ;;  %v8659_v5 = vpop.f32.mrb[46].mxu0 }
 0xe27   : > { %10433 = vst [vmem:[#allocation19_spill] sm:$0xff] %v8659_v5  ;;  %v8663_v11 = vpop.f32.mrb[47].mxu0 }
 0xe28   : > { %10434 = vst [vmem:[#allocation20_spill] sm:$0xff] %v8663_v11 }
 0xe2c   : > { %v6697_v0 = vpop.f32.mrb[48].mxu0 }
 0xe2d   : > { %v2139_v46 = vpop.f32.mrb[49].mxu0  ;;  %v2176_v62 = vsel %vm551_vm2, %v6697_v0, -inf }
 0xe2e   : > { %2177 = vmax.xlane.f32.xlu0 %v2176_v62  ;;  %v6698_v31 = vpop.f32.mrb[50].mxu0  ;;  %v2170_v38 = vsel %vm551_vm2, %v2139_v46, -inf }
 0xe2f   : > { %v2142_v60 = vpop.f32.mrb[51].mxu0  ;;  %v2179_v52 = vsel %vm551_vm2, %v6698_v31, -inf }
 0xe30   : > { %v2173_v23 = vsel %vm551_vm2, %v2142_v60, -inf }
 0xe31   : > { %2174 = vmax.xlane.f32.xlu1 %v2173_v23 }
 0xe32   : > { %2171 = vmax.xlane.f32.xlu0 %v2170_v38 }
 0xe34   : > { %v6701_v41 = vpop.f32.mrb[52].mxu0 }
 0xe35   : > { %v2155_v56 = vpop.f32.mrb[53].mxu0  ;;  %v2188_v32 = vsel %vm551_vm2, %v6701_v41, -inf }
 0xe36   : > { %2180 = vmax.xlane.f32.xlu0 %v2179_v52  ;;  %2189 = vmax.xlane.f32.xlu1 %v2188_v32  ;;  %v6702_v40 = vpop.f32.mrb[54].mxu0  ;;  %v2182_v33 = vsel %vm551_vm2, %v2155_v56, -inf }
 0xe37   : > { %v8672_v50 = vpop.f32.mrb[55].mxu0  ;;  %v2191_v62 = vsel %vm551_vm2, %v6702_v40, -inf }
 0xe38   : > { %v2185_v53 = vsel %vm551_vm2, %v8672_v50, -inf }
 0xe3a   : > { %2183 = vmax.xlane.f32.xlu1 %v2182_v33  ;;  %2186 = vmax.xlane.f32.xlu0 %v2185_v53 }
 0xe3e   : > { %2192 = vmax.xlane.f32.xlu0 %v2191_v62 }
 0xe4b   : > { %2278 = vrot.lane.b32.xlu1 %v8026_v16, %s10347_s28 }
 0xe4f   : > { %2282 = vrot.lane.b32.xlu1 %v8036_v26, %s10347_s28 }
 0xe53   : > { %2284 = vrot.lane.b32.xlu1 %v8034_v25, %s10347_s28 }
 0xe54   : > { %2280 = vrot.lane.b32.xlu0 %v8024_v15, %s10347_s28  ;;  %s10349_s28 = smov 104  }
 0xe57   : > { %2400 = vrot.lane.b32.xlu1 %v8026_v16, %s10351_s30 }
 0xebb   : > { %v2178_v23 = vpop.xlane.xlu0 %2177 }
 0xebc   : > { %v2196_v38 = vsub.f32 %v6697_v0, %v2178_v23 }
 0xebe   : > { %v2206_v52 = vmul.f32 1.442695, %v2196_v38  ;;  %v2175_v32 = vpop.xlane.xlu1 %2174 }
 0xebf   : > { %v2172_v53 = vpop.xlane.xlu0 %2171  ;;  %v2195_v33 = vsub.f32 %v2142_v60, %v2175_v32 }
 0xec0   : > { %7382 = vpow2.f32 %v2206_v52  ;;  %v2194_v62 = vsub.f32 %v2139_v46, %v2172_v53 }
 0xec1   : > { %v2204_v48 = vmul.f32 1.442695, %v2195_v33 }
 0xec2   : > { %v2202_v7 = vmul.f32 1.442695, %v2194_v62 }
 0xec3   : > { %v2190_v28 = vpop.xlane.xlu1 %2189  ;;  %v2181_v45 = vpop.xlane.xlu0 %2180 }
 0xec4   : > { %7384 = vpow2.f32 %v2202_v7  ;;  %v2197_v8 = vsub.f32 %v6698_v31, %v2181_v45  ;;  %v2200_v14 = vsub.f32 %v6701_v41, %v2190_v28 }
 0xec5   : > { %7386 = vpow2.f32 %v2204_v48 }
 0xec6   : > { %v2208_v5 = vmul.f32 1.442695, %v2197_v8  ;;  %v2214_v3 = vmul.f32 1.442695, %v2200_v14 }
 0xec7   : > { %v2184_v20 = vpop.xlane.xlu1 %2183  ;;  %v2187_v11 = vpop.xlane.xlu0 %2186 }
 0xec8   : > { %7388 = vpow2.f32 %v2208_v5  ;;  %v2198_v0 = vsub.f32 %v2155_v56, %v2184_v20 }
 0xec9   : > { %7390 = vpow2.f32 %v2214_v3 }
 0xeca   : > { %v7383_v23 = vpop.eup %7382  ;;  %v2210_v46 = vmul.f32 1.442695, %v2198_v0 }
 0xecb   : > { %v2279_v38 = vpop.permute.xlu1 %2278  ;;  %v2193_v43 = vpop.xlane.xlu0 %2192  ;;  %v8689_v60 = vmul.f32 %v8432_v1, %v7383_v23  ;;  %v2199_v23 = vsub.f32 %v8672_v50, %v2187_v11 }
 0xecc   : > { %6703 = vmatprep.subr.bf16.mxu1 %v2279_v38  ;;  %v2201_v52 = vsub.f32 %v6702_v40, %v2193_v43  ;;  %7392 = vpow2.f32 %v2210_v46 }
 0xecd   : > { %6704 = vmatpush3.bf16.msra.mxu1 %v2279_v38  ;;  %v2232_v8 = vsel %vm551_vm2, %v8689_v60, 0.0 }
 0xece   : > { %v7385_v45 = vpop.eup %7384  ;;  %2233 = vadd.xlane.f32.xlu1 %v2232_v8  ;;  %v2216_v5 = vmul.f32 1.442695, %v2201_v52 }
 0xecf   : > { %v2283_v48 = vpop.permute.xlu1 %2282  ;;  %v2281_v14 = vpop.permute.xlu0 %2280  ;;  %v8694_v20 = vmul.f32 %v8440_v29, %v7385_v45 }
 0xed0   : > { %6705 = vmatprep.subr.bf16.mxu1 %v2281_v14  ;;  %v7387_v3 = vpop.eup %7386  ;;  %7394 = vpow2.f32 %v2216_v5 }
 0xed1   : > { %6706 = vmatpush3.bf16.msra.mxu1 %v2281_v14  ;;  %v2226_v1 = vsel %vm551_vm2, %v8694_v20, 0.0  ;;  %v2219_v29 = vmul.f32 %v8453_v12, %v7387_v3 }
 0xed2   : > { %2227 = vadd.xlane.f32.xlu1 %v2226_v1  ;;  %6707 = vmatprep.subr.bf16.mxu1 %v2283_v48  ;;  %v7389_v43 = vpop.eup %7388 }
 0xed3   : > { %v2285_v7 = vpop.permute.xlu1 %2284  ;;  %v2221_v28 = vmul.f32 %v8448_v37, %v7389_v43  ;;  %v7391_v41 = vpop.eup %7390  ;;  %v2229_v40 = vsel %vm551_vm2, %v2219_v29, 0.0 }
 0xed4   : > { %v8704_v32 = vmul.f32 %v8459_v21, %v7391_v41 }
 0xed5   : > { %6708 = vmatpush3.bf16.msra.mxu1 %v2283_v48  ;;  %v2235_v31 = vsel %vm551_vm2, %v2221_v28, 0.0 }
 0xed6   : > { %6709 = vmatprep.subr.bf16.mxu1 %v2285_v7  ;;  %2236 = vadd.xlane.f32.xlu0 %v2235_v31  ;;  %v7393_v53 = vpop.eup %7392  ;;  %v2244_v37 = vsel %vm551_vm2, %v8704_v32, 0.0 }
 0xed7   : > { %v2401_v56 = vpop.permute.xlu1 %2400  ;;  %v8709_v33 = vmul.f32 %v8467_v47, %v7393_v53  ;;  %v2212_v47 = vmul.f32 1.442695, %v2199_v23 }
 0xed8   : > { %v2421_v23 = vsel %vm461_vm1, %v2401_v56, 0 }
 0xed9   : > { %6710 = vmatpush3.bf16.msra.mxu1 %v2285_v7  ;;  %v2238_v62 = vsel %vm551_vm2, %v8709_v33, 0.0  ;;  %7396 = vpow2.f32 %v2212_v47 }
 0xeda   : > { %7099 = vmatprep.subr.msk.bf16.mxu1 %vm461_vm1, %v2401_v56  ;;  %2230 = vadd.xlane.f32.xlu0 %v2229_v40  ;;  %v7395_v12 = vpop.eup %7394 }
 0xedb   : > { %v8714_v0 = vmul.f32 %v8475_v54, %v7395_v12 }
 0xedd   : > { %v2247_v21 = vsel %vm551_vm2, %v8714_v0, 0.0 }
 0xede   : > { %2245 = vadd.xlane.f32.xlu0 %v2244_v37 }
 0xee2   : > { %2239 = vadd.xlane.f32.xlu0 %v2238_v62 }
 0xee3   : > { %2404 = vrot.lane.b32.xlu1 %v8036_v26, %s10351_s30  ;;  %v7397_v38 = vpop.eup %7396 }
 0xee4   : > { %v8726_v54 = vmul.f32 %v8491_v2, %v7397_v38 }
 0xee6   : > { %2248 = vadd.xlane.f32.xlu0 %v2247_v21  ;;  %v2241_v46 = vsel %vm551_vm2, %v8726_v54, 0.0 }
 0xefc   : > { %2402 = vrot.lane.b32.xlu0 %v8024_v15, %s10351_s30 }
 0xf00   : > { %2392 = vrot.lane.b32.xlu0 %v8026_v16, %s10349_s28 }
 0xf04   : > { %2396 = vrot.lane.b32.xlu0 %v8036_v26, %s10349_s28 }
 0xf07   : > { %2242 = vadd.xlane.f32.xlu1 %v2241_v46 }
 0xf18   : > { %2406 = vrot.lane.b32.xlu1 %v8034_v25, %s10351_s30  ;;  %s10366_s30 = smov 68  }
 0xf1c   : > { %2394 = vrot.lane.b32.xlu1 %v8024_v15, %s10349_s28 }
 0xf20   : > { %2398 = vrot.lane.b32.xlu1 %v8034_v25, %s10349_s28  ;;  %s10353_s28 = smov 40  }
 0xf5b   : > { %v2234_v11 = vpop.xlane.xlu1 %2233 }
 0xf5c   : > { %v2252_v45 = vmax.f32 %v2234_v11, 1e-30 }
 0xf5f   : > { %v2228_v50 = vpop.xlane.xlu1 %2227 }
 0xf60   : > { %v2250_v52 = vmax.f32 %v2228_v50, 1e-30 }
 0xf63   : > { %v2237_v2 = vpop.xlane.xlu0 %2236  ;;  %v2405_v38 = vpop.permute.xlu1 %2404 }
 0xf64   : > { %v2253_v8 = vmax.f32 %v2237_v2, 1e-30 }
 0xf66   : > { %7398 = vrcp.f32 %v2253_v8 }
 0xf67   : > { %v2231_v48 = vpop.xlane.xlu0 %2230  ;;  %7400 = vrcp.f32 %v2250_v52 }
 0xf68   : > { %v2251_v14 = vmax.f32 %v2231_v48, 1e-30  ;;  %7402 = vrcp.f32 %v2252_v45 }
 0xf6a   : > { %7404 = vrcp.f32 %v2251_v14 }
 0xf6b   : > { %v2246_v5 = vpop.xlane.xlu0 %2245 }
 0xf6c   : > { %v2256_v46 = vmax.f32 %v2246_v5, 1e-30 }
 0xf6f   : > { %v2240_v1 = vpop.xlane.xlu0 %2239 }
 0xf70   : > { %v7399_v3 = vpop.eup %7398 }
 0xf71   : > { %v7401_v43 = vpop.eup %7400  ;;  %v2269_v41 = vmul.f32 %v7399_v3, %v2221_v28 }
 0xf72   : > { %v7403_v7 = vpop.eup %7402  ;;  %v2266_v53 = vmul.f32 %v7401_v43, %v8694_v20 }
 0xf73   : > { %v2249_v40 = vpop.xlane.xlu0 %2248  ;;  %v2268_v12 = vmul.f32 %v7403_v7, %v8689_v60  ;;  %v2427_v60 = vsel %vm461_vm1, %v2405_v38, 0 }
 0xf74   : > { %v7405_v31 = vpop.eup %7404  ;;  %v2257_v20 = vmax.f32 %v2249_v40, 1e-30 }
 0xf75   : > { %v2267_v37 = vmul.f32 %v7405_v31, %v2219_v29  ;;  %v2275_v21 = vpack.c.bf16 %v2269_v41, %v2268_v12  ;;  %v2254_v29 = vmax.f32 %v2240_v1, 1e-30 }
 0xf76   : > { %7406 = vrcp.f32 %v2257_v20 }
 0xf77   : > { %v2274_v62 = vpack.c.bf16 %v2267_v37, %v2266_v53  ;;  %v2403_v47 = vpop.permute.xlu0 %2402  ;;  %7408 = vrcp.f32 %v2254_v29 }
 0xf78   : > { %v2424_v28 = vsel %vm461_vm1, %v2403_v47, 0  ;;  %7410 = vrcp.f32 %v2256_v46 }
 0xf79   : > { %6711 = vmatprep.mubr.msk.bf16.mxu1 %vm551_vm2, %v2274_v62 }
 0xf7a   : > { %6712 = vmatmul.mubr.msk.bf16.vlgmr.msra.gmra.mrb[40].mxu1 %vm551_vm2, %v2275_v21 }
 0xf7b   : > { %6720 = vmatpush3.bf16.xpose.msra.mxu1 %v2421_v23  ;;  %v2393_v31 = vpop.permute.xlu0 %2392 }
 0xf7c   : > { %7100 = vmatprep.subr.msk.bf16.mxu1 %vm461_vm1, %v2403_v47 }
 0xf7f   : > { %v2397_v40 = vpop.permute.xlu0 %2396 }
 0xf80   : > { %v7407_v52 = vpop.eup %7406 }
 0xf81   : > { %v7409_v8 = vpop.eup %7408  ;;  %v2273_v14 = vmul.f32 %v7407_v52, %v8714_v0 }
 0xf82   : > { %v7411_v45 = vpop.eup %7410  ;;  %v2270_v5 = vmul.f32 %v7409_v8, %v8709_v33 }
 0xf83   : > { %6722 = vmatpush3.bf16.xpose.msra.mxu1 %v2424_v28  ;;  %v2272_v3 = vmul.f32 %v7411_v45, %v8704_v32 }
 0xf84   : > { %7101 = vmatprep.subr.msk.bf16.mxu1 %vm461_vm1, %v2405_v38 }
 0xf85   : > { %v2277_v7 = vpack.c.bf16 %v2273_v14, %v2272_v3 }
 0xf8b   : > { %6724 = vmatpush3.bf16.xpose.msra.mxu1 %v2427_v60 }
 0xf94   : > { %v2243_v11 = vpop.xlane.xlu1 %2242 }
 0xf95   : > { %v2255_v56 = vmax.f32 %v2243_v11, 1e-30 }
 0xf97   : > { %7412 = vrcp.f32 %v2255_v56 }
 0xf98   : > { %v2407_v50 = vpop.permute.xlu1 %2406 }
 0xf99   : > { %7102 = vmatprep.subr.msk.bf16.mxu1 %vm461_vm1, %v2407_v50  ;;  %v2430_v2 = vsel %vm461_vm1, %v2407_v50, 0 }
 0xf9a   : > { %6726 = vmatpush3.bf16.xpose.msra.mxu1 %v2430_v2 }
 0xf9c   : > { %v2395_v41 = vpop.permute.xlu1 %2394 }
 0xfa0   : > { %v2399_v33 = vpop.permute.xlu1 %2398 }
 0xfa1   : > { %v7413_v48 = vpop.eup %7412 }
 0xfa2   : > { %v2271_v1 = vmul.f32 %v7413_v48, %v8726_v54 }
 0xfa4   : > { %v2276_v43 = vpack.c.bf16 %v2271_v1, %v2270_v5 }
 0xfa6   : > { %6715 = vmatprep.mubr.msk.bf16.mxu1 %vm551_vm2, %v2276_v43 }
 0xfa7   : > { %6716 = vmatmul.mubr.msk.bf16.gmra.mrb[44].mxu1 %vm551_vm2, %v2277_v7 }
 0xfa8   : > { %6727 = vmatprep.mubr.msk.bf16.mxu1 %vm461_vm1, %v2393_v31 }
 0xfaf   : > { %6728 = vmatmul.mubr.msk.bf16.vlgmr.msra.gmra.mrb[48].mxu1 %vm461_vm1, %v2395_v41 }
 0xfb0   : > { %6731 = vmatprep.mubr.msk.bf16.mxu1 %vm461_vm1, %v2397_v40 }
 0xfb7   : > { %6732 = vmatmul.mubr.msk.bf16.gmra.mrb[52].mxu1 %vm461_vm1, %v2399_v33 }
0x104d   : > { %v8759_v0 = vpop.f32.mrb[40].mxu1 }
0x104e   : > { %v8761_v32 = vpop.f32.mrb[41].mxu1 }
0x104f   : > { %v8763_v54 = vpop.f32.mrb[42].mxu1 }
0x1050   : > { %v8767_v37 = vpop.f32.mrb[43].mxu1 }
0x107a   : > { %v8771_v62 = vpop.f32.mrb[44].mxu1 }
0x107b   : > { %10435 = vst [vmem:[#allocation21_spill] sm:$0xff] %v8771_v62  ;;  %v8773_v21 = vpop.f32.mrb[45].mxu1 }
0x107c   : > { %10436 = vst [vmem:[#allocation22_spill] sm:$0xff] %v8773_v21  ;;  %v8775_v23 = vpop.f32.mrb[46].mxu1 }
0x107d   : > { %10437 = vst [vmem:[#allocation23_spill] sm:$0xff] %v8775_v23  ;;  %v8779_v28 = vpop.f32.mrb[47].mxu1 }
0x107e   : > { %10438 = vst [vmem:[#allocation24_spill] sm:$0xff] %v8779_v28 }
0x1082   : > { %v6729_v60 = vpop.f32.mrb[48].mxu1 }
0x1083   : > { %v2466_v20 = vpop.f32.mrb[49].mxu1  ;;  %v2503_v29 = vsel %vm551_vm2, %v6729_v60, -inf }
0x1084   : > { %2504 = vmax.xlane.f32.xlu0 %v2503_v29  ;;  %v6730_v46 = vpop.f32.mrb[50].mxu1  ;;  %v2497_v50 = vsel %vm551_vm2, %v2466_v20, -inf }
0x1085   : > { %v2469_v11 = vpop.f32.mrb[51].mxu1  ;;  %v2506_v8 = vsel %vm551_vm2, %v6730_v46, -inf }
0x1086   : > { %v2500_v56 = vsel %vm551_vm2, %v2469_v11, -inf }
0x1087   : > { %2501 = vmax.xlane.f32.xlu1 %v2500_v56 }
0x1088   : > { %2498 = vmax.xlane.f32.xlu0 %v2497_v50 }
0x108a   : > { %v6733_v2 = vpop.f32.mrb[52].mxu1 }
0x108b   : > { %v2482_v52 = vpop.f32.mrb[53].mxu1  ;;  %v2515_v45 = vsel %vm551_vm2, %v6733_v2, -inf }
0x108c   : > { %2507 = vmax.xlane.f32.xlu0 %v2506_v8  ;;  %2516 = vmax.xlane.f32.xlu1 %v2515_v45  ;;  %v6734_v48 = vpop.f32.mrb[54].mxu1  ;;  %v2509_v1 = vsel %vm551_vm2, %v2482_v52, -inf }
0x108d   : > { %v8788_v14 = vpop.f32.mrb[55].mxu1  ;;  %v2518_v3 = vsel %vm551_vm2, %v6734_v48, -inf }
0x108e   : > { %v2512_v5 = vsel %vm551_vm2, %v8788_v14, -inf }
0x1090   : > { %2510 = vmax.xlane.f32.xlu1 %v2509_v1  ;;  %2513 = vmax.xlane.f32.xlu0 %v2512_v5 }
0x1094   : > { %2519 = vmax.xlane.f32.xlu0 %v2518_v3 }
0x10a1   : > { %2605 = vrot.lane.b32.xlu1 %v8026_v16, %s10353_s28 }
0x10a5   : > { %2609 = vrot.lane.b32.xlu1 %v8036_v26, %s10353_s28 }
0x10a9   : > { %2611 = vrot.lane.b32.xlu1 %v8034_v25, %s10353_s28 }
0x10aa   : > { %2607 = vrot.lane.b32.xlu0 %v8024_v15, %s10353_s28  ;;  %s10364_s28 = smov 100  }
0x10ad   : > { %2727 = vrot.lane.b32.xlu1 %v8026_v16, %s10366_s30 }
0x1111   : > { %v2505_v43 = vpop.xlane.xlu0 %2504 }
0x1112   : > { %v2523_v7 = vsub.f32 %v6729_v60, %v2505_v43 }
0x1114   : > { %v2533_v31 = vmul.f32 1.442695, %v2523_v7  ;;  %v2502_v41 = vpop.xlane.xlu1 %2501 }
0x1115   : > { %v2499_v40 = vpop.xlane.xlu0 %2498  ;;  %v2522_v33 = vsub.f32 %v2469_v11, %v2502_v41 }
0x1116   : > { %7414 = vpow2.f32 %v2533_v31  ;;  %v2521_v29 = vsub.f32 %v2466_v20, %v2499_v40  ;;  %v8807_v31 = vld [vmem:[%s7991_s19 + $0x10] sm:$0xff] }
0x1117   : > { %v2531_v45 = vmul.f32 1.442695, %v2522_v33 }
0x1118   : > { %v2529_v56 = vmul.f32 1.442695, %v2521_v29  ;;  %v8815_v29 = vld [vmem:[%s7991_s19] sm:$0xff] }
0x1119   : > { %v2517_v50 = vpop.xlane.xlu1 %2516  ;;  %v2508_v8 = vpop.xlane.xlu0 %2507 }
0x111a   : > { %7416 = vpow2.f32 %v2529_v56  ;;  %v2524_v5 = vsub.f32 %v6730_v46, %v2508_v8  ;;  %v2527_v1 = vsub.f32 %v6733_v2, %v2517_v50 }
0x111b   : > { %7418 = vpow2.f32 %v2531_v45 }
0x111c   : > { %v2535_v3 = vmul.f32 1.442695, %v2524_v5  ;;  %v2541_v60 = vmul.f32 1.442695, %v2527_v1  ;;  %v8823_v1 = vld [vmem:[%s7991_s19 + $0x18] sm:$0xff] }
0x111d   : > { %v2511_v47 = vpop.xlane.xlu1 %2510  ;;  %v8804_v38 = vpop.xlane.xlu0 %2513 }
0x111e   : > { %7420 = vpow2.f32 %v2535_v3  ;;  %v2525_v43 = vsub.f32 %v2482_v52, %v2511_v47 }
0x111f   : > { %7422 = vpow2.f32 %v2541_v60 }
0x1120   : > { %v7415_v7 = vpop.eup %7414  ;;  %v2537_v46 = vmul.f32 1.442695, %v2525_v43  ;;  %v8828_v43 = vld [vmem:[%s7991_s19 + $0x8] sm:$0xff] }
0x1121   : > { %v2606_v11 = vpop.permute.xlu1 %2605  ;;  %v2520_v20 = vpop.xlane.xlu0 %2519  ;;  %v8810_v41 = vmul.f32 %v8807_v31, %v7415_v7 }
0x1122   : > { %6735 = vmatprep.subr.bf16.mxu0 %v2606_v11  ;;  %v2528_v2 = vsub.f32 %v6734_v48, %v2520_v20  ;;  %7424 = vpow2.f32 %v2537_v46 }
0x1123   : > { %6736 = vmatpush3.bf16.msra.mxu0 %v2606_v11  ;;  %v2559_v40 = vsel %vm551_vm2, %v8810_v41, 0.0 }
0x1124   : > { %v7417_v33 = vpop.eup %7416  ;;  %2560 = vadd.xlane.f32.xlu1 %v2559_v40  ;;  %v2543_v50 = vmul.f32 1.442695, %v2528_v2  ;;  %v8834_v2 = vld [vmem:[%s7991_s19 + $0x30] sm:$0xff] }
0x1125   : > { %v2610_v47 = vpop.permute.xlu1 %2609  ;;  %v2608_v52 = vpop.permute.xlu0 %2607  ;;  %v8818_v56 = vmul.f32 %v8815_v29, %v7417_v33 }
0x1126   : > { %6737 = vmatprep.subr.bf16.mxu0 %v2608_v52  ;;  %v7419_v8 = vpop.eup %7418  ;;  %7426 = vpow2.f32 %v2543_v50 }
0x1127   : > { %6738 = vmatpush3.bf16.msra.mxu0 %v2608_v52  ;;  %v2553_v48 = vsel %vm551_vm2, %v8818_v56, 0.0  ;;  %v2546_v7 = vmul.f32 %v8828_v43, %v7419_v8  ;;  %v8842_v52 = vld [vmem:[%s7991_s19 + $0x20] sm:$0xff] }
0x1128   : > { %2554 = vadd.xlane.f32.xlu1 %v2553_v48  ;;  %6739 = vmatprep.subr.bf16.mxu0 %v2610_v47  ;;  %v7421_v45 = vpop.eup %7420 }
0x1129   : > { %v2612_v5 = vpop.permute.xlu1 %2611  ;;  %v2548_v3 = vmul.f32 %v8823_v1, %v7421_v45  ;;  %v7423_v11 = vpop.eup %7422  ;;  %v2556_v46 = vsel %vm551_vm2, %v2546_v7, 0.0  ;;  %v8850_v45 = vld [vmem:[%s7991_s19 + $0x38] sm:$0xff] }
0x112a   : > { %v8837_v40 = vmul.f32 %v8834_v2, %v7423_v11  ;;  %v2526_v11 = vsub.f32 %v8788_v14, %v8804_v38 }
0x112b   : > { %6740 = vmatpush3.bf16.msra.mxu0 %v2610_v47  ;;  %v2562_v60 = vsel %vm551_vm2, %v2548_v3, 0.0 }
0x112c   : > { %6741 = vmatprep.subr.bf16.mxu0 %v2612_v5  ;;  %2563 = vadd.xlane.f32.xlu0 %v2562_v60  ;;  %v7425_v33 = vpop.eup %7424  ;;  %v2571_v47 = vsel %vm551_vm2, %v8837_v40, 0.0 }
0x112d   : > { %v2728_v20 = vpop.permute.xlu1 %2727  ;;  %v8845_v50 = vmul.f32 %v8842_v52, %v7425_v33 }
0x112f   : > { %6742 = vmatpush3.bf16.msra.mxu0 %v2612_v5  ;;  %v2565_v8 = vsel %vm551_vm2, %v8845_v50, 0.0 }
0x1130   : > { %7103 = vmatprep.subr.msk.bf16.mxu0 %vm461_vm1, %v2728_v20  ;;  %2557 = vadd.xlane.f32.xlu0 %v2556_v46  ;;  %v7427_v48 = vpop.eup %7426  ;;  %v2539_v46 = vmul.f32 1.442695, %v2526_v11 }
0x1131   : > { %v8853_v5 = vmul.f32 %v8850_v45, %v7427_v48 }
0x1132   : > { %7428 = vpow2.f32 %v2539_v46 }
0x1133   : > { %v2574_v60 = vsel %vm551_vm2, %v8853_v5, 0.0 }
0x1134   : > { %2572 = vadd.xlane.f32.xlu0 %v2571_v47  ;;  %v8866_v47 = vld [vmem:[%s7991_s19 + $0x28] sm:$0xff] }
0x1138   : > { %2566 = vadd.xlane.f32.xlu0 %v2565_v8 }
0x1139   : > { %2731 = vrot.lane.b32.xlu1 %v8036_v26, %s10366_s30 }
0x113c   : > { %2575 = vadd.xlane.f32.xlu0 %v2574_v60  ;;  %v7429_v33 = vpop.eup %7428 }
0x113d   : > { %v8869_v48 = vmul.f32 %v8866_v47, %v7429_v33 }
0x113f   : > { %v2568_v38 = vsel %vm551_vm2, %v8869_v48, 0.0 }
0x1152   : > { %2729 = vrot.lane.b32.xlu0 %v8024_v15, %s10366_s30 }
0x1156   : > { %2719 = vrot.lane.b32.xlu0 %v8026_v16, %s10364_s28 }
0x115a   : > { %2723 = vrot.lane.b32.xlu0 %v8036_v26, %s10364_s28 }
0x115d   : > { %2569 = vadd.xlane.f32.xlu1 %v2568_v38 }
0x116e   : > { %2733 = vrot.lane.b32.xlu1 %v8034_v25, %s10366_s30  ;;  %s10380_s30 = smov 36  }
0x1172   : > { %2721 = vrot.lane.b32.xlu1 %v8024_v15, %s10364_s28 }
0x1176   : > { %2725 = vrot.lane.b32.xlu1 %v8034_v25, %s10364_s28  ;;  %s7865_s28 = smov 8  }
0x11b1   : > { %v2561_v14 = vpop.xlane.xlu1 %2560 }
0x11b2   : > { %v2579_v33 = vmax.f32 %v2561_v14, 1e-30 }
0x11b5   : > { %v2555_v8 = vpop.xlane.xlu1 %2554 }
0x11b6   : > { %v2577_v11 = vmax.f32 %v2555_v8, 1e-30 }
0x11b9   : > { %v2564_v60 = vpop.xlane.xlu0 %2563 }
0x11ba   : > { %v2580_v46 = vmax.f32 %v2564_v60, 1e-30 }
0x11bc   : > { %7430 = vrcp.f32 %v2580_v46 }
0x11bd   : > { %v2558_v12 = vpop.xlane.xlu0 %2557  ;;  %7432 = vrcp.f32 %v2577_v11 }
0x11be   : > { %v2578_v53 = vmax.f32 %v2558_v12, 1e-30  ;;  %7434 = vrcp.f32 %v2579_v33 }
0x11c0   : > { %7436 = vrcp.f32 %v2578_v53  ;;  %v2748_v53 = vsel %vm461_vm1, %v2728_v20, 0 }
0x11c1   : > { %v2573_v38 = vpop.xlane.xlu0 %2572 }
0x11c5   : > { %v2567_v62 = vpop.xlane.xlu0 %2566 }
0x11c6   : > { %v7431_v23 = vpop.eup %7430 }
0x11c7   : > { %v7433_v21 = vpop.eup %7432  ;;  %v2596_v35 = vmul.f32 %v7431_v23, %v2548_v3  ;;  %v2732_v3 = vpop.permute.xlu1 %2731 }
0x11c8   : > { %v7435_v28 = vpop.eup %7434  ;;  %v2593_v59 = vmul.f32 %v7433_v21, %v8818_v56 }
0x11c9   : > { %v2576_v57 = vpop.xlane.xlu0 %2575  ;;  %v2595_v8 = vmul.f32 %v7435_v28, %v8810_v41 }
0x11ca   : > { %v7437_v30 = vpop.eup %7436 }
0x11cb   : > { %v2594_v58 = vmul.f32 %v7437_v30, %v2546_v7  ;;  %v2602_v60 = vpack.c.bf16 %v2596_v35, %v2595_v8  ;;  %v2754_v30 = vsel %vm461_vm1, %v2732_v3, 0  ;;  %v2583_v35 = vmax.f32 %v2573_v38, 1e-30  ;;  %v7750_v7 = vld [vmem:[%s10334_s2] sm:$0xff]  }
0x11cd   : > { %v2601_v14 = vpack.c.bf16 %v2594_v58, %v2593_v59  ;;  %v2730_v12 = vpop.permute.xlu0 %2729  ;;  %v2584_v58 = vmax.f32 %v2576_v57, 1e-30  ;;  %v2581_v59 = vmax.f32 %v2567_v62, 1e-30 }
0x11ce   : > { %v2751_v23 = vsel %vm461_vm1, %v2730_v12, 0 }
0x11cf   : > { %6743 = vmatprep.mubr.msk.bf16.mxu0 %vm551_vm2, %v2601_v14  ;;  %7438 = vrcp.f32 %v2584_v58 }
0x11d0   : > { %6744 = vmatmul.mubr.msk.bf16.vlgmr.msra.gmra.mrb[56].mxu0 %vm551_vm2, %v2602_v60  ;;  %7440 = vrcp.f32 %v2581_v59 }
0x11d1   : > { %6752 = vmatpush3.bf16.xpose.msra.mxu0 %v2748_v53  ;;  %7442 = vrcp.f32 %v2583_v35  ;;  %v2720_v53 = vpop.permute.xlu0 %2719 }
0x11d2   : > { %7104 = vmatprep.subr.msk.bf16.mxu0 %vm461_vm1, %v2730_v12 }
0x11d9   : > { %6754 = vmatpush3.bf16.xpose.msra.mxu0 %v2751_v23  ;;  %v7439_v57 = vpop.eup %7438  ;;  %v2724_v23 = vpop.permute.xlu0 %2723 }
0x11da   : > { %7105 = vmatprep.subr.msk.bf16.mxu0 %vm461_vm1, %v2732_v3  ;;  %v7441_v62 = vpop.eup %7440  ;;  %v2600_v46 = vmul.f32 %v7439_v57, %v8853_v5  ;;  %v7216_v5 = vld [vmem:[%s8005_s20 + $0x20] sm:$0xff]  }
0x11db   : > { %v7443_v20 = vpop.eup %7442  ;;  %v2597_v33 = vmul.f32 %v7441_v62, %v8845_v50 }
0x11dc   : > { %v2599_v8 = vmul.f32 %v7443_v20, %v8837_v40  ;;  %v7751_v40 = vld [vmem:[%s10334_s2 + $0x8] sm:$0xff]  }
0x11de   : > { %v2604_v60 = vpack.c.bf16 %v2600_v46, %v2599_v8 }
0x11e1   : > { %6756 = vmatpush3.bf16.xpose.msra.mxu0 %v2754_v30 }
0x11ea   : > { %v2570_v21 = vpop.xlane.xlu1 %2569 }
0x11eb   : > { %v2582_v28 = vmax.f32 %v2570_v21, 1e-30 }
0x11ed   : > { %7444 = vrcp.f32 %v2582_v28 }
0x11ee   : > { %v2734_v41 = vpop.permute.xlu1 %2733 }
0x11ef   : > { %7106 = vmatprep.subr.msk.bf16.mxu0 %vm461_vm1, %v2734_v41  ;;  %v2757_v56 = vsel %vm461_vm1, %v2734_v41, 0 }
0x11f0   : > { %6758 = vmatpush3.bf16.xpose.msra.mxu0 %v2757_v56 }
0x11f1   : > { %6795 = vmatprep.subr.bf16.mxu0 %v7750_v7 }
0x11f2   : > { %v2722_v12 = vpop.permute.xlu1 %2721 }
0x11f6   : > { %v2726_v50 = vpop.permute.xlu1 %2725 }
0x11f7   : > { %v7445_v11 = vpop.eup %7444 }
0x11f8   : > { %v2598_v38 = vmul.f32 %v7445_v11, %v8869_v48  ;;  %v7217_v48 = vld [vmem:[%s8005_s20 + $0x28] sm:$0xff]  }
0x11fa   : > { %v2603_v14 = vpack.c.bf16 %v2598_v38, %v2597_v33 }
0x11fc   : > { %6747 = vmatprep.mubr.msk.bf16.mxu0 %vm551_vm2, %v2603_v14 }
0x11fd   : > { %6748 = vmatmul.mubr.msk.bf16.gmra.mrb[60].mxu0 %vm551_vm2, %v2604_v60 }
0x11fe   : > { %6759 = vmatprep.mubr.msk.bf16.mxu0 %vm461_vm1, %v2720_v53 }
0x1205   : > { %6760 = vmatmul.mubr.msk.bf16.vlgmr.msra.gmra.mrb[64].mxu0 %vm461_vm1, %v2722_v12 }
0x1206   : > { %6763 = vmatprep.mubr.msk.bf16.mxu0 %vm461_vm1, %v2724_v23  ;;  %6796 = vmatpush3.bf16.msra.mxu0 %v7750_v7 }
0x1207   : > { %6797 = vmatprep.subr.bf16.mxu0 %v7751_v40 }
0x120a   : > { %6798 = vmatpush3.bf16.msra.mxu0 %v7751_v40 }
0x120d   : > { %6764 = vmatmul.mubr.msk.bf16.gmra.mrb[68].mxu0 %vm461_vm1, %v2726_v50 }
0x120e   : > { %6799 = vmatprep.mubr.msk.bf16.mxu0 %vm367_vm0, %v7216_v5 }
0x1215   : > { %6800 = vmatmul.mubr.msk.bf16.vlgmr.msra.gmra.mrb[72].mxu0 %vm367_vm0, %v7217_v48 }
0x12a3   : > { %v8912_v3 = vpop.f32.mrb[56].mxu0 }
0x12a4   : > { %v8914_v30 = vpop.f32.mrb[57].mxu0 }
0x12a5   : > { %v8916_v58 = vpop.f32.mrb[58].mxu0 }
0x12a6   : > { %v8920_v35 = vpop.f32.mrb[59].mxu0 }
0x12d0   : > { %v8924_v28 = vpop.f32.mrb[60].mxu0 }
0x12d1   : > { %10439 = vst [vmem:[#allocation25_spill] sm:$0xff] %v8924_v28  ;;  %v8926_v41 = vpop.f32.mrb[61].mxu0 }
0x12d2   : > { %10440 = vst [vmem:[#allocation26_spill] sm:$0xff] %v8926_v41  ;;  %v8928_v56 = vpop.f32.mrb[62].mxu0 }
0x12d3   : > { %10441 = vst [vmem:[#allocation27_spill] sm:$0xff] %v8928_v56  ;;  %v8932_v57 = vpop.f32.mrb[63].mxu0 }
0x12d4   : > { %10442 = vst [vmem:[#allocation28_spill] sm:$0xff] %v8932_v57 }
0x12d8   : > { %v6761_v20 = vpop.f32.mrb[64].mxu0 }
0x12d9   : > { %v2793_v11 = vpop.f32.mrb[65].mxu0  ;;  %v2830_v14 = vsel %vm551_vm2, %v6761_v20, -inf }
0x12da   : > { %v6762_v46 = vpop.f32.mrb[66].mxu0  ;;  %v2824_v33 = vsel %vm551_vm2, %v2793_v11, -inf }
0x12db   : > { %2825 = vmax.xlane.f32.xlu0 %v2824_v33  ;;  %v2796_v38 = vpop.f32.mrb[67].mxu0  ;;  %v2833_v40 = vsel %vm551_vm2, %v6762_v46, -inf }
0x12dc   : > { %v2827_v8 = vsel %vm551_vm2, %v2796_v38, -inf }
0x12dd   : > { %2828 = vmax.xlane.f32.xlu1 %v2827_v8 }
0x12df   : > { %2831 = vmax.xlane.f32.xlu0 %v2830_v14  ;;  %v8951_v14 = vld [vmem:[%s10335_s3] ss:$0 sm:$0xff] }
0x12e0   : > { %v6765_v60 = vpop.f32.mrb[68].mxu0 }
0x12e1   : > { %v2809_v53 = vpop.f32.mrb[69].mxu0  ;;  %v2842_v12 = vsel %vm551_vm2, %v6765_v60, -inf }
0x12e2   : > { %2843 = vmax.xlane.f32.xlu1 %v2842_v12  ;;  %v6766_v23 = vpop.f32.mrb[70].mxu0  ;;  %v2836_v5 = vsel %vm551_vm2, %v2809_v53, -inf }
0x12e3   : > { %2834 = vmax.xlane.f32.xlu0 %v2833_v40  ;;  %v2812_v50 = vpop.f32.mrb[71].mxu0  ;;  %v2845_v48 = vsel %vm551_vm2, %v6766_v23, -inf }
0x12e4   : > { %v2839_v33 = vsel %vm551_vm2, %v2812_v50, -inf }
0x12e6   : > { %2837 = vmax.xlane.f32.xlu1 %v2836_v5 }
0x12e7   : > { %2846 = vmax.xlane.f32.xlu0 %v2845_v48 }
0x12e8   : > { %v6801_v8 = vpop.f32.mrb[72].mxu0 }
0x12e9   : > { %v3246_v12 = vadd.f32 %v8951_v14, %v6801_v8  ;;  %v3237_v40 = vpop.f32.mrb[73].mxu0 }
0x12ea   : > { %v3238_v5 = vadd.f32 %v8951_v14, %v3237_v40  ;;  %v6802_v48 = vpop.f32.mrb[74].mxu0 }
0x12eb   : > { %2840 = vmax.xlane.f32.xlu0 %v2839_v33  ;;  %v3249_v33 = vadd.f32 %v8951_v14, %v6802_v48  ;;  %v3240_v7 = vpop.f32.mrb[75].mxu0 }
0x12ed   : > { %v8957_v62 = vpack.c.bf16 %v3249_v33, %v3246_v12 }
0x12f7   : > { %2932 = vrot.lane.b32.xlu1 %v8026_v16, %s10380_s30  ;;  %v3241_v16 = vadd.f32 %v8951_v14, %v3240_v7 }
0x1301   : > { %2934 = vrot.lane.b32.xlu0 %v8024_v15, %s10380_s30  ;;  %v8959_v15 = vpack.c.bf16 %v3241_v16, %v3238_v5 }
0x1368   : > { %v2826_v21 = vpop.xlane.xlu0 %2825 }
0x1369   : > { %v2848_v59 = vsub.f32 %v2793_v11, %v2826_v21 }
0x136a   : > { %v2829_v28 = vpop.xlane.xlu1 %2828 }
0x136b   : > { %v2849_v56 = vsub.f32 %v2796_v38, %v2829_v28  ;;  %v2856_v41 = vmul.f32 1.442695, %v2848_v59 }
0x136c   : > { %v2832_v57 = vpop.xlane.xlu0 %2831 }
0x136d   : > { %v2850_v8 = vsub.f32 %v6761_v20, %v2832_v57  ;;  %v2858_v61 = vmul.f32 1.442695, %v2849_v56  ;;  %7446 = vpow2.f32 %v2856_v41 }
0x136f   : > { %v2860_v18 = vmul.f32 1.442695, %v2850_v8  ;;  %v2844_v40 = vpop.xlane.xlu1 %2843 }
0x1370   : > { %v2854_v22 = vsub.f32 %v6765_v60, %v2844_v40  ;;  %v2835_v48 = vpop.xlane.xlu0 %2834 }
0x1371   : > { %7448 = vpow2.f32 %v2860_v18  ;;  %v2851_v9 = vsub.f32 %v6762_v46, %v2835_v48 }
0x1372   : > { %v2868_v7 = vmul.f32 1.442695, %v2854_v22  ;;  %7450 = vpow2.f32 %v2858_v61 }
0x1373   : > { %v2862_v12 = vmul.f32 1.442695, %v2851_v9  ;;  %v2838_v5 = vpop.xlane.xlu1 %2837 }
0x1374   : > { %7452 = vpow2.f32 %v2868_v7  ;;  %v2852_v33 = vsub.f32 %v2809_v53, %v2838_v5  ;;  %v2847_v21 = vpop.xlane.xlu0 %2846 }
0x1375   : > { %7454 = vpow2.f32 %v2862_v12  ;;  %v2855_v28 = vsub.f32 %v6766_v23, %v2847_v21 }
0x1376   : > { %v2864_v59 = vmul.f32 1.442695, %v2852_v33 }
0x1377   : > { %v2870_v11 = vmul.f32 1.442695, %v2855_v28  ;;  %v2933_v57 = vpop.permute.xlu1 %2932  ;;  %v7447_v18 = vpop.eup %7446 }
0x1378   : > { %7456 = vpow2.f32 %v2864_v59  ;;  %6767 = vmatprep.subr.bf16.mxu1 %v2933_v57  ;;  %v2841_v56 = vpop.xlane.xlu0 %2840  ;;  %v8967_v53 = vmul.f32 %v8815_v29, %v7447_v18 }
0x1379   : > { %7458 = vpow2.f32 %v2870_v11  ;;  %v2853_v41 = vsub.f32 %v2812_v50, %v2841_v56  ;;  %6768 = vmatpush3.bf16.msra.mxu1 %v2933_v57 }
0x137b   : > { %v7449_v20 = vpop.eup %7448  ;;  %v2866_v22 = vmul.f32 1.442695, %v2853_v41 }
0x137c   : > { %v2935_v61 = vpop.permute.xlu0 %2934  ;;  %v8962_v9 = vmul.f32 %v8807_v31, %v7449_v20  ;;  %v7451_v46 = vpop.eup %7450  ;;  %v2880_v31 = vsel %vm551_vm2, %v8967_v53, 0.0 }
0x137d   : > { %7460 = vpow2.f32 %v2866_v22  ;;  %6769 = vmatprep.subr.bf16.mxu1 %v2935_v61  ;;  %v8980_v48 = vmul.f32 %v8828_v43, %v7451_v46 }
0x137e   : > { %v7453_v38 = vpop.eup %7452  ;;  %6770 = vmatpush3.bf16.msra.mxu1 %v2935_v61  ;;  %v2886_v60 = vsel %vm551_vm2, %v8962_v9, 0.0 }
0x137f   : > { %v7455_v23 = vpop.eup %7454  ;;  %2887 = vadd.xlane.f32.xlu1 %v2886_v60  ;;  %v8977_v40 = vmul.f32 %v8834_v2, %v7453_v38  ;;  %v2883_v7 = vsel %vm551_vm2, %v8980_v48, 0.0 }
0x1380   : > { %v8970_v50 = vmul.f32 %v8823_v1, %v7455_v23 }
0x1381   : > { %v2898_v1 = vsel %vm551_vm2, %v8977_v40, 0.0 }
0x1382   : > { %v7457_v16 = vpop.eup %7456  ;;  %v2889_v8 = vsel %vm551_vm2, %v8970_v50, 0.0 }
0x1383   : > { %v7459_v29 = vpop.eup %7458  ;;  %2881 = vadd.xlane.f32.xlu1 %v2880_v31  ;;  %2890 = vadd.xlane.f32.xlu0 %v2889_v8  ;;  %v8987_v12 = vmul.f32 %v8842_v52, %v7457_v16 }
0x1384   : > { %v8990_v5 = vmul.f32 %v8850_v45, %v7459_v29  ;;  %v10443_v45 = vpack.c.bf16 %v8276_v17, %v8270_v63  ;;  %v10446_v63 = vpack.c.bf16 %v8392_v55, %v8386_v44  ;;  %v10450_v17 = vpack.c.bf16 %v8651_v36, %v8645_v34  ;;  %v10458_v34 = vld [vmem:[#allocation7_spill] sm:$0xff]  ;;  %v10460_v36 = vld [vmem:[#allocation12_spill] sm:$0xff] }
0x1385   : > { %v2892_v43 = vsel %vm551_vm2, %v8987_v12, 0.0  ;;  %v10452_v44 = vpack.c.bf16 %v8767_v37, %v8761_v32  ;;  %v10454_v55 = vpack.c.bf16 %v8920_v35, %v8914_v30 }
0x1386   : > { %v2901_v33 = vsel %vm551_vm2, %v8990_v5, 0.0 }
0x1387   : > { %v7461_v2 = vpop.eup %7460  ;;  %2899 = vadd.xlane.f32.xlu1 %v2898_v1  ;;  %2884 = vadd.xlane.f32.xlu0 %v2883_v7 }
0x1388   : > { %v8997_v21 = vmul.f32 %v8866_v47, %v7461_v2  ;;  %v10444_v47 = vpack.c.bf16 %v8272_v13, %v8268_v6  ;;  %v10447_v6 = vpack.c.bf16 %v8531_v24, %v8527_v49  ;;  %v10449_v13 = vpack.c.bf16 %v8647_v10, %v8643_v4  ;;  %v7218_v49 = vld [vmem:[%s8005_s20 + $0x30] sm:$0xff]   ;;  %v10455_v24 = vld [vmem:[#allocation6_spill] sm:$0xff] }
0x1389   : > { %6803 = vmatprep.mubr.msk.bf16.mxu0 %vm367_vm0, %v7218_v49  ;;  %v10457_v4 = vld [vmem:[#allocation8_spill] sm:$0xff] }
0x138a   : > { %v2895_v52 = vsel %vm551_vm2, %v8997_v21, 0.0  ;;  %v10459_v10 = vpack.c.bf16 %v10457_v4, %v10458_v34 }
0x138b   : > { %2893 = vadd.xlane.f32.xlu1 %v2892_v43  ;;  %2902 = vadd.xlane.f32.xlu0 %v2901_v33 }
0x138f   : > { %2896 = vadd.xlane.f32.xlu0 %v2895_v52 }
0x139c   : > { %2936 = vrot.lane.b32.xlu1 %v8036_v26, %s10380_s30  ;;  %v10445_v26 = vpack.c.bf16 %v8388_v42, %v8384_v51  ;;  %v10451_v51 = vpack.c.bf16 %v8763_v54, %v8759_v0  ;;  %v10453_v42 = vpack.c.bf16 %v8916_v58, %v8912_v3  ;;  %v10461_v0 = vld [vmem:[#allocation10_spill] sm:$0xff] }
0x139d   : > { %v10462_v32 = vpack.c.bf16 %v10460_v36, %v10461_v0 }
0x13a0   : > { %1067 = vrot.lane.b32.xlu1 %v10443_v45, %s10386_s25 }
0x13a4   : > { %1069 = vrot.lane.b32.xlu1 %v10444_v47, %s10386_s25 }
0x13a5   : > { %2938 = vrot.lane.b32.xlu0 %v8034_v25, %s10380_s30  ;;  %v10448_v25 = vpack.c.bf16 %v8535_v39, %v8529_v27  ;;  %s7867_s30 = smov 16   ;;  %v7219_v27 = vld [vmem:[%s8005_s20 + $0x38] sm:$0xff]   ;;  %v10456_v39 = vpack.c.bf16 %v8284_v19, %v10455_v24  ;;  %s10519_s20 = smov 68  }
0x13a6   : > { %6804 = vmatmul.mubr.msk.bf16.gmra.mrb[76].mxu0 %vm367_vm0, %v7219_v27 }
0x13a8   : > { %1396 = vrot.lane.b32.xlu1 %v10445_v26, %s7865_s28 }
0x13a9   : > { %1394 = vrot.lane.b32.xlu0 %v10446_v63, %s7865_s28 }
0x13ac   : > { %1723 = vrot.lane.b32.xlu1 %v10447_v6, %s7866_s24 }
0x13ad   : > { %1721 = vrot.lane.b32.xlu0 %v10448_v25, %s7866_s24 }
0x13b0   : > { %2050 = vrot.lane.b32.xlu1 %v10449_v13, %s7867_s30 }
0x13b1   : > { %2048 = vrot.lane.b32.xlu0 %v10450_v17, %s7867_s30 }
0x13b4   : > { %2377 = vrot.lane.b32.xlu1 %v10451_v51, %s7868_s27 }
0x13b5   : > { %2375 = vrot.lane.b32.xlu0 %v10452_v44, %s7868_s27 }
0x13b8   : > { %2704 = vrot.lane.b32.xlu1 %v10453_v42, %s7869_s21 }
0x13b9   : > { %2702 = vrot.lane.b32.xlu0 %v10454_v55, %s7869_s21 }
0x13bc   : > { %3278 = vrot.lane.b32.xlu1 %v8957_v62, %s7841_s7 }
0x13bd   : > { %3276 = vrot.lane.b32.xlu0 %v8959_v15, %s7841_s7 }
0x13c0   : > { %1073 = vrot.lane.b32.xlu1 %v10456_v39, %s10386_s25 }
0x13c1   : > { %1071 = vrot.lane.b32.xlu0 %v10459_v10, %s10386_s25  ;;  %s10518_s25 = smov 40  }
0x13c5   : > { %1398 = vrot.lane.b32.xlu0 %v10462_v32, %s7865_s28 }
0x140c   : > { %v2888_v54 = vpop.xlane.xlu1 %2887 }
0x140d   : > { %v2906_v35 = vmax.f32 %v2888_v54, 1e-30 }
0x1410   : > { %v2882_v37 = vpop.xlane.xlu1 %2881  ;;  %v2891_v3 = vpop.xlane.xlu0 %2890 }
0x1411   : > { %v2907_v30 = vmax.f32 %v2891_v3, 1e-30  ;;  %v2904_v58 = vmax.f32 %v2882_v37, 1e-30 }
0x1413   : > { %7462 = vrcp.f32 %v2907_v30 }
0x1414   : > { %v2900_v28 = vpop.xlane.xlu1 %2899  ;;  %v2885_v59 = vpop.xlane.xlu0 %2884  ;;  %7464 = vrcp.f32 %v2904_v58  ;;  %v7220_v58 = vld [vmem:[%s10336_s4] sm:$0xff]  }
0x1415   : > { %v2905_v19 = vmax.f32 %v2885_v59, 1e-30  ;;  %7466 = vrcp.f32 %v2906_v35  ;;  %v2910_v18 = vmax.f32 %v2900_v28, 1e-30  ;;  %v7221_v35 = vld [vmem:[%s10336_s4 + $0x8] sm:$0xff]  }
0x1417   : > { %7468 = vrcp.f32 %v2905_v19 }
0x1418   : > { %v2894_v11 = vpop.xlane.xlu1 %2893  ;;  %v2903_v57 = vpop.xlane.xlu0 %2902 }
0x1419   : > { %v2908_v56 = vmax.f32 %v2894_v11, 1e-30  ;;  %v2911_v41 = vmax.f32 %v2903_v57, 1e-30 }
0x141b   : > { %7470 = vrcp.f32 %v2908_v56 }
0x141c   : > { %v2937_v20 = vpop.permute.xlu1 %2936  ;;  %v2897_v22 = vpop.xlane.xlu0 %2896  ;;  %7472 = vrcp.f32 %v2911_v41  ;;  %v10463_v41 = vld [vmem:[#allocation11_spill] sm:$0xff] }
0x141d   : > { %v2909_v61 = vmax.f32 %v2897_v22, 1e-30  ;;  %6771 = vmatprep.subr.bf16.mxu1 %v2937_v20  ;;  %7474 = vrcp.f32 %v2910_v18  ;;  %v7463_v46 = vpop.eup %7462  ;;  %v10464_v18 = vld [vmem:[#allocation9_spill] sm:$0xff] }
0x141e   : > { %6772 = vmatpush3.bf16.msra.mxu1 %v2937_v20  ;;  %v7465_v38 = vpop.eup %7464  ;;  %v2923_v8 = vmul.f32 %v7463_v46, %v8970_v50  ;;  %v10465_v20 = vpack.c.bf16 %v10463_v41, %v10464_v18  ;;  %v10467_v46 = vld [vmem:[#allocation14_spill] sm:$0xff] }
0x141f   : > { %7476 = vrcp.f32 %v2909_v61  ;;  %v7467_v16 = vpop.eup %7466  ;;  %v2920_v29 = vmul.f32 %v7465_v38, %v8967_v53  ;;  %v10466_v61 = vld [vmem:[#allocation16_spill] sm:$0xff] }
0x1420   : > { %v1068_v60 = vpop.permute.xlu1 %1067  ;;  %v2939_v23 = vpop.permute.xlu0 %2938  ;;  %v2922_v7 = vmul.f32 %v7467_v16, %v8962_v9  ;;  %v10468_v38 = vpack.c.bf16 %v10466_v61, %v10467_v46 }
0x1421   : > { %1080 = vst.msk [vmem:[#allocation2] sm:$0xff] %vm1079_vm3, %v1068_v60  ;;  %6773 = vmatprep.subr.bf16.mxu1 %v2939_v23  ;;  %v7469_v31 = vpop.eup %7468 }
0x1422   : > { %6774 = vmatpush3.bf16.msra.mxu1 %v2939_v23  ;;  %v2921_v1 = vmul.f32 %v7469_v31, %v8980_v48  ;;  %v2929_v45 = vpack.c.bf16 %v2923_v8, %v2922_v7  ;;  %v10469_v8 = vld [vmem:[#allocation15_spill] sm:$0xff]  ;;  %v10472_v7 = vld [vmem:[#allocation20_spill] sm:$0xff] }
0x1423   : > { %6783 = vmatprep.subr.bf16.mxu1 %v7220_v58 }
0x1424   : > { %v1070_v2 = vpop.permute.xlu1 %1069  ;;  %v1395_v43 = vpop.permute.xlu0 %1394  ;;  %v2928_v33 = vpack.c.bf16 %v2921_v1, %v2920_v29  ;;  %v10470_v29 = vld [vmem:[#allocation13_spill] sm:$0xff] }
0x1425   : > { %1081 = vst.msk [vmem:[#allocation2 + $0x8] sm:$0xff] %vm1079_vm3, %v1070_v2  ;;  %v7471_v52 = vpop.eup %7470  ;;  %v10471_v1 = vpack.c.bf16 %v10469_v8, %v10470_v29  ;;  %v10473_v2 = vld [vmem:[#allocation18_spill] sm:$0xff] }
0x1426   : > { %1407 = vst.msk [vmem:[#allocation2] sm:$0xff] %vm1406_vm4, %v1395_v43  ;;  %v7473_v47 = vpop.eup %7472  ;;  %6775 = vmatprep.mubr.msk.bf16.mxu1 %vm551_vm2, %v2928_v33  ;;  %v2924_v9 = vmul.f32 %v7471_v52, %v8987_v12  ;;  %v10474_v43 = vpack.c.bf16 %v10472_v7, %v10473_v2  ;;  %v10475_v33 = vld [vmem:[#allocation19_spill] sm:$0xff]  ;;  %v10476_v52 = vld [vmem:[#allocation17_spill] sm:$0xff] }
0x1427   : > { %v7475_v50 = vpop.eup %7474  ;;  %6776 = vmatmul.mubr.msk.bf16.vlgmr.msra.gmra.mrb[56].mxu1 %vm551_vm2, %v2929_v45  ;;  %v2927_v6 = vmul.f32 %v7473_v47, %v8990_v5  ;;  %v10477_v45 = vpack.c.bf16 %v10475_v33, %v10476_v52  ;;  %v10478_v47 = vld [vmem:[#allocation24_spill] sm:$0xff] }
0x1428   : > { %v1397_v53 = vpop.permute.xlu1 %1396  ;;  %v1722_v48 = vpop.permute.xlu0 %1721  ;;  %v2926_v51 = vmul.f32 %v7475_v50, %v8977_v40  ;;  %6784 = vmatpush3.bf16.msra.mxu1 %v7220_v58  ;;  %v10479_v50 = vld [vmem:[#allocation22_spill] sm:$0xff] }
0x1429   : > { %v7477_v26 = vpop.eup %7476  ;;  %1408 = vst.msk [vmem:[#allocation2 + $0x8] sm:$0xff] %vm1406_vm4, %v1397_v53  ;;  %6785 = vmatprep.subr.bf16.mxu1 %v7221_v35  ;;  %v10480_v53 = vpack.c.bf16 %v10478_v47, %v10479_v50 }
0x142a   : > { %1734 = vst.msk [vmem:[#allocation2] sm:$0xff] %vm1733_vm5, %v1722_v48  ;;  %v2925_v63 = vmul.f32 %v7477_v26, %v8997_v21  ;;  %v2931_v44 = vpack.c.bf16 %v2927_v6, %v2926_v51  ;;  %v10481_v48 = vld [vmem:[#allocation23_spill] sm:$0xff]  ;;  %v10482_v26 = vld [vmem:[#allocation21_spill] sm:$0xff]  ;;  %v10485_v6 = vld [vmem:[#allocation26_spill] sm:$0xff] }
0x142c   : > { %v1724_v25 = vpop.permute.xlu1 %1723  ;;  %v2049_v13 = vpop.permute.xlu0 %2048  ;;  %v2930_v17 = vpack.c.bf16 %v2925_v63, %v2924_v9  ;;  %6786 = vmatpush3.bf16.msra.mxu1 %v7221_v35  ;;  %v10483_v9 = vpack.c.bf16 %v10481_v48, %v10482_v26  ;;  %v10484_v63 = vld [vmem:[#allocation28_spill] sm:$0xff] }
0x142d   : > { %1735 = vst.msk [vmem:[#allocation2 + $0x8] sm:$0xff] %vm1733_vm5, %v1724_v25  ;;  %v10486_v25 = vpack.c.bf16 %v10484_v63, %v10485_v6 }
0x142e   : > { %2061 = vst.msk [vmem:[#allocation2] sm:$0xff] %vm2060_vm6, %v2049_v13  ;;  %6779 = vmatprep.mubr.msk.bf16.mxu1 %vm551_vm2, %v2930_v17  ;;  %v10487_v13 = vld [vmem:[#allocation27_spill] sm:$0xff]  ;;  %v10488_v17 = vld [vmem:[#allocation25_spill] sm:$0xff] }
0x142f   : > { %6780 = vmatmul.mubr.msk.bf16.gmra.mrb[60].mxu1 %vm551_vm2, %v2931_v44  ;;  %v10489_v51 = vpack.c.bf16 %v10487_v13, %v10488_v17 }
0x1430   : > { %v2051_v12 = vpop.permute.xlu1 %2050  ;;  %v2376_v42 = vpop.permute.xlu0 %2375 }
0x1431   : > { %2062 = vst.msk [vmem:[#allocation2 + $0x8] sm:$0xff] %vm2060_vm6, %v2051_v12 }
0x1432   : > { %2388 = vst.msk [vmem:[#allocation2] sm:$0xff] %vm2387_vm7, %v2376_v42 }
0x1434   : > { %v2378_v5 = vpop.permute.xlu1 %2377  ;;  %v2703_v21 = vpop.permute.xlu0 %2702 }
0x1435   : > { %2389 = vst.msk [vmem:[#allocation2 + $0x8] sm:$0xff] %vm2387_vm7, %v2378_v5 }
0x1436   : > { %2715 = vst.msk [vmem:[#allocation2] sm:$0xff] %vm2714_vm8, %v2703_v21 }
0x1438   : > { %v2705_v40 = vpop.permute.xlu1 %2704  ;;  %v9096_v55 = vpop.permute.xlu0 %3276 }
0x1439   : > { %2716 = vst.msk [vmem:[#allocation2 + $0x8] sm:$0xff] %vm2714_vm8, %v2705_v40  ;;  %7107 = vmatprep.subr.msk.bf16.mxu1 %vm461_vm1, %v9096_v55 }
0x143c   : > { %v9099_v49 = vpop.permute.xlu1 %3278  ;;  %v1072_v27 = vpop.permute.xlu0 %1071 }
0x143d   : > { %1082 = vst.msk [vmem:[#allocation2 + $0x10] sm:$0xff] %vm1079_vm3, %v1072_v27 }
0x1440   : > { %v1074_v24 = vpop.permute.xlu1 %1073  ;;  %v1399_v39 = vpop.permute.xlu0 %1398 }
0x1441   : > { %1083 = vst.msk [vmem:[#allocation2 + $0x18] sm:$0xff] %vm1079_vm3, %v1074_v24 }
0x1442   : > { %1409 = vst.msk [vmem:[#allocation2 + $0x10] sm:$0xff] %vm1406_vm4, %v1399_v39  ;;  %v3297_v39 = vsel %vm461_vm1, %v9096_v55, 0 }
0x1479   : > { %v6805_v4 = vpop.f32.mrb[76].mxu0 }
0x147a   : > { %v3262_v34 = vadd.f32 %v8951_v14, %v6805_v4  ;;  %v3253_v10 = vpop.f32.mrb[77].mxu0 }
0x147b   : > { %v3254_v36 = vadd.f32 %v8951_v14, %v3253_v10  ;;  %v6806_v0 = vpop.f32.mrb[78].mxu0 }
0x147c   : > { %v3265_v32 = vadd.f32 %v8951_v14, %v6806_v0  ;;  %v3256_v54 = vpop.f32.mrb[79].mxu0  ;;  %v3300_v0 = vsel %vm461_vm1, %v9099_v49, 0 }
0x147d   : > { %v3257_v37 = vadd.f32 %v8951_v14, %v3256_v54 }
0x147e   : > { %v9108_v3 = vpack.c.bf16 %v3265_v32, %v3262_v34 }
0x147f   : > { %v9110_v30 = vpack.c.bf16 %v3257_v37, %v3254_v36 }
0x14fa   : > { %v6777_v14 = vpop.f32.mrb[56].mxu1 }
0x14fb   : > { %v2990_v28 = vpop.f32.mrb[57].mxu1 }
0x14fc   : > { %v6778_v59 = vpop.f32.mrb[58].mxu1 }
0x14fd   : > { %v3022_v19 = vpack.c.bf16 %v6778_v59, %v6777_v14  ;;  %v2993_v11 = vpop.f32.mrb[59].mxu1  ;;  %v6122_v59 = vld [vmem:[%s10337_s5] ss:$0 sm:$0xff] }
0x14fe   : > { %v3021_v57 = vpack.c.bf16 %v2993_v11, %v2990_v28 }
0x14ff   : > { %3031 = vrot.lane.b32.xlu1 %v3022_v19, %s10394_s12 }
0x1500   : > { %3029 = vrot.lane.b32.xlu0 %v3021_v57, %s10394_s12 }
0x1502   : > { %v6781_v56 = vpop.f32.mrb[60].mxu1 }
0x1503   : > { %1400 = vrot.lane.b32.xlu1 %v10465_v20, %s7865_s28  ;;  %v3006_v22 = vpop.f32.mrb[61].mxu1 }
0x1504   : > { %1725 = vrot.lane.b32.xlu0 %v10468_v38, %s7866_s24  ;;  %v6782_v60 = vpop.f32.mrb[62].mxu1 }
0x1505   : > { %v3024_v23 = vpack.c.bf16 %v6782_v60, %v6781_v56  ;;  %v3009_v16 = vpop.f32.mrb[63].mxu1 }
0x1506   : > { %v3023_v31 = vpack.c.bf16 %v3009_v16, %v3006_v22 }
0x1507   : > { %1727 = vrot.lane.b32.xlu1 %v10471_v1, %s7866_s24 }
0x1508   : > { %2052 = vrot.lane.b32.xlu0 %v10474_v43, %s7867_s30 }
0x150b   : > { %2054 = vrot.lane.b32.xlu1 %v10477_v45, %s7867_s30 }
0x150c   : > { %2379 = vrot.lane.b32.xlu0 %v10480_v53, %s7868_s27 }
0x150f   : > { %2381 = vrot.lane.b32.xlu1 %v10483_v9, %s7868_s27 }
0x1510   : > { %2706 = vrot.lane.b32.xlu0 %v10486_v25, %s7869_s21 }
0x1513   : > { %2708 = vrot.lane.b32.xlu1 %v10489_v51, %s7869_s21 }
0x1514   : > { %3033 = vrot.lane.b32.xlu0 %v3023_v31, %s10394_s12 }
0x1517   : > { %3035 = vrot.lane.b32.xlu1 %v3024_v23, %s10394_s12 }
0x1518   : > { %3280 = vrot.lane.b32.xlu0 %v9110_v30, %s7841_s7 }
0x151b   : > { %3282 = vrot.lane.b32.xlu1 %v9108_v3, %s7841_s7  ;;  %s6234_s7 = sshll.u32 %s10578_s15, 6  ;;  %s10492_s15 = smov 84  }
0x151c   : > { %s9206_s12 = scalar_lea.vmem %s10338_s6, %s6234_s7  ;;  %s10511_s7 = smov 44  }
0x1571   : > { %v3032_v44 = vpop.permute.xlu1 %3031 }
0x1572   : > { %3043 = vst.msk [vmem:[#allocation2 + $0x8] sm:$0xff] %vm3041_vm9, %v3032_v44  ;;  %v3030_v12 = vpop.permute.xlu0 %3029 }
0x1573   : > { %3042 = vst.msk [vmem:[#allocation2] sm:$0xff] %vm3041_vm9, %v3030_v12 }
0x1575   : > { %v1401_v42 = vpop.permute.xlu1 %1400 }
0x1576   : > { %1410 = vst.msk [vmem:[#allocation2 + $0x18] sm:$0xff] %vm1406_vm4, %v1401_v42  ;;  %v1726_v5 = vpop.permute.xlu0 %1725 }
0x1577   : > { %1736 = vst.msk [vmem:[#allocation2 + $0x10] sm:$0xff] %vm1733_vm5, %v1726_v5 }
0x1579   : > { %v1728_v21 = vpop.permute.xlu1 %1727  ;;  %v3047_v24 = vld [vmem:[#allocation2 + $0x8] sm:$0xff] }
0x157a   : > { %1737 = vst.msk [vmem:[#allocation2 + $0x18] sm:$0xff] %vm1733_vm5, %v1728_v21  ;;  %v2053_v40 = vpop.permute.xlu0 %2052  ;;  %v3046_v27 = vld [vmem:[#allocation2] sm:$0xff] }
0x157b   : > { %2063 = vst.msk [vmem:[#allocation2 + $0x10] sm:$0xff] %vm2060_vm6, %v2053_v40  ;;  %6787 = vmatprep.mubr.msk.bf16.mxu1 %vm367_vm0, %v3046_v27 }
0x157c   : > { %6788 = vmatmul.mubr.msk.bf16.vlgmr.msra.gmra.mrb[64].mxu1 %vm367_vm0, %v3047_v24 }
0x157d   : > { %6808 = vmatpush3.bf16.xpose.msra.mxu1 %v3297_v39  ;;  %v2055_v4 = vpop.permute.xlu1 %2054 }
0x157e   : > { %2064 = vst.msk [vmem:[#allocation2 + $0x18] sm:$0xff] %vm2060_vm6, %v2055_v4  ;;  %7108 = vmatprep.subr.msk.bf16.mxu1 %vm461_vm1, %v9099_v49  ;;  %v2380_v34 = vpop.permute.xlu0 %2379 }
0x157f   : > { %2390 = vst.msk [vmem:[#allocation2 + $0x10] sm:$0xff] %vm2387_vm7, %v2380_v34 }
0x1581   : > { %v2382_v10 = vpop.permute.xlu1 %2381 }
0x1582   : > { %2391 = vst.msk [vmem:[#allocation2 + $0x18] sm:$0xff] %vm2387_vm7, %v2382_v10  ;;  %v2707_v36 = vpop.permute.xlu0 %2706 }
0x1583   : > { %2717 = vst.msk [vmem:[#allocation2 + $0x10] sm:$0xff] %vm2714_vm8, %v2707_v36 }
0x1585   : > { %6810 = vmatpush3.bf16.xpose.msra.mxu1 %v3300_v0  ;;  %v2709_v55 = vpop.permute.xlu1 %2708 }
0x1586   : > { %2718 = vst.msk [vmem:[#allocation2 + $0x18] sm:$0xff] %vm2714_vm8, %v2709_v55  ;;  %v3034_v32 = vpop.permute.xlu0 %3033  ;;  %v9246_v55 = vld [vmem:[%s7991_s19 + $0x50] sm:$0xff] }
0x1587   : > { %3044 = vst.msk [vmem:[#allocation2 + $0x10] sm:$0xff] %vm3041_vm9, %v3034_v32 }
0x1589   : > { %v3036_v54 = vpop.permute.xlu1 %3035 }
0x158a   : > { %3045 = vst.msk [vmem:[#allocation2 + $0x18] sm:$0xff] %vm3041_vm9, %v3036_v54  ;;  %v3281_v37 = vpop.permute.xlu0 %3280 }
0x158b   : > { %7109 = vmatprep.subr.msk.bf16.mxu1 %vm461_vm1, %v3281_v37  ;;  %v3303_v58 = vsel %vm461_vm1, %v3281_v37, 0 }
0x158d   : > { %6812 = vmatpush3.bf16.xpose.msra.mxu1 %v3303_v58  ;;  %v3283_v35 = vpop.permute.xlu1 %3282 }
0x158e   : > { %7110 = vmatprep.subr.msk.bf16.mxu1 %vm461_vm1, %v3283_v35  ;;  %v3048_v49 = vld [vmem:[#allocation2 + $0x10] sm:$0xff]  ;;  %v3306_v28 = vsel %vm461_vm1, %v3283_v35, 0 }
0x158f   : > { %6791 = vmatprep.mubr.msk.bf16.mxu1 %vm367_vm0, %v3048_v49 }
0x1591   : > { %v3049_v14 = vld [vmem:[#allocation2 + $0x18] sm:$0xff] }
0x1592   : > { %6792 = vmatmul.mubr.msk.bf16.gmra.mrb[68].mxu1 %vm367_vm0, %v3049_v14  ;;  %v9252_v14 = vld [vmem:[%s7991_s19 + $0x40] sm:$0xff] }
0x1593   : > { %6815 = vmatprep.mubr.msk.bf16.mxu1 %vm461_vm1, %v8959_v15 }
0x1595   : > { %6814 = vmatpush3.bf16.xpose.msra.mxu1 %v3306_v28 }
0x159c   : > { %6816 = vmatmul.mubr.msk.bf16.vlgmr.msra.gmra.mrb[72].mxu1 %vm461_vm1, %v8957_v62 }
0x159d   : > { %6819 = vmatprep.mubr.msk.bf16.mxu1 %vm461_vm1, %v9110_v30 }
0x15a4   : > { %6820 = vmatmul.mubr.msk.bf16.gmra.mrb[76].mxu1 %vm461_vm1, %v9108_v3 }
0x164f   : > { %v6789_v19 = vpop.f32.mrb[64].mxu1 }
0x1650   : > { %v3123_v11 = vadd.f32 %v6789_v19, %v6122_v59  ;;  %v3114_v57 = vpop.f32.mrb[65].mxu1 }
0x1651   : > { %v3115_v56 = vadd.f32 %v6122_v59, %v3114_v57  ;;  %v6790_v41 = vpop.f32.mrb[66].mxu1 }
0x1652   : > { %3147 = vst.msk [vmem:[%s9206_s12 + $0x10] sm:$0xff] %vm367_vm0, %v3123_v11  ;;  %v3126_v18 = vadd.f32 %v6790_v41, %v6122_v59  ;;  %v3117_v20 = vpop.f32.mrb[67].mxu1  ;;  %v9260_v41 = vld [vmem:[%s7991_s19 + $0x58] sm:$0xff] }
0x1653   : > { %3145 = vst.msk [vmem:[%s9206_s12] sm:$0xff] %vm367_vm0, %v3115_v56  ;;  %v3118_v22 = vadd.f32 %v6122_v59, %v3117_v20 }
0x1654   : > { %3148 = vst.msk [vmem:[%s9206_s12 + $0x18] sm:$0xff] %vm367_vm0, %v3126_v18 }
0x1655   : > { %3146 = vst.msk [vmem:[%s9206_s12 + $0x8] sm:$0xff] %vm367_vm0, %v3118_v22 }
0x1665   : > { %v6793_v61 = vpop.f32.mrb[68].mxu1 }
0x1666   : > { %v3139_v46 = vadd.f32 %v6793_v61, %v6122_v59  ;;  %v3130_v38 = vpop.f32.mrb[69].mxu1  ;;  %v9265_v61 = vld [vmem:[%s7991_s19 + $0x48] sm:$0xff] }
0x1667   : > { %v3131_v60 = vadd.f32 %v6122_v59, %v3130_v38  ;;  %v6794_v23 = vpop.f32.mrb[70].mxu1 }
0x1668   : > { %3151 = vst.msk [vmem:[%s9206_s12 + $0x30] sm:$0xff] %vm367_vm0, %v3139_v46  ;;  %v3142_v16 = vadd.f32 %v6794_v23, %v6122_v59  ;;  %v3133_v31 = vpop.f32.mrb[71].mxu1 }
0x1669   : > { %3149 = vst.msk [vmem:[%s9206_s12 + $0x20] sm:$0xff] %vm367_vm0, %v3131_v60  ;;  %v3134_v8 = vadd.f32 %v6122_v59, %v3133_v31  ;;  %v9271_v31 = vld [vmem:[%s7991_s19 + $0x70] sm:$0xff] }
0x166a   : > { %3152 = vst.msk [vmem:[%s9206_s12 + $0x38] sm:$0xff] %vm367_vm0, %v3142_v16 }
0x166b   : > { %3150 = vst.msk [vmem:[%s9206_s12 + $0x28] sm:$0xff] %vm367_vm0, %v3134_v8 }
0x166f   : > { %v6817_v29 = vpop.f32.mrb[72].mxu1 }
0x1670   : > { %v3342_v1 = vpop.f32.mrb[73].mxu1  ;;  %v3379_v7 = vsel %vm551_vm2, %v6817_v29, -inf }
0x1671   : > { %3380 = vmax.xlane.f32.xlu0 %v3379_v7  ;;  %v6818_v2 = vpop.f32.mrb[74].mxu1  ;;  %v3373_v52 = vsel %vm551_vm2, %v3342_v1, -inf }
0x1672   : > { %v3345_v43 = vpop.f32.mrb[75].mxu1  ;;  %v3382_v50 = vsel %vm551_vm2, %v6818_v2, -inf }
0x1673   : > { %v3376_v33 = vsel %vm551_vm2, %v3345_v43, -inf }
0x1674   : > { %3377 = vmax.xlane.f32.xlu1 %v3376_v33 }
0x1675   : > { %3374 = vmax.xlane.f32.xlu0 %v3373_v52 }
0x1677   : > { %v6821_v45 = vpop.f32.mrb[76].mxu1 }
0x1678   : > { %v3358_v47 = vpop.f32.mrb[77].mxu1  ;;  %v3391_v53 = vsel %vm551_vm2, %v6821_v45, -inf }
0x1679   : > { %3383 = vmax.xlane.f32.xlu0 %v3382_v50  ;;  %3392 = vmax.xlane.f32.xlu1 %v3391_v53  ;;  %v6822_v48 = vpop.f32.mrb[78].mxu1  ;;  %v3385_v63 = vsel %vm551_vm2, %v3358_v47, -inf }
0x167a   : > { %v9229_v26 = vpop.f32.mrb[79].mxu1  ;;  %v3394_v6 = vsel %vm551_vm2, %v6822_v48, -inf }
0x167b   : > { %v3388_v9 = vsel %vm551_vm2, %v9229_v26, -inf }
0x167d   : > { %3386 = vmax.xlane.f32.xlu1 %v3385_v63  ;;  %3389 = vmax.xlane.f32.xlu0 %v3388_v9 }
0x1681   : > { %3395 = vmax.xlane.f32.xlu0 %v3394_v6  ;;  %v9302_v6 = vld [vmem:[%s7991_s19 + $0x68] sm:$0xff] }
0x168e   : > { %3481 = vrot.lane.b32.xlu1 %v8959_v15, %s7842_s8 }
0x1692   : > { %3485 = vrot.lane.b32.xlu1 %v9110_v30, %s7842_s8 }
0x1696   : > { %3487 = vrot.lane.b32.xlu1 %v9108_v3, %s7842_s8 }
0x1697   : > { %3483 = vrot.lane.b32.xlu0 %v8957_v62, %s7842_s8  ;;  %s10493_s8 = smov 116  }
0x169a   : > { %3586 = vrot.lane.b32.xlu1 %v8959_v15, %s7843_s9 }
0x16fe   : > { %v3381_v25 = vpop.xlane.xlu0 %3380 }
0x16ff   : > { %v3399_v13 = vsub.f32 %v6817_v29, %v3381_v25 }
0x1701   : > { %v3409_v17 = vmul.f32 1.442695, %v3399_v13  ;;  %v3378_v51 = vpop.xlane.xlu1 %3377 }
0x1702   : > { %v3398_v44 = vsub.f32 %v3345_v43, %v3378_v51  ;;  %v3375_v12 = vpop.xlane.xlu0 %3374 }
0x1703   : > { %7478 = vpow2.f32 %v3409_v17  ;;  %v3397_v42 = vsub.f32 %v3342_v1, %v3375_v12 }
0x1704   : > { %v3407_v21 = vmul.f32 1.442695, %v3398_v44 }
0x1705   : > { %v3405_v5 = vmul.f32 1.442695, %v3397_v42 }
0x1706   : > { %v3384_v40 = vpop.xlane.xlu0 %3383  ;;  %v3393_v27 = vpop.xlane.xlu1 %3392 }
0x1707   : > { %7480 = vpow2.f32 %v3405_v5  ;;  %v3400_v24 = vsub.f32 %v6818_v2, %v3384_v40  ;;  %v3403_v39 = vsub.f32 %v6821_v45, %v3393_v27  ;;  %v9279_v2 = vld [vmem:[%s7991_s19 + $0x60] sm:$0xff]  ;;  %v9287_v45 = vld [vmem:[%s7991_s19 + $0x78] sm:$0xff] }
0x1708   : > { %7482 = vpow2.f32 %v3407_v21 }
0x1709   : > { %v3411_v4 = vmul.f32 1.442695, %v3400_v24  ;;  %v3417_v36 = vmul.f32 1.442695, %v3403_v39 }
0x170a   : > { %v3387_v34 = vpop.xlane.xlu1 %3386  ;;  %v3390_v10 = vpop.xlane.xlu0 %3389 }
0x170b   : > { %7484 = vpow2.f32 %v3411_v4  ;;  %v3401_v0 = vsub.f32 %v3358_v47, %v3387_v34 }
0x170c   : > { %7486 = vpow2.f32 %v3417_v36 }
0x170d   : > { %v7479_v32 = vpop.eup %7478  ;;  %v3413_v35 = vmul.f32 1.442695, %v3401_v0 }
0x170e   : > { %v3482_v54 = vpop.permute.xlu1 %3481  ;;  %v3396_v37 = vpop.xlane.xlu0 %3395  ;;  %v9249_v58 = vmul.f32 %v7479_v32, %v9246_v55 }
0x170f   : > { %v3404_v49 = vsub.f32 %v6822_v48, %v3396_v37  ;;  %6823 = vmatprep.subr.bf16.mxu0 %v3482_v54  ;;  %7488 = vpow2.f32 %v3413_v35  ;;  %v3402_v48 = vsub.f32 %v9229_v26, %v3390_v10 }
0x1710   : > { %6824 = vmatpush3.bf16.msra.mxu0 %v3482_v54  ;;  %v3435_v28 = vsel %vm551_vm2, %v9249_v58, 0.0 }
0x1711   : > { %v7481_v59 = vpop.eup %7480  ;;  %3436 = vadd.xlane.f32.xlu1 %v3435_v28  ;;  %v3419_v56 = vmul.f32 1.442695, %v3404_v49  ;;  %v3415_v9 = vmul.f32 1.442695, %v3402_v48 }
0x1712   : > { %v3486_v19 = vpop.permute.xlu1 %3485  ;;  %v3484_v11 = vpop.permute.xlu0 %3483  ;;  %v9257_v57 = vmul.f32 %v7481_v59, %v9252_v14 }
0x1713   : > { %6825 = vmatprep.subr.bf16.mxu0 %v3484_v11  ;;  %v7483_v18 = vpop.eup %7482  ;;  %7490 = vpow2.f32 %v3419_v56 }
0x1714   : > { %6826 = vmatpush3.bf16.msra.mxu0 %v3484_v11  ;;  %v3429_v20 = vsel %vm551_vm2, %v9257_v57, 0.0  ;;  %v3422_v23 = vmul.f32 %v7483_v18, %v9265_v61  ;;  %7492 = vpow2.f32 %v3415_v9 }
0x1715   : > { %v7485_v22 = vpop.eup %7484  ;;  %3430 = vadd.xlane.f32.xlu1 %v3429_v20  ;;  %6827 = vmatprep.subr.bf16.mxu0 %v3486_v19 }
0x1716   : > { %v3488_v46 = vpop.permute.xlu1 %3487  ;;  %v3424_v38 = vmul.f32 %v7485_v22, %v9260_v41  ;;  %v7487_v16 = vpop.eup %7486  ;;  %v3432_v29 = vsel %vm551_vm2, %v3422_v23, 0.0 }
0x1717   : > { %v9275_v1 = vmul.f32 %v7487_v16, %v9271_v31 }
0x1718   : > { %6828 = vmatpush3.bf16.msra.mxu0 %v3486_v19  ;;  %v3438_v60 = vsel %vm551_vm2, %v3424_v38, 0.0 }
0x1719   : > { %3439 = vadd.xlane.f32.xlu0 %v3438_v60  ;;  %6829 = vmatprep.subr.bf16.mxu0 %v3488_v46  ;;  %v7489_v7 = vpop.eup %7488  ;;  %v3447_v43 = vsel %vm551_vm2, %v9275_v1, 0.0 }
0x171a   : > { %v3587_v8 = vpop.permute.xlu1 %3586  ;;  %v9284_v33 = vmul.f32 %v7489_v7, %v9279_v2 }
0x171b   : > { %v3607_v49 = vsel %vm461_vm1, %v3587_v8, 0 }
0x171c   : > { %6830 = vmatpush3.bf16.msra.mxu0 %v3488_v46  ;;  %v3441_v47 = vsel %vm551_vm2, %v9284_v33, 0.0 }
0x171d   : > { %3433 = vadd.xlane.f32.xlu0 %v3432_v29  ;;  %7111 = vmatprep.subr.msk.bf16.mxu0 %vm461_vm1, %v3587_v8  ;;  %v7491_v52 = vpop.eup %7490 }
0x171e   : > { %v9292_v50 = vmul.f32 %v7491_v52, %v9287_v45  ;;  %v7493_v63 = vpop.eup %7492 }
0x171f   : > { %v9307_v25 = vmul.f32 %v7493_v63, %v9302_v6 }
0x1720   : > { %v3450_v53 = vsel %vm551_vm2, %v9292_v50, 0.0 }
0x1721   : > { %3448 = vadd.xlane.f32.xlu0 %v3447_v43  ;;  %v3444_v26 = vsel %vm551_vm2, %v9307_v25, 0.0 }
0x1725   : > { %3442 = vadd.xlane.f32.xlu0 %v3441_v47 }
0x1726   : > { %3590 = vrot.lane.b32.xlu1 %v9110_v30, %s7843_s9 }
0x1729   : > { %3451 = vadd.xlane.f32.xlu0 %v3450_v53 }
0x173f   : > { %3588 = vrot.lane.b32.xlu0 %v8957_v62, %s7843_s9 }
0x1743   : > { %3578 = vrot.lane.b32.xlu0 %v8959_v15, %s7844_s10 }
0x1747   : > { %3582 = vrot.lane.b32.xlu0 %v9110_v30, %s7844_s10 }
0x174a   : > { %3445 = vadd.xlane.f32.xlu1 %v3444_v26 }
0x175b   : > { %3592 = vrot.lane.b32.xlu1 %v9108_v3, %s7843_s9  ;;  %s10497_s9 = smov 52  }
0x175f   : > { %3580 = vrot.lane.b32.xlu1 %v8957_v62, %s7844_s10 }
0x1763   : > { %3584 = vrot.lane.b32.xlu1 %v9108_v3, %s7844_s10  ;;  %s10498_s10 = smov 80  }
0x179e   : > { %v3437_v13 = vpop.xlane.xlu1 %3436 }
0x179f   : > { %v3455_v42 = vmax.f32 %v3437_v13, 1e-30 }
0x17a2   : > { %v3431_v17 = vpop.xlane.xlu1 %3430 }
0x17a3   : > { %v3453_v44 = vmax.f32 %v3431_v17, 1e-30 }
0x17a6   : > { %v3440_v51 = vpop.xlane.xlu0 %3439  ;;  %v3591_v19 = vpop.permute.xlu1 %3590 }
0x17a7   : > { %v3456_v12 = vmax.f32 %v3440_v51, 1e-30 }
0x17a9   : > { %7494 = vrcp.f32 %v3456_v12 }
0x17aa   : > { %v3434_v5 = vpop.xlane.xlu0 %3433  ;;  %7496 = vrcp.f32 %v3453_v44 }
0x17ab   : > { %v3454_v21 = vmax.f32 %v3434_v5, 1e-30  ;;  %7498 = vrcp.f32 %v3455_v42 }
0x17ad   : > { %7500 = vrcp.f32 %v3454_v21 }
0x17ae   : > { %v3449_v40 = vpop.xlane.xlu0 %3448 }
0x17af   : > { %v3459_v56 = vmax.f32 %v3449_v40, 1e-30 }
0x17b2   : > { %v3443_v27 = vpop.xlane.xlu0 %3442 }
0x17b3   : > { %v7495_v24 = vpop.eup %7494 }
0x17b4   : > { %v7497_v39 = vpop.eup %7496  ;;  %v3472_v10 = vmul.f32 %v7495_v24, %v3424_v38 }
0x17b5   : > { %v7499_v4 = vpop.eup %7498  ;;  %v3469_v0 = vmul.f32 %v7497_v39, %v9257_v57  ;;  %v3457_v57 = vmax.f32 %v3443_v27, 1e-30 }
0x17b6   : > { %v3452_v36 = vpop.xlane.xlu0 %3451  ;;  %v3471_v54 = vmul.f32 %v7499_v4, %v9249_v58  ;;  %v3613_v58 = vsel %vm461_vm1, %v3591_v19, 0 }
0x17b7   : > { %v7501_v34 = vpop.eup %7500  ;;  %v3460_v11 = vmax.f32 %v3452_v36, 1e-30 }
0x17b8   : > { %v3470_v32 = vmul.f32 %v7501_v34, %v3422_v23  ;;  %v3478_v35 = vpack.c.bf16 %v3472_v10, %v3471_v54 }
0x17b9   : > { %7502 = vrcp.f32 %v3460_v11 }
0x17ba   : > { %v3477_v37 = vpack.c.bf16 %v3470_v32, %v3469_v0  ;;  %v3589_v28 = vpop.permute.xlu0 %3588  ;;  %7504 = vrcp.f32 %v3457_v57 }
0x17bb   : > { %v3610_v59 = vsel %vm461_vm1, %v3589_v28, 0  ;;  %7506 = vrcp.f32 %v3459_v56 }
0x17bc   : > { %6831 = vmatprep.mubr.msk.bf16.mxu0 %vm551_vm2, %v3477_v37 }
0x17bd   : > { %6832 = vmatmul.mubr.msk.bf16.vlgmr.msra.gmra.mrb[80].mxu0 %vm551_vm2, %v3478_v35 }
0x17be   : > { %6840 = vmatpush3.bf16.xpose.msra.mxu0 %v3607_v49  ;;  %v3579_v53 = vpop.permute.xlu0 %3578 }
0x17bf   : > { %7112 = vmatprep.subr.msk.bf16.mxu0 %vm461_vm1, %v3589_v28 }
0x17c2   : > { %v3583_v9 = vpop.permute.xlu0 %3582 }
0x17c3   : > { %v7503_v38 = vpop.eup %7502 }
0x17c4   : > { %v7505_v60 = vpop.eup %7504  ;;  %v3476_v8 = vmul.f32 %v7503_v38, %v9292_v50 }
0x17c5   : > { %v7507_v23 = vpop.eup %7506  ;;  %v3473_v29 = vmul.f32 %v7505_v60, %v9284_v33 }
0x17c6   : > { %6842 = vmatpush3.bf16.xpose.msra.mxu0 %v3610_v59  ;;  %v3475_v43 = vmul.f32 %v7507_v23, %v9275_v1 }
0x17c7   : > { %7113 = vmatprep.subr.msk.bf16.mxu0 %vm461_vm1, %v3591_v19 }
0x17c8   : > { %v3480_v47 = vpack.c.bf16 %v3476_v8, %v3475_v43 }
0x17ce   : > { %6844 = vmatpush3.bf16.xpose.msra.mxu0 %v3613_v58 }
0x17d7   : > { %v3446_v18 = vpop.xlane.xlu1 %3445 }
0x17d8   : > { %v3458_v20 = vmax.f32 %v3446_v18, 1e-30 }
0x17da   : > { %7508 = vrcp.f32 %v3458_v20 }
0x17db   : > { %v3593_v22 = vpop.permute.xlu1 %3592 }
0x17dc   : > { %7114 = vmatprep.subr.msk.bf16.mxu0 %vm461_vm1, %v3593_v22  ;;  %v3616_v46 = vsel %vm461_vm1, %v3593_v22, 0 }
0x17dd   : > { %6846 = vmatpush3.bf16.xpose.msra.mxu0 %v3616_v46 }
0x17df   : > { %v3581_v48 = vpop.permute.xlu1 %3580 }
0x17e3   : > { %v3585_v33 = vpop.permute.xlu1 %3584 }
0x17e4   : > { %v7509_v16 = vpop.eup %7508 }
0x17e5   : > { %v3474_v7 = vmul.f32 %v7509_v16, %v9307_v25 }
0x17e7   : > { %v3479_v52 = vpack.c.bf16 %v3474_v7, %v3473_v29 }
0x17e9   : > { %6835 = vmatprep.mubr.msk.bf16.mxu0 %vm551_vm2, %v3479_v52 }
0x17ea   : > { %6836 = vmatmul.mubr.msk.bf16.gmra.mrb[84].mxu0 %vm551_vm2, %v3480_v47 }
0x17eb   : > { %6847 = vmatprep.mubr.msk.bf16.mxu0 %vm461_vm1, %v3579_v53 }
0x17f2   : > { %6848 = vmatmul.mubr.msk.bf16.vlgmr.msra.gmra.mrb[88].mxu0 %vm461_vm1, %v3581_v48 }
0x17f3   : > { %6851 = vmatprep.mubr.msk.bf16.mxu0 %vm461_vm1, %v3583_v9 }
0x17fa   : > { %6852 = vmatmul.mubr.msk.bf16.gmra.mrb[92].mxu0 %vm461_vm1, %v3585_v33 }
0x1890   : > { %v6833_v50 = vpop.f32.mrb[80].mxu0 }
0x1891   : > { %v3539_v1 = vpop.f32.mrb[81].mxu0 }
0x1892   : > { %v6834_v63 = vpop.f32.mrb[82].mxu0 }
0x1893   : > { %v3571_v25 = vpack.c.bf16 %v6834_v63, %v6833_v50  ;;  %v3542_v26 = vpop.f32.mrb[83].mxu0 }
0x1894   : > { %v3570_v13 = vpack.c.bf16 %v3542_v26, %v3539_v1 }
0x1895   : > { %3575 = vst.msk [vmem:[#allocation2 + $0x8] sm:$0xff] %vm461_vm1, %v3571_v25 }
0x1896   : > { %3574 = vst.msk [vmem:[#allocation2] sm:$0xff] %vm461_vm1, %v3570_v13 }
0x18bd   : > { %v6837_v17 = vpop.f32.mrb[84].mxu0 }
0x18be   : > { %v3555_v51 = vpop.f32.mrb[85].mxu0 }
0x18bf   : > { %v6838_v44 = vpop.f32.mrb[86].mxu0 }
0x18c0   : > { %v3573_v12 = vpack.c.bf16 %v6838_v44, %v6837_v17  ;;  %v3558_v42 = vpop.f32.mrb[87].mxu0 }
0x18c1   : > { %v3572_v5 = vpack.c.bf16 %v3558_v42, %v3555_v51 }
0x18c2   : > { %3577 = vst.msk [vmem:[#allocation2 + $0x18] sm:$0xff] %vm461_vm1, %v3573_v12 }
0x18c3   : > { %3576 = vst.msk [vmem:[#allocation2 + $0x10] sm:$0xff] %vm461_vm1, %v3572_v5 }
0x18c5   : > { %v6849_v21 = vpop.f32.mrb[88].mxu0 }
0x18c6   : > { %v3652_v40 = vpop.f32.mrb[89].mxu0  ;;  %v3689_v27 = vsel %vm551_vm2, %v6849_v21, -inf }
0x18c7   : > { %3690 = vmax.xlane.f32.xlu0 %v3689_v27  ;;  %v6850_v24 = vpop.f32.mrb[90].mxu0  ;;  %v3683_v34 = vsel %vm551_vm2, %v3652_v40, -inf }
0x18c8   : > { %v3655_v39 = vpop.f32.mrb[91].mxu0  ;;  %v3692_v0 = vsel %vm551_vm2, %v6850_v24, -inf }
0x18c9   : > { %v3686_v4 = vsel %vm551_vm2, %v3655_v39, -inf }
0x18ca   : > { %3687 = vmax.xlane.f32.xlu1 %v3686_v4 }
0x18cb   : > { %3684 = vmax.xlane.f32.xlu0 %v3683_v34 }
0x18cd   : > { %v6853_v10 = vpop.f32.mrb[92].mxu0 }
0x18ce   : > { %v3668_v36 = vpop.f32.mrb[93].mxu0  ;;  %v3701_v32 = vsel %vm551_vm2, %v6853_v10, -inf }
0x18cf   : > { %3693 = vmax.xlane.f32.xlu0 %v3692_v0  ;;  %3702 = vmax.xlane.f32.xlu1 %v3701_v32  ;;  %v6854_v54 = vpop.f32.mrb[94].mxu0  ;;  %v3695_v49 = vsel %vm551_vm2, %v3668_v36, -inf }
0x18d0   : > { %v9349_v37 = vpop.f32.mrb[95].mxu0  ;;  %v3704_v28 = vsel %vm551_vm2, %v6854_v54, -inf }
0x18d1   : > { %v3698_v35 = vsel %vm551_vm2, %v9349_v37, -inf }
0x18d3   : > { %3696 = vmax.xlane.f32.xlu1 %v3695_v49  ;;  %3699 = vmax.xlane.f32.xlu0 %v3698_v35 }
0x18d7   : > { %3705 = vmax.xlane.f32.xlu0 %v3704_v28 }
0x18e4   : > { %3791 = vrot.lane.b32.xlu1 %v8959_v15, %s7845_s11 }
0x18e8   : > { %3795 = vrot.lane.b32.xlu1 %v9110_v30, %s7845_s11 }
0x18ec   : > { %3797 = vrot.lane.b32.xlu1 %v9108_v3, %s7845_s11 }
0x18ed   : > { %3793 = vrot.lane.b32.xlu0 %v8957_v62, %s7845_s11  ;;  %s10499_s11 = smov 112  }
0x18f0   : > { %3912 = vrot.lane.b32.xlu1 %v8959_v15, %s7846_s13 }
0x1954   : > { %v3691_v59 = vpop.xlane.xlu0 %3690 }
0x1955   : > { %v3709_v19 = vsub.f32 %v6849_v21, %v3691_v59 }
0x1957   : > { %v3719_v58 = vmul.f32 1.442695, %v3709_v19  ;;  %v3688_v11 = vpop.xlane.xlu1 %3687 }
0x1958   : > { %v3685_v57 = vpop.xlane.xlu0 %3684  ;;  %v3708_v56 = vsub.f32 %v3655_v39, %v3688_v11 }
0x1959   : > { %7510 = vpow2.f32 %v3719_v58  ;;  %v3707_v18 = vsub.f32 %v3652_v40, %v3685_v57 }
0x195a   : > { %v3717_v38 = vmul.f32 1.442695, %v3708_v56 }
0x195b   : > { %v3715_v20 = vmul.f32 1.442695, %v3707_v18 }
0x195c   : > { %v3703_v22 = vpop.xlane.xlu1 %3702  ;;  %v3694_v46 = vpop.xlane.xlu0 %3693 }
0x195d   : > { %7512 = vpow2.f32 %v3715_v20  ;;  %v3710_v60 = vsub.f32 %v6850_v24, %v3694_v46  ;;  %v3713_v23 = vsub.f32 %v6853_v10, %v3703_v22 }
0x195e   : > { %7514 = vpow2.f32 %v3717_v38 }
0x195f   : > { %v3721_v16 = vmul.f32 1.442695, %v3710_v60  ;;  %v3727_v7 = vmul.f32 1.442695, %v3713_v23 }
0x1960   : > { %v3697_v8 = vpop.xlane.xlu1 %3696  ;;  %v3700_v29 = vpop.xlane.xlu0 %3699 }
0x1961   : > { %7516 = vpow2.f32 %v3721_v16  ;;  %v3711_v43 = vsub.f32 %v3668_v36, %v3697_v8  ;;  %v3712_v35 = vsub.f32 %v9349_v37, %v3700_v29 }
0x1962   : > { %7518 = vpow2.f32 %v3727_v7 }
0x1963   : > { %v7511_v52 = vpop.eup %7510  ;;  %v3723_v9 = vmul.f32 1.442695, %v3711_v43  ;;  %v3725_v49 = vmul.f32 1.442695, %v3712_v35 }
0x1964   : > { %v3792_v47 = vpop.permute.xlu1 %3791  ;;  %v3706_v53 = vpop.xlane.xlu0 %3705  ;;  %v9366_v48 = vmul.f32 %v7511_v52, %v9246_v55 }
0x1965   : > { %6855 = vmatprep.subr.bf16.mxu1 %v3792_v47  ;;  %v3714_v33 = vsub.f32 %v6854_v54, %v3706_v53  ;;  %7520 = vpow2.f32 %v3723_v9 }
0x1966   : > { %6856 = vmatpush3.bf16.msra.mxu1 %v3792_v47  ;;  %v3745_v50 = vsel %vm551_vm2, %v9366_v48, 0.0 }
0x1967   : > { %v7513_v1 = vpop.eup %7512  ;;  %3746 = vadd.xlane.f32.xlu1 %v3745_v50  ;;  %v3729_v13 = vmul.f32 1.442695, %v3714_v33 }
0x1968   : > { %v3796_v63 = vpop.permute.xlu1 %3795  ;;  %v3794_v25 = vpop.permute.xlu0 %3793  ;;  %v9371_v26 = vmul.f32 %v7513_v1, %v9252_v14 }
0x1969   : > { %6857 = vmatprep.subr.bf16.mxu1 %v3794_v25  ;;  %v7515_v51 = vpop.eup %7514  ;;  %7522 = vpow2.f32 %v3729_v13 }
0x196a   : > { %6858 = vmatpush3.bf16.msra.mxu1 %v3794_v25  ;;  %v3739_v17 = vsel %vm551_vm2, %v9371_v26, 0.0  ;;  %v3732_v21 = vmul.f32 %v7515_v51, %v9265_v61  ;;  %7524 = vpow2.f32 %v3725_v49 }
0x196b   : > { %3740 = vadd.xlane.f32.xlu1 %v3739_v17  ;;  %6859 = vmatprep.subr.bf16.mxu1 %v3796_v63  ;;  %v7517_v44 = vpop.eup %7516 }
0x196c   : > { %v3798_v12 = vpop.permute.xlu1 %3797  ;;  %v3734_v42 = vmul.f32 %v7517_v44, %v9260_v41  ;;  %v7519_v40 = vpop.eup %7518  ;;  %v3742_v24 = vsel %vm551_vm2, %v3732_v21, 0.0 }
0x196d   : > { %v9381_v39 = vmul.f32 %v7519_v40, %v9271_v31 }
0x196e   : > { %6860 = vmatpush3.bf16.msra.mxu1 %v3796_v63  ;;  %v3748_v5 = vsel %vm551_vm2, %v3734_v42, 0.0 }
0x196f   : > { %6861 = vmatprep.subr.bf16.mxu1 %v3798_v12  ;;  %3749 = vadd.xlane.f32.xlu0 %v3748_v5  ;;  %v7521_v4 = vpop.eup %7520  ;;  %v3757_v34 = vsel %vm551_vm2, %v9381_v39, 0.0 }
0x1970   : > { %v3913_v27 = vpop.permute.xlu1 %3912  ;;  %v9386_v10 = vmul.f32 %v7521_v4, %v9279_v2 }
0x1971   : > { %v3933_v33 = vsel %vm461_vm1, %v3913_v27, 0 }
0x1972   : > { %6862 = vmatpush3.bf16.msra.mxu1 %v3798_v12  ;;  %v3751_v0 = vsel %vm551_vm2, %v9386_v10, 0.0 }
0x1973   : > { %7115 = vmatprep.subr.msk.bf16.mxu1 %vm461_vm1, %v3913_v27  ;;  %3743 = vadd.xlane.f32.xlu0 %v3742_v24  ;;  %v7523_v36 = vpop.eup %7522 }
0x1974   : > { %v9391_v32 = vmul.f32 %v7523_v36, %v9287_v45  ;;  %v7525_v28 = vpop.eup %7524 }
0x1975   : > { %v9403_v59 = vmul.f32 %v7525_v28, %v9302_v6 }
0x1976   : > { %v3760_v54 = vsel %vm551_vm2, %v9391_v32, 0.0 }
0x1977   : > { %3758 = vadd.xlane.f32.xlu0 %v3757_v34  ;;  %v3754_v19 = vsel %vm551_vm2, %v9403_v59, 0.0 }
0x197b   : > { %3752 = vadd.xlane.f32.xlu0 %v3751_v0 }
0x197c   : > { %3916 = vrot.lane.b32.xlu1 %v9110_v30, %s7846_s13 }
0x197f   : > { %3761 = vadd.xlane.f32.xlu0 %v3760_v54 }
0x1995   : > { %3914 = vrot.lane.b32.xlu0 %v8957_v62, %s7846_s13 }
0x1999   : > { %3904 = vrot.lane.b32.xlu0 %v8959_v15, %s7847_s17 }
0x199d   : > { %3908 = vrot.lane.b32.xlu0 %v9110_v30, %s7847_s17 }
0x19a0   : > { %3755 = vadd.xlane.f32.xlu1 %v3754_v19 }
0x19b1   : > { %3918 = vrot.lane.b32.xlu1 %v9108_v3, %s7846_s13  ;;  %s10504_s13 = smov 48  }
0x19b5   : > { %3906 = vrot.lane.b32.xlu1 %v8957_v62, %s7847_s17 }
0x19b9   : > { %3910 = vrot.lane.b32.xlu1 %v9108_v3, %s7847_s17  ;;  %s10505_s17 = smov 76  }
0x19f4   : > { %v3747_v37 = vpop.xlane.xlu1 %3746 }
0x19f5   : > { %v3765_v18 = vmax.f32 %v3747_v37, 1e-30 }
0x19f8   : > { %v3741_v58 = vpop.xlane.xlu1 %3740 }
0x19f9   : > { %v3763_v57 = vmax.f32 %v3741_v58, 1e-30 }
0x19fc   : > { %v3750_v11 = vpop.xlane.xlu0 %3749  ;;  %v3917_v63 = vpop.permute.xlu1 %3916 }
0x19fd   : > { %v3766_v56 = vmax.f32 %v3750_v11, 1e-30 }
0x19ff   : > { %7526 = vrcp.f32 %v3766_v56 }
0x1a00   : > { %v3744_v20 = vpop.xlane.xlu0 %3743  ;;  %7528 = vrcp.f32 %v3763_v57 }
0x1a01   : > { %v3764_v22 = vmax.f32 %v3744_v20, 1e-30  ;;  %7530 = vrcp.f32 %v3765_v18 }
0x1a03   : > { %7532 = vrcp.f32 %v3764_v22 }
0x1a04   : > { %v3759_v46 = vpop.xlane.xlu0 %3758 }
0x1a05   : > { %v3769_v13 = vmax.f32 %v3759_v46, 1e-30 }
0x1a08   : > { %v3753_v38 = vpop.xlane.xlu0 %3752 }
0x1a09   : > { %v7527_v60 = vpop.eup %7526 }
0x1a0a   : > { %v7529_v23 = vpop.eup %7528  ;;  %v3782_v29 = vmul.f32 %v7527_v60, %v3734_v42 }
0x1a0b   : > { %v7531_v16 = vpop.eup %7530  ;;  %v3779_v43 = vmul.f32 %v7529_v23, %v9371_v26  ;;  %v3767_v26 = vmax.f32 %v3753_v38, 1e-30 }
0x1a0c   : > { %v3762_v7 = vpop.xlane.xlu0 %3761  ;;  %v3781_v47 = vmul.f32 %v7531_v16, %v9366_v48  ;;  %v3939_v48 = vsel %vm461_vm1, %v3917_v63, 0 }
0x1a0d   : > { %v7533_v8 = vpop.eup %7532  ;;  %v3770_v25 = vmax.f32 %v3762_v7, 1e-30 }
0x1a0e   : > { %v3780_v52 = vmul.f32 %v7533_v8, %v3732_v21  ;;  %v3788_v9 = vpack.c.bf16 %v3782_v29, %v3781_v47 }
0x1a0f   : > { %7534 = vrcp.f32 %v3770_v25 }
0x1a10   : > { %v3787_v53 = vpack.c.bf16 %v3780_v52, %v3779_v43  ;;  %v3915_v50 = vpop.permute.xlu0 %3914  ;;  %7536 = vrcp.f32 %v3767_v26 }
0x1a11   : > { %v3936_v1 = vsel %vm461_vm1, %v3915_v50, 0  ;;  %7538 = vrcp.f32 %v3769_v13 }
0x1a12   : > { %6863 = vmatprep.mubr.msk.bf16.mxu1 %vm551_vm2, %v3787_v53 }
0x1a13   : > { %6864 = vmatmul.mubr.msk.bf16.vlgmr.msra.gmra.mrb[80].mxu1 %vm551_vm2, %v3788_v9 }
0x1a14   : > { %6872 = vmatpush3.bf16.xpose.msra.mxu1 %v3933_v33  ;;  %v3905_v54 = vpop.permute.xlu0 %3904 }
0x1a15   : > { %7116 = vmatprep.subr.msk.bf16.mxu1 %vm461_vm1, %v3915_v50 }
0x1a18   : > { %v3909_v49 = vpop.permute.xlu0 %3908 }
0x1a19   : > { %v7535_v42 = vpop.eup %7534 }
0x1a1a   : > { %v7537_v5 = vpop.eup %7536  ;;  %v3786_v27 = vmul.f32 %v7535_v42, %v9391_v32 }
0x1a1b   : > { %v7539_v21 = vpop.eup %7538  ;;  %v3783_v24 = vmul.f32 %v7537_v5, %v9386_v10 }
0x1a1c   : > { %6874 = vmatpush3.bf16.xpose.msra.mxu1 %v3936_v1  ;;  %v3785_v34 = vmul.f32 %v7539_v21, %v9381_v39 }
0x1a1d   : > { %7117 = vmatprep.subr.msk.bf16.mxu1 %vm461_vm1, %v3917_v63 }
0x1a1e   : > { %v3790_v0 = vpack.c.bf16 %v3786_v27, %v3785_v34 }
0x1a24   : > { %6876 = vmatpush3.bf16.xpose.msra.mxu1 %v3939_v48 }
0x1a2d   : > { %v3756_v17 = vpop.xlane.xlu1 %3755 }
0x1a2e   : > { %v3768_v51 = vmax.f32 %v3756_v17, 1e-30 }
0x1a30   : > { %7540 = vrcp.f32 %v3768_v51 }
0x1a31   : > { %v3919_v44 = vpop.permute.xlu1 %3918 }
0x1a32   : > { %7118 = vmatprep.subr.msk.bf16.mxu1 %vm461_vm1, %v3919_v44  ;;  %v3942_v12 = vsel %vm461_vm1, %v3919_v44, 0 }
0x1a33   : > { %6878 = vmatpush3.bf16.xpose.msra.mxu1 %v3942_v12 }
0x1a35   : > { %v3907_v35 = vpop.permute.xlu1 %3906 }
0x1a39   : > { %v3911_v10 = vpop.permute.xlu1 %3910 }
0x1a3a   : > { %v7541_v40 = vpop.eup %7540 }
0x1a3b   : > { %v3784_v4 = vmul.f32 %v7541_v40, %v9403_v59 }
0x1a3d   : > { %v3789_v36 = vpack.c.bf16 %v3784_v4, %v3783_v24 }
0x1a3f   : > { %6867 = vmatprep.mubr.msk.bf16.mxu1 %vm551_vm2, %v3789_v36 }
0x1a40   : > { %6868 = vmatmul.mubr.msk.bf16.gmra.mrb[84].mxu1 %vm551_vm2, %v3790_v0 }
0x1a41   : > { %6879 = vmatprep.mubr.msk.bf16.mxu1 %vm461_vm1, %v3905_v54 }
0x1a48   : > { %6880 = vmatmul.mubr.msk.bf16.vlgmr.msra.gmra.mrb[88].mxu1 %vm461_vm1, %v3907_v35 }
0x1a49   : > { %6883 = vmatprep.mubr.msk.bf16.mxu1 %vm461_vm1, %v3909_v49 }
0x1a50   : > { %6884 = vmatmul.mubr.msk.bf16.gmra.mrb[92].mxu1 %vm461_vm1, %v3911_v10 }
0x1ae6   : > { %v9436_v32 = vpop.f32.mrb[80].mxu1 }
0x1ae7   : > { %v9438_v39 = vpop.f32.mrb[81].mxu1 }
0x1ae8   : > { %v9440_v28 = vpop.f32.mrb[82].mxu1 }
0x1ae9   : > { %v9444_v19 = vpop.f32.mrb[83].mxu1 }
0x1b13   : > { %v9448_v58 = vpop.f32.mrb[84].mxu1 }
0x1b14   : > { %v9450_v11 = vpop.f32.mrb[85].mxu1 }
0x1b15   : > { %10490 = vst [vmem:[#allocation6_spill] sm:$0xff] %v9450_v11  ;;  %v9452_v57 = vpop.f32.mrb[86].mxu1 }
0x1b16   : > { %v9456_v18 = vpop.f32.mrb[87].mxu1 }
0x1b17   : > { %10491 = vst [vmem:[#allocation8_spill] sm:$0xff] %v9456_v18 }
0x1b1b   : > { %v6881_v22 = vpop.f32.mrb[88].mxu1 }
0x1b1c   : > { %v3978_v46 = vpop.f32.mrb[89].mxu1  ;;  %v4015_v38 = vsel %vm551_vm2, %v6881_v22, -inf }
0x1b1d   : > { %4016 = vmax.xlane.f32.xlu0 %v4015_v38  ;;  %v6882_v60 = vpop.f32.mrb[90].mxu1  ;;  %v4009_v8 = vsel %vm551_vm2, %v3978_v46, -inf }
0x1b1e   : > { %v3981_v23 = vpop.f32.mrb[91].mxu1  ;;  %v4018_v43 = vsel %vm551_vm2, %v6882_v60, -inf }
0x1b1f   : > { %v4012_v16 = vsel %vm551_vm2, %v3981_v23, -inf }
0x1b20   : > { %4013 = vmax.xlane.f32.xlu1 %v4012_v16 }
0x1b21   : > { %4010 = vmax.xlane.f32.xlu0 %v4009_v8 }
0x1b23   : > { %v6885_v29 = vpop.f32.mrb[92].mxu1 }
0x1b24   : > { %v3994_v7 = vpop.f32.mrb[93].mxu1  ;;  %v4027_v52 = vsel %vm551_vm2, %v6885_v29, -inf }
0x1b25   : > { %4019 = vmax.xlane.f32.xlu0 %v4018_v43  ;;  %4028 = vmax.xlane.f32.xlu1 %v4027_v52  ;;  %v6886_v47 = vpop.f32.mrb[94].mxu1  ;;  %v4021_v33 = vsel %vm551_vm2, %v3994_v7, -inf }
0x1b26   : > { %v9465_v53 = vpop.f32.mrb[95].mxu1  ;;  %v4030_v50 = vsel %vm551_vm2, %v6886_v47, -inf }
0x1b27   : > { %v4024_v9 = vsel %vm551_vm2, %v9465_v53, -inf }
0x1b29   : > { %4022 = vmax.xlane.f32.xlu1 %v4021_v33  ;;  %4025 = vmax.xlane.f32.xlu0 %v4024_v9 }
0x1b2d   : > { %4031 = vmax.xlane.f32.xlu0 %v4030_v50 }
0x1b3a   : > { %4117 = vrot.lane.b32.xlu1 %v8959_v15, %s7848_s18 }
0x1b3e   : > { %4121 = vrot.lane.b32.xlu1 %v9110_v30, %s7848_s18 }
0x1b42   : > { %4123 = vrot.lane.b32.xlu1 %v9108_v3, %s7848_s18 }
0x1b43   : > { %4119 = vrot.lane.b32.xlu0 %v8957_v62, %s7848_s18  ;;  %s10506_s18 = smov 108  }
0x1b46   : > { %4238 = vrot.lane.b32.xlu1 %v8959_v15, %s10492_s15 }
0x1baa   : > { %v4017_v1 = vpop.xlane.xlu0 %4016 }
0x1bab   : > { %v4035_v63 = vsub.f32 %v6881_v22, %v4017_v1 }
0x1bad   : > { %v4045_v48 = vmul.f32 1.442695, %v4035_v63  ;;  %v4014_v25 = vpop.xlane.xlu1 %4013 }
0x1bae   : > { %v4011_v26 = vpop.xlane.xlu0 %4010  ;;  %v4034_v13 = vsub.f32 %v3981_v23, %v4014_v25 }
0x1baf   : > { %7542 = vpow2.f32 %v4045_v48  ;;  %v4033_v17 = vsub.f32 %v3978_v46, %v4011_v26 }
0x1bb0   : > { %v4043_v42 = vmul.f32 1.442695, %v4034_v13 }
0x1bb1   : > { %v4041_v51 = vmul.f32 1.442695, %v4033_v17 }
0x1bb2   : > { %v4029_v44 = vpop.xlane.xlu1 %4028  ;;  %v4020_v12 = vpop.xlane.xlu0 %4019 }
0x1bb3   : > { %7544 = vpow2.f32 %v4041_v51  ;;  %v4036_v5 = vsub.f32 %v6882_v60, %v4020_v12  ;;  %v4039_v21 = vsub.f32 %v6885_v29, %v4029_v44 }
0x1bb4   : > { %7546 = vpow2.f32 %v4043_v42 }
0x1bb5   : > { %v4047_v40 = vmul.f32 1.442695, %v4036_v5  ;;  %v4053_v4 = vmul.f32 1.442695, %v4039_v21 }
0x1bb6   : > { %v4023_v27 = vpop.xlane.xlu1 %4022  ;;  %v4026_v24 = vpop.xlane.xlu0 %4025 }
0x1bb7   : > { %7548 = vpow2.f32 %v4047_v40  ;;  %v4037_v34 = vsub.f32 %v3994_v7, %v4023_v27  ;;  %v4038_v26 = vsub.f32 %v9465_v53, %v4026_v24 }
0x1bb8   : > { %7550 = vpow2.f32 %v4053_v4 }
0x1bb9   : > { %v7543_v36 = vpop.eup %7542  ;;  %v4049_v49 = vmul.f32 1.442695, %v4037_v34 }
0x1bba   : > { %v4118_v0 = vpop.permute.xlu1 %4117  ;;  %v4032_v54 = vpop.xlane.xlu0 %4031  ;;  %v9482_v35 = vmul.f32 %v7543_v36, %v9246_v55 }
0x1bbb   : > { %6887 = vmatprep.subr.bf16.mxu0 %v4118_v0  ;;  %v4040_v10 = vsub.f32 %v6886_v47, %v4032_v54  ;;  %7552 = vpow2.f32 %v4049_v49 }
0x1bbc   : > { %6888 = vmatpush3.bf16.msra.mxu0 %v4118_v0  ;;  %v4071_v22 = vsel %vm551_vm2, %v9482_v35, 0.0 }
0x1bbd   : > { %v7545_v46 = vpop.eup %7544  ;;  %4072 = vadd.xlane.f32.xlu1 %v4071_v22  ;;  %v4055_v16 = vmul.f32 1.442695, %v4040_v10 }
0x1bbe   : > { %v4122_v38 = vpop.permute.xlu1 %4121  ;;  %v4120_v60 = vpop.permute.xlu0 %4119  ;;  %v9487_v23 = vmul.f32 %v7545_v46, %v9252_v14 }
0x1bbf   : > { %6889 = vmatprep.subr.bf16.mxu0 %v4120_v60  ;;  %v7547_v8 = vpop.eup %7546  ;;  %7554 = vpow2.f32 %v4055_v16 }
0x1bc0   : > { %6890 = vmatpush3.bf16.msra.mxu0 %v4120_v60  ;;  %v4065_v55 = vsel %vm551_vm2, %v9487_v23, 0.0  ;;  %v4058_v14 = vmul.f32 %v7547_v8, %v9265_v61 }
0x1bc1   : > { %4066 = vadd.xlane.f32.xlu1 %v4065_v55  ;;  %6891 = vmatprep.subr.bf16.mxu0 %v4122_v38  ;;  %v7549_v29 = vpop.eup %7548 }
0x1bc2   : > { %v4124_v7 = vpop.permute.xlu1 %4123  ;;  %v4060_v43 = vmul.f32 %v7549_v29, %v9260_v41  ;;  %v7551_v47 = vpop.eup %7550  ;;  %v4068_v33 = vsel %vm551_vm2, %v4058_v14, 0.0 }
0x1bc3   : > { %v9497_v50 = vmul.f32 %v7551_v47, %v9271_v31 }
0x1bc4   : > { %6892 = vmatpush3.bf16.msra.mxu0 %v4122_v38  ;;  %v4074_v52 = vsel %vm551_vm2, %v4060_v43, 0.0 }
0x1bc5   : > { %6893 = vmatprep.subr.bf16.mxu0 %v4124_v7  ;;  %4075 = vadd.xlane.f32.xlu0 %v4074_v52  ;;  %v7553_v1 = vpop.eup %7552  ;;  %v4083_v41 = vsel %vm551_vm2, %v9497_v50, 0.0 }
0x1bc6   : > { %v4239_v9 = vpop.permute.xlu1 %4238  ;;  %v9502_v63 = vmul.f32 %v7553_v1, %v9279_v2  ;;  %v4051_v2 = vmul.f32 1.442695, %v4038_v26 }
0x1bc7   : > { %v4259_v60 = vsel %vm461_vm1, %v4239_v9, 0 }
0x1bc8   : > { %6894 = vmatpush3.bf16.msra.mxu0 %v4124_v7  ;;  %v4077_v48 = vsel %vm551_vm2, %v9502_v63, 0.0  ;;  %7556 = vpow2.f32 %v4051_v2 }
0x1bc9   : > { %7119 = vmatprep.subr.msk.bf16.mxu0 %vm461_vm1, %v4239_v9  ;;  %4069 = vadd.xlane.f32.xlu0 %v4068_v33  ;;  %v7555_v61 = vpop.eup %7554 }
0x1bca   : > { %v9507_v25 = vmul.f32 %v7555_v61, %v9287_v45 }
0x1bcc   : > { %v4086_v31 = vsel %vm551_vm2, %v9507_v25, 0.0 }
0x1bcd   : > { %4084 = vadd.xlane.f32.xlu0 %v4083_v41 }
0x1bd1   : > { %4078 = vadd.xlane.f32.xlu0 %v4077_v48 }
0x1bd2   : > { %4242 = vrot.lane.b32.xlu1 %v9110_v30, %s10492_s15  ;;  %v7557_v13 = vpop.eup %7556 }
0x1bd3   : > { %v9519_v45 = vmul.f32 %v7557_v13, %v9302_v6 }
0x1bd5   : > { %4087 = vadd.xlane.f32.xlu0 %v4086_v31  ;;  %v4080_v17 = vsel %vm551_vm2, %v9519_v45, 0.0 }
0x1beb   : > { %4240 = vrot.lane.b32.xlu0 %v8957_v62, %s10492_s15 }
0x1bef   : > { %4230 = vrot.lane.b32.xlu0 %v8959_v15, %s10493_s8 }
0x1bf3   : > { %4234 = vrot.lane.b32.xlu0 %v9110_v30, %s10493_s8 }
0x1bf6   : > { %4081 = vadd.xlane.f32.xlu1 %v4080_v17 }
0x1c07   : > { %4244 = vrot.lane.b32.xlu1 %v9108_v3, %s10492_s15  ;;  %s10520_s15 = smov 100  }
0x1c0b   : > { %4232 = vrot.lane.b32.xlu1 %v8957_v62, %s10493_s8 }
0x1c0f   : > { %4236 = vrot.lane.b32.xlu1 %v9108_v3, %s10493_s8  ;;  %s10526_s8 = smov 4  }
0x1c4a   : > { %v4073_v53 = vpop.xlane.xlu1 %4072 }
0x1c4b   : > { %v4091_v42 = vmax.f32 %v4073_v53, 1e-30 }
0x1c4e   : > { %v4067_v51 = vpop.xlane.xlu1 %4066 }
0x1c4f   : > { %v4089_v44 = vmax.f32 %v4067_v51, 1e-30 }
0x1c52   : > { %v4076_v6 = vpop.xlane.xlu0 %4075  ;;  %v4243_v8 = vpop.permute.xlu1 %4242 }
0x1c53   : > { %v4092_v12 = vmax.f32 %v4076_v6, 1e-30 }
0x1c55   : > { %7558 = vrcp.f32 %v4092_v12 }
0x1c56   : > { %v4070_v5 = vpop.xlane.xlu0 %4069  ;;  %7560 = vrcp.f32 %v4089_v44 }
0x1c57   : > { %v4090_v21 = vmax.f32 %v4070_v5, 1e-30  ;;  %7562 = vrcp.f32 %v4091_v42 }
0x1c59   : > { %7564 = vrcp.f32 %v4090_v21 }
0x1c5a   : > { %v4085_v40 = vpop.xlane.xlu0 %4084 }
0x1c5b   : > { %v4095_v7 = vmax.f32 %v4085_v40, 1e-30 }
0x1c5e   : > { %v4079_v27 = vpop.xlane.xlu0 %4078 }
0x1c5f   : > { %v7559_v24 = vpop.eup %7558  ;;  %v4093_v29 = vmax.f32 %v4079_v27, 1e-30 }
0x1c60   : > { %v7561_v4 = vpop.eup %7560  ;;  %v4108_v0 = vmul.f32 %v7559_v24, %v4060_v43 }
0x1c61   : > { %v7563_v34 = vpop.eup %7562  ;;  %v4105_v49 = vmul.f32 %v7561_v4, %v9487_v23 }
0x1c62   : > { %v4088_v54 = vpop.xlane.xlu0 %4087  ;;  %v4107_v22 = vmul.f32 %v7563_v34, %v9482_v35  ;;  %v4265_v35 = vsel %vm461_vm1, %v4243_v8, 0 }
0x1c63   : > { %v7565_v36 = vpop.eup %7564  ;;  %v4096_v23 = vmax.f32 %v4088_v54, 1e-30 }
0x1c64   : > { %v4106_v10 = vmul.f32 %v7565_v36, %v4058_v14  ;;  %v4114_v38 = vpack.c.bf16 %v4108_v0, %v4107_v22 }
0x1c65   : > { %7566 = vrcp.f32 %v4096_v23 }
0x1c66   : > { %v4113_v46 = vpack.c.bf16 %v4106_v10, %v4105_v49  ;;  %v4241_v16 = vpop.permute.xlu0 %4240  ;;  %7568 = vrcp.f32 %v4093_v29 }
0x1c67   : > { %v4262_v55 = vsel %vm461_vm1, %v4241_v16, 0  ;;  %7570 = vrcp.f32 %v4095_v7 }
0x1c68   : > { %6895 = vmatprep.mubr.msk.bf16.mxu0 %vm551_vm2, %v4113_v46 }
0x1c69   : > { %6896 = vmatmul.mubr.msk.bf16.vlgmr.msra.gmra.mrb[96].mxu0 %vm551_vm2, %v4114_v38 }
0x1c6a   : > { %6904 = vmatpush3.bf16.xpose.msra.mxu0 %v4259_v60  ;;  %v4231_v17 = vpop.permute.xlu0 %4230 }
0x1c6b   : > { %7120 = vmatprep.subr.msk.bf16.mxu0 %vm461_vm1, %v4241_v16 }
0x1c6e   : > { %v4235_v51 = vpop.permute.xlu0 %4234 }
0x1c6f   : > { %v7567_v9 = vpop.eup %7566 }
0x1c70   : > { %v7569_v33 = vpop.eup %7568  ;;  %v4112_v61 = vmul.f32 %v7567_v9, %v9507_v25 }
0x1c71   : > { %v7571_v1 = vpop.eup %7570  ;;  %v4109_v48 = vmul.f32 %v7569_v33, %v9502_v63 }
0x1c72   : > { %6906 = vmatpush3.bf16.xpose.msra.mxu0 %v4262_v55  ;;  %v4111_v26 = vmul.f32 %v7571_v1, %v9497_v50 }
0x1c73   : > { %7121 = vmatprep.subr.msk.bf16.mxu0 %vm461_vm1, %v4243_v8 }
0x1c74   : > { %v4116_v13 = vpack.c.bf16 %v4112_v61, %v4111_v26 }
0x1c7a   : > { %6908 = vmatpush3.bf16.xpose.msra.mxu0 %v4265_v35 }
0x1c83   : > { %v4082_v43 = vpop.xlane.xlu1 %4081 }
0x1c84   : > { %v4094_v52 = vmax.f32 %v4082_v43, 1e-30 }
0x1c86   : > { %7572 = vrcp.f32 %v4094_v52 }
0x1c87   : > { %v4245_v14 = vpop.permute.xlu1 %4244 }
0x1c88   : > { %7122 = vmatprep.subr.msk.bf16.mxu0 %vm461_vm1, %v4245_v14  ;;  %v4268_v47 = vsel %vm461_vm1, %v4245_v14, 0 }
0x1c89   : > { %6910 = vmatpush3.bf16.xpose.msra.mxu0 %v4268_v47 }
0x1c8b   : > { %v4233_v53 = vpop.permute.xlu1 %4232 }
0x1c8f   : > { %v4237_v63 = vpop.permute.xlu1 %4236 }
0x1c90   : > { %v7573_v41 = vpop.eup %7572 }
0x1c91   : > { %v4110_v31 = vmul.f32 %v7573_v41, %v9519_v45 }
0x1c93   : > { %v4115_v2 = vpack.c.bf16 %v4110_v31, %v4109_v48 }
0x1c95   : > { %6899 = vmatprep.mubr.msk.bf16.mxu0 %vm551_vm2, %v4115_v2 }
0x1c96   : > { %6900 = vmatmul.mubr.msk.bf16.gmra.mrb[100].mxu0 %vm551_vm2, %v4116_v13 }
0x1c97   : > { %6911 = vmatprep.mubr.msk.bf16.mxu0 %vm461_vm1, %v4231_v17 }
0x1c9e   : > { %6912 = vmatmul.mubr.msk.bf16.vlgmr.msra.gmra.mrb[104].mxu0 %vm461_vm1, %v4233_v53 }
0x1c9f   : > { %6915 = vmatprep.mubr.msk.bf16.mxu0 %vm461_vm1, %v4235_v51 }
0x1ca6   : > { %6916 = vmatmul.mubr.msk.bf16.gmra.mrb[108].mxu0 %vm461_vm1, %v4237_v63 }
0x1d3c   : > { %v9552_v25 = vpop.f32.mrb[96].mxu0 }
0x1d3d   : > { %v9554_v50 = vpop.f32.mrb[97].mxu0 }
0x1d3e   : > { %v9556_v45 = vpop.f32.mrb[98].mxu0 }
0x1d3f   : > { %v9560_v44 = vpop.f32.mrb[99].mxu0 }
0x1d69   : > { %v9564_v42 = vpop.f32.mrb[100].mxu0 }
0x1d6a   : > { %10494 = vst [vmem:[#allocation7_spill] sm:$0xff] %v9564_v42  ;;  %v9566_v5 = vpop.f32.mrb[101].mxu0 }
0x1d6b   : > { %10495 = vst [vmem:[#allocation12_spill] sm:$0xff] %v9566_v5  ;;  %v9568_v21 = vpop.f32.mrb[102].mxu0 }
0x1d6c   : > { %v9572_v27 = vpop.f32.mrb[103].mxu0 }
0x1d6d   : > { %10496 = vst [vmem:[#allocation10_spill] sm:$0xff] %v9572_v27 }
0x1d71   : > { %v6913_v4 = vpop.f32.mrb[104].mxu0 }
0x1d72   : > { %v4304_v34 = vpop.f32.mrb[105].mxu0  ;;  %v4341_v36 = vsel %vm551_vm2, %v6913_v4, -inf }
0x1d73   : > { %4342 = vmax.xlane.f32.xlu0 %v4341_v36  ;;  %v6914_v0 = vpop.f32.mrb[106].mxu0  ;;  %v4335_v10 = vsel %vm551_vm2, %v4304_v34, -inf }
0x1d74   : > { %v4307_v54 = vpop.f32.mrb[107].mxu0  ;;  %v4344_v38 = vsel %vm551_vm2, %v6914_v0, -inf }
0x1d75   : > { %v4338_v49 = vsel %vm551_vm2, %v4307_v54, -inf }
0x1d76   : > { %4339 = vmax.xlane.f32.xlu1 %v4338_v49 }
0x1d77   : > { %4336 = vmax.xlane.f32.xlu0 %v4335_v10 }
0x1d79   : > { %v6917_v22 = vpop.f32.mrb[108].mxu0 }
0x1d7a   : > { %v4320_v46 = vpop.f32.mrb[109].mxu0  ;;  %v4353_v60 = vsel %vm551_vm2, %v6917_v22, -inf }
0x1d7b   : > { %4345 = vmax.xlane.f32.xlu0 %v4344_v38  ;;  %4354 = vmax.xlane.f32.xlu1 %v4353_v60  ;;  %v6918_v16 = vpop.f32.mrb[110].mxu0  ;;  %v4347_v35 = vsel %vm551_vm2, %v4320_v46, -inf  ;;  %v9608_v38 = vld [vmem:[%s7991_s19 + $0x40] sm:$0xff] }
0x1d7c   : > { %v9581_v55 = vpop.f32.mrb[111].mxu0  ;;  %v4356_v23 = vsel %vm551_vm2, %v6918_v16, -inf }
0x1d7d   : > { %v4350_v8 = vsel %vm551_vm2, %v9581_v55, -inf }
0x1d7f   : > { %4348 = vmax.xlane.f32.xlu1 %v4347_v35  ;;  %4351 = vmax.xlane.f32.xlu0 %v4350_v8 }
0x1d83   : > { %4357 = vmax.xlane.f32.xlu0 %v4356_v23 }
0x1d90   : > { %4443 = vrot.lane.b32.xlu1 %v8959_v15, %s10497_s9 }
0x1d94   : > { %4447 = vrot.lane.b32.xlu1 %v9110_v30, %s10497_s9 }
0x1d98   : > { %4449 = vrot.lane.b32.xlu1 %v9108_v3, %s10497_s9 }
0x1d99   : > { %4445 = vrot.lane.b32.xlu0 %v8957_v62, %s10497_s9  ;;  %s10566_s9 = smov 28  }
0x1d9c   : > { %4564 = vrot.lane.b32.xlu1 %v8959_v15, %s10498_s10 }
0x1e00   : > { %v4343_v29 = vpop.xlane.xlu0 %4342 }
0x1e01   : > { %v4361_v7 = vsub.f32 %v6913_v4, %v4343_v29 }
0x1e03   : > { %v4371_v43 = vmul.f32 1.442695, %v4361_v7  ;;  %v4340_v52 = vpop.xlane.xlu1 %4339  ;;  %v9616_v7 = vld [vmem:[%s7991_s19 + $0x58] sm:$0xff] }
0x1e04   : > { %v4337_v14 = vpop.xlane.xlu0 %4336  ;;  %v4360_v47 = vsub.f32 %v4307_v54, %v4340_v52 }
0x1e05   : > { %7574 = vpow2.f32 %v4371_v43  ;;  %v4359_v9 = vsub.f32 %v4304_v34, %v4337_v14  ;;  %v9600_v34 = vld [vmem:[%s7991_s19 + $0x50] sm:$0xff]  ;;  %v9621_v14 = vld [vmem:[%s7991_s19 + $0x48] sm:$0xff] }
0x1e06   : > { %v4369_v61 = vmul.f32 1.442695, %v4360_v47 }
0x1e07   : > { %v4367_v33 = vmul.f32 1.442695, %v4359_v9 }
0x1e08   : > { %v4355_v1 = vpop.xlane.xlu1 %4354  ;;  %v4346_v41 = vpop.xlane.xlu0 %4345 }
0x1e09   : > { %7576 = vpow2.f32 %v4367_v33  ;;  %v4362_v48 = vsub.f32 %v6914_v0, %v4346_v41  ;;  %v4365_v31 = vsub.f32 %v6917_v22, %v4355_v1  ;;  %v9627_v41 = vld [vmem:[%s7991_s19 + $0x70] sm:$0xff] }
0x1e0a   : > { %7578 = vpow2.f32 %v4369_v61 }
0x1e0b   : > { %v4373_v26 = vmul.f32 1.442695, %v4362_v48  ;;  %v4379_v17 = vmul.f32 1.442695, %v4365_v31 }
0x1e0c   : > { %v4349_v2 = vpop.xlane.xlu1 %4348  ;;  %v9597_v13 = vpop.xlane.xlu0 %4351 }
0x1e0d   : > { %7580 = vpow2.f32 %v4373_v26  ;;  %v4363_v53 = vsub.f32 %v4320_v46, %v4349_v2  ;;  %v9635_v26 = vld [vmem:[%s7991_s19 + $0x60] sm:$0xff] }
0x1e0e   : > { %7582 = vpow2.f32 %v4379_v17 }
0x1e0f   : > { %v7575_v51 = vpop.eup %7574  ;;  %v4375_v0 = vmul.f32 1.442695, %v4363_v53 }
0x1e10   : > { %v4444_v63 = vpop.permute.xlu1 %4443  ;;  %v4358_v4 = vpop.xlane.xlu0 %4357  ;;  %v9603_v36 = vmul.f32 %v9600_v34, %v7575_v51  ;;  %v9643_v51 = vld [vmem:[%s7991_s19 + $0x78] sm:$0xff] }
0x1e11   : > { %6919 = vmatprep.subr.bf16.mxu1 %v4444_v63  ;;  %v4366_v54 = vsub.f32 %v6918_v16, %v4358_v4  ;;  %7584 = vpow2.f32 %v4375_v0  ;;  %v4364_v0 = vsub.f32 %v9581_v55, %v9597_v13 }
0x1e12   : > { %6920 = vmatpush3.bf16.msra.mxu1 %v4444_v63  ;;  %v4397_v49 = vsel %vm551_vm2, %v9603_v36, 0.0 }
0x1e13   : > { %v7577_v10 = vpop.eup %7576  ;;  %4398 = vadd.xlane.f32.xlu1 %v4397_v49  ;;  %v4381_v8 = vmul.f32 1.442695, %v4366_v54  ;;  %v4377_v54 = vmul.f32 1.442695, %v4364_v0 }
0x1e14   : > { %v4448_v22 = vpop.permute.xlu1 %4447  ;;  %v4446_v46 = vpop.permute.xlu0 %4445  ;;  %v9611_v60 = vmul.f32 %v9608_v38, %v7577_v10  ;;  %v9659_v10 = vld [vmem:[%s7991_s19 + $0x68] sm:$0xff] }
0x1e15   : > { %6921 = vmatprep.subr.bf16.mxu1 %v4446_v46  ;;  %v7579_v35 = vpop.eup %7578  ;;  %7586 = vpow2.f32 %v4381_v8 }
0x1e16   : > { %6922 = vmatpush3.bf16.msra.mxu1 %v4446_v46  ;;  %v4391_v16 = vsel %vm551_vm2, %v9611_v60, 0.0  ;;  %v4384_v47 = vmul.f32 %v9621_v14, %v7579_v35  ;;  %7588 = vpow2.f32 %v4377_v54 }
0x1e17   : > { %4392 = vadd.xlane.f32.xlu1 %v4391_v16  ;;  %6923 = vmatprep.subr.bf16.mxu1 %v4448_v22  ;;  %v7581_v23 = vpop.eup %7580 }
0x1e18   : > { %v4450_v29 = vpop.permute.xlu1 %4449  ;;  %v4386_v43 = vmul.f32 %v9616_v7, %v7581_v23  ;;  %v7583_v9 = vpop.eup %7582  ;;  %v4394_v1 = vsel %vm551_vm2, %v4384_v47, 0.0 }
0x1e19   : > { %v9630_v61 = vmul.f32 %v9627_v41, %v7583_v9 }
0x1e1a   : > { %6924 = vmatpush3.bf16.msra.mxu1 %v4448_v22  ;;  %v4400_v52 = vsel %vm551_vm2, %v4386_v43, 0.0 }
0x1e1b   : > { %6925 = vmatprep.subr.bf16.mxu1 %v4450_v29  ;;  %4401 = vadd.xlane.f32.xlu0 %v4400_v52  ;;  %v7585_v48 = vpop.eup %7584  ;;  %v4409_v31 = vsel %vm551_vm2, %v9630_v61, 0.0 }
0x1e1c   : > { %v4565_v33 = vpop.permute.xlu1 %4564  ;;  %v9638_v2 = vmul.f32 %v9635_v26, %v7585_v48 }
0x1e1e   : > { %6926 = vmatpush3.bf16.msra.mxu1 %v4450_v29  ;;  %v4403_v53 = vsel %vm551_vm2, %v9638_v2, 0.0 }
0x1e1f   : > { %7123 = vmatprep.subr.msk.bf16.mxu1 %vm461_vm1, %v4565_v33  ;;  %4395 = vadd.xlane.f32.xlu0 %v4394_v1  ;;  %v7587_v17 = vpop.eup %7586 }
0x1e20   : > { %v9646_v63 = vmul.f32 %v9643_v51, %v7587_v17  ;;  %v7589_v49 = vpop.eup %7588 }
0x1e21   : > { %v9662_v22 = vmul.f32 %v9659_v10, %v7589_v49 }
0x1e22   : > { %v4412_v4 = vsel %vm551_vm2, %v9646_v63, 0.0 }
0x1e23   : > { %4410 = vadd.xlane.f32.xlu0 %v4409_v31  ;;  %v4406_v55 = vsel %vm551_vm2, %v9662_v22, 0.0 }
0x1e27   : > { %4404 = vadd.xlane.f32.xlu0 %v4403_v53 }
0x1e28   : > { %4568 = vrot.lane.b32.xlu1 %v9110_v30, %s10498_s10 }
0x1e2b   : > { %4413 = vadd.xlane.f32.xlu0 %v4412_v4 }
0x1e41   : > { %4566 = vrot.lane.b32.xlu0 %v8957_v62, %s10498_s10 }
0x1e45   : > { %4556 = vrot.lane.b32.xlu0 %v8959_v15, %s10499_s11 }
0x1e49   : > { %4560 = vrot.lane.b32.xlu0 %v9110_v30, %s10499_s11 }
0x1e4c   : > { %4407 = vadd.xlane.f32.xlu1 %v4406_v55 }
0x1e5d   : > { %4570 = vrot.lane.b32.xlu1 %v9108_v3, %s10498_s10 }
0x1e61   : > { %4558 = vrot.lane.b32.xlu1 %v8957_v62, %s10499_s11 }
0x1e65   : > { %4562 = vrot.lane.b32.xlu1 %v9108_v3, %s10499_s11 }
0x1ea0   : > { %v4399_v13 = vpop.xlane.xlu1 %4398 }
0x1ea1   : > { %v4417_v23 = vmax.f32 %v4399_v13, 1e-30 }
0x1ea4   : > { %v4393_v46 = vpop.xlane.xlu1 %4392 }
0x1ea5   : > { %v4415_v16 = vmax.f32 %v4393_v46, 1e-30 }
0x1ea8   : > { %v4402_v8 = vpop.xlane.xlu0 %4401 }
0x1ea9   : > { %v4418_v35 = vmax.f32 %v4402_v8, 1e-30  ;;  %v4585_v8 = vsel %vm461_vm1, %v4565_v33, 0 }
0x1eab   : > { %7590 = vrcp.f32 %v4418_v35  ;;  %v4569_v35 = vpop.permute.xlu1 %4568 }
0x1eac   : > { %v4396_v29 = vpop.xlane.xlu0 %4395  ;;  %7592 = vrcp.f32 %v4415_v16 }
0x1ead   : > { %v4416_v52 = vmax.f32 %v4396_v29, 1e-30  ;;  %7594 = vrcp.f32 %v4417_v23 }
0x1eaf   : > { %7596 = vrcp.f32 %v4416_v52 }
0x1eb0   : > { %v4411_v9 = vpop.xlane.xlu0 %4410 }
0x1eb1   : > { %v4421_v23 = vmax.f32 %v4411_v9, 1e-30 }
0x1eb4   : > { %v4405_v1 = vpop.xlane.xlu0 %4404 }
0x1eb5   : > { %v7591_v48 = vpop.eup %7590 }
0x1eb6   : > { %v7593_v31 = vpop.eup %7592  ;;  %v4434_v4 = vmul.f32 %v7591_v48, %v4386_v43 }
0x1eb7   : > { %v7595_v17 = vpop.eup %7594  ;;  %v4431_v54 = vmul.f32 %v7593_v31, %v9611_v60 }
0x1eb8   : > { %v4414_v0 = vpop.xlane.xlu0 %4413  ;;  %v4433_v55 = vmul.f32 %v7595_v17, %v9603_v36  ;;  %v4591_v36 = vsel %vm461_vm1, %v4569_v35, 0 }
0x1eb9   : > { %v7597_v53 = vpop.eup %7596  ;;  %v4422_v60 = vmax.f32 %v4414_v0, 1e-30 }
0x1eba   : > { %v4432_v49 = vmul.f32 %v7597_v53, %v4384_v47  ;;  %v4440_v46 = vpack.c.bf16 %v4434_v4, %v4433_v55  ;;  %v4419_v47 = vmax.f32 %v4405_v1, 1e-30 }
0x1ebb   : > { %7598 = vrcp.f32 %v4422_v60 }
0x1ebc   : > { %v4439_v13 = vpack.c.bf16 %v4432_v49, %v4431_v54  ;;  %v4567_v16 = vpop.permute.xlu0 %4566  ;;  %7600 = vrcp.f32 %v4419_v47 }
0x1ebd   : > { %v4588_v43 = vsel %vm461_vm1, %v4567_v16, 0  ;;  %7602 = vrcp.f32 %v4421_v23 }
0x1ebe   : > { %6927 = vmatprep.mubr.msk.bf16.mxu1 %vm551_vm2, %v4439_v13 }
0x1ebf   : > { %6928 = vmatmul.mubr.msk.bf16.vlgmr.msra.gmra.mrb[96].mxu1 %vm551_vm2, %v4440_v46 }
0x1ec0   : > { %6936 = vmatpush3.bf16.xpose.msra.mxu1 %v4585_v8  ;;  %v4557_v13 = vpop.permute.xlu0 %4556 }
0x1ec1   : > { %7124 = vmatprep.subr.msk.bf16.mxu1 %vm461_vm1, %v4567_v16 }
0x1ec4   : > { %v4561_v8 = vpop.permute.xlu0 %4560 }
0x1ec5   : > { %v7599_v31 = vpop.eup %7598 }
0x1ec6   : > { %v7601_v17 = vpop.eup %7600  ;;  %v4438_v0 = vmul.f32 %v7599_v31, %v9646_v63 }
0x1ec7   : > { %v7603_v53 = vpop.eup %7602  ;;  %v4435_v9 = vmul.f32 %v7601_v17, %v9638_v2 }
0x1ec8   : > { %6938 = vmatpush3.bf16.xpose.msra.mxu1 %v4588_v43  ;;  %v4437_v54 = vmul.f32 %v7603_v53, %v9630_v61 }
0x1ec9   : > { %7125 = vmatprep.subr.msk.bf16.mxu1 %vm461_vm1, %v4569_v35 }
0x1eca   : > { %v4442_v55 = vpack.c.bf16 %v4438_v0, %v4437_v54 }
0x1ed0   : > { %6940 = vmatpush3.bf16.xpose.msra.mxu1 %v4591_v36 }
0x1ed9   : > { %v4408_v29 = vpop.xlane.xlu1 %4407 }
0x1eda   : > { %v4420_v33 = vmax.f32 %v4408_v29, 1e-30 }
0x1edc   : > { %7604 = vrcp.f32 %v4420_v33 }
0x1edd   : > { %v4571_v52 = vpop.permute.xlu1 %4570 }
0x1ede   : > { %7126 = vmatprep.subr.msk.bf16.mxu1 %vm461_vm1, %v4571_v52  ;;  %v4594_v48 = vsel %vm461_vm1, %v4571_v52, 0 }
0x1edf   : > { %6942 = vmatpush3.bf16.xpose.msra.mxu1 %v4594_v48 }
0x1ee1   : > { %v4559_v46 = vpop.permute.xlu1 %4558 }
0x1ee5   : > { %v4563_v2 = vpop.permute.xlu1 %4562 }
0x1ee6   : > { %v7605_v4 = vpop.eup %7604 }
0x1ee7   : > { %v4436_v1 = vmul.f32 %v7605_v4, %v9662_v22 }
0x1ee9   : > { %v4441_v49 = vpack.c.bf16 %v4436_v1, %v4435_v9 }
0x1eeb   : > { %6931 = vmatprep.mubr.msk.bf16.mxu1 %vm551_vm2, %v4441_v49 }
0x1eec   : > { %6932 = vmatmul.mubr.msk.bf16.gmra.mrb[100].mxu1 %vm551_vm2, %v4442_v55 }
0x1eed   : > { %6943 = vmatprep.mubr.msk.bf16.mxu1 %vm461_vm1, %v4557_v13 }
0x1ef4   : > { %6944 = vmatmul.mubr.msk.bf16.vlgmr.msra.gmra.mrb[104].mxu1 %vm461_vm1, %v4559_v46 }
0x1ef5   : > { %6947 = vmatprep.mubr.msk.bf16.mxu1 %vm461_vm1, %v4561_v8 }
0x1efc   : > { %6948 = vmatmul.mubr.msk.bf16.gmra.mrb[108].mxu1 %vm461_vm1, %v4563_v2 }
0x1f92   : > { %v9695_v63 = vpop.f32.mrb[96].mxu1 }
0x1f93   : > { %v9697_v61 = vpop.f32.mrb[97].mxu1 }
0x1f94   : > { %v9699_v22 = vpop.f32.mrb[98].mxu1 }
0x1f95   : > { %v9703_v43 = vpop.f32.mrb[99].mxu1 }
0x1fbf   : > { %v9707_v36 = vpop.f32.mrb[100].mxu1 }
0x1fc0   : > { %10500 = vst [vmem:[#allocation11_spill] sm:$0xff] %v9707_v36  ;;  %v9709_v60 = vpop.f32.mrb[101].mxu1 }
0x1fc1   : > { %10501 = vst [vmem:[#allocation9_spill] sm:$0xff] %v9709_v60  ;;  %v9711_v47 = vpop.f32.mrb[102].mxu1 }
0x1fc2   : > { %10502 = vst [vmem:[#allocation16_spill] sm:$0xff] %v9711_v47  ;;  %v9715_v29 = vpop.f32.mrb[103].mxu1 }
0x1fc3   : > { %10503 = vst [vmem:[#allocation14_spill] sm:$0xff] %v9715_v29 }
0x1fc7   : > { %v6945_v52 = vpop.f32.mrb[104].mxu1 }
0x1fc8   : > { %v4630_v48 = vpop.f32.mrb[105].mxu1  ;;  %v4667_v31 = vsel %vm551_vm2, %v6945_v52, -inf }
0x1fc9   : > { %4668 = vmax.xlane.f32.xlu0 %v4667_v31  ;;  %v6946_v17 = vpop.f32.mrb[106].mxu1  ;;  %v4661_v0 = vsel %vm551_vm2, %v4630_v48, -inf }
0x1fca   : > { %v4633_v53 = vpop.f32.mrb[107].mxu1  ;;  %v4670_v54 = vsel %vm551_vm2, %v6946_v17, -inf }
0x1fcb   : > { %v4664_v4 = vsel %vm551_vm2, %v4633_v53, -inf }
0x1fcc   : > { %4665 = vmax.xlane.f32.xlu1 %v4664_v4 }
0x1fcd   : > { %4662 = vmax.xlane.f32.xlu0 %v4661_v0 }
0x1fcf   : > { %v6949_v9 = vpop.f32.mrb[108].mxu1 }
0x1fd0   : > { %v4646_v1 = vpop.f32.mrb[109].mxu1  ;;  %v4679_v49 = vsel %vm551_vm2, %v6949_v9, -inf }
0x1fd1   : > { %4671 = vmax.xlane.f32.xlu0 %v4670_v54  ;;  %4680 = vmax.xlane.f32.xlu1 %v4679_v49  ;;  %v6950_v55 = vpop.f32.mrb[110].mxu1  ;;  %v4673_v8 = vsel %vm551_vm2, %v4646_v1, -inf }
0x1fd2   : > { %v9724_v13 = vpop.f32.mrb[111].mxu1  ;;  %v4682_v2 = vsel %vm551_vm2, %v6950_v55, -inf }
0x1fd3   : > { %v4676_v46 = vsel %vm551_vm2, %v9724_v13, -inf }
0x1fd5   : > { %4674 = vmax.xlane.f32.xlu1 %v4673_v8  ;;  %4677 = vmax.xlane.f32.xlu0 %v4676_v46 }
0x1fd9   : > { %4683 = vmax.xlane.f32.xlu0 %v4682_v2 }
0x1fe6   : > { %4769 = vrot.lane.b32.xlu1 %v8959_v15, %s10504_s13 }
0x1fea   : > { %4773 = vrot.lane.b32.xlu1 %v9110_v30, %s10504_s13 }
0x1fee   : > { %4775 = vrot.lane.b32.xlu1 %v9108_v3, %s10504_s13 }
0x1fef   : > { %4771 = vrot.lane.b32.xlu0 %v8957_v62, %s10504_s13 }
0x1ff2   : > { %4890 = vrot.lane.b32.xlu1 %v8959_v15, %s10505_s17 }
0x2056   : > { %v4669_v31 = vpop.xlane.xlu0 %4668 }
0x2057   : > { %v4687_v4 = vsub.f32 %v6945_v52, %v4669_v31 }
0x2059   : > { %v4697_v0 = vmul.f32 1.442695, %v4687_v4  ;;  %v4666_v54 = vpop.xlane.xlu1 %4665 }
0x205a   : > { %v4663_v49 = vpop.xlane.xlu0 %4662  ;;  %v4686_v46 = vsub.f32 %v4633_v53, %v4666_v54 }
0x205b   : > { %7606 = vpow2.f32 %v4697_v0  ;;  %v4685_v8 = vsub.f32 %v4630_v48, %v4663_v49 }
0x205c   : > { %v4695_v23 = vmul.f32 1.442695, %v4686_v46 }
0x205d   : > { %v4693_v2 = vmul.f32 1.442695, %v4685_v8 }
0x205e   : > { %v4681_v33 = vpop.xlane.xlu1 %4680  ;;  %v4672_v24 = vpop.xlane.xlu0 %4671 }
0x205f   : > { %7608 = vpow2.f32 %v4693_v2  ;;  %v4688_v20 = vsub.f32 %v6946_v17, %v4672_v24  ;;  %v4691_v40 = vsub.f32 %v6949_v9, %v4681_v33 }
0x2060   : > { %7610 = vpow2.f32 %v4695_v23 }
0x2061   : > { %v4699_v56 = vmul.f32 1.442695, %v4688_v20  ;;  %v4705_v16 = vmul.f32 1.442695, %v4691_v40 }
0x2062   : > { %v4675_v35 = vpop.xlane.xlu1 %4674  ;;  %v4678_v12 = vpop.xlane.xlu0 %4677 }
0x2063   : > { %7612 = vpow2.f32 %v4699_v56  ;;  %v4689_v52 = vsub.f32 %v4646_v1, %v4675_v35 }
0x2064   : > { %7614 = vpow2.f32 %v4705_v16 }
0x2065   : > { %v7607_v31 = vpop.eup %7606  ;;  %v4701_v48 = vmul.f32 1.442695, %v4689_v52 }
0x2066   : > { %v4770_v4 = vpop.permute.xlu1 %4769  ;;  %v4684_v37 = vpop.xlane.xlu0 %4683  ;;  %v9741_v53 = vmul.f32 %v9600_v34, %v7607_v31 }
0x2067   : > { %6951 = vmatprep.subr.bf16.mxu0 %v4770_v4  ;;  %v4692_v0 = vsub.f32 %v6950_v55, %v4684_v37  ;;  %7616 = vpow2.f32 %v4701_v48 }
0x2068   : > { %6952 = vmatpush3.bf16.msra.mxu0 %v4770_v4  ;;  %v4723_v20 = vsel %vm551_vm2, %v9741_v53, 0.0 }
0x2069   : > { %v7609_v24 = vpop.eup %7608  ;;  %4724 = vadd.xlane.f32.xlu1 %v4723_v20  ;;  %v4707_v35 = vmul.f32 1.442695, %v4692_v0 }
0x206a   : > { %v4774_v23 = vpop.permute.xlu1 %4773  ;;  %v4772_v40 = vpop.permute.xlu0 %4771  ;;  %v9746_v56 = vmul.f32 %v9608_v38, %v7609_v24  ;;  %v4690_v24 = vsub.f32 %v9724_v13, %v4678_v12 }
0x206b   : > { %6953 = vmatprep.subr.bf16.mxu0 %v4772_v40  ;;  %v7611_v33 = vpop.eup %7610  ;;  %7618 = vpow2.f32 %v4707_v35 }
0x206c   : > { %6954 = vmatpush3.bf16.msra.mxu0 %v4772_v40  ;;  %v4717_v16 = vsel %vm551_vm2, %v9746_v56, 0.0  ;;  %v4710_v55 = vmul.f32 %v9621_v14, %v7611_v33 }
0x206d   : > { %4718 = vadd.xlane.f32.xlu1 %v4717_v16  ;;  %6955 = vmatprep.subr.bf16.mxu0 %v4774_v23  ;;  %v7613_v37 = vpop.eup %7612 }
0x206e   : > { %v4776_v17 = vpop.permute.xlu1 %4775  ;;  %v4712_v9 = vmul.f32 %v9616_v7, %v7613_v37  ;;  %v7615_v54 = vpop.eup %7614  ;;  %v4720_v46 = vsel %vm551_vm2, %v4710_v55, 0.0 }
0x206f   : > { %v9756_v8 = vmul.f32 %v9627_v41, %v7615_v54 }
0x2070   : > { %6956 = vmatpush3.bf16.msra.mxu0 %v4774_v23  ;;  %v4726_v1 = vsel %vm551_vm2, %v4712_v9, 0.0  ;;  %v4703_v23 = vmul.f32 1.442695, %v4690_v24 }
0x2071   : > { %6957 = vmatprep.subr.bf16.mxu0 %v4776_v17  ;;  %4727 = vadd.xlane.f32.xlu0 %v4726_v1  ;;  %v7617_v2 = vpop.eup %7616  ;;  %v4735_v52 = vsel %vm551_vm2, %v9756_v8, 0.0 }
0x2072   : > { %v4891_v49 = vpop.permute.xlu1 %4890  ;;  %v9761_v31 = vmul.f32 %v9635_v26, %v7617_v2  ;;  %7620 = vpow2.f32 %v4703_v23 }
0x2074   : > { %6958 = vmatpush3.bf16.msra.mxu0 %v4776_v17  ;;  %v4729_v48 = vsel %vm551_vm2, %v9761_v31, 0.0 }
0x2075   : > { %7127 = vmatprep.subr.msk.bf16.mxu0 %vm461_vm1, %v4891_v49  ;;  %4721 = vadd.xlane.f32.xlu0 %v4720_v46  ;;  %v7619_v4 = vpop.eup %7618 }
0x2076   : > { %v9766_v0 = vmul.f32 %v9643_v51, %v7619_v4 }
0x2078   : > { %v4738_v20 = vsel %vm551_vm2, %v9766_v0, 0.0 }
0x2079   : > { %4736 = vadd.xlane.f32.xlu0 %v4735_v52 }
0x207c   : > { %v7621_v40 = vpop.eup %7620 }
0x207d   : > { %4730 = vadd.xlane.f32.xlu0 %v4729_v48  ;;  %v9778_v35 = vmul.f32 %v9659_v10, %v7621_v40 }
0x207e   : > { %4894 = vrot.lane.b32.xlu1 %v9110_v30, %s10505_s17 }
0x207f   : > { %v4732_v16 = vsel %vm551_vm2, %v9778_v35, 0.0 }
0x2081   : > { %4739 = vadd.xlane.f32.xlu0 %v4738_v20 }
0x2097   : > { %4892 = vrot.lane.b32.xlu0 %v8957_v62, %s10505_s17 }
0x209b   : > { %4882 = vrot.lane.b32.xlu0 %v8959_v15, %s10506_s18 }
0x209f   : > { %4886 = vrot.lane.b32.xlu0 %v9110_v30, %s10506_s18 }
0x20a2   : > { %4733 = vadd.xlane.f32.xlu1 %v4732_v16 }
0x20b3   : > { %4896 = vrot.lane.b32.xlu1 %v9108_v3, %s10505_s17 }
0x20b7   : > { %4884 = vrot.lane.b32.xlu1 %v8957_v62, %s10506_s18 }
0x20bb   : > { %4888 = vrot.lane.b32.xlu1 %v9108_v3, %s10506_s18 }
0x20f6   : > { %v4725_v12 = vpop.xlane.xlu1 %4724 }
0x20f7   : > { %v4743_v1 = vmax.f32 %v4725_v12, 1e-30 }
0x20fa   : > { %v4719_v13 = vpop.xlane.xlu1 %4718 }
0x20fb   : > { %v4741_v37 = vmax.f32 %v4719_v13, 1e-30 }
0x20fe   : > { %v4728_v33 = vpop.xlane.xlu0 %4727 }
0x20ff   : > { %v4744_v17 = vmax.f32 %v4728_v33, 1e-30 }
0x2101   : > { %7622 = vrcp.f32 %v4744_v17 }
0x2102   : > { %v4722_v54 = vpop.xlane.xlu0 %4721  ;;  %7624 = vrcp.f32 %v4741_v37  ;;  %v4911_v37 = vsel %vm461_vm1, %v4891_v49, 0 }
0x2103   : > { %v4742_v46 = vmax.f32 %v4722_v54, 1e-30  ;;  %7626 = vrcp.f32 %v4743_v1  ;;  %v4895_v1 = vpop.permute.xlu1 %4894 }
0x2105   : > { %7628 = vrcp.f32 %v4742_v46 }
0x2106   : > { %v4737_v2 = vpop.xlane.xlu0 %4736 }
0x210a   : > { %v4731_v52 = vpop.xlane.xlu0 %4730 }
0x210b   : > { %v7623_v4 = vpop.eup %7622 }
0x210c   : > { %v7625_v48 = vpop.eup %7624  ;;  %v4760_v23 = vmul.f32 %v7623_v4, %v4712_v9 }
0x210d   : > { %v7627_v20 = vpop.eup %7626  ;;  %v4757_v16 = vmul.f32 %v7625_v48, %v9746_v56  ;;  %v4745_v56 = vmax.f32 %v4731_v52, 1e-30 }
0x210e   : > { %v4740_v40 = vpop.xlane.xlu0 %4739  ;;  %v4759_v13 = vmul.f32 %v7627_v20, %v9741_v53  ;;  %v4917_v53 = vsel %vm461_vm1, %v4895_v1, 0 }
0x210f   : > { %v7629_v24 = vpop.eup %7628 }
0x2110   : > { %v4758_v6 = vmul.f32 %v7629_v24, %v4710_v55  ;;  %v4766_v33 = vpack.c.bf16 %v4760_v23, %v4759_v13  ;;  %v4747_v55 = vmax.f32 %v4737_v2, 1e-30 }
0x2112   : > { %v4765_v12 = vpack.c.bf16 %v4758_v6, %v4757_v16  ;;  %v4893_v17 = vpop.permute.xlu0 %4892  ;;  %v4748_v6 = vmax.f32 %v4740_v40, 1e-30 }
0x2113   : > { %v4914_v9 = vsel %vm461_vm1, %v4893_v17, 0 }
0x2114   : > { %6959 = vmatprep.mubr.msk.bf16.mxu0 %vm551_vm2, %v4765_v12  ;;  %7630 = vrcp.f32 %v4748_v6 }
0x2115   : > { %6960 = vmatmul.mubr.msk.bf16.vlgmr.msra.gmra.mrb[112].mxu0 %vm551_vm2, %v4766_v33  ;;  %7632 = vrcp.f32 %v4745_v56 }
0x2116   : > { %6968 = vmatpush3.bf16.xpose.msra.mxu0 %v4911_v37  ;;  %7634 = vrcp.f32 %v4747_v55  ;;  %v4883_v33 = vpop.permute.xlu0 %4882 }
0x2117   : > { %7128 = vmatprep.subr.msk.bf16.mxu0 %vm461_vm1, %v4893_v17 }
0x211a   : > { %v4887_v17 = vpop.permute.xlu0 %4886 }
0x211e   : > { %6970 = vmatpush3.bf16.xpose.msra.mxu0 %v4914_v9  ;;  %v7631_v48 = vpop.eup %7630 }
0x211f   : > { %7129 = vmatprep.subr.msk.bf16.mxu0 %vm461_vm1, %v4895_v1  ;;  %v7633_v20 = vpop.eup %7632  ;;  %v4764_v40 = vmul.f32 %v7631_v48, %v9766_v0 }
0x2120   : > { %v7635_v24 = vpop.eup %7634  ;;  %v4761_v2 = vmul.f32 %v7633_v20, %v9761_v31 }
0x2121   : > { %v4763_v16 = vmul.f32 %v7635_v24, %v9756_v8 }
0x2123   : > { %v4768_v12 = vpack.c.bf16 %v4764_v40, %v4763_v16 }
0x2126   : > { %6972 = vmatpush3.bf16.xpose.msra.mxu0 %v4917_v53 }
0x212f   : > { %v4734_v54 = vpop.xlane.xlu1 %4733 }
0x2130   : > { %v4746_v49 = vmax.f32 %v4734_v54, 1e-30 }
0x2132   : > { %7636 = vrcp.f32 %v4746_v49 }
0x2133   : > { %v4897_v46 = vpop.permute.xlu1 %4896 }
0x2134   : > { %7130 = vmatprep.subr.msk.bf16.mxu0 %vm461_vm1, %v4897_v46  ;;  %v4920_v4 = vsel %vm461_vm1, %v4897_v46, 0 }
0x2135   : > { %6974 = vmatpush3.bf16.xpose.msra.mxu0 %v4920_v4 }
0x2137   : > { %v4885_v37 = vpop.permute.xlu1 %4884 }
0x213b   : > { %v4889_v31 = vpop.permute.xlu1 %4888 }
0x213c   : > { %v7637_v23 = vpop.eup %7636 }
0x213d   : > { %v4762_v52 = vmul.f32 %v7637_v23, %v9778_v35 }
0x213f   : > { %v4767_v13 = vpack.c.bf16 %v4762_v52, %v4761_v2 }
0x2141   : > { %6963 = vmatprep.mubr.msk.bf16.mxu0 %vm551_vm2, %v4767_v13 }
0x2142   : > { %6964 = vmatmul.mubr.msk.bf16.gmra.mrb[116].mxu0 %vm551_vm2, %v4768_v12 }
0x2143   : > { %6975 = vmatprep.mubr.msk.bf16.mxu0 %vm461_vm1, %v4883_v33 }
0x214a   : > { %6976 = vmatmul.mubr.msk.bf16.vlgmr.msra.gmra.mrb[120].mxu0 %vm461_vm1, %v4885_v37 }
0x214b   : > { %6979 = vmatprep.mubr.msk.bf16.mxu0 %vm461_vm1, %v4887_v17 }
0x2152   : > { %6980 = vmatmul.mubr.msk.bf16.gmra.mrb[124].mxu0 %vm461_vm1, %v4889_v31 }
0x21e8   : > { %v9811_v0 = vpop.f32.mrb[112].mxu0 }
0x21e9   : > { %v9813_v8 = vpop.f32.mrb[113].mxu0 }
0x21ea   : > { %v9815_v35 = vpop.f32.mrb[114].mxu0 }
0x21eb   : > { %v9819_v1 = vpop.f32.mrb[115].mxu0 }
0x2215   : > { %v9823_v6 = vpop.f32.mrb[116].mxu0 }
0x2216   : > { %10507 = vst [vmem:[#allocation15_spill] sm:$0xff] %v9823_v6  ;;  %v9825_v56 = vpop.f32.mrb[117].mxu0 }
0x2217   : > { %10508 = vst [vmem:[#allocation13_spill] sm:$0xff] %v9825_v56  ;;  %v9827_v55 = vpop.f32.mrb[118].mxu0 }
0x2218   : > { %10509 = vst [vmem:[#allocation20_spill] sm:$0xff] %v9827_v55  ;;  %v9831_v49 = vpop.f32.mrb[119].mxu0 }
0x2219   : > { %10510 = vst [vmem:[#allocation18_spill] sm:$0xff] %v9831_v49 }
0x221d   : > { %v6977_v4 = vpop.f32.mrb[120].mxu0 }
0x221e   : > { %v4956_v48 = vpop.f32.mrb[121].mxu0  ;;  %v4993_v20 = vsel %vm551_vm2, %v6977_v4, -inf }
0x221f   : > { %4994 = vmax.xlane.f32.xlu0 %v4993_v20  ;;  %v6978_v24 = vpop.f32.mrb[122].mxu0  ;;  %v4987_v2 = vsel %vm551_vm2, %v4956_v48, -inf }
0x2220   : > { %v4959_v23 = vpop.f32.mrb[123].mxu0  ;;  %v4996_v13 = vsel %vm551_vm2, %v6978_v24, -inf }
0x2221   : > { %v4990_v40 = vsel %vm551_vm2, %v4959_v23, -inf }
0x2222   : > { %4991 = vmax.xlane.f32.xlu1 %v4990_v40 }
0x2223   : > { %4988 = vmax.xlane.f32.xlu0 %v4987_v2 }
0x2225   : > { %v6981_v52 = vpop.f32.mrb[124].mxu0 }
0x2226   : > { %v4972_v16 = vpop.f32.mrb[125].mxu0  ;;  %v5005_v12 = vsel %vm551_vm2, %v6981_v52, -inf }
0x2227   : > { %4997 = vmax.xlane.f32.xlu0 %v4996_v13  ;;  %5006 = vmax.xlane.f32.xlu1 %v5005_v12  ;;  %v6982_v33 = vpop.f32.mrb[126].mxu0  ;;  %v4999_v31 = vsel %vm551_vm2, %v4972_v16, -inf }
0x2228   : > { %v9840_v37 = vpop.f32.mrb[127].mxu0  ;;  %v5008_v20 = vsel %vm551_vm2, %v6982_v33, -inf }
0x2229   : > { %v5002_v17 = vsel %vm551_vm2, %v9840_v37, -inf }
0x222b   : > { %5000 = vmax.xlane.f32.xlu1 %v4999_v31  ;;  %5003 = vmax.xlane.f32.xlu0 %v5002_v17 }
0x222f   : > { %5009 = vmax.xlane.f32.xlu0 %v5008_v20 }
0x223c   : > { %5095 = vrot.lane.b32.xlu1 %v8959_v15, %s10511_s7 }
0x2240   : > { %5099 = vrot.lane.b32.xlu1 %v9110_v30, %s10511_s7 }
0x2244   : > { %5101 = vrot.lane.b32.xlu1 %v9108_v3, %s10511_s7 }
0x2245   : > { %5097 = vrot.lane.b32.xlu0 %v8957_v62, %s10511_s7 }
0x2248   : > { %5216 = vrot.lane.b32.xlu1 %v8959_v15, %s10512_s14 }
0x22ac   : > { %v4995_v40 = vpop.xlane.xlu0 %4994 }
0x22ad   : > { %v5013_v2 = vsub.f32 %v6977_v4, %v4995_v40 }
0x22af   : > { %v5023_v13 = vmul.f32 1.442695, %v5013_v2  ;;  %v4992_v12 = vpop.xlane.xlu1 %4991 }
0x22b0   : > { %v4989_v17 = vpop.xlane.xlu0 %4988  ;;  %v5012_v31 = vsub.f32 %v4959_v23, %v4992_v12 }
0x22b1   : > { %7638 = vpow2.f32 %v5023_v13  ;;  %v5011_v20 = vsub.f32 %v4956_v48, %v4989_v17 }
0x22b2   : > { %v5021_v9 = vmul.f32 1.442695, %v5012_v31 }
0x22b3   : > { %v5019_v46 = vmul.f32 1.442695, %v5011_v20 }
0x22b4   : > { %v5007_v54 = vpop.xlane.xlu1 %5006  ;;  %v4998_v53 = vpop.xlane.xlu0 %4997 }
0x22b5   : > { %7640 = vpow2.f32 %v5019_v46  ;;  %v5014_v59 = vsub.f32 %v6978_v24, %v4998_v53  ;;  %v5017_v56 = vsub.f32 %v6981_v52, %v5007_v54 }
0x22b6   : > { %7642 = vpow2.f32 %v5021_v9 }
0x22b7   : > { %v5025_v49 = vmul.f32 1.442695, %v5014_v59  ;;  %v5031_v6 = vmul.f32 1.442695, %v5017_v56 }
0x22b8   : > { %v5001_v60 = vpop.xlane.xlu1 %5000  ;;  %v5004_v29 = vpop.xlane.xlu0 %5003 }
0x22b9   : > { %7644 = vpow2.f32 %v5025_v49  ;;  %v5015_v4 = vsub.f32 %v4972_v16, %v5001_v60 }
0x22ba   : > { %7646 = vpow2.f32 %v5031_v6 }
0x22bb   : > { %v7639_v40 = vpop.eup %7638  ;;  %v5027_v48 = vmul.f32 1.442695, %v5015_v4 }
0x22bc   : > { %v5096_v2 = vpop.permute.xlu1 %5095  ;;  %v5010_v55 = vpop.xlane.xlu0 %5009  ;;  %v9857_v23 = vmul.f32 %v9600_v34, %v7639_v40  ;;  %v5016_v40 = vsub.f32 %v9840_v37, %v5004_v29 }
0x22bd   : > { %6983 = vmatprep.subr.bf16.mxu1 %v5096_v2  ;;  %v5018_v13 = vsub.f32 %v6982_v33, %v5010_v55  ;;  %7648 = vpow2.f32 %v5027_v48 }
0x22be   : > { %6984 = vmatpush3.bf16.msra.mxu1 %v5096_v2  ;;  %v5049_v59 = vsel %vm551_vm2, %v9857_v23, 0.0 }
0x22bf   : > { %v7641_v53 = vpop.eup %7640  ;;  %5050 = vadd.xlane.f32.xlu1 %v5049_v59  ;;  %v5033_v54 = vmul.f32 1.442695, %v5018_v13 }
0x22c0   : > { %v5100_v9 = vpop.permute.xlu1 %5099  ;;  %v5098_v56 = vpop.permute.xlu0 %5097  ;;  %v9862_v60 = vmul.f32 %v9608_v38, %v7641_v53 }
0x22c1   : > { %6985 = vmatprep.subr.bf16.mxu1 %v5098_v56  ;;  %v7643_v6 = vpop.eup %7642  ;;  %7650 = vpow2.f32 %v5033_v54 }
0x22c2   : > { %6986 = vmatpush3.bf16.msra.mxu1 %v5098_v56  ;;  %v5043_v34 = vsel %vm551_vm2, %v9862_v60, 0.0  ;;  %v5036_v38 = vmul.f32 %v9621_v14, %v7643_v6 }
0x22c3   : > { %5044 = vadd.xlane.f32.xlu1 %v5043_v34  ;;  %6987 = vmatprep.subr.bf16.mxu1 %v5100_v9  ;;  %v7645_v55 = vpop.eup %7644 }
0x22c4   : > { %v5102_v49 = vpop.permute.xlu1 %5101  ;;  %v5038_v46 = vmul.f32 %v9616_v7, %v7645_v55  ;;  %v7647_v52 = vpop.eup %7646  ;;  %v5046_v33 = vsel %vm551_vm2, %v5036_v38, 0.0 }
0x22c5   : > { %v9872_v12 = vmul.f32 %v9627_v41, %v7647_v52 }
0x22c6   : > { %6988 = vmatpush3.bf16.msra.mxu1 %v5100_v9  ;;  %v5052_v24 = vsel %vm551_vm2, %v5038_v46, 0.0 }
0x22c7   : > { %6989 = vmatprep.subr.bf16.mxu1 %v5102_v49  ;;  %5053 = vadd.xlane.f32.xlu0 %v5052_v24  ;;  %v7649_v17 = vpop.eup %7648  ;;  %v5061_v7 = vsel %vm551_vm2, %v9872_v12, 0.0 }
0x22c8   : > { %v5217_v16 = vpop.permute.xlu1 %5216  ;;  %v9877_v31 = vmul.f32 %v9635_v26, %v7649_v17  ;;  %v5029_v26 = vmul.f32 1.442695, %v5016_v40 }
0x22c9   : > { %v5237_v40 = vsel %vm461_vm1, %v5217_v16, 0 }
0x22ca   : > { %6990 = vmatpush3.bf16.msra.mxu1 %v5102_v49  ;;  %v5055_v20 = vsel %vm551_vm2, %v9877_v31, 0.0  ;;  %7652 = vpow2.f32 %v5029_v26 }
0x22cb   : > { %7131 = vmatprep.subr.msk.bf16.mxu1 %vm461_vm1, %v5217_v16  ;;  %5047 = vadd.xlane.f32.xlu0 %v5046_v33  ;;  %v7651_v14 = vpop.eup %7650 }
0x22cc   : > { %v9882_v4 = vmul.f32 %v9643_v51, %v7651_v14 }
0x22ce   : > { %v5064_v41 = vsel %vm551_vm2, %v9882_v4, 0.0 }
0x22cf   : > { %5062 = vadd.xlane.f32.xlu0 %v5061_v7 }
0x22d3   : > { %5056 = vadd.xlane.f32.xlu0 %v5055_v20 }
0x22d4   : > { %5220 = vrot.lane.b32.xlu1 %v9110_v30, %s10512_s14  ;;  %v7653_v2 = vpop.eup %7652 }
0x22d5   : > { %v9894_v51 = vmul.f32 %v9659_v10, %v7653_v2 }
0x22d7   : > { %5065 = vadd.xlane.f32.xlu0 %v5064_v41  ;;  %v5058_v48 = vsel %vm551_vm2, %v9894_v51, 0.0 }
0x22ed   : > { %5218 = vrot.lane.b32.xlu0 %v8957_v62, %s10512_s14 }
0x22f1   : > { %5208 = vrot.lane.b32.xlu0 %v8959_v15, %s10513_s16 }
0x22f5   : > { %5212 = vrot.lane.b32.xlu0 %v9110_v30, %s10513_s16 }
0x22f8   : > { %5059 = vadd.xlane.f32.xlu1 %v5058_v48 }
0x2309   : > { %5222 = vrot.lane.b32.xlu1 %v9108_v3, %s10512_s14 }
0x230d   : > { %5210 = vrot.lane.b32.xlu1 %v8957_v62, %s10513_s16 }
0x2311   : > { %5214 = vrot.lane.b32.xlu1 %v9108_v3, %s10513_s16 }
0x234c   : > { %v5051_v29 = vpop.xlane.xlu1 %5050 }
0x234d   : > { %v5069_v53 = vmax.f32 %v5051_v29, 1e-30 }
0x2350   : > { %v5045_v37 = vpop.xlane.xlu1 %5044 }
0x2351   : > { %v5067_v13 = vmax.f32 %v5045_v37, 1e-30 }
0x2354   : > { %v5054_v10 = vpop.xlane.xlu0 %5053  ;;  %v5221_v2 = vpop.permute.xlu1 %5220 }
0x2355   : > { %v5070_v59 = vmax.f32 %v5054_v10, 1e-30 }
0x2357   : > { %7654 = vrcp.f32 %v5070_v59 }
0x2358   : > { %v5048_v9 = vpop.xlane.xlu0 %5047  ;;  %7656 = vrcp.f32 %v5067_v13 }
0x2359   : > { %v5068_v56 = vmax.f32 %v5048_v9, 1e-30  ;;  %7658 = vrcp.f32 %v5069_v53 }
0x235b   : > { %7660 = vrcp.f32 %v5068_v56 }
0x235c   : > { %v5063_v54 = vpop.xlane.xlu0 %5062 }
0x235d   : > { %v5073_v48 = vmax.f32 %v5063_v54, 1e-30 }
0x2360   : > { %v5057_v34 = vpop.xlane.xlu0 %5056 }
0x2361   : > { %v7655_v6 = vpop.eup %7654 }
0x2362   : > { %v7657_v55 = vpop.eup %7656  ;;  %v5086_v52 = vmul.f32 %v7655_v6, %v5038_v46 }
0x2363   : > { %v7659_v49 = vpop.eup %7658  ;;  %v5083_v17 = vmul.f32 %v7657_v55, %v9862_v60 }
0x2364   : > { %v5066_v33 = vpop.xlane.xlu0 %5065  ;;  %v5085_v14 = vmul.f32 %v7659_v49, %v9857_v23  ;;  %v5243_v23 = vsel %vm461_vm1, %v5221_v2, 0 }
0x2365   : > { %v7661_v24 = vpop.eup %7660  ;;  %v5074_v60 = vmax.f32 %v5066_v33, 1e-30 }
0x2366   : > { %v5084_v7 = vmul.f32 %v7661_v24, %v5036_v38  ;;  %v5092_v41 = vpack.c.bf16 %v5086_v52, %v5085_v14  ;;  %v5071_v38 = vmax.f32 %v5057_v34, 1e-30 }
0x2367   : > { %7662 = vrcp.f32 %v5074_v60 }
0x2368   : > { %v5091_v20 = vpack.c.bf16 %v5084_v7, %v5083_v17  ;;  %v5219_v26 = vpop.permute.xlu0 %5218  ;;  %7664 = vrcp.f32 %v5071_v38 }
0x2369   : > { %v5240_v46 = vsel %vm461_vm1, %v5219_v26, 0  ;;  %7666 = vrcp.f32 %v5073_v48 }
0x236a   : > { %6991 = vmatprep.mubr.msk.bf16.mxu1 %vm551_vm2, %v5091_v20 }
0x236b   : > { %6992 = vmatmul.mubr.msk.bf16.vlgmr.msra.gmra.mrb[112].mxu1 %vm551_vm2, %v5092_v41 }
0x236c   : > { %7000 = vmatpush3.bf16.xpose.msra.mxu1 %v5237_v40  ;;  %v5209_v24 = vpop.permute.xlu0 %5208 }
0x236d   : > { %7132 = vmatprep.subr.msk.bf16.mxu1 %vm461_vm1, %v5219_v26 }
0x2370   : > { %v5213_v33 = vpop.permute.xlu0 %5212 }
0x2371   : > { %v7663_v13 = vpop.eup %7662 }
0x2372   : > { %v7665_v59 = vpop.eup %7664  ;;  %v5090_v56 = vmul.f32 %v7663_v13, %v9882_v4 }
0x2373   : > { %v7667_v53 = vpop.eup %7666  ;;  %v5087_v54 = vmul.f32 %v7665_v59, %v9877_v31 }
0x2374   : > { %7002 = vmatpush3.bf16.xpose.msra.mxu1 %v5240_v46  ;;  %v5089_v6 = vmul.f32 %v7667_v53, %v9872_v12 }
0x2375   : > { %7133 = vmatprep.subr.msk.bf16.mxu1 %vm461_vm1, %v5221_v2 }
0x2376   : > { %v5094_v49 = vpack.c.bf16 %v5090_v56, %v5089_v6 }
0x237c   : > { %7004 = vmatpush3.bf16.xpose.msra.mxu1 %v5243_v23 }
0x2385   : > { %v5060_v16 = vpop.xlane.xlu1 %5059 }
0x2386   : > { %v5072_v29 = vmax.f32 %v5060_v16, 1e-30 }
0x2388   : > { %7668 = vrcp.f32 %v5072_v29 }
0x2389   : > { %v5223_v37 = vpop.permute.xlu1 %5222 }
0x238a   : > { %v5246_v10 = vsel %vm461_vm1, %v5223_v37, 0  ;;  %7134 = vmatprep.subr.msk.bf16.mxu1 %vm461_vm1, %v5223_v37 }
0x238b   : > { %7006 = vmatpush3.bf16.xpose.msra.mxu1 %v5246_v10 }
0x238d   : > { %v5211_v52 = vpop.permute.xlu1 %5210 }
0x2391   : > { %v5215_v31 = vpop.permute.xlu1 %5214 }
0x2392   : > { %v7669_v9 = vpop.eup %7668 }
0x2393   : > { %v5088_v34 = vmul.f32 %v7669_v9, %v9894_v51 }
0x2395   : > { %v5093_v55 = vpack.c.bf16 %v5088_v34, %v5087_v54 }
0x2397   : > { %6995 = vmatprep.mubr.msk.bf16.mxu1 %vm551_vm2, %v5093_v55 }
0x2398   : > { %6996 = vmatmul.mubr.msk.bf16.gmra.mrb[116].mxu1 %vm551_vm2, %v5094_v49 }
0x2399   : > { %7007 = vmatprep.mubr.msk.bf16.mxu1 %vm461_vm1, %v5209_v24 }
0x23a0   : > { %7008 = vmatmul.mubr.msk.bf16.vlgmr.msra.gmra.mrb[120].mxu1 %vm461_vm1, %v5211_v52 }
0x23a1   : > { %7011 = vmatprep.mubr.msk.bf16.mxu1 %vm461_vm1, %v5213_v33 }
0x23a8   : > { %7012 = vmatmul.mubr.msk.bf16.gmra.mrb[124].mxu1 %vm461_vm1, %v5215_v31 }
0x243e   : > { %v9927_v4 = vpop.f32.mrb[112].mxu1 }
0x243f   : > { %v9929_v12 = vpop.f32.mrb[113].mxu1 }
0x2440   : > { %v9931_v51 = vpop.f32.mrb[114].mxu1 }
0x2441   : > { %v9935_v7 = vpop.f32.mrb[115].mxu1 }
0x246b   : > { %v9939_v20 = vpop.f32.mrb[116].mxu1 }
0x246c   : > { %10514 = vst [vmem:[#allocation19_spill] sm:$0xff] %v9939_v20  ;;  %v9941_v41 = vpop.f32.mrb[117].mxu1 }
0x246d   : > { %10515 = vst [vmem:[#allocation17_spill] sm:$0xff] %v9941_v41  ;;  %v9943_v40 = vpop.f32.mrb[118].mxu1 }
0x246e   : > { %10516 = vst [vmem:[#allocation24_spill] sm:$0xff] %v9943_v40  ;;  %v9947_v46 = vpop.f32.mrb[119].mxu1 }
0x246f   : > { %10517 = vst [vmem:[#allocation22_spill] sm:$0xff] %v9947_v46 }
0x2473   : > { %v7009_v23 = vpop.f32.mrb[120].mxu1 }
0x2474   : > { %v5282_v60 = vpop.f32.mrb[121].mxu1  ;;  %v5319_v38 = vsel %vm551_vm2, %v7009_v23, -inf }
0x2475   : > { %5320 = vmax.xlane.f32.xlu0 %v5319_v38  ;;  %v7010_v48 = vpop.f32.mrb[122].mxu1  ;;  %v5313_v37 = vsel %vm551_vm2, %v5282_v60, -inf }
0x2476   : > { %v5285_v16 = vpop.f32.mrb[123].mxu1  ;;  %v5322_v59 = vsel %vm551_vm2, %v7010_v48, -inf }
0x2477   : > { %v5316_v29 = vsel %vm551_vm2, %v5285_v16, -inf }
0x2478   : > { %5317 = vmax.xlane.f32.xlu1 %v5316_v29 }
0x2479   : > { %5314 = vmax.xlane.f32.xlu0 %v5313_v37 }
0x247b   : > { %v7013_v10 = vpop.f32.mrb[124].mxu1 }
0x247c   : > { %v5298_v13 = vpop.f32.mrb[125].mxu1  ;;  %v5331_v53 = vsel %vm551_vm2, %v7013_v10, -inf }
0x247d   : > { %5323 = vmax.xlane.f32.xlu0 %v5322_v59  ;;  %5332 = vmax.xlane.f32.xlu1 %v5331_v53  ;;  %v7014_v9 = vpop.f32.mrb[126].mxu1  ;;  %v5325_v34 = vsel %vm551_vm2, %v5298_v13, -inf }
0x247e   : > { %v9956_v56 = vpop.f32.mrb[127].mxu1  ;;  %v5334_v6 = vsel %vm551_vm2, %v7014_v9, -inf }
0x247f   : > { %v5328_v54 = vsel %vm551_vm2, %v9956_v56, -inf }
0x2481   : > { %5326 = vmax.xlane.f32.xlu1 %v5325_v34  ;;  %5329 = vmax.xlane.f32.xlu0 %v5328_v54 }
0x2485   : > { %5335 = vmax.xlane.f32.xlu0 %v5334_v6 }
0x2492   : > { %5421 = vrot.lane.b32.xlu1 %v8959_v15, %s10518_s25 }
0x2496   : > { %5425 = vrot.lane.b32.xlu1 %v9110_v30, %s10518_s25 }
0x249a   : > { %5427 = vrot.lane.b32.xlu1 %v9108_v3, %s10518_s25 }
0x249b   : > { %5423 = vrot.lane.b32.xlu0 %v8957_v62, %s10518_s25 }
0x249e   : > { %5542 = vrot.lane.b32.xlu1 %v8959_v15, %s10519_s20 }
0x2502   : > { %v5321_v55 = vpop.xlane.xlu0 %5320 }
0x2503   : > { %v5339_v49 = vsub.f32 %v7009_v23, %v5321_v55 }
0x2505   : > { %v5349_v24 = vmul.f32 1.442695, %v5339_v49  ;;  %v5318_v52 = vpop.xlane.xlu1 %5317 }
0x2506   : > { %v5315_v33 = vpop.xlane.xlu0 %5314  ;;  %v5338_v31 = vsub.f32 %v5285_v16, %v5318_v52 }
0x2507   : > { %7670 = vpow2.f32 %v5349_v24  ;;  %v5337_v38 = vsub.f32 %v5282_v60, %v5315_v33  ;;  %v9975_v24 = vld [vmem:[%s7991_s19 + $0x50] sm:$0xff] }
0x2508   : > { %v5347_v53 = vmul.f32 1.442695, %v5338_v31 }
0x2509   : > { %v5345_v29 = vmul.f32 1.442695, %v5337_v38  ;;  %v9983_v38 = vld [vmem:[%s7991_s19 + $0x40] sm:$0xff] }
0x250a   : > { %v5333_v37 = vpop.xlane.xlu1 %5332  ;;  %v5324_v59 = vpop.xlane.xlu0 %5323 }
0x250b   : > { %7672 = vpow2.f32 %v5345_v29  ;;  %v5340_v54 = vsub.f32 %v7010_v48, %v5324_v59  ;;  %v5343_v34 = vsub.f32 %v7013_v10, %v5333_v37 }
0x250c   : > { %7674 = vpow2.f32 %v5347_v53 }
0x250d   : > { %v5351_v6 = vmul.f32 1.442695, %v5340_v54  ;;  %v5357_v23 = vmul.f32 1.442695, %v5343_v34  ;;  %v9991_v34 = vld [vmem:[%s7991_s19 + $0x58] sm:$0xff] }
0x250e   : > { %v5327_v2 = vpop.xlane.xlu1 %5326  ;;  %v9972_v26 = vpop.xlane.xlu0 %5329 }
0x250f   : > { %7676 = vpow2.f32 %v5351_v6  ;;  %v5341_v55 = vsub.f32 %v5298_v13, %v5327_v2 }
0x2510   : > { %7678 = vpow2.f32 %v5357_v23 }
0x2511   : > { %v7671_v49 = vpop.eup %7670  ;;  %v5353_v48 = vmul.f32 1.442695, %v5341_v55  ;;  %v9996_v55 = vld [vmem:[%s7991_s19 + $0x48] sm:$0xff] }
0x2512   : > { %v5422_v16 = vpop.permute.xlu1 %5421  ;;  %v5336_v60 = vpop.xlane.xlu0 %5335  ;;  %v9978_v52 = vmul.f32 %v9975_v24, %v7671_v49 }
0x2513   : > { %7015 = vmatprep.subr.bf16.mxu0 %v5422_v16  ;;  %v5344_v10 = vsub.f32 %v7014_v9, %v5336_v60  ;;  %7680 = vpow2.f32 %v5353_v48 }
0x2514   : > { %7016 = vmatpush3.bf16.msra.mxu0 %v5422_v16  ;;  %v5375_v33 = vsel %vm551_vm2, %v9978_v52, 0.0 }
0x2515   : > { %v7673_v31 = vpop.eup %7672  ;;  %5376 = vadd.xlane.f32.xlu1 %v5375_v33  ;;  %v5359_v37 = vmul.f32 1.442695, %v5344_v10  ;;  %v10002_v10 = vld [vmem:[%s7991_s19 + $0x70] sm:$0xff] }
0x2516   : > { %v5426_v2 = vpop.permute.xlu1 %5425  ;;  %v5424_v13 = vpop.permute.xlu0 %5423  ;;  %v9986_v29 = vmul.f32 %v9983_v38, %v7673_v31 }
0x2517   : > { %7017 = vmatprep.subr.bf16.mxu0 %v5424_v13  ;;  %v7675_v59 = vpop.eup %7674  ;;  %7682 = vpow2.f32 %v5359_v37 }
0x2518   : > { %7018 = vmatpush3.bf16.msra.mxu0 %v5424_v13  ;;  %v5369_v9 = vsel %vm551_vm2, %v9986_v29, 0.0  ;;  %v5362_v49 = vmul.f32 %v9996_v55, %v7675_v59  ;;  %v10010_v13 = vld [vmem:[%s7991_s19 + $0x60] sm:$0xff] }
0x2519   : > { %5370 = vadd.xlane.f32.xlu1 %v5369_v9  ;;  %7019 = vmatprep.subr.bf16.mxu0 %v5426_v2  ;;  %v7677_v53 = vpop.eup %7676 }
0x251a   : > { %v5428_v54 = vpop.permute.xlu1 %5427  ;;  %v5364_v6 = vmul.f32 %v9991_v34, %v7677_v53  ;;  %v7679_v16 = vpop.eup %7678  ;;  %v5372_v48 = vsel %vm551_vm2, %v5362_v49, 0.0  ;;  %v10018_v53 = vld [vmem:[%s7991_s19 + $0x78] sm:$0xff] }
0x251b   : > { %v10005_v33 = vmul.f32 %v10002_v10, %v7679_v16  ;;  %v5342_v16 = vsub.f32 %v9956_v56, %v9972_v26 }
0x251c   : > { %7020 = vmatpush3.bf16.msra.mxu0 %v5426_v2  ;;  %v5378_v23 = vsel %vm551_vm2, %v5364_v6, 0.0 }
0x251d   : > { %7021 = vmatprep.subr.bf16.mxu0 %v5428_v54  ;;  %5379 = vadd.xlane.f32.xlu0 %v5378_v23  ;;  %v7681_v31 = vpop.eup %7680  ;;  %v5387_v2 = vsel %vm551_vm2, %v10005_v33, 0.0 }
0x251e   : > { %v5543_v60 = vpop.permute.xlu1 %5542  ;;  %v10013_v37 = vmul.f32 %v10010_v13, %v7681_v31 }
0x2520   : > { %7022 = vmatpush3.bf16.msra.mxu0 %v5428_v54  ;;  %v5381_v59 = vsel %vm551_vm2, %v10013_v37, 0.0 }
0x2521   : > { %7135 = vmatprep.subr.msk.bf16.mxu0 %vm461_vm1, %v5543_v60  ;;  %5373 = vadd.xlane.f32.xlu0 %v5372_v48  ;;  %v7683_v9 = vpop.eup %7682  ;;  %v5355_v48 = vmul.f32 1.442695, %v5342_v16 }
0x2522   : > { %v10021_v54 = vmul.f32 %v10018_v53, %v7683_v9 }
0x2523   : > { %7684 = vpow2.f32 %v5355_v48 }
0x2524   : > { %v5390_v23 = vsel %vm551_vm2, %v10021_v54, 0.0 }
0x2525   : > { %5388 = vadd.xlane.f32.xlu0 %v5387_v2  ;;  %v10034_v2 = vld [vmem:[%s7991_s19 + $0x68] sm:$0xff]  ;;  %s10525_s19 = smov 36  }
0x2529   : > { %5382 = vadd.xlane.f32.xlu0 %v5381_v59 }
0x252a   : > { %5546 = vrot.lane.b32.xlu1 %v9110_v30, %s10519_s20 }
0x252d   : > { %5391 = vadd.xlane.f32.xlu0 %v5390_v23  ;;  %v7685_v31 = vpop.eup %7684 }
0x252e   : > { %v10037_v9 = vmul.f32 %v10034_v2, %v7685_v31 }
0x2530   : > { %v5384_v26 = vsel %vm551_vm2, %v10037_v9, 0.0 }
0x2543   : > { %5544 = vrot.lane.b32.xlu0 %v8957_v62, %s10519_s20 }
0x2547   : > { %5534 = vrot.lane.b32.xlu0 %v8959_v15, %s10520_s15 }
0x254b   : > { %5538 = vrot.lane.b32.xlu0 %v9110_v30, %s10520_s15 }
0x254e   : > { %5385 = vadd.xlane.f32.xlu1 %v5384_v26 }
0x255f   : > { %5548 = vrot.lane.b32.xlu1 %v9108_v3, %s10519_s20 }
0x2563   : > { %5536 = vrot.lane.b32.xlu1 %v8957_v62, %s10520_s15 }
0x2567   : > { %5540 = vrot.lane.b32.xlu1 %v9108_v3, %s10520_s15 }
0x25a2   : > { %v5377_v56 = vpop.xlane.xlu1 %5376 }
0x25a3   : > { %v5395_v31 = vmax.f32 %v5377_v56, 1e-30 }
0x25a6   : > { %v5371_v59 = vpop.xlane.xlu1 %5370 }
0x25a7   : > { %v5393_v16 = vmax.f32 %v5371_v59, 1e-30 }
0x25aa   : > { %v5380_v23 = vpop.xlane.xlu0 %5379 }
0x25ab   : > { %v5396_v48 = vmax.f32 %v5380_v23, 1e-30 }
0x25ad   : > { %7686 = vrcp.f32 %v5396_v48 }
0x25ae   : > { %v5374_v14 = vpop.xlane.xlu0 %5373  ;;  %7688 = vrcp.f32 %v5393_v16 }
0x25af   : > { %v5394_v17 = vmax.f32 %v5374_v14, 1e-30  ;;  %7690 = vrcp.f32 %v5395_v31  ;;  %v5563_v14 = vsel %vm461_vm1, %v5543_v60, 0 }
0x25b1   : > { %7692 = vrcp.f32 %v5394_v17 }
0x25b2   : > { %v5389_v26 = vpop.xlane.xlu0 %5388 }
0x25b6   : > { %v5383_v41 = vpop.xlane.xlu0 %5382 }
0x25b7   : > { %v7687_v46 = vpop.eup %7686 }
0x25b8   : > { %v7689_v20 = vpop.eup %7688  ;;  %v5412_v27 = vmul.f32 %v7687_v46, %v5364_v6  ;;  %v5547_v6 = vpop.permute.xlu1 %5546 }
0x25b9   : > { %v7691_v40 = vpop.eup %7690  ;;  %v5409_v47 = vmul.f32 %v7689_v20, %v9986_v29 }
0x25ba   : > { %v5392_v36 = vpop.xlane.xlu0 %5391  ;;  %v5411_v59 = vmul.f32 %v7691_v40, %v9978_v52 }
0x25bb   : > { %v7693_v5 = vpop.eup %7692 }
0x25bc   : > { %v5410_v11 = vmul.f32 %v7693_v5, %v5362_v49  ;;  %v5418_v23 = vpack.c.bf16 %v5412_v27, %v5411_v59  ;;  %v5569_v5 = vsel %vm461_vm1, %v5547_v6, 0  ;;  %v5397_v27 = vmax.f32 %v5383_v41, 1e-30 }
0x25be   : > { %v5417_v56 = vpack.c.bf16 %v5410_v11, %v5409_v47  ;;  %v5545_v17 = vpop.permute.xlu0 %5544  ;;  %v5400_v11 = vmax.f32 %v5392_v36, 1e-30  ;;  %v5399_v47 = vmax.f32 %v5389_v26, 1e-30 }
0x25bf   : > { %v5566_v46 = vsel %vm461_vm1, %v5545_v17, 0 }
0x25c0   : > { %7023 = vmatprep.mubr.msk.bf16.mxu0 %vm551_vm2, %v5417_v56  ;;  %7694 = vrcp.f32 %v5400_v11 }
0x25c1   : > { %7024 = vmatmul.mubr.msk.bf16.vlgmr.msra.gmra.mrb[128].mxu0 %vm551_vm2, %v5418_v23  ;;  %7696 = vrcp.f32 %v5397_v27 }
0x25c2   : > { %7032 = vmatpush3.bf16.xpose.msra.mxu0 %v5563_v14  ;;  %7698 = vrcp.f32 %v5399_v47  ;;  %v5535_v23 = vpop.permute.xlu0 %5534 }
0x25c3   : > { %7136 = vmatprep.subr.msk.bf16.mxu0 %vm461_vm1, %v5545_v17 }
0x25c6   : > { %v5539_v17 = vpop.permute.xlu0 %5538 }
0x25ca   : > { %7034 = vmatpush3.bf16.xpose.msra.mxu0 %v5566_v46  ;;  %v7695_v49 = vpop.eup %7694 }
0x25cb   : > { %7137 = vmatprep.subr.msk.bf16.mxu0 %vm461_vm1, %v5547_v6  ;;  %v7697_v60 = vpop.eup %7696  ;;  %v5416_v36 = vmul.f32 %v7695_v49, %v10021_v54 }
0x25cc   : > { %v7699_v16 = vpop.eup %7698  ;;  %v5413_v41 = vmul.f32 %v7697_v60, %v10013_v37 }
0x25cd   : > { %v5415_v26 = vmul.f32 %v7699_v16, %v10005_v33 }
0x25cf   : > { %v5420_v56 = vpack.c.bf16 %v5416_v36, %v5415_v26 }
0x25d2   : > { %7036 = vmatpush3.bf16.xpose.msra.mxu0 %v5569_v5 }
0x25db   : > { %v5386_v20 = vpop.xlane.xlu1 %5385 }
0x25dc   : > { %v5398_v40 = vmax.f32 %v5386_v20, 1e-30 }
0x25de   : > { %7700 = vrcp.f32 %v5398_v40 }
0x25df   : > { %v5549_v52 = vpop.permute.xlu1 %5548 }
0x25e0   : > { %v5572_v29 = vsel %vm461_vm1, %v5549_v52, 0  ;;  %7138 = vmatprep.subr.msk.bf16.mxu0 %vm461_vm1, %v5549_v52 }
0x25e1   : > { %7038 = vmatpush3.bf16.xpose.msra.mxu0 %v5572_v29 }
0x25e3   : > { %v5537_v14 = vpop.permute.xlu1 %5536 }
0x25e7   : > { %v5541_v37 = vpop.permute.xlu1 %5540 }
0x25e8   : > { %v7701_v48 = vpop.eup %7700 }
0x25e9   : > { %v5414_v31 = vmul.f32 %v7701_v48, %v10037_v9 }
0x25eb   : > { %v5419_v59 = vpack.c.bf16 %v5414_v31, %v5413_v41 }
0x25ed   : > { %7027 = vmatprep.mubr.msk.bf16.mxu0 %vm551_vm2, %v5419_v59 }
0x25ee   : > { %7028 = vmatmul.mubr.msk.bf16.gmra.mrb[132].mxu0 %vm551_vm2, %v5420_v56 }
0x25ef   : > { %7039 = vmatprep.mubr.msk.bf16.mxu0 %vm461_vm1, %v5535_v23 }
0x25f6   : > { %7040 = vmatmul.mubr.msk.bf16.vlgmr.msra.gmra.mrb[136].mxu0 %vm461_vm1, %v5537_v14 }
0x25f7   : > { %7043 = vmatprep.mubr.msk.bf16.mxu0 %vm461_vm1, %v5539_v17 }
0x25fe   : > { %7044 = vmatmul.mubr.msk.bf16.gmra.mrb[140].mxu0 %vm461_vm1, %v5541_v37 }
0x2694   : > { %v10070_v54 = vpop.f32.mrb[128].mxu0 }
0x2695   : > { %v10072_v33 = vpop.f32.mrb[129].mxu0 }
0x2696   : > { %v10074_v9 = vpop.f32.mrb[130].mxu0 }
0x2697   : > { %v10078_v6 = vpop.f32.mrb[131].mxu0 }
0x26c1   : > { %v10082_v11 = vpop.f32.mrb[132].mxu0 }
0x26c2   : > { %10521 = vst [vmem:[#allocation23_spill] sm:$0xff] %v10082_v11  ;;  %v10084_v27 = vpop.f32.mrb[133].mxu0 }
0x26c3   : > { %10522 = vst [vmem:[#allocation21_spill] sm:$0xff] %v10084_v27  ;;  %v10086_v47 = vpop.f32.mrb[134].mxu0 }
0x26c4   : > { %10523 = vst [vmem:[#allocation28_spill] sm:$0xff] %v10086_v47  ;;  %v10090_v40 = vpop.f32.mrb[135].mxu0 }
0x26c5   : > { %10524 = vst [vmem:[#allocation26_spill] sm:$0xff] %v10090_v40 }
0x26c9   : > { %v7041_v29 = vpop.f32.mrb[136].mxu0 }
0x26ca   : > { %v5608_v49 = vpop.f32.mrb[137].mxu0  ;;  %v5645_v41 = vsel %vm551_vm2, %v7041_v29, -inf }
0x26cb   : > { %v7042_v60 = vpop.f32.mrb[138].mxu0  ;;  %v5639_v16 = vsel %vm551_vm2, %v5608_v49, -inf }
0x26cc   : > { %5640 = vmax.xlane.f32.xlu0 %v5639_v16  ;;  %v5611_v48 = vpop.f32.mrb[139].mxu0  ;;  %v5648_v56 = vsel %vm551_vm2, %v7042_v60, -inf }
0x26cd   : > { %v5642_v36 = vsel %vm551_vm2, %v5611_v48, -inf }
0x26ce   : > { %5643 = vmax.xlane.f32.xlu1 %v5642_v36 }
0x26d0   : > { %5646 = vmax.xlane.f32.xlu0 %v5645_v41 }
0x26d1   : > { %v7045_v31 = vpop.f32.mrb[140].mxu0 }
0x26d2   : > { %v5624_v26 = vpop.f32.mrb[141].mxu0  ;;  %v5657_v37 = vsel %vm551_vm2, %v7045_v31, -inf }
0x26d3   : > { %v7046_v59 = vpop.f32.mrb[142].mxu0  ;;  %v5651_v23 = vsel %vm551_vm2, %v5624_v26, -inf }
0x26d4   : > { %5649 = vmax.xlane.f32.xlu0 %v5648_v56  ;;  %5652 = vmax.xlane.f32.xlu1 %v5651_v23  ;;  %v5627_v14 = vpop.f32.mrb[143].mxu0  ;;  %v5660_v16 = vsel %vm551_vm2, %v7046_v59, -inf }
0x26d5   : > { %v5654_v17 = vsel %vm551_vm2, %v5627_v14, -inf }
0x26d8   : > { %5658 = vmax.xlane.f32.xlu1 %v5657_v37  ;;  %5655 = vmax.xlane.f32.xlu0 %v5654_v17 }
0x26dc   : > { %5661 = vmax.xlane.f32.xlu0 %v5660_v16 }
0x26e9   : > { %5747 = vrot.lane.b32.xlu1 %v8959_v15, %s10525_s19 }
0x2759   : > { %v5641_v36 = vpop.xlane.xlu0 %5640 }
0x275a   : > { %v5663_v41 = vsub.f32 %v5608_v49, %v5641_v36 }
0x275b   : > { %v5644_v52 = vpop.xlane.xlu1 %5643 }
0x275c   : > { %v5671_v20 = vmul.f32 1.442695, %v5663_v41  ;;  %v5664_v56 = vsub.f32 %v5611_v48, %v5644_v52 }
0x275d   : > { %v5647_v5 = vpop.xlane.xlu0 %5646 }
0x275e   : > { %v5665_v23 = vsub.f32 %v7041_v29, %v5647_v5  ;;  %7702 = vpow2.f32 %v5671_v20  ;;  %v5673_v11 = vmul.f32 1.442695, %v5664_v56 }
0x2760   : > { %v5675_v46 = vmul.f32 1.442695, %v5665_v23 }
0x2761   : > { %v5653_v27 = vpop.xlane.xlu1 %5652  ;;  %v5650_v40 = vpop.xlane.xlu0 %5649 }
0x2762   : > { %7704 = vpow2.f32 %v5675_v46  ;;  %v5667_v17 = vsub.f32 %v5624_v26, %v5653_v27  ;;  %v5666_v37 = vsub.f32 %v7042_v60, %v5650_v40 }
0x2763   : > { %7706 = vpow2.f32 %v5673_v11 }
0x2764   : > { %v5677_v47 = vmul.f32 1.442695, %v5666_v37  ;;  %v5679_v16 = vmul.f32 1.442695, %v5667_v17 }
0x2765   : > { %v5659_v18 = vpop.xlane.xlu1 %5658  ;;  %v5656_v42 = vpop.xlane.xlu0 %5655 }
0x2766   : > { %v5669_v15 = vsub.f32 %v7045_v31, %v5659_v18  ;;  %7708 = vpow2.f32 %v5677_v47  ;;  %v5668_v49 = vsub.f32 %v5627_v14, %v5656_v42 }
0x2767   : > { %7710 = vpow2.f32 %v5679_v16 }
0x2768   : > { %v5683_v36 = vmul.f32 1.442695, %v5669_v15  ;;  %v7703_v29 = vpop.eup %7702  ;;  %v5681_v48 = vmul.f32 1.442695, %v5668_v49  ;;  %v10560_v49 = vld [vmem:[#allocation18_spill] sm:$0xff] }
0x2769   : > { %v5748_v52 = vpop.permute.xlu1 %5747  ;;  %v5662_v5 = vpop.xlane.xlu0 %5661  ;;  %v10110_v42 = vmul.f32 %v9983_v38, %v7703_v29 }
0x276a   : > { %7712 = vpow2.f32 %v5683_v36  ;;  %v5670_v20 = vsub.f32 %v7046_v59, %v5662_v5  ;;  %7047 = vmatprep.subr.bf16.mxu1 %v5748_v52  ;;  %v10561_v36 = vld [vmem:[#allocation13_spill] sm:$0xff]  ;;  %v10563_v5 = vld [vmem:[#allocation22_spill] sm:$0xff] }
0x276b   : > { %7048 = vmatpush3.bf16.msra.mxu1 %v5748_v52  ;;  %v5695_v26 = vsel %vm551_vm2, %v10110_v42, 0.0  ;;  %v10562_v52 = vpack.c.bf16 %v10560_v49, %v10561_v36 }
0x276c   : > { %v7705_v46 = vpop.eup %7704  ;;  %v5685_v27 = vmul.f32 1.442695, %v5670_v20  ;;  %v10564_v20 = vld [vmem:[#allocation17_spill] sm:$0xff] }
0x276d   : > { %v10105_v40 = vmul.f32 %v9975_v24, %v7705_v46  ;;  %v7707_v11 = vpop.eup %7706  ;;  %v10565_v29 = vpack.c.bf16 %v10563_v5, %v10564_v20 }
0x276e   : > { %7714 = vpow2.f32 %v5685_v27  ;;  %v10120_v14 = vmul.f32 %v9996_v55, %v7707_v11 }
0x276f   : > { %7716 = vpow2.f32 %v5681_v48  ;;  %v5701_v18 = vsel %vm551_vm2, %v10105_v40, 0.0 }
0x2770   : > { %5702 = vadd.xlane.f32.xlu1 %v5701_v18  ;;  %v7709_v47 = vpop.eup %7708  ;;  %v5698_v23 = vsel %vm551_vm2, %v10120_v14, 0.0 }
0x2771   : > { %v10113_v60 = vmul.f32 %v9991_v34, %v7709_v47  ;;  %v7711_v31 = vpop.eup %7710 }
0x2772   : > { %v10128_v41 = vmul.f32 %v10010_v13, %v7711_v31 }
0x2773   : > { %v5704_v59 = vsel %vm551_vm2, %v10113_v60, 0.0 }
0x2774   : > { %v7713_v24 = vpop.eup %7712  ;;  %5696 = vadd.xlane.f32.xlu1 %v5695_v26  ;;  %5705 = vadd.xlane.f32.xlu0 %v5704_v59 }
0x2775   : > { %v10123_v38 = vmul.f32 %v10002_v10, %v7713_v24  ;;  %v5707_v10 = vsel %vm551_vm2, %v10128_v41, 0.0 }
0x2777   : > { %v5713_v34 = vsel %vm551_vm2, %v10123_v38, 0.0 }
0x2778   : > { %v7715_v56 = vpop.eup %7714  ;;  %5714 = vadd.xlane.f32.xlu1 %v5713_v34  ;;  %5699 = vadd.xlane.f32.xlu0 %v5698_v23 }
0x2779   : > { %v7717_v17 = vpop.eup %7716  ;;  %v10133_v55 = vmul.f32 %v10018_v53, %v7715_v56  ;;  %v10527_v53 = vpack.c.bf16 %v9440_v28, %v9436_v32  ;;  %v10531_v32 = vpack.c.bf16 %v9560_v44, %v9554_v50  ;;  %v10534_v28 = vpack.c.bf16 %v9931_v51, %v9927_v4  ;;  %v10552_v51 = vld [vmem:[#allocation15_spill] sm:$0xff] }
0x277a   : > { %v10140_v13 = vmul.f32 %v10034_v2, %v7717_v17  ;;  %v10528_v2 = vpack.c.bf16 %v9556_v45, %v9552_v25  ;;  %v10536_v25 = vpack.c.bf16 %v10074_v9, %v10070_v54  ;;  %v10537_v50 = vpack.c.bf16 %v9935_v7, %v9929_v12  ;;  %v10551_v12 = vld [vmem:[#allocation20_spill] sm:$0xff]  ;;  %v10554_v7 = vld [vmem:[#allocation14_spill] sm:$0xff]  ;;  %v10555_v54 = vld [vmem:[#allocation9_spill] sm:$0xff] }
0x277b   : > { %v5716_v37 = vsel %vm551_vm2, %v10133_v55, 0.0  ;;  %v10538_v45 = vpack.c.bf16 %v9452_v57, %v9448_v58  ;;  %v10539_v44 = vpack.c.bf16 %v10078_v6, %v10072_v33  ;;  %v10548_v57 = vld [vmem:[#allocation10_spill] sm:$0xff]  ;;  %v10556_v33 = vpack.c.bf16 %v10554_v7, %v10555_v54  ;;  %v10557_v9 = vld [vmem:[#allocation24_spill] sm:$0xff]  ;;  %v10558_v6 = vld [vmem:[#allocation19_spill] sm:$0xff] }
0x277c   : > { %5708 = vadd.xlane.f32.xlu1 %v5707_v10  ;;  %5717 = vadd.xlane.f32.xlu0 %v5716_v37  ;;  %v5710_v16 = vsel %vm551_vm2, %v10140_v13, 0.0  ;;  %v10559_v15 = vpack.c.bf16 %v10557_v9, %v10558_v6 }
0x2780   : > { %5711 = vadd.xlane.f32.xlu0 %v5710_v16 }
0x278d   : > { %5751 = vrot.lane.b32.xlu1 %v9110_v30, %s10525_s19  ;;  %v10529_v30 = vpack.c.bf16 %v9444_v19, %v9438_v39  ;;  %v10533_v39 = vpack.c.bf16 %v9703_v43, %v9697_v61  ;;  %v10535_v19 = vpack.c.bf16 %v9819_v1, %v9813_v8  ;;  %v10543_v43 = vld [vmem:[#allocation6_spill] sm:$0xff]  ;;  %v10545_v8 = vld [vmem:[#allocation16_spill] sm:$0xff] }
0x278e   : > { %v10549_v1 = vld [vmem:[#allocation12_spill] sm:$0xff] }
0x278f   : > { %v10550_v4 = vpack.c.bf16 %v10548_v57, %v10549_v1  ;;  %v7770_v1 = vld [vmem:[%s10336_s4 + $0x8] sm:$0xff]  }
0x2791   : > { %5753 = vrot.lane.b32.xlu1 %v9108_v3, %s10525_s19  ;;  %v10530_v3 = vpack.c.bf16 %v9699_v22, %v9695_v63  ;;  %v10540_v63 = vld [vmem:[#allocation7_spill] sm:$0xff]  ;;  %v10542_v22 = vld [vmem:[#allocation8_spill] sm:$0xff] }
0x2792   : > { %v10541_v61 = vpack.c.bf16 %v9568_v21, %v10540_v63  ;;  %v10553_v21 = vpack.c.bf16 %v10551_v12, %v10552_v51 }
0x2795   : > { %3890 = vrot.lane.b32.xlu1 %v10527_v53, %s10526_s8 }
0x2796   : > { %5749 = vrot.lane.b32.xlu0 %v8957_v62, %s10525_s19  ;;  %v10532_v62 = vpack.c.bf16 %v9815_v35, %v9811_v0  ;;  %v10544_v0 = vpack.c.bf16 %v10542_v22, %v10543_v43  ;;  %v10546_v35 = vld [vmem:[#allocation11_spill] sm:$0xff] }
0x2797   : > { %v10547_v58 = vpack.c.bf16 %v10545_v8, %v10546_v35 }
0x2799   : > { %4216 = vrot.lane.b32.xlu1 %v10528_v2, %s7865_s28 }
0x279a   : > { %3888 = vrot.lane.b32.xlu0 %v10529_v30, %s10526_s8 }
0x279d   : > { %4542 = vrot.lane.b32.xlu1 %v10530_v3, %s7866_s24 }
0x279e   : > { %4214 = vrot.lane.b32.xlu0 %v10531_v32, %s7865_s28 }
0x27a1   : > { %4868 = vrot.lane.b32.xlu1 %v10532_v62, %s7867_s30 }
0x27a2   : > { %4540 = vrot.lane.b32.xlu0 %v10533_v39, %s7866_s24 }
0x27a5   : > { %5194 = vrot.lane.b32.xlu1 %v10534_v28, %s7868_s27 }
0x27a6   : > { %4866 = vrot.lane.b32.xlu0 %v10535_v19, %s7867_s30 }
0x27a9   : > { %5520 = vrot.lane.b32.xlu1 %v10536_v25, %s7869_s21 }
0x27aa   : > { %5192 = vrot.lane.b32.xlu0 %v10537_v50, %s7868_s27 }
0x27ad   : > { %3894 = vrot.lane.b32.xlu1 %v10538_v45, %s10526_s8 }
0x27ae   : > { %5518 = vrot.lane.b32.xlu0 %v10539_v44, %s7869_s21 }
0x27b1   : > { %4220 = vrot.lane.b32.xlu1 %v10541_v61, %s7865_s28 }
0x27b2   : > { %3892 = vrot.lane.b32.xlu0 %v10544_v0, %s10526_s8 }
0x27b5   : > { %4546 = vrot.lane.b32.xlu1 %v10547_v58, %s7866_s24 }
0x27b6   : > { %4218 = vrot.lane.b32.xlu0 %v10550_v4, %s7865_s28 }
0x27b9   : > { %4872 = vrot.lane.b32.xlu1 %v10553_v21, %s7867_s30 }
0x27ba   : > { %4544 = vrot.lane.b32.xlu0 %v10556_v33, %s7866_s24 }
0x27bd   : > { %5198 = vrot.lane.b32.xlu1 %v10559_v15, %s7868_s27 }
0x27be   : > { %4870 = vrot.lane.b32.xlu0 %v10562_v52, %s7867_s30 }
0x27c2   : > { %5196 = vrot.lane.b32.xlu0 %v10565_v29, %s7868_s27 }
0x27fd   : > { %v5703_v48 = vpop.xlane.xlu1 %5702 }
0x27fe   : > { %v5721_v59 = vmax.f32 %v5703_v48, 1e-30 }
0x2801   : > { %v5697_v46 = vpop.xlane.xlu1 %5696  ;;  %v5706_v27 = vpop.xlane.xlu0 %5705 }
0x2802   : > { %v5719_v18 = vmax.f32 %v5697_v46, 1e-30  ;;  %v5722_v26 = vmax.f32 %v5706_v27, 1e-30 }
0x2804   : > { %7718 = vrcp.f32 %v5719_v18 }
0x2805   : > { %v5715_v11 = vpop.xlane.xlu1 %5714  ;;  %v5700_v47 = vpop.xlane.xlu0 %5699 }
0x2806   : > { %v5720_v31 = vmax.f32 %v5700_v47, 1e-30  ;;  %v5725_v2 = vmax.f32 %v5715_v11, 1e-30 }
0x2808   : > { %7720 = vrcp.f32 %v5720_v31  ;;  %v10567_v31 = vld [vmem:[#allocation28_spill] sm:$0xff] }
0x2809   : > { %v5709_v24 = vpop.xlane.xlu1 %5708  ;;  %v5718_v34 = vpop.xlane.xlu0 %5717  ;;  %7722 = vrcp.f32 %v5722_v26  ;;  %v10568_v26 = vld [vmem:[#allocation23_spill] sm:$0xff] }
0x280a   : > { %v5723_v56 = vmax.f32 %v5709_v24, 1e-30  ;;  %7724 = vrcp.f32 %v5721_v59  ;;  %v5726_v37 = vmax.f32 %v5718_v34, 1e-30  ;;  %v10569_v24 = vpack.c.bf16 %v10567_v31, %v10568_v26  ;;  %v10570_v34 = vld [vmem:[#allocation26_spill] sm:$0xff] }
0x280c   : > { %7726 = vrcp.f32 %v5723_v56  ;;  %v10571_v56 = vld [vmem:[#allocation21_spill] sm:$0xff] }
0x280d   : > { %v5752_v23 = vpop.permute.xlu1 %5751  ;;  %v5712_v17 = vpop.xlane.xlu0 %5711 }
0x280e   : > { %v5724_v10 = vmax.f32 %v5712_v17, 1e-30  ;;  %v7719_v16 = vpop.eup %7718 }
0x280f   : > { %v5735_v32 = vmul.f32 %v7719_v16, %v10110_v42 }
0x2810   : > { %7728 = vrcp.f32 %v5724_v10 }
0x2811   : > { %v5754_v53 = vpop.permute.xlu1 %5753  ;;  %v5750_v30 = vpop.permute.xlu0 %5749  ;;  %7730 = vrcp.f32 %v5726_v37 }
0x2812   : > { %v7721_v3 = vpop.eup %7720  ;;  %7049 = vmatprep.subr.bf16.mxu1 %v5750_v30  ;;  %7732 = vrcp.f32 %v5725_v2 }
0x2813   : > { %7050 = vmatpush3.bf16.msra.mxu1 %v5750_v30  ;;  %v5736_v62 = vmul.f32 %v7721_v3, %v10120_v14  ;;  %v7723_v28 = vpop.eup %7722 }
0x2814   : > { %7051 = vmatprep.subr.bf16.mxu1 %v5752_v23  ;;  %v7725_v50 = vpop.eup %7724  ;;  %v5738_v44 = vmul.f32 %v7723_v28, %v10113_v60  ;;  %v7769_v60 = vld [vmem:[%s10336_s4] sm:$0xff]  }
0x2815   : > { %v3891_v39 = vpop.permute.xlu1 %3890  ;;  %v3889_v19 = vpop.permute.xlu0 %3888  ;;  %v5743_v25 = vpack.c.bf16 %v5736_v62, %v5735_v32  ;;  %v5737_v61 = vmul.f32 %v7725_v50, %v10105_v40 }
0x2816   : > { %3901 = vst.msk [vmem:[#allocation2 + $0x8] sm:$0xff] %vm1079_vm3, %v3891_v39  ;;  %3900 = vst.msk [vmem:[#allocation2] sm:$0xff] %vm1079_vm3, %v3889_v19  ;;  %v7727_v45 = vpop.eup %7726 }
0x2817   : > { %7052 = vmatpush3.bf16.msra.mxu1 %v5752_v23  ;;  %7055 = vmatprep.mubr.msk.bf16.mxu1 %vm551_vm2, %v5743_v25  ;;  %v5739_v22 = vmul.f32 %v7727_v45, %v10128_v41  ;;  %v5744_v0 = vpack.c.bf16 %v5738_v44, %v5737_v61  ;;  %v10572_v23 = vpack.c.bf16 %v10570_v34, %v10571_v56  ;;  %v7771_v45 = vld [vmem:[%s10337_s5] ss:$0 sm:$0xff] }
0x2818   : > { %7053 = vmatprep.subr.bf16.mxu1 %v5754_v53 }
0x2819   : > { %v4217_v42 = vpop.permute.xlu1 %4216  ;;  %v4215_v14 = vpop.permute.xlu0 %4214 }
0x281a   : > { %4227 = vst.msk [vmem:[#allocation2 + $0x8] sm:$0xff] %vm1406_vm4, %v4217_v42  ;;  %v7729_v63 = vpop.eup %7728  ;;  %4226 = vst.msk [vmem:[#allocation2] sm:$0xff] %vm1406_vm4, %v4215_v14 }
0x281b   : > { %7054 = vmatpush3.bf16.msra.mxu1 %v5754_v53  ;;  %v5740_v43 = vmul.f32 %v7729_v63, %v10140_v13  ;;  %v7731_v35 = vpop.eup %7730 }
0x281c   : > { %7063 = vmatprep.subr.bf16.mxu1 %v7769_v60  ;;  %v7733_v40 = vpop.eup %7732  ;;  %v5742_v13 = vmul.f32 %v7731_v35, %v10133_v55 }
0x281d   : > { %v4543_v8 = vpop.permute.xlu1 %4542  ;;  %v4541_v58 = vpop.permute.xlu0 %4540  ;;  %v5745_v57 = vpack.c.bf16 %v5740_v43, %v5739_v22  ;;  %v5741_v12 = vmul.f32 %v7733_v40, %v10123_v38 }
0x281e   : > { %4553 = vst.msk [vmem:[#allocation2 + $0x8] sm:$0xff] %vm1733_vm5, %v4543_v8  ;;  %4552 = vst.msk [vmem:[#allocation2] sm:$0xff] %vm1733_vm5, %v4541_v58  ;;  %7056 = vmatmul.mubr.msk.bf16.vlgmr.msra.gmra.mrb[128].mxu1 %vm551_vm2, %v5744_v0 }
0x281f   : > { %7059 = vmatprep.mubr.msk.bf16.mxu1 %vm551_vm2, %v5745_v57  ;;  %7064 = vmatpush3.bf16.msra.mxu1 %v7769_v60  ;;  %v5746_v21 = vpack.c.bf16 %v5742_v13, %v5741_v12 }
0x2820   : > { %7065 = vmatprep.subr.bf16.mxu1 %v7770_v1 }
0x2821   : > { %v4869_v41 = vpop.permute.xlu1 %4868  ;;  %v4867_v4 = vpop.permute.xlu0 %4866 }
0x2822   : > { %4879 = vst.msk [vmem:[#allocation2 + $0x8] sm:$0xff] %vm2060_vm6, %v4869_v41  ;;  %4878 = vst.msk [vmem:[#allocation2] sm:$0xff] %vm2060_vm6, %v4867_v4 }
0x2823   : > { %7066 = vmatpush3.bf16.msra.mxu1 %v7770_v1 }
0x2825   : > { %v5195_v51 = vpop.permute.xlu1 %5194  ;;  %v5193_v7 = vpop.permute.xlu0 %5192 }
0x2826   : > { %5205 = vst.msk [vmem:[#allocation2 + $0x8] sm:$0xff] %vm2387_vm7, %v5195_v51  ;;  %5204 = vst.msk [vmem:[#allocation2] sm:$0xff] %vm2387_vm7, %v5193_v7  ;;  %7060 = vmatmul.mubr.msk.bf16.gmra.mrb[132].mxu1 %vm551_vm2, %v5746_v21 }
0x2829   : > { %v5521_v55 = vpop.permute.xlu1 %5520  ;;  %v5519_v54 = vpop.permute.xlu0 %5518 }
0x282a   : > { %5531 = vst.msk [vmem:[#allocation2 + $0x8] sm:$0xff] %vm2714_vm8, %v5521_v55  ;;  %5530 = vst.msk [vmem:[#allocation2] sm:$0xff] %vm2714_vm8, %v5519_v54 }
0x282d   : > { %v3895_v33 = vpop.permute.xlu1 %3894  ;;  %v3893_v38 = vpop.permute.xlu0 %3892 }
0x282e   : > { %3903 = vst.msk [vmem:[#allocation2 + $0x18] sm:$0xff] %vm1079_vm3, %v3895_v33  ;;  %3902 = vst.msk [vmem:[#allocation2 + $0x10] sm:$0xff] %vm1079_vm3, %v3893_v38 }
0x2831   : > { %v4221_v9 = vpop.permute.xlu1 %4220  ;;  %v4219_v6 = vpop.permute.xlu0 %4218 }
0x2832   : > { %4229 = vst.msk [vmem:[#allocation2 + $0x18] sm:$0xff] %vm1406_vm4, %v4221_v9  ;;  %4228 = vst.msk [vmem:[#allocation2 + $0x10] sm:$0xff] %vm1406_vm4, %v4219_v6 }
0x2835   : > { %v4547_v15 = vpop.permute.xlu1 %4546  ;;  %v4545_v49 = vpop.permute.xlu0 %4544 }
0x2836   : > { %4555 = vst.msk [vmem:[#allocation2 + $0x18] sm:$0xff] %vm1733_vm5, %v4547_v15  ;;  %4554 = vst.msk [vmem:[#allocation2 + $0x10] sm:$0xff] %vm1733_vm5, %v4545_v49 }
0x2839   : > { %v4873_v36 = vpop.permute.xlu1 %4872  ;;  %v4871_v52 = vpop.permute.xlu0 %4870 }
0x283a   : > { %4881 = vst.msk [vmem:[#allocation2 + $0x18] sm:$0xff] %vm2060_vm6, %v4873_v36  ;;  %4880 = vst.msk [vmem:[#allocation2 + $0x10] sm:$0xff] %vm2060_vm6, %v4871_v52 }
0x283d   : > { %v5199_v5 = vpop.permute.xlu1 %5198  ;;  %v5197_v20 = vpop.permute.xlu0 %5196 }
0x283e   : > { %5207 = vst.msk [vmem:[#allocation2 + $0x18] sm:$0xff] %vm2387_vm7, %v5199_v5  ;;  %5206 = vst.msk [vmem:[#allocation2 + $0x10] sm:$0xff] %vm2387_vm7, %v5197_v20 }
0x28f1   : > { %v7057_v29 = vpop.f32.mrb[128].mxu1 }
0x28f2   : > { %v5805_v48 = vpop.f32.mrb[129].mxu1 }
0x28f3   : > { %v7058_v46 = vpop.f32.mrb[130].mxu1 }
0x28f4   : > { %v5837_v27 = vpack.c.bf16 %v7058_v46, %v7057_v29  ;;  %v5808_v18 = vpop.f32.mrb[131].mxu1 }
0x28f5   : > { %v5836_v11 = vpack.c.bf16 %v5808_v18, %v5805_v48 }
0x28f6   : > { %5846 = vrot.lane.b32.xlu1 %v5837_v27, %s10566_s9 }
0x28f7   : > { %5844 = vrot.lane.b32.xlu0 %v5836_v11, %s10566_s9 }
0x28f9   : > { %v7061_v47 = vpop.f32.mrb[132].mxu1 }
0x28fa   : > { %5524 = vrot.lane.b32.xlu1 %v10569_v24, %s7869_s21  ;;  %v5821_v59 = vpop.f32.mrb[133].mxu1 }
0x28fb   : > { %5522 = vrot.lane.b32.xlu0 %v10572_v23, %s7869_s21  ;;  %v7062_v17 = vpop.f32.mrb[134].mxu1 }
0x28fc   : > { %v5839_v10 = vpack.c.bf16 %v7062_v17, %v7061_v47  ;;  %v5824_v37 = vpop.f32.mrb[135].mxu1 }
0x28fd   : > { %v5838_v16 = vpack.c.bf16 %v5824_v37, %v5821_v59 }
0x28fe   : > { %5850 = vrot.lane.b32.xlu1 %v5839_v10, %s10566_s9 }
0x28ff   : > { %5848 = vrot.lane.b32.xlu0 %v5838_v16, %s10566_s9 }
0x2968   : > { %v5847_v53 = vpop.permute.xlu1 %5846 }
0x2969   : > { %5857 = vst.msk [vmem:[#allocation2 + $0x8] sm:$0xff] %vm3041_vm9, %v5847_v53  ;;  %v5845_v2 = vpop.permute.xlu0 %5844 }
0x296a   : > { %5856 = vst.msk [vmem:[#allocation2] sm:$0xff] %vm3041_vm9, %v5845_v2 }
0x296c   : > { %v5525_v30 = vpop.permute.xlu1 %5524 }
0x296d   : > { %5533 = vst.msk [vmem:[#allocation2 + $0x18] sm:$0xff] %vm2714_vm8, %v5525_v30  ;;  %v5523_v3 = vpop.permute.xlu0 %5522 }
0x296e   : > { %5532 = vst.msk [vmem:[#allocation2 + $0x10] sm:$0xff] %vm2714_vm8, %v5523_v3 }
0x2970   : > { %v5851_v32 = vpop.permute.xlu1 %5850  ;;  %v5861_v28 = vld [vmem:[#allocation2 + $0x8] sm:$0xff] }
0x2971   : > { %5859 = vst.msk [vmem:[#allocation2 + $0x18] sm:$0xff] %vm3041_vm9, %v5851_v32  ;;  %v5849_v62 = vpop.permute.xlu0 %5848  ;;  %v5860_v39 = vld [vmem:[#allocation2] sm:$0xff] }
0x2972   : > { %5858 = vst.msk [vmem:[#allocation2 + $0x10] sm:$0xff] %vm3041_vm9, %v5849_v62  ;;  %7067 = vmatprep.mubr.msk.bf16.mxu1 %vm367_vm0, %v5860_v39 }
0x2973   : > { %7068 = vmatmul.mubr.msk.bf16.vlgmr.msra.gmra.mrb[136].mxu1 %vm367_vm0, %v5861_v28 }
0x2978   : > { %v5863_v25 = vld [vmem:[#allocation2 + $0x18] sm:$0xff] }
0x2979   : > { %v5862_v19 = vld [vmem:[#allocation2 + $0x10] sm:$0xff] }
0x297a   : > { %7071 = vmatprep.mubr.msk.bf16.mxu1 %vm367_vm0, %v5862_v19 }
0x297b   : > { %7072 = vmatmul.mubr.msk.bf16.gmra.mrb[140].mxu1 %vm367_vm0, %v5863_v25 }
0x2a46   : > { %v7069_v50 = vpop.f32.mrb[136].mxu1 }
0x2a47   : > { %v5919_v44 = vadd.f32 %v7771_v45, %v7069_v50  ;;  %v5910_v42 = vpop.f32.mrb[137].mxu1 }
0x2a48   : > { %v5911_v14 = vadd.f32 %v7771_v45, %v5910_v42  ;;  %v7070_v63 = vpop.f32.mrb[138].mxu1 }
0x2a49   : > { %6223 = vst.msk [vmem:[%s9206_s12 + $0x50] sm:$0xff] %vm367_vm0, %v5919_v44  ;;  %v5922_v61 = vadd.f32 %v7771_v45, %v7070_v63  ;;  %v5913_v22 = vpop.f32.mrb[139].mxu1 }
0x2a4a   : > { %6221 = vst.msk [vmem:[%s9206_s12 + $0x40] sm:$0xff] %vm367_vm0, %v5911_v14  ;;  %v5914_v43 = vadd.f32 %v7771_v45, %v5913_v22 }
0x2a4b   : > { %6224 = vst.msk [vmem:[%s9206_s12 + $0x58] sm:$0xff] %vm367_vm0, %v5922_v61 }
0x2a4c   : > { %6222 = vst.msk [vmem:[%s9206_s12 + $0x48] sm:$0xff] %vm367_vm0, %v5914_v43 }
0x2a4e   : > { %v7073_v0 = vpop.f32.mrb[140].mxu1 }
0x2a4f   : > { %v5935_v8 = vadd.f32 %v7771_v45, %v7073_v0  ;;  %v5926_v60 = vpop.f32.mrb[141].mxu1 }
0x2a50   : > { %v5927_v35 = vadd.f32 %v7771_v45, %v5926_v60  ;;  %v7074_v58 = vpop.f32.mrb[142].mxu1 }
0x2a51   : > { %6227 = vst.msk [vmem:[%s9206_s12 + $0x70] sm:$0xff] %vm367_vm0, %v5935_v8  ;;  %v5938_v57 = vadd.f32 %v7771_v45, %v7074_v58  ;;  %v5929_v40 = vpop.f32.mrb[143].mxu1 }
0x2a52   : > { %6225 = vst.msk [vmem:[%s9206_s12 + $0x60] sm:$0xff] %vm367_vm0, %v5927_v35  ;;  %v5930_v41 = vadd.f32 %v7771_v45, %v5929_v40 }
0x2a53   : > { %6228 = vst.msk [vmem:[%s9206_s12 + $0x78] sm:$0xff] %vm367_vm0, %v5938_v57 }
0x2a54   : > { %6226 = vst.msk [vmem:[%s9206_s12 + $0x68] sm:$0xff] %vm367_vm0, %v5930_v41 }
0x2a55 PF: > { %p16_p7 = scmp.ge.s32.totalorder %s7926_s26, 6   ;;  %s10573_s21 = smov %s7828_s22 }
0x2a56   : > { %s10574_s22 = smov %s7832_s23  ;;  %s10575_s23 = smov %s7936_s29 }
0x2a57   : > { %s10576_s24 = smov %s7926_s26  ;;  %18 = sbr.rel (!%p16_p7) target bundleno = 3 (0x3), region = 90 }
0x2a5e   :  { %5974 = vsyncpa [#allocation4], 1 }
0x2a5f   :  { %5976 = vsyncpa [#allocation4 + $0x1], 1 }

</bundles_post_ra>
